<compile_context>
chip_gen: v7x
topology: tpu7x:2x2x1
jax: 0.10.0
libtpu: 0.0.40
codegen_flags: <defaults>
</compile_context>

<pallas_src>
import math

import jax
import jax.numpy as jnp
from jax.experimental import pallas as pl
from jax.experimental.pallas import tpu as pltpu

# ----------------------------- model dims -----------------------------------
N_NODES = 16
IN_DIM = 16
HIDDEN = 32
OUT_DIM = 32          # hidden_dim == out_dim (standard config)
N_HEADS = 4
DK = OUT_DIM // N_HEADS
N_LAYERS = 2
N_CLASSES = 4
PAD_CLASSES = 128     # lane-dense padded logits; sliced back in the wrapper
POS_ENC_DIM = 8
LN_EPS = 1e-5
BATCH = 8             # graphs per call; BATCH * N_NODES == 128 folded rows
N_TOT = BATCH * N_NODES


def _layer_norm(x, gamma, beta):
    mu = jnp.mean(x, axis=-1, keepdims=True)
    var = jnp.mean((x - mu) ** 2, axis=-1, keepdims=True)
    return (x - mu) * jax.lax.rsqrt(var + LN_EPS) * gamma + beta


# ------------------------------ Pallas kernel --------------------------------
def graph_transformer_kernel(
    adj_ref, hx_ref,
    w_emb_ref, b_emb_ref,
    wq_ref, wk_ref, wv_ref, wo_ref, bo_ref,
    ln1g_ref, ln1b_ref,
    wf1_ref, bf1_ref, wf2_ref, bf2_ref,
    ln2g_ref, ln2b_ref,
    wr0_ref, br0_ref, wr1_ref, br1_ref, wr2_ref, br2_ref,
    out_ref,
):
    adj = adj_ref[...]                                  # (128,128) block-diag mask, adj[dst,src]

    # Fused embedding_h + lap positional-encoding embedding:
    #   x = [h | lap] @ [w_emb ; w_lap] + (b_emb + b_lap)
    # wl_pos_enc disabled in this config; in_feat_dropout = identity (eval).
    x = (jnp.dot(hx_ref[...], w_emb_ref[...], preferred_element_type=jnp.float32)
         + b_emb_ref[...])                              # (128, 32)

    scale = 1.0 / math.sqrt(DK)
    for l in range(N_LAYERS):                           # GraphTransformerLayer x L
        x_in1 = x

        # Transpose-free head-major projections. Each is ONE dot_general whose
        # natural output order matches the einsum output -> no relayout, and
        # the 128-wide node axis sits on lanes (lane-dense vregs).
        q = jnp.einsum('hcd,nc->hdn', wq_ref[l], x,
                       preferred_element_type=jnp.float32)            # (H, DK, 128)
        k = jnp.einsum('hcd,mc->hdm', wk_ref[l], x,
                       preferred_element_type=jnp.float32)            # (H, DK, 128)
        v = jnp.einsum('hcd,mc->hdm', wv_ref[l], x,
                       preferred_element_type=jnp.float32)            # (H, DK, 128)

        # score[h, dst, src] = <Q_h[dst], K_h[src]> / sqrt(dk)   (src_dot_dst)
        score = jnp.einsum('hdn,hdm->hnm', q, k,
                           preferred_element_type=jnp.float32) * scale  # (H,128,128)
        # scaled_exp with clamp(-5, 5), masked to (block-diagonal) graph edges
        e = jnp.exp(jnp.clip(score, -5.0, 5.0)) * adj[None, :, :]
        z = jnp.sum(e, axis=-1, keepdims=True) + 1e-6                 # (H, 128, 1)
        wv_out = jnp.einsum('hnm,hdm->hnd', e, v,
                            preferred_element_type=jnp.float32)       # (H, 128, DK)

        # EUP approx reciprocal + one Newton step (full f32 accuracy, off the
        # VPU divide path).
        r = pl.reciprocal(z, approx=True)
        r = r * (2.0 - z * r)
        attn = wv_out * r

        # Head combine: concat(heads) @ Wo  ==  sum_h head_h @ Wo_h
        h_attn = jnp.sum(
            jnp.einsum('hnd,hdo->hno', attn, wo_ref[l],
                       preferred_element_type=jnp.float32),
            axis=0) + bo_ref[l]                                       # (128, 32)
        x = _layer_norm(x_in1 + h_attn, ln1g_ref[l], ln1b_ref[l])     # residual + LN1

        x_in2 = x
        y = jnp.maximum(
            jnp.dot(x, wf1_ref[l], preferred_element_type=jnp.float32)
            + bf1_ref[l], 0.0)                                        # FFN + ReLU
        y = jnp.dot(y, wf2_ref[l], preferred_element_type=jnp.float32) + bf2_ref[l]
        x = _layer_norm(x_in2 + y, ln2g_ref[l], ln2b_ref[l])          # residual + LN2

    # MLPReadout: out_dim -> out_dim//2 -> out_dim//4 -> n_classes (lane-padded)
    y = jnp.maximum(jnp.dot(x, wr0_ref[...], preferred_element_type=jnp.float32)
                    + br0_ref[...], 0.0)
    y = jnp.maximum(jnp.dot(y, wr1_ref[...], preferred_element_type=jnp.float32)
                    + br1_ref[...], 0.0)
    y = jnp.dot(y, wr2_ref[...], preferred_element_type=jnp.float32) + br2_ref[...]
    out_ref[...] = y                                    # (128, 128) lane-dense store


# ------------------------ weight preparation (once) ---------------------------
def prepare_kernel_params(params):
    """One-time layout prep: fuse embeddings, split heads, pad readout.

    Called once at init (outside jit) so no per-forward reshape/pad ops.
    """
    (w_emb, b_emb, w_lap, b_lap, wq, wk, wv, wo, bo, ln1g, ln1b,
     wf1, bf1, wf2, bf2, ln2g, ln2b, wr0, br0, wr1, br1, wr2, br2) = params

    def split_cols(w):                  # (L, C, H*DK) -> (L, H, C, DK)
        L, C, _ = w.shape
        return w.reshape(L, C, N_HEADS, DK).transpose(0, 2, 1, 3)

    def split_rows(w):                  # (L, H*DK, O) -> (L, H, DK, O)
        L, _, O = w.shape
        return w.reshape(L, N_HEADS, DK, O)

    w_emb_fused = jnp.concatenate([w_emb, w_lap], axis=0)            # (24, 32)
    b_emb_fused = b_emb + b_lap                                      # (1, 32)

    wr2_pad = jnp.zeros((wr2.shape[0], PAD_CLASSES), jnp.float32)
    wr2_pad = wr2_pad.at[:, :N_CLASSES].set(wr2)
    br2_pad = jnp.zeros((1, PAD_CLASSES), jnp.float32)
    br2_pad = br2_pad.at[:, :N_CLASSES].set(br2)

    return (w_emb_fused, b_emb_fused,
            split_cols(wq), split_cols(wk), split_cols(wv), split_rows(wo), bo,
            ln1g, ln1b, wf1, bf1, wf2, bf2, ln2g, ln2b,
            wr0, br0, wr1, br1, wr2_pad, br2_pad)


# ------------------------------- forward --------------------------------------
@jax.jit
def graph_transformer_net(adj, h, lap, kparams):
    """Batched forward: batch folded into a 128-row node axis, one grid-free call."""
    B, N = adj.shape[0], adj.shape[1]

    # Fold batch into the node axis and fuse [h | lap] for the embedding matmul.
    hx = jnp.concatenate([h, lap], axis=-1).reshape(B * N, IN_DIM + POS_ENC_DIM)
    # Block-diagonal adjacency mask (cross-graph entries are zero).
    eye_b = jnp.eye(B, dtype=adj.dtype)
    adj_full = jnp.einsum('bc,bnm->bncm', eye_b, adj).reshape(B * N, B * N)

    vmem = pltpu.MemorySpace.VMEM
    n_in = 2 + len(kparams)
    out = pl.pallas_call(
        graph_transformer_kernel,
        out_shape=jax.ShapeDtypeStruct((B * N, PAD_CLASSES), jnp.float32),
        in_specs=[pl.BlockSpec(memory_space=vmem)] * n_in,
        out_specs=pl.BlockSpec(memory_space=vmem),
    )(adj_full, hx, *kparams)
    return out.reshape(B, N, PAD_CLASSES)[:, :, :N_CLASSES]


# ---------------------------- parameter init ---------------------------------
def init_params(key):
    ks = iter(jax.random.split(key, 64))

    def lin(k, fan_in, fan_out):
        return (jax.random.normal(k, (fan_in, fan_out), jnp.float32)
                * (1.0 / math.sqrt(fan_in)))

    w_emb = lin(next(ks), IN_DIM, HIDDEN)
    b_emb = jax.random.normal(next(ks), (1, HIDDEN), jnp.float32) * 0.01
    w_lap = lin(next(ks), POS_ENC_DIM, HIDDEN)
    b_lap = jax.random.normal(next(ks), (1, HIDDEN), jnp.float32) * 0.01

    def stack(fn):
        return jnp.stack([fn() for _ in range(N_LAYERS)], axis=0)

    wq = stack(lambda: lin(next(ks), HIDDEN, OUT_DIM))
    wk = stack(lambda: lin(next(ks), HIDDEN, OUT_DIM))
    wv = stack(lambda: lin(next(ks), HIDDEN, OUT_DIM))
    wo = stack(lambda: lin(next(ks), OUT_DIM, OUT_DIM))
    bo = stack(lambda: jax.random.normal(next(ks), (1, OUT_DIM), jnp.float32) * 0.01)
    ln1g = jnp.ones((N_LAYERS, 1, OUT_DIM), jnp.float32)
    ln1b = jnp.zeros((N_LAYERS, 1, OUT_DIM), jnp.float32)
    wf1 = stack(lambda: lin(next(ks), OUT_DIM, OUT_DIM * 2))
    bf1 = stack(lambda: jax.random.normal(next(ks), (1, OUT_DIM * 2), jnp.float32) * 0.01)
    wf2 = stack(lambda: lin(next(ks), OUT_DIM * 2, OUT_DIM))
    bf2 = stack(lambda: jax.random.normal(next(ks), (1, OUT_DIM), jnp.float32) * 0.01)
    ln2g = jnp.ones((N_LAYERS, 1, OUT_DIM), jnp.float32)
    ln2b = jnp.zeros((N_LAYERS, 1, OUT_DIM), jnp.float32)

    d0, d1, d2 = OUT_DIM, OUT_DIM // 2, OUT_DIM // 4
    wr0 = lin(next(ks), d0, d1)
    br0 = jax.random.normal(next(ks), (1, d1), jnp.float32) * 0.01
    wr1 = lin(next(ks), d1, d2)
    br1 = jax.random.normal(next(ks), (1, d2), jnp.float32) * 0.01
    wr2 = lin(next(ks), d2, N_CLASSES)
    br2 = jax.random.normal(next(ks), (1, N_CLASSES), jnp.float32) * 0.01

    return (w_emb, b_emb, w_lap, b_lap, wq, wk, wv, wo, bo, ln1g, ln1b,
            wf1, bf1, wf2, bf2, ln2g, ln2b, wr0, br0, wr1, br1, wr2, br2)


# --------------------------- plain-JAX reference ------------------------------
def reference_forward(adj, h, lap, params):
    (w_emb, b_emb, w_lap, b_lap, wq, wk, wv, wo, bo, ln1g, ln1b,
     wf1, bf1, wf2, bf2, ln2g, ln2b, wr0, br0, wr1, br1, wr2, br2) = params
    x = h @ w_emb + b_emb + lap @ w_lap + b_lap
    scale = 1.0 / math.sqrt(DK)
    for l in range(N_LAYERS):
        x_in1 = x
        Q, K, V = x @ wq[l], x @ wk[l], x @ wv[l]
        heads = []
        for hd in range(N_HEADS):
            qh = Q[:, hd * DK:(hd + 1) * DK]
            kh = K[:, hd * DK:(hd + 1) * DK]
            vh = V[:, hd * DK:(hd + 1) * DK]
            e = jnp.exp(jnp.clip(qh @ kh.T * scale, -5.0, 5.0)) * adj
            heads.append((e @ vh) / (jnp.sum(e, axis=-1, keepdims=True) + 1e-6))
        x = jnp.concatenate(heads, axis=-1) @ wo[l] + bo[l]
        x = _layer_norm(x_in1 + x, ln1g[l], ln1b[l])
        x_in2 = x
        y = jnp.maximum(x @ wf1[l] + bf1[l], 0.0) @ wf2[l] + bf2[l]
        x = _layer_norm(x_in2 + y, ln2g[l], ln2b[l])
    y = jnp.maximum(x @ wr0 + br0, 0.0)
    y = jnp.maximum(y @ wr1 + br1, 0.0)
    return y @ wr2 + br2


# ---------------------------------- main --------------------------------------
if __name__ == "__main__":
    key = jax.random.PRNGKey(0)
    k_adj, k_h, k_lap, k_par = jax.random.split(key, 4)

    # B graphs: random edges + self loops (adj[dst, src])
    adj = (jax.random.uniform(k_adj, (BATCH, N_NODES, N_NODES)) < 0.4).astype(jnp.float32)
    adj = jnp.maximum(adj, jnp.eye(N_NODES, dtype=jnp.float32)[None])

    h = jax.random.normal(k_h, (BATCH, N_NODES, IN_DIM), jnp.float32)
    lap = jax.random.normal(k_lap, (BATCH, N_NODES, POS_ENC_DIM), jnp.float32)
    params = init_params(k_par)
    kparams = prepare_kernel_params(params)     # one-time layout prep, outside jit

    out = graph_transformer_net(adj, h, lap, kparams)
    out = jax.block_until_ready(out)

    ref = jnp.stack([reference_forward(adj[b], h[b], lap[b], params)
                     for b in range(BATCH)], axis=0)

    assert out.shape == (BATCH, N_NODES, N_CLASSES)
    assert bool(jnp.all(jnp.isfinite(out)))
    max_diff = float(jnp.max(jnp.abs(out - ref)))
    assert jnp.allclose(out, ref, rtol=1e-3, atol=1e-3), f"max abs diff {max_diff}"

    print("KERNEL_OK")
</pallas_src>

<mosaic_0001>
module attributes {stable_mosaic.version = 11 : i64} {
  func.func @graph_transformer_kernel(%arg0: memref<128x128xf32, #tpu.memory_space<vmem>>, %arg1: memref<128x24xf32, #tpu.memory_space<vmem>>, %arg2: memref<24x32xf32, #tpu.memory_space<vmem>>, %arg3: memref<1x32xf32, #tpu.memory_space<vmem>>, %arg4: memref<2x4x32x8xf32, #tpu.memory_space<vmem>>, %arg5: memref<2x4x32x8xf32, #tpu.memory_space<vmem>>, %arg6: memref<2x4x32x8xf32, #tpu.memory_space<vmem>>, %arg7: memref<2x4x8x32xf32, #tpu.memory_space<vmem>>, %arg8: memref<2x1x32xf32, #tpu.memory_space<vmem>>, %arg9: memref<2x1x32xf32, #tpu.memory_space<vmem>>, %arg10: memref<2x1x32xf32, #tpu.memory_space<vmem>>, %arg11: memref<2x32x64xf32, #tpu.memory_space<vmem>>, %arg12: memref<2x1x64xf32, #tpu.memory_space<vmem>>, %arg13: memref<2x64x32xf32, #tpu.memory_space<vmem>>, %arg14: memref<2x1x32xf32, #tpu.memory_space<vmem>>, %arg15: memref<2x1x32xf32, #tpu.memory_space<vmem>>, %arg16: memref<2x1x32xf32, #tpu.memory_space<vmem>>, %arg17: memref<32x16xf32, #tpu.memory_space<vmem>>, %arg18: memref<1x16xf32, #tpu.memory_space<vmem>>, %arg19: memref<16x8xf32, #tpu.memory_space<vmem>>, %arg20: memref<1x8xf32, #tpu.memory_space<vmem>>, %arg21: memref<8x128xf32, #tpu.memory_space<vmem>>, %arg22: memref<1x128xf32, #tpu.memory_space<vmem>>, %arg23: memref<128x128xf32, #tpu.memory_space<vmem>>) attributes {dimension_semantics = [], scalar_prefetch = 0 : i64, scratch_operands = 0 : i64, tpu.core_type = #tpu.core_type<tc>} {
    %c0 = arith.constant 0 : index
    %c0_0 = arith.constant 0 : index
    %0 = vector.load %arg0[%c0, %c0_0] : memref<128x128xf32, #tpu.memory_space<vmem>>, vector<128x128xf32>
    %c0_1 = arith.constant 0 : index
    %c0_2 = arith.constant 0 : index
    %1 = vector.load %arg1[%c0_1, %c0_2] : memref<128x24xf32, #tpu.memory_space<vmem>>, vector<128x24xf32>
    %c0_3 = arith.constant 0 : index
    %c0_4 = arith.constant 0 : index
    %2 = vector.load %arg2[%c0_3, %c0_4] : memref<24x32xf32, #tpu.memory_space<vmem>>, vector<24x32xf32>
    %cst = arith.constant dense<0.000000e+00> : vector<128x32xf32>
    %3 = tpu.matmul %1, %2, %cst {dimension_numbers = #tpu.dot_dimension_numbers<[1], [0], [0], [1], [0, 0, 1, 1], [], []>} : vector<128x24xf32>, vector<24x32xf32>, vector<128x32xf32> -> vector<128x32xf32>
    %c0_5 = arith.constant 0 : index
    %c0_6 = arith.constant 0 : index
    %4 = vector.load %arg3[%c0_5, %c0_6] : memref<1x32xf32, #tpu.memory_space<vmem>>, vector<1x32xf32>
    %5 = vector.broadcast %4 : vector<1x32xf32> to vector<128x32xf32>
    %6 = arith.addf %3, %5 : vector<128x32xf32>
    %c0_7 = arith.constant 0 : index
    %c0_8 = arith.constant 0 : index
    %c0_9 = arith.constant 0 : index
    %c0_10 = arith.constant 0 : index
    %7 = vector.load %arg4[%c0_7, %c0_8, %c0_9, %c0_10] : memref<2x4x32x8xf32, #tpu.memory_space<vmem>>, vector<1x4x32x8xf32>
    %8 = vector.shape_cast %7 : vector<1x4x32x8xf32> to vector<4x32x8xf32>
    "tpu.trace_start"() <{level = 10 : i32, message = "hcd,nc->hdn"}> : () -> ()
    %cst_11 = arith.constant dense<0.000000e+00> : vector<4x8x128xf32>
    %9 = tpu.matmul %8, %6, %cst_11 {dimension_numbers = #tpu.dot_dimension_numbers<[1], [1], [0, 2], [0], [0, 0, 0, 2, 1, 0], [], []>} : vector<4x32x8xf32>, vector<128x32xf32>, vector<4x8x128xf32> -> vector<4x8x128xf32>
    "tpu.trace_stop"() : () -> ()
    %c0_12 = arith.constant 0 : index
    %c0_13 = arith.constant 0 : index
    %c0_14 = arith.constant 0 : index
    %c0_15 = arith.constant 0 : index
    %10 = vector.load %arg5[%c0_12, %c0_13, %c0_14, %c0_15] : memref<2x4x32x8xf32, #tpu.memory_space<vmem>>, vector<1x4x32x8xf32>
    %11 = vector.shape_cast %10 : vector<1x4x32x8xf32> to vector<4x32x8xf32>
    "tpu.trace_start"() <{level = 10 : i32, message = "hcd,mc->hdm"}> : () -> ()
    %cst_16 = arith.constant dense<0.000000e+00> : vector<4x8x128xf32>
    %12 = tpu.matmul %11, %6, %cst_16 {dimension_numbers = #tpu.dot_dimension_numbers<[1], [1], [0, 2], [0], [0, 0, 0, 2, 1, 0], [], []>} : vector<4x32x8xf32>, vector<128x32xf32>, vector<4x8x128xf32> -> vector<4x8x128xf32>
    "tpu.trace_stop"() : () -> ()
    %c0_17 = arith.constant 0 : index
    %c0_18 = arith.constant 0 : index
    %c0_19 = arith.constant 0 : index
    %c0_20 = arith.constant 0 : index
    %13 = vector.load %arg6[%c0_17, %c0_18, %c0_19, %c0_20] : memref<2x4x32x8xf32, #tpu.memory_space<vmem>>, vector<1x4x32x8xf32>
    %14 = vector.shape_cast %13 : vector<1x4x32x8xf32> to vector<4x32x8xf32>
    "tpu.trace_start"() <{level = 10 : i32, message = "hcd,mc->hdm"}> : () -> ()
    %cst_21 = arith.constant dense<0.000000e+00> : vector<4x8x128xf32>
    %15 = tpu.matmul %14, %6, %cst_21 {dimension_numbers = #tpu.dot_dimension_numbers<[1], [1], [0, 2], [0], [0, 0, 0, 2, 1, 0], [], []>} : vector<4x32x8xf32>, vector<128x32xf32>, vector<4x8x128xf32> -> vector<4x8x128xf32>
    "tpu.trace_stop"() : () -> ()
    "tpu.trace_start"() <{level = 10 : i32, message = "hdn,hdm->hnm"}> : () -> ()
    %cst_22 = arith.constant dense<0.000000e+00> : vector<4x128x128xf32>
    %16 = tpu.matmul %9, %12, %cst_22 {dimension_numbers = #tpu.dot_dimension_numbers<[1], [1], [2], [2], [0, 0, 0, 2, 1, 2], [0], [0]>} : vector<4x8x128xf32>, vector<4x8x128xf32>, vector<4x128x128xf32> -> vector<4x128x128xf32>
    "tpu.trace_stop"() : () -> ()
    %cst_23 = arith.constant 0.353553385 : f32
    %17 = vector.broadcast %cst_23 : f32 to vector<4x128x128xf32>
    %18 = arith.mulf %16, %17 : vector<4x128x128xf32>
    %cst_24 = arith.constant -5.000000e+00 : f32
    %cst_25 = arith.constant 5.000000e+00 : f32
    %19 = vector.broadcast %cst_24 : f32 to vector<4x128x128xf32>
    %20 = arith.maximumf %19, %18 : vector<4x128x128xf32>
    %21 = vector.broadcast %cst_25 : f32 to vector<4x128x128xf32>
    %22 = arith.minimumf %21, %20 : vector<4x128x128xf32>
    %23 = math.exp %22 : vector<4x128x128xf32>
    %24 = vector.shape_cast %0 : vector<128x128xf32> to vector<1x128x128xf32>
    %25 = vector.broadcast %24 : vector<1x128x128xf32> to vector<4x128x128xf32>
    %26 = arith.mulf %23, %25 : vector<4x128x128xf32>
    %cst_26 = arith.constant dense<0.000000e+00> : vector<4x128xf32>
    %27 = vector.multi_reduction <add>, %26, %cst_26 [2] : vector<4x128x128xf32> to vector<4x128xf32>
    %28 = vector.shape_cast %27 : vector<4x128xf32> to vector<4x128x1xf32>
    %cst_27 = arith.constant 9.99999997E-7 : f32
    %29 = vector.broadcast %cst_27 : f32 to vector<4x128x1xf32>
    %30 = arith.addf %28, %29 : vector<4x128x1xf32>
    "tpu.trace_start"() <{level = 10 : i32, message = "hnm,hdm->hnd"}> : () -> ()
    %cst_28 = arith.constant dense<0.000000e+00> : vector<4x128x8xf32>
    %31 = tpu.matmul %26, %15, %cst_28 {dimension_numbers = #tpu.dot_dimension_numbers<[2], [2], [1], [1], [0, 0, 0, 1, 1, 1], [0], [0]>} : vector<4x128x128xf32>, vector<4x8x128xf32>, vector<4x128x8xf32> -> vector<4x128x8xf32>
    "tpu.trace_stop"() : () -> ()
    %32 = tpu.reciprocal %30 {approx = true} : vector<4x128x1xf32> -> vector<4x128x1xf32>
    %33 = arith.mulf %30, %32 : vector<4x128x1xf32>
    %cst_29 = arith.constant 2.000000e+00 : f32
    %34 = vector.broadcast %cst_29 : f32 to vector<4x128x1xf32>
    %35 = arith.subf %34, %33 : vector<4x128x1xf32>
    %36 = arith.mulf %32, %35 : vector<4x128x1xf32>
    %37 = vector.broadcast %36 : vector<4x128x1xf32> to vector<4x128x8xf32>
    %38 = arith.mulf %31, %37 : vector<4x128x8xf32>
    %c0_30 = arith.constant 0 : index
    %c0_31 = arith.constant 0 : index
    %c0_32 = arith.constant 0 : index
    %c0_33 = arith.constant 0 : index
    %39 = vector.load %arg7[%c0_30, %c0_31, %c0_32, %c0_33] : memref<2x4x8x32xf32, #tpu.memory_space<vmem>>, vector<1x4x8x32xf32>
    %40 = vector.shape_cast %39 : vector<1x4x8x32xf32> to vector<4x8x32xf32>
    "tpu.trace_start"() <{level = 10 : i32, message = "hnd,hdo->hno"}> : () -> ()
    %cst_34 = arith.constant dense<0.000000e+00> : vector<4x128x32xf32>
    %41 = tpu.matmul %38, %40, %cst_34 {dimension_numbers = #tpu.dot_dimension_numbers<[2], [1], [1], [2], [0, 0, 0, 1, 1, 2], [0], [0]>} : vector<4x128x8xf32>, vector<4x8x32xf32>, vector<4x128x32xf32> -> vector<4x128x32xf32>
    "tpu.trace_stop"() : () -> ()
    %cst_35 = arith.constant dense<0.000000e+00> : vector<128x32xf32>
    %42 = vector.multi_reduction <add>, %41, %cst_35 [0] : vector<4x128x32xf32> to vector<128x32xf32>
    %c0_36 = arith.constant 0 : index
    %c0_37 = arith.constant 0 : index
    %c0_38 = arith.constant 0 : index
    %43 = vector.load %arg8[%c0_36, %c0_37, %c0_38] : memref<2x1x32xf32, #tpu.memory_space<vmem>>, vector<1x1x32xf32>
    %44 = vector.shape_cast %43 : vector<1x1x32xf32> to vector<1x32xf32>
    %45 = vector.broadcast %44 : vector<1x32xf32> to vector<128x32xf32>
    %46 = arith.addf %42, %45 : vector<128x32xf32>
    %47 = arith.addf %6, %46 : vector<128x32xf32>
    %c0_39 = arith.constant 0 : index
    %c0_40 = arith.constant 0 : index
    %c0_41 = arith.constant 0 : index
    %48 = vector.load %arg9[%c0_39, %c0_40, %c0_41] : memref<2x1x32xf32, #tpu.memory_space<vmem>>, vector<1x1x32xf32>
    %49 = vector.shape_cast %48 : vector<1x1x32xf32> to vector<1x32xf32>
    %c0_42 = arith.constant 0 : index
    %c0_43 = arith.constant 0 : index
    %c0_44 = arith.constant 0 : index
    %50 = vector.load %arg10[%c0_42, %c0_43, %c0_44] : memref<2x1x32xf32, #tpu.memory_space<vmem>>, vector<1x1x32xf32>
    %51 = vector.shape_cast %50 : vector<1x1x32xf32> to vector<1x32xf32>
    %cst_45 = arith.constant dense<0.000000e+00> : vector<128xf32>
    %52 = vector.multi_reduction <add>, %47, %cst_45 [1] : vector<128x32xf32> to vector<128xf32>
    %53 = vector.shape_cast %52 : vector<128xf32> to vector<128x1xf32>
    %cst_46 = arith.constant 3.200000e+01 : f32
    %54 = vector.broadcast %cst_46 : f32 to vector<128x1xf32>
    %55 = arith.divf %53, %54 : vector<128x1xf32>
    %56 = vector.broadcast %55 : vector<128x1xf32> to vector<128x32xf32>
    %57 = arith.subf %47, %56 : vector<128x32xf32>
    %58 = arith.mulf %57, %57 : vector<128x32xf32>
    %cst_47 = arith.constant dense<0.000000e+00> : vector<128xf32>
    %59 = vector.multi_reduction <add>, %58, %cst_47 [1] : vector<128x32xf32> to vector<128xf32>
    %60 = vector.shape_cast %59 : vector<128xf32> to vector<128x1xf32>
    %cst_48 = arith.constant 3.200000e+01 : f32
    %61 = vector.broadcast %cst_48 : f32 to vector<128x1xf32>
    %62 = arith.divf %60, %61 : vector<128x1xf32>
    %63 = vector.broadcast %55 : vector<128x1xf32> to vector<128x32xf32>
    %64 = arith.subf %47, %63 : vector<128x32xf32>
    %cst_49 = arith.constant 9.99999974E-6 : f32
    %65 = vector.broadcast %cst_49 : f32 to vector<128x1xf32>
    %66 = arith.addf %62, %65 : vector<128x1xf32>
    %67 = math.rsqrt %66 : vector<128x1xf32>
    %68 = vector.broadcast %67 : vector<128x1xf32> to vector<128x32xf32>
    %69 = arith.mulf %64, %68 : vector<128x32xf32>
    %70 = vector.broadcast %49 : vector<1x32xf32> to vector<128x32xf32>
    %71 = arith.mulf %69, %70 : vector<128x32xf32>
    %72 = vector.broadcast %51 : vector<1x32xf32> to vector<128x32xf32>
    %73 = arith.addf %71, %72 : vector<128x32xf32>
    %c0_50 = arith.constant 0 : index
    %c0_51 = arith.constant 0 : index
    %c0_52 = arith.constant 0 : index
    %74 = vector.load %arg11[%c0_50, %c0_51, %c0_52] : memref<2x32x64xf32, #tpu.memory_space<vmem>>, vector<1x32x64xf32>
    %75 = vector.shape_cast %74 : vector<1x32x64xf32> to vector<32x64xf32>
    %cst_53 = arith.constant dense<0.000000e+00> : vector<128x64xf32>
    %76 = tpu.matmul %73, %75, %cst_53 {dimension_numbers = #tpu.dot_dimension_numbers<[1], [0], [0], [1], [0, 0, 1, 1], [], []>} : vector<128x32xf32>, vector<32x64xf32>, vector<128x64xf32> -> vector<128x64xf32>
    %c0_54 = arith.constant 0 : index
    %c0_55 = arith.constant 0 : index
    %c0_56 = arith.constant 0 : index
    %77 = vector.load %arg12[%c0_54, %c0_55, %c0_56] : memref<2x1x64xf32, #tpu.memory_space<vmem>>, vector<1x1x64xf32>
    %78 = vector.shape_cast %77 : vector<1x1x64xf32> to vector<1x64xf32>
    %79 = vector.broadcast %78 : vector<1x64xf32> to vector<128x64xf32>
    %80 = arith.addf %76, %79 : vector<128x64xf32>
    %cst_57 = arith.constant 0.000000e+00 : f32
    %81 = vector.broadcast %cst_57 : f32 to vector<128x64xf32>
    %82 = arith.maximumf %80, %81 : vector<128x64xf32>
    %c0_58 = arith.constant 0 : index
    %c0_59 = arith.constant 0 : index
    %c0_60 = arith.constant 0 : index
    %83 = vector.load %arg13[%c0_58, %c0_59, %c0_60] : memref<2x64x32xf32, #tpu.memory_space<vmem>>, vector<1x64x32xf32>
    %84 = vector.shape_cast %83 : vector<1x64x32xf32> to vector<64x32xf32>
    %cst_61 = arith.constant dense<0.000000e+00> : vector<128x32xf32>
    %85 = tpu.matmul %82, %84, %cst_61 {dimension_numbers = #tpu.dot_dimension_numbers<[1], [0], [0], [1], [0, 0, 1, 1], [], []>} : vector<128x64xf32>, vector<64x32xf32>, vector<128x32xf32> -> vector<128x32xf32>
    %c0_62 = arith.constant 0 : index
    %c0_63 = arith.constant 0 : index
    %c0_64 = arith.constant 0 : index
    %86 = vector.load %arg14[%c0_62, %c0_63, %c0_64] : memref<2x1x32xf32, #tpu.memory_space<vmem>>, vector<1x1x32xf32>
    %87 = vector.shape_cast %86 : vector<1x1x32xf32> to vector<1x32xf32>
    %88 = vector.broadcast %87 : vector<1x32xf32> to vector<128x32xf32>
    %89 = arith.addf %85, %88 : vector<128x32xf32>
    %90 = arith.addf %73, %89 : vector<128x32xf32>
    %c0_65 = arith.constant 0 : index
    %c0_66 = arith.constant 0 : index
    %c0_67 = arith.constant 0 : index
    %91 = vector.load %arg15[%c0_65, %c0_66, %c0_67] : memref<2x1x32xf32, #tpu.memory_space<vmem>>, vector<1x1x32xf32>
    %92 = vector.shape_cast %91 : vector<1x1x32xf32> to vector<1x32xf32>
    %c0_68 = arith.constant 0 : index
    %c0_69 = arith.constant 0 : index
    %c0_70 = arith.constant 0 : index
    %93 = vector.load %arg16[%c0_68, %c0_69, %c0_70] : memref<2x1x32xf32, #tpu.memory_space<vmem>>, vector<1x1x32xf32>
    %94 = vector.shape_cast %93 : vector<1x1x32xf32> to vector<1x32xf32>
    %cst_71 = arith.constant dense<0.000000e+00> : vector<128xf32>
    %95 = vector.multi_reduction <add>, %90, %cst_71 [1] : vector<128x32xf32> to vector<128xf32>
    %96 = vector.shape_cast %95 : vector<128xf32> to vector<128x1xf32>
    %cst_72 = arith.constant 3.200000e+01 : f32
    %97 = vector.broadcast %cst_72 : f32 to vector<128x1xf32>
    %98 = arith.divf %96, %97 : vector<128x1xf32>
    %99 = vector.broadcast %98 : vector<128x1xf32> to vector<128x32xf32>
    %100 = arith.subf %90, %99 : vector<128x32xf32>
    %101 = arith.mulf %100, %100 : vector<128x32xf32>
    %cst_73 = arith.constant dense<0.000000e+00> : vector<128xf32>
    %102 = vector.multi_reduction <add>, %101, %cst_73 [1] : vector<128x32xf32> to vector<128xf32>
    %103 = vector.shape_cast %102 : vector<128xf32> to vector<128x1xf32>
    %cst_74 = arith.constant 3.200000e+01 : f32
    %104 = vector.broadcast %cst_74 : f32 to vector<128x1xf32>
    %105 = arith.divf %103, %104 : vector<128x1xf32>
    %106 = vector.broadcast %98 : vector<128x1xf32> to vector<128x32xf32>
    %107 = arith.subf %90, %106 : vector<128x32xf32>
    %cst_75 = arith.constant 9.99999974E-6 : f32
    %108 = vector.broadcast %cst_75 : f32 to vector<128x1xf32>
    %109 = arith.addf %105, %108 : vector<128x1xf32>
    %110 = math.rsqrt %109 : vector<128x1xf32>
    %111 = vector.broadcast %110 : vector<128x1xf32> to vector<128x32xf32>
    %112 = arith.mulf %107, %111 : vector<128x32xf32>
    %113 = vector.broadcast %92 : vector<1x32xf32> to vector<128x32xf32>
    %114 = arith.mulf %112, %113 : vector<128x32xf32>
    %115 = vector.broadcast %94 : vector<1x32xf32> to vector<128x32xf32>
    %116 = arith.addf %114, %115 : vector<128x32xf32>
    %c1 = arith.constant 1 : index
    %c0_76 = arith.constant 0 : index
    %c0_77 = arith.constant 0 : index
    %c0_78 = arith.constant 0 : index
    %117 = vector.load %arg4[%c1, %c0_76, %c0_77, %c0_78] : memref<2x4x32x8xf32, #tpu.memory_space<vmem>>, vector<1x4x32x8xf32>
    %118 = vector.shape_cast %117 : vector<1x4x32x8xf32> to vector<4x32x8xf32>
    "tpu.trace_start"() <{level = 10 : i32, message = "hcd,nc->hdn"}> : () -> ()
    %cst_79 = arith.constant dense<0.000000e+00> : vector<4x8x128xf32>
    %119 = tpu.matmul %118, %116, %cst_79 {dimension_numbers = #tpu.dot_dimension_numbers<[1], [1], [0, 2], [0], [0, 0, 0, 2, 1, 0], [], []>} : vector<4x32x8xf32>, vector<128x32xf32>, vector<4x8x128xf32> -> vector<4x8x128xf32>
    "tpu.trace_stop"() : () -> ()
    %c1_80 = arith.constant 1 : index
    %c0_81 = arith.constant 0 : index
    %c0_82 = arith.constant 0 : index
    %c0_83 = arith.constant 0 : index
    %120 = vector.load %arg5[%c1_80, %c0_81, %c0_82, %c0_83] : memref<2x4x32x8xf32, #tpu.memory_space<vmem>>, vector<1x4x32x8xf32>
    %121 = vector.shape_cast %120 : vector<1x4x32x8xf32> to vector<4x32x8xf32>
    "tpu.trace_start"() <{level = 10 : i32, message = "hcd,mc->hdm"}> : () -> ()
    %cst_84 = arith.constant dense<0.000000e+00> : vector<4x8x128xf32>
    %122 = tpu.matmul %121, %116, %cst_84 {dimension_numbers = #tpu.dot_dimension_numbers<[1], [1], [0, 2], [0], [0, 0, 0, 2, 1, 0], [], []>} : vector<4x32x8xf32>, vector<128x32xf32>, vector<4x8x128xf32> -> vector<4x8x128xf32>
    "tpu.trace_stop"() : () -> ()
    %c1_85 = arith.constant 1 : index
    %c0_86 = arith.constant 0 : index
    %c0_87 = arith.constant 0 : index
    %c0_88 = arith.constant 0 : index
    %123 = vector.load %arg6[%c1_85, %c0_86, %c0_87, %c0_88] : memref<2x4x32x8xf32, #tpu.memory_space<vmem>>, vector<1x4x32x8xf32>
    %124 = vector.shape_cast %123 : vector<1x4x32x8xf32> to vector<4x32x8xf32>
    "tpu.trace_start"() <{level = 10 : i32, message = "hcd,mc->hdm"}> : () -> ()
    %cst_89 = arith.constant dense<0.000000e+00> : vector<4x8x128xf32>
    %125 = tpu.matmul %124, %116, %cst_89 {dimension_numbers = #tpu.dot_dimension_numbers<[1], [1], [0, 2], [0], [0, 0, 0, 2, 1, 0], [], []>} : vector<4x32x8xf32>, vector<128x32xf32>, vector<4x8x128xf32> -> vector<4x8x128xf32>
    "tpu.trace_stop"() : () -> ()
    "tpu.trace_start"() <{level = 10 : i32, message = "hdn,hdm->hnm"}> : () -> ()
    %cst_90 = arith.constant dense<0.000000e+00> : vector<4x128x128xf32>
    %126 = tpu.matmul %119, %122, %cst_90 {dimension_numbers = #tpu.dot_dimension_numbers<[1], [1], [2], [2], [0, 0, 0, 2, 1, 2], [0], [0]>} : vector<4x8x128xf32>, vector<4x8x128xf32>, vector<4x128x128xf32> -> vector<4x128x128xf32>
    "tpu.trace_stop"() : () -> ()
    %cst_91 = arith.constant 0.353553385 : f32
    %127 = vector.broadcast %cst_91 : f32 to vector<4x128x128xf32>
    %128 = arith.mulf %126, %127 : vector<4x128x128xf32>
    %cst_92 = arith.constant -5.000000e+00 : f32
    %cst_93 = arith.constant 5.000000e+00 : f32
    %129 = vector.broadcast %cst_92 : f32 to vector<4x128x128xf32>
    %130 = arith.maximumf %129, %128 : vector<4x128x128xf32>
    %131 = vector.broadcast %cst_93 : f32 to vector<4x128x128xf32>
    %132 = arith.minimumf %131, %130 : vector<4x128x128xf32>
    %133 = math.exp %132 : vector<4x128x128xf32>
    %134 = vector.shape_cast %0 : vector<128x128xf32> to vector<1x128x128xf32>
    %135 = vector.broadcast %134 : vector<1x128x128xf32> to vector<4x128x128xf32>
    %136 = arith.mulf %133, %135 : vector<4x128x128xf32>
    %cst_94 = arith.constant dense<0.000000e+00> : vector<4x128xf32>
    %137 = vector.multi_reduction <add>, %136, %cst_94 [2] : vector<4x128x128xf32> to vector<4x128xf32>
    %138 = vector.shape_cast %137 : vector<4x128xf32> to vector<4x128x1xf32>
    %cst_95 = arith.constant 9.99999997E-7 : f32
    %139 = vector.broadcast %cst_95 : f32 to vector<4x128x1xf32>
    %140 = arith.addf %138, %139 : vector<4x128x1xf32>
    "tpu.trace_start"() <{level = 10 : i32, message = "hnm,hdm->hnd"}> : () -> ()
    %cst_96 = arith.constant dense<0.000000e+00> : vector<4x128x8xf32>
    %141 = tpu.matmul %136, %125, %cst_96 {dimension_numbers = #tpu.dot_dimension_numbers<[2], [2], [1], [1], [0, 0, 0, 1, 1, 1], [0], [0]>} : vector<4x128x128xf32>, vector<4x8x128xf32>, vector<4x128x8xf32> -> vector<4x128x8xf32>
    "tpu.trace_stop"() : () -> ()
    %142 = tpu.reciprocal %140 {approx = true} : vector<4x128x1xf32> -> vector<4x128x1xf32>
    %143 = arith.mulf %140, %142 : vector<4x128x1xf32>
    %cst_97 = arith.constant 2.000000e+00 : f32
    %144 = vector.broadcast %cst_97 : f32 to vector<4x128x1xf32>
    %145 = arith.subf %144, %143 : vector<4x128x1xf32>
    %146 = arith.mulf %142, %145 : vector<4x128x1xf32>
    %147 = vector.broadcast %146 : vector<4x128x1xf32> to vector<4x128x8xf32>
    %148 = arith.mulf %141, %147 : vector<4x128x8xf32>
    %c1_98 = arith.constant 1 : index
    %c0_99 = arith.constant 0 : index
    %c0_100 = arith.constant 0 : index
    %c0_101 = arith.constant 0 : index
    %149 = vector.load %arg7[%c1_98, %c0_99, %c0_100, %c0_101] : memref<2x4x8x32xf32, #tpu.memory_space<vmem>>, vector<1x4x8x32xf32>
    %150 = vector.shape_cast %149 : vector<1x4x8x32xf32> to vector<4x8x32xf32>
    "tpu.trace_start"() <{level = 10 : i32, message = "hnd,hdo->hno"}> : () -> ()
    %cst_102 = arith.constant dense<0.000000e+00> : vector<4x128x32xf32>
    %151 = tpu.matmul %148, %150, %cst_102 {dimension_numbers = #tpu.dot_dimension_numbers<[2], [1], [1], [2], [0, 0, 0, 1, 1, 2], [0], [0]>} : vector<4x128x8xf32>, vector<4x8x32xf32>, vector<4x128x32xf32> -> vector<4x128x32xf32>
    "tpu.trace_stop"() : () -> ()
    %cst_103 = arith.constant dense<0.000000e+00> : vector<128x32xf32>
    %152 = vector.multi_reduction <add>, %151, %cst_103 [0] : vector<4x128x32xf32> to vector<128x32xf32>
    %c1_104 = arith.constant 1 : index
    %c0_105 = arith.constant 0 : index
    %c0_106 = arith.constant 0 : index
    %153 = vector.load %arg8[%c1_104, %c0_105, %c0_106] : memref<2x1x32xf32, #tpu.memory_space<vmem>>, vector<1x1x32xf32>
    %154 = vector.shape_cast %153 : vector<1x1x32xf32> to vector<1x32xf32>
    %155 = vector.broadcast %154 : vector<1x32xf32> to vector<128x32xf32>
    %156 = arith.addf %152, %155 : vector<128x32xf32>
    %157 = arith.addf %116, %156 : vector<128x32xf32>
    %c1_107 = arith.constant 1 : index
    %c0_108 = arith.constant 0 : index
    %c0_109 = arith.constant 0 : index
    %158 = vector.load %arg9[%c1_107, %c0_108, %c0_109] : memref<2x1x32xf32, #tpu.memory_space<vmem>>, vector<1x1x32xf32>
    %159 = vector.shape_cast %158 : vector<1x1x32xf32> to vector<1x32xf32>
    %c1_110 = arith.constant 1 : index
    %c0_111 = arith.constant 0 : index
    %c0_112 = arith.constant 0 : index
    %160 = vector.load %arg10[%c1_110, %c0_111, %c0_112] : memref<2x1x32xf32, #tpu.memory_space<vmem>>, vector<1x1x32xf32>
    %161 = vector.shape_cast %160 : vector<1x1x32xf32> to vector<1x32xf32>
    %cst_113 = arith.constant dense<0.000000e+00> : vector<128xf32>
    %162 = vector.multi_reduction <add>, %157, %cst_113 [1] : vector<128x32xf32> to vector<128xf32>
    %163 = vector.shape_cast %162 : vector<128xf32> to vector<128x1xf32>
    %cst_114 = arith.constant 3.200000e+01 : f32
    %164 = vector.broadcast %cst_114 : f32 to vector<128x1xf32>
    %165 = arith.divf %163, %164 : vector<128x1xf32>
    %166 = vector.broadcast %165 : vector<128x1xf32> to vector<128x32xf32>
    %167 = arith.subf %157, %166 : vector<128x32xf32>
    %168 = arith.mulf %167, %167 : vector<128x32xf32>
    %cst_115 = arith.constant dense<0.000000e+00> : vector<128xf32>
    %169 = vector.multi_reduction <add>, %168, %cst_115 [1] : vector<128x32xf32> to vector<128xf32>
    %170 = vector.shape_cast %169 : vector<128xf32> to vector<128x1xf32>
    %cst_116 = arith.constant 3.200000e+01 : f32
    %171 = vector.broadcast %cst_116 : f32 to vector<128x1xf32>
    %172 = arith.divf %170, %171 : vector<128x1xf32>
    %173 = vector.broadcast %165 : vector<128x1xf32> to vector<128x32xf32>
    %174 = arith.subf %157, %173 : vector<128x32xf32>
    %cst_117 = arith.constant 9.99999974E-6 : f32
    %175 = vector.broadcast %cst_117 : f32 to vector<128x1xf32>
    %176 = arith.addf %172, %175 : vector<128x1xf32>
    %177 = math.rsqrt %176 : vector<128x1xf32>
    %178 = vector.broadcast %177 : vector<128x1xf32> to vector<128x32xf32>
    %179 = arith.mulf %174, %178 : vector<128x32xf32>
    %180 = vector.broadcast %159 : vector<1x32xf32> to vector<128x32xf32>
    %181 = arith.mulf %179, %180 : vector<128x32xf32>
    %182 = vector.broadcast %161 : vector<1x32xf32> to vector<128x32xf32>
    %183 = arith.addf %181, %182 : vector<128x32xf32>
    %c1_118 = arith.constant 1 : index
    %c0_119 = arith.constant 0 : index
    %c0_120 = arith.constant 0 : index
    %184 = vector.load %arg11[%c1_118, %c0_119, %c0_120] : memref<2x32x64xf32, #tpu.memory_space<vmem>>, vector<1x32x64xf32>
    %185 = vector.shape_cast %184 : vector<1x32x64xf32> to vector<32x64xf32>
    %cst_121 = arith.constant dense<0.000000e+00> : vector<128x64xf32>
    %186 = tpu.matmul %183, %185, %cst_121 {dimension_numbers = #tpu.dot_dimension_numbers<[1], [0], [0], [1], [0, 0, 1, 1], [], []>} : vector<128x32xf32>, vector<32x64xf32>, vector<128x64xf32> -> vector<128x64xf32>
    %c1_122 = arith.constant 1 : index
    %c0_123 = arith.constant 0 : index
    %c0_124 = arith.constant 0 : index
    %187 = vector.load %arg12[%c1_122, %c0_123, %c0_124] : memref<2x1x64xf32, #tpu.memory_space<vmem>>, vector<1x1x64xf32>
    %188 = vector.shape_cast %187 : vector<1x1x64xf32> to vector<1x64xf32>
    %189 = vector.broadcast %188 : vector<1x64xf32> to vector<128x64xf32>
    %190 = arith.addf %186, %189 : vector<128x64xf32>
    %cst_125 = arith.constant 0.000000e+00 : f32
    %191 = vector.broadcast %cst_125 : f32 to vector<128x64xf32>
    %192 = arith.maximumf %190, %191 : vector<128x64xf32>
    %c1_126 = arith.constant 1 : index
    %c0_127 = arith.constant 0 : index
    %c0_128 = arith.constant 0 : index
    %193 = vector.load %arg13[%c1_126, %c0_127, %c0_128] : memref<2x64x32xf32, #tpu.memory_space<vmem>>, vector<1x64x32xf32>
    %194 = vector.shape_cast %193 : vector<1x64x32xf32> to vector<64x32xf32>
    %cst_129 = arith.constant dense<0.000000e+00> : vector<128x32xf32>
    %195 = tpu.matmul %192, %194, %cst_129 {dimension_numbers = #tpu.dot_dimension_numbers<[1], [0], [0], [1], [0, 0, 1, 1], [], []>} : vector<128x64xf32>, vector<64x32xf32>, vector<128x32xf32> -> vector<128x32xf32>
    %c1_130 = arith.constant 1 : index
    %c0_131 = arith.constant 0 : index
    %c0_132 = arith.constant 0 : index
    %196 = vector.load %arg14[%c1_130, %c0_131, %c0_132] : memref<2x1x32xf32, #tpu.memory_space<vmem>>, vector<1x1x32xf32>
    %197 = vector.shape_cast %196 : vector<1x1x32xf32> to vector<1x32xf32>
    %198 = vector.broadcast %197 : vector<1x32xf32> to vector<128x32xf32>
    %199 = arith.addf %195, %198 : vector<128x32xf32>
    %200 = arith.addf %183, %199 : vector<128x32xf32>
    %c1_133 = arith.constant 1 : index
    %c0_134 = arith.constant 0 : index
    %c0_135 = arith.constant 0 : index
    %201 = vector.load %arg15[%c1_133, %c0_134, %c0_135] : memref<2x1x32xf32, #tpu.memory_space<vmem>>, vector<1x1x32xf32>
    %202 = vector.shape_cast %201 : vector<1x1x32xf32> to vector<1x32xf32>
    %c1_136 = arith.constant 1 : index
    %c0_137 = arith.constant 0 : index
    %c0_138 = arith.constant 0 : index
    %203 = vector.load %arg16[%c1_136, %c0_137, %c0_138] : memref<2x1x32xf32, #tpu.memory_space<vmem>>, vector<1x1x32xf32>
    %204 = vector.shape_cast %203 : vector<1x1x32xf32> to vector<1x32xf32>
    %cst_139 = arith.constant dense<0.000000e+00> : vector<128xf32>
    %205 = vector.multi_reduction <add>, %200, %cst_139 [1] : vector<128x32xf32> to vector<128xf32>
    %206 = vector.shape_cast %205 : vector<128xf32> to vector<128x1xf32>
    %cst_140 = arith.constant 3.200000e+01 : f32
    %207 = vector.broadcast %cst_140 : f32 to vector<128x1xf32>
    %208 = arith.divf %206, %207 : vector<128x1xf32>
    %209 = vector.broadcast %208 : vector<128x1xf32> to vector<128x32xf32>
    %210 = arith.subf %200, %209 : vector<128x32xf32>
    %211 = arith.mulf %210, %210 : vector<128x32xf32>
    %cst_141 = arith.constant dense<0.000000e+00> : vector<128xf32>
    %212 = vector.multi_reduction <add>, %211, %cst_141 [1] : vector<128x32xf32> to vector<128xf32>
    %213 = vector.shape_cast %212 : vector<128xf32> to vector<128x1xf32>
    %cst_142 = arith.constant 3.200000e+01 : f32
    %214 = vector.broadcast %cst_142 : f32 to vector<128x1xf32>
    %215 = arith.divf %213, %214 : vector<128x1xf32>
    %216 = vector.broadcast %208 : vector<128x1xf32> to vector<128x32xf32>
    %217 = arith.subf %200, %216 : vector<128x32xf32>
    %cst_143 = arith.constant 9.99999974E-6 : f32
    %218 = vector.broadcast %cst_143 : f32 to vector<128x1xf32>
    %219 = arith.addf %215, %218 : vector<128x1xf32>
    %220 = math.rsqrt %219 : vector<128x1xf32>
    %221 = vector.broadcast %220 : vector<128x1xf32> to vector<128x32xf32>
    %222 = arith.mulf %217, %221 : vector<128x32xf32>
    %223 = vector.broadcast %202 : vector<1x32xf32> to vector<128x32xf32>
    %224 = arith.mulf %222, %223 : vector<128x32xf32>
    %225 = vector.broadcast %204 : vector<1x32xf32> to vector<128x32xf32>
    %226 = arith.addf %224, %225 : vector<128x32xf32>
    %c0_144 = arith.constant 0 : index
    %c0_145 = arith.constant 0 : index
    %227 = vector.load %arg17[%c0_144, %c0_145] : memref<32x16xf32, #tpu.memory_space<vmem>>, vector<32x16xf32>
    %cst_146 = arith.constant dense<0.000000e+00> : vector<128x16xf32>
    %228 = tpu.matmul %226, %227, %cst_146 {dimension_numbers = #tpu.dot_dimension_numbers<[1], [0], [0], [1], [0, 0, 1, 1], [], []>} : vector<128x32xf32>, vector<32x16xf32>, vector<128x16xf32> -> vector<128x16xf32>
    %c0_147 = arith.constant 0 : index
    %c0_148 = arith.constant 0 : index
    %229 = vector.load %arg18[%c0_147, %c0_148] : memref<1x16xf32, #tpu.memory_space<vmem>>, vector<1x16xf32>
    %230 = vector.broadcast %229 : vector<1x16xf32> to vector<128x16xf32>
    %231 = arith.addf %228, %230 : vector<128x16xf32>
    %cst_149 = arith.constant 0.000000e+00 : f32
    %232 = vector.broadcast %cst_149 : f32 to vector<128x16xf32>
    %233 = arith.maximumf %231, %232 : vector<128x16xf32>
    %c0_150 = arith.constant 0 : index
    %c0_151 = arith.constant 0 : index
    %234 = vector.load %arg19[%c0_150, %c0_151] : memref<16x8xf32, #tpu.memory_space<vmem>>, vector<16x8xf32>
    %cst_152 = arith.constant dense<0.000000e+00> : vector<128x8xf32>
    %235 = tpu.matmul %233, %234, %cst_152 {dimension_numbers = #tpu.dot_dimension_numbers<[1], [0], [0], [1], [0, 0, 1, 1], [], []>} : vector<128x16xf32>, vector<16x8xf32>, vector<128x8xf32> -> vector<128x8xf32>
    %c0_153 = arith.constant 0 : index
    %c0_154 = arith.constant 0 : index
    %236 = vector.load %arg20[%c0_153, %c0_154] : memref<1x8xf32, #tpu.memory_space<vmem>>, vector<1x8xf32>
    %237 = vector.broadcast %236 : vector<1x8xf32> to vector<128x8xf32>
    %238 = arith.addf %235, %237 : vector<128x8xf32>
    %cst_155 = arith.constant 0.000000e+00 : f32
    %239 = vector.broadcast %cst_155 : f32 to vector<128x8xf32>
    %240 = arith.maximumf %238, %239 : vector<128x8xf32>
    %c0_156 = arith.constant 0 : index
    %c0_157 = arith.constant 0 : index
    %241 = vector.load %arg21[%c0_156, %c0_157] : memref<8x128xf32, #tpu.memory_space<vmem>>, vector<8x128xf32>
    %cst_158 = arith.constant dense<0.000000e+00> : vector<128x128xf32>
    %242 = tpu.matmul %240, %241, %cst_158 {dimension_numbers = #tpu.dot_dimension_numbers<[1], [0], [0], [1], [0, 0, 1, 1], [], []>} : vector<128x8xf32>, vector<8x128xf32>, vector<128x128xf32> -> vector<128x128xf32>
    %c0_159 = arith.constant 0 : index
    %c0_160 = arith.constant 0 : index
    %243 = vector.load %arg22[%c0_159, %c0_160] : memref<1x128xf32, #tpu.memory_space<vmem>>, vector<1x128xf32>
    %244 = vector.broadcast %243 : vector<1x128xf32> to vector<128x128xf32>
    %245 = arith.addf %242, %244 : vector<128x128xf32>
    %c0_161 = arith.constant 0 : index
    %c0_162 = arith.constant 0 : index
    %246 = vector.load %arg23[%c0_161, %c0_162] : memref<128x128xf32, #tpu.memory_space<vmem>>, vector<128x128xf32>
    tpu.vector_store %arg23[%c0_161, %c0_162], %245 {strides = array<i32>} : memref<128x128xf32, #tpu.memory_space<vmem>>, vector<128x128xf32>,
    return
  }
}

</mosaic_0001>

<bundles_post_ra>
// kernel: graph_transformer_net.1
= control target key start
LH: loop header
LB: loop body
LE: loop exit
PB: predicated region body
PF: predicated region fallthrough
CT: control target
= control target key end

     0   :  { %vm116_vm0 = vcmask 195584   ;;  %vm454_vm1 = vcmask 261120   ;;  %v18773_v55 = vmov 0  ;;  %vm1114_vm3 = vcmask 64512   ;;  %s18702_s2 = inlined_call_operand.vmem [shape: f32[24,32], index: 2, kind: input, shape index: {}]   ;;  %s18703_s1 = inlined_call_operand.vmem [shape: f32[128,24], index: 1, kind: input, shape index: {}]   ;;  %s18704_s4 = inlined_call_operand.vmem [shape: f32[2,4,32,8], index: 4, kind: input, shape index: {}]   ;;  %s18705_s5 = inlined_call_operand.vmem [shape: f32[2,4,32,8], index: 5, kind: input, shape index: {}]   ;;  %s18706_s3 = inlined_call_operand.vmem [shape: f32[1,32], index: 3, kind: input, shape index: {}]   ;;  %s18707_s6 = inlined_call_operand.vmem [shape: f32[2,4,32,8], index: 6, kind: input, shape index: {}]   ;;  %s18708_s0 = inlined_call_operand.vmem [shape: f32[128,128], index: 0, kind: input, shape index: {}]   ;;  %s18709_s7 = inlined_call_operand.vmem [shape: f32[2,4,8,32], index: 7, kind: input, shape index: {}]   ;;  %s18710_s8 = inlined_call_operand.vmem [shape: f32[2,1,32], index: 8, kind: input, shape index: {}]   ;;  %s18711_s11 = inlined_call_operand.vmem [shape: f32[2,32,64], index: 11, kind: input, shape index: {}]   ;;  %s18712_s13 = inlined_call_operand.vmem [shape: f32[2,64,32], index: 13, kind: input, shape index: {}]   ;;  %s18713_s9 = inlined_call_operand.vmem [shape: f32[2,1,32], index: 9, kind: input, shape index: {}]   ;;  %s18714_s10 = inlined_call_operand.vmem [shape: f32[2,1,32], index: 10, kind: input, shape index: {}]   ;;  %s18715_s12 = inlined_call_operand.vmem [shape: f32[2,1,64], index: 12, kind: input, shape index: {}]   ;;  %s18716_s14 = inlined_call_operand.vmem [shape: f32[2,1,32], index: 14, kind: input, shape index: {}]   ;;  %s18717_s15 = inlined_call_operand.vmem [shape: f32[2,1,32], index: 15, kind: input, shape index: {}]   ;;  %s18718_s16 = inlined_call_operand.vmem [shape: f32[2,1,32], index: 16, kind: input, shape index: {}]   ;;  %s18719_s17 = inlined_call_operand.vmem [shape: f32[32,16], index: 17, kind: input, shape index: {}]   ;;  %s18720_s19 = inlined_call_operand.vmem [shape: f32[16,8], index: 19, kind: input, shape index: {}]   ;;  %s18721_s18 = inlined_call_operand.vmem [shape: f32[1,16], index: 18, kind: input, shape index: {}]   ;;  %s18722_s21 = inlined_call_operand.vmem [shape: f32[8,128], index: 21, kind: input, shape index: {}]   ;;  %s18723_s20 = inlined_call_operand.vmem [shape: f32[1,8], index: 20, kind: input, shape index: {}]   ;;  %s18724_s22 = inlined_call_operand.vmem [shape: f32[1,128], index: 22, kind: input, shape index: {}]   ;;  %s18725_s23 = inlined_call_operand.vmem [shape: f32[128,128], index: 23, kind: output, shape index: {}]  }
   0x1   :  { %18760 = sst [smem:[#allocation28_spill]] %s18702_s2  ;;  %vm14865_vm2 = vmpackc.low %vm454_vm1, %vm454_vm1  ;;  %vm4876_vm4 = vcmask 523264   ;;  %vm10608_vm5 = vcmask 130048  }
   0x2   :  { %18761 = sst [smem:[#allocation29_spill]] %s18703_s1  ;;  %s18768_s24 = sld [smem:[#allocation28_spill]]  ;;  %v18774_v55 = vsel %vm14865_vm2, 4294967295, %v18773_v55 }
   0x3   :  { %18762 = sst [smem:[#allocation30_spill]] %s18704_s4  ;;  %s18769_s26 = sld [smem:[#allocation29_spill]]  ;;  %18775 = vst [vmem:[#allocation2_spill] sm:$0xff] %v18774_v55 }
   0x4   :  { %18763 = sst [smem:[#allocation31_spill]] %s18705_s5  ;;  %s18770_s2 = sld [smem:[#allocation30_spill]] }
   0x5   :  { %18764 = sst [smem:[#allocation32_spill]] %s18706_s3 }
   0x6   :  { %18765 = sst [smem:[#allocation33_spill]] %s18707_s6  ;;  %s18772_s30 = sld [smem:[#allocation32_spill]] }
   0x7   :  { %18766 = sst [smem:[#allocation34_spill]] %s18708_s0  ;;  %s18776_s4 = sld [smem:[#allocation33_spill]] }
   0x8   :  { %18767 = sst [smem:[#allocation35_spill]] %s18709_s7  ;;  %v106_v0 = vld [vmem:[%s18768_s24] sm:$0xff]  ;;  %v107_v1 = vld [vmem:[%s18768_s24 + $0x8] sm:$0xff]  ;;  %v108_v4 = vld [vmem:[%s18768_s24 + $0x10] sm:$0xff]  ;;  %s18771_s24 = sld [smem:[#allocation31_spill]] }
   0x9   :  { %v13562_v2 = vpack.c.bf16 %v107_v1, %v106_v0  ;;  %v90_v3 = vld [vmem:[%s18769_s26] sm:$0xff]  ;;  %v91_v5 = vld [vmem:[%s18769_s26 + $0x8] sm:$0xff]  ;;  %v92_v8 = vld [vmem:[%s18769_s26 + $0x10] sm:$0xff]  ;;  %s18781_s25 = sld [smem:[#allocation34_spill]] }
   0xa   :  { %12456 = vmatprep.mubr.msk.f32.mxu0 %vm116_vm0, %v90_v3  ;;  %v310_v6 = vld [vmem:[%s18770_s2] sm:$0xff]  ;;  %v311_v9 = vld [vmem:[%s18770_s2 + $0x8] sm:$0xff]  ;;  %v93_v11 = vld [vmem:[%s18769_s26 + $0x18] sm:$0xff] }
   0xb   :  { %13563 = vmatprep.subr.bf16.mxu0 %v13562_v2  ;;  %v314_v7 = vld [vmem:[%s18770_s2 + $0x20] sm:$0xff]  ;;  %326 = vxpose.xlu0.b32.start [1/4] (short) (narrow) %v310_v6, 8  ;;  %v315_v10 = vld [vmem:[%s18770_s2 + $0x28] sm:$0xff]  ;;  %v312_v13 = vld [vmem:[%s18770_s2 + $0x10] sm:$0xff] }
   0xc   :  { %13565 = vmatpush3.bf16.msra.mxu0 %v13562_v2  ;;  %358 = vxpose.xlu1.b32.start [1/4] (short) (narrow) %v314_v7, 8  ;;  %v94_v12 = vld [vmem:[%s18769_s26 + $0x20] sm:$0xff]  ;;  %v316_v14 = vld [vmem:[%s18770_s2 + $0x30] sm:$0xff]  ;;  %v95_v15 = vld [vmem:[%s18769_s26 + $0x28] sm:$0xff] }
   0xd   :  { %12454 = vmatprep.subr.mxu0 %v108_v4  ;;  %v96_v16 = vld [vmem:[%s18769_s26 + $0x30] sm:$0xff]  ;;  %v313_v17 = vld [vmem:[%s18770_s2 + $0x18] sm:$0xff]  ;;  %v98_v20 = vld [vmem:[%s18769_s26 + $0x40] sm:$0xff] }
   0xe   :  { %v317_v18 = vld [vmem:[%s18770_s2 + $0x38] sm:$0xff]  ;;  %v600_v21 = vld [vmem:[%s18771_s24] sm:$0xff]  ;;  %v99_v23 = vld [vmem:[%s18769_s26 + $0x48] sm:$0xff] }
   0xf   :  { %327 = vxpose.xlu0.b32.cont [2/4] (short) (narrow) %v311_v9, 8  ;;  %v97_v19 = vld [vmem:[%s18769_s26 + $0x38] sm:$0xff]  ;;  %v604_v22 = vld [vmem:[%s18771_s24 + $0x20] sm:$0xff]  ;;  %v100_v24 = vld [vmem:[%s18769_s26 + $0x50] sm:$0xff] }
  0x10   :  { %12455 = vmatpush3.msra.mxu0 %v108_v4  ;;  %359 = vxpose.xlu1.b32.cont [2/4] (short) (narrow) %v315_v10, 8  ;;  %v601_v25 = vld [vmem:[%s18771_s24 + $0x8] sm:$0xff]  ;;  %v101_v27 = vld [vmem:[%s18769_s26 + $0x58] sm:$0xff]  ;;  %v102_v28 = vld [vmem:[%s18769_s26 + $0x60] sm:$0xff] }
  0x11   :  { %12457 = vmatmul.mubr.msk.f32.vlgmr.msra.gmra.mrb[0].mxu0 %vm116_vm0, %v91_v5  ;;  %v605_v26 = vld [vmem:[%s18771_s24 + $0x28] sm:$0xff]  ;;  %v602_v29 = vld [vmem:[%s18771_s24 + $0x10] sm:$0xff]  ;;  %v603_v33 = vld [vmem:[%s18771_s24 + $0x18] sm:$0xff] }
  0x12   :  { %12459 = vmatprep.mubr.msk.f32.mxu0 %vm116_vm0, %v92_v8  ;;  %v606_v30 = vld [vmem:[%s18771_s24 + $0x30] sm:$0xff]  ;;  %v103_v31 = vld [vmem:[%s18769_s26 + $0x68] sm:$0xff]  ;;  %v607_v34 = vld [vmem:[%s18771_s24 + $0x38] sm:$0xff] }
  0x13   :  { %328 = vxpose.xlu0.b32.cont [3/4] (short) (narrow) %v312_v13, 8  ;;  %v104_v32 = vld [vmem:[%s18769_s26 + $0x70] sm:$0xff]  ;;  %v105_v35 = vld [vmem:[%s18769_s26 + $0x78] sm:$0xff]  ;;  %v318_v36 = vld [vmem:[%s18770_s2 + $0x40] sm:$0xff]  ;;  %s18782_s26 = sld [smem:[#allocation35_spill]] }
  0x14   :  { %360 = vxpose.xlu1.b32.cont [3/4] (short) (narrow) %v316_v14, 8  ;;  %v322_v37 = vld [vmem:[%s18770_s2 + $0x60] sm:$0xff]  ;;  %v319_v38 = vld [vmem:[%s18770_s2 + $0x48] sm:$0xff]  ;;  %v320_v40 = vld [vmem:[%s18770_s2 + $0x50] sm:$0xff] }
  0x15   :  { %12460 = vmatmul.mubr.msk.f32.gmra.mrb[2].mxu0 %vm116_vm0, %v93_v11  ;;  %v323_v39 = vld [vmem:[%s18770_s2 + $0x68] sm:$0xff]  ;;  %v324_v41 = vld [vmem:[%s18770_s2 + $0x70] sm:$0xff]  ;;  %v321_v42 = vld [vmem:[%s18770_s2 + $0x58] sm:$0xff] }
  0x16   :  { %12462 = vmatprep.mubr.msk.f32.mxu0 %vm116_vm0, %v94_v12  ;;  %v325_v43 = vld [vmem:[%s18770_s2 + $0x78] sm:$0xff]  ;;  %v14843_v46 = vld [vmem:[%s18772_s30] ss:$0 sm:$0xff]  ;;  %v609_v52 = vld [vmem:[%s18771_s24 + $0x48] sm:$0xff] }
  0x17   :  { %329 = vxpose.xlu0.b32.end [4/4] (short) (narrow) %v313_v17, 8  ;;  %v608_v47 = vld [vmem:[%s18771_s24 + $0x40] sm:$0xff]  ;;  %v613_v53 = vld [vmem:[%s18771_s24 + $0x68] sm:$0xff]  ;;  %v610_v60 = vld [vmem:[%s18771_s24 + $0x50] sm:$0xff] }
  0x18   :  { %361 = vxpose.xlu1.b32.end [4/4] (short) (narrow) %v317_v18, 8  ;;  %v612_v48 = vld [vmem:[%s18771_s24 + $0x60] sm:$0xff]  ;;  %v614_v61 = vld [vmem:[%s18771_s24 + $0x70] sm:$0xff]  ;;  %v611_v3 = vld [vmem:[%s18771_s24 + $0x58] sm:$0xff] }
  0x19   :  { %12463 = vmatmul.mubr.msk.f32.gmra.mrb[4].mxu0 %vm116_vm0, %v95_v15  ;;  %v615_v4 = vld [vmem:[%s18771_s24 + $0x78] sm:$0xff]  ;;  %v845_v9 = vld [vmem:[%s18776_s4 + $0x20] sm:$0xff]  ;;  %v846_v15 = vld [vmem:[%s18776_s4 + $0x28] sm:$0xff] }
  0x1a   :  { %12465 = vmatprep.mubr.msk.f32.mxu0 %vm116_vm0, %v96_v16  ;;  %v841_v10 = vld [vmem:[%s18776_s4] sm:$0xff]  ;;  %v842_v16 = vld [vmem:[%s18776_s4 + $0x8] sm:$0xff] }
  0x1b   :  { %616 = vxpose.xlu0.b32.start [1/4] (short) (narrow) %v600_v21, 8  ;;  %v843_v21 = vld [vmem:[%s18776_s4 + $0x10] sm:$0xff] }
  0x1c   :  { %648 = vxpose.xlu1.b32.start [1/4] (short) (narrow) %v604_v22, 8 }
  0x1d   :  { %12466 = vmatmul.mubr.msk.f32.gmra.mrb[6].mxu0 %vm116_vm0, %v97_v19 }
  0x1e   :  { %12468 = vmatprep.mubr.msk.f32.mxu0 %vm116_vm0, %v98_v20  ;;  %v847_v20 = vld [vmem:[%s18776_s4 + $0x30] sm:$0xff] }
  0x1f   :  { %617 = vxpose.xlu0.b32.cont [2/4] (short) (narrow) %v601_v25, 8 }
  0x20   :  { %649 = vxpose.xlu1.b32.cont [2/4] (short) (narrow) %v605_v26, 8  ;;  %v848_v26 = vld [vmem:[%s18776_s4 + $0x38] sm:$0xff] }
  0x21   :  { %12469 = vmatmul.mubr.msk.f32.gmra.mrb[8].mxu0 %vm116_vm0, %v99_v23 }
  0x22   :  { %12471 = vmatprep.mubr.msk.f32.mxu0 %vm116_vm0, %v100_v24 }
  0x23   :  { %618 = vxpose.xlu0.b32.cont [3/4] (short) (narrow) %v602_v29, 8 }
  0x24   :  { %650 = vxpose.xlu1.b32.cont [3/4] (short) (narrow) %v606_v30, 8 }
  0x25   :  { %12472 = vmatmul.mubr.msk.f32.gmra.mrb[10].mxu0 %vm116_vm0, %v101_v27  ;;  %v844_v27 = vld [vmem:[%s18776_s4 + $0x18] sm:$0xff] }
  0x26   :  { %12474 = vmatprep.mubr.msk.f32.mxu0 %vm116_vm0, %v102_v28 }
  0x27   :  { %619 = vxpose.xlu0.b32.end [4/4] (short) (narrow) %v603_v33, 8 }
  0x28   :  { %651 = vxpose.xlu1.b32.end [4/4] (short) (narrow) %v607_v34, 8 }
  0x29   :  { %12475 = vmatmul.mubr.msk.f32.gmra.mrb[12].mxu0 %vm116_vm0, %v103_v31 }
  0x2a   :  { %12477 = vmatprep.mubr.msk.f32.mxu0 %vm116_vm0, %v104_v32 }
  0x2b   :  { %390 = vxpose.xlu0.b32.start [1/4] (short) (narrow) %v318_v36, 8 }
  0x2c   :  { %422 = vxpose.xlu1.b32.start [1/4] (short) (narrow) %v322_v37, 8 }
  0x2d   :  { %12478 = vmatmul.mubr.msk.f32.gmra.mrb[14].mxu0 %vm116_vm0, %v105_v35 }
  0x2f   :  { %391 = vxpose.xlu0.b32.cont [2/4] (short) (narrow) %v319_v38, 8 }
  0x30   :  { %423 = vxpose.xlu1.b32.cont [2/4] (short) (narrow) %v323_v39, 8 }
  0x33   :  { %392 = vxpose.xlu0.b32.cont [3/4] (short) (narrow) %v320_v40, 8 }
  0x34   :  { %424 = vxpose.xlu1.b32.cont [3/4] (short) (narrow) %v324_v41, 8 }
  0x37   :  { %393 = vxpose.xlu0.b32.end [4/4] (short) (narrow) %v321_v42, 8 }
  0x38   :  { %425 = vxpose.xlu1.b32.end [4/4] (short) (narrow) %v325_v43, 8 }
  0x3b   :  { %680 = vxpose.xlu0.b32.start [1/4] (short) (narrow) %v608_v47, 8 }
  0x3c   :  { %712 = vxpose.xlu1.b32.start [1/4] (short) (narrow) %v612_v48, 8 }
  0x3f   :  { %681 = vxpose.xlu0.b32.cont [2/4] (short) (narrow) %v609_v52, 8 }
  0x40   :  { %713 = vxpose.xlu1.b32.cont [2/4] (short) (narrow) %v613_v53, 8 }
  0x43   :  { %682 = vxpose.xlu0.b32.cont [3/4] (short) (narrow) %v610_v60, 8  ;;  %v853_v60 = vld [vmem:[%s18776_s4 + $0x60] sm:$0xff] }
  0x44   :  { %714 = vxpose.xlu1.b32.cont [3/4] (short) (narrow) %v614_v61, 8  ;;  %v849_v61 = vld [vmem:[%s18776_s4 + $0x40] sm:$0xff] }
  0x47   :  { %683 = vxpose.xlu0.b32.end [4/4] (short) (narrow) %v611_v3, 8 }
  0x48   :  { %715 = vxpose.xlu1.b32.end [4/4] (short) (narrow) %v615_v4, 8  ;;  %v851_v4 = vld [vmem:[%s18776_s4 + $0x50] sm:$0xff] }
  0x4b   :  { %857 = vxpose.xlu0.b32.start [1/4] (short) (narrow) %v841_v10, 8 }
  0x4c   :  { %889 = vxpose.xlu1.b32.start [1/4] (short) (narrow) %v845_v9, 8  ;;  %v852_v9 = vld [vmem:[%s18776_s4 + $0x58] sm:$0xff] }
  0x4f   :  { %858 = vxpose.xlu0.b32.cont [2/4] (short) (narrow) %v842_v16, 8 }
  0x50   :  { %890 = vxpose.xlu1.b32.cont [2/4] (short) (narrow) %v846_v15, 8 }
  0x53   :  { %859 = vxpose.xlu0.b32.cont [3/4] (short) (narrow) %v843_v21, 8 }
  0x54   :  { %891 = vxpose.xlu1.b32.cont [3/4] (short) (narrow) %v847_v20, 8 }
  0x57   :  { %860 = vxpose.xlu0.b32.end [4/4] (short) (narrow) %v844_v27, 8 }
  0x58   :  { %892 = vxpose.xlu1.b32.end [4/4] (short) (narrow) %v848_v26, 8 }
  0x8b   :  { %v342_v44 = vpop.trf.xlu0 }
  0x8c   :  { %12512 = vmatprep.mubr.msk.f32.mxu1 %vm454_vm1, %v342_v44  ;;  %v374_v40 = vpop.trf.xlu1 }
  0x9b   :  { %v632_v45 = vpop.trf.xlu0 }
  0x9c   :  { %12550 = vmatprep.mubr.msk.f32.mxu0 %vm454_vm1, %v632_v45  ;;  %v664_v41 = vpop.trf.xlu1 }
  0xab   :  { %v406_v42 = vpop.trf.xlu0 }
  0xac   :  { %v438_v43 = vpop.trf.xlu1 }
  0xbb   :  { %v696_v44 = vpop.trf.xlu0 }
  0xbc   :  { %v728_v45 = vpop.trf.xlu1 }
  0xcc   :  { %v905_v47 = vpop.trf.xlu1 }
  0xe4   :  { %v12458_v49 = vpop.f32.mrb[0].mxu0 }
  0xe5   :  { %v14852_v50 = vadd.f32 %v12458_v49, %v14843_v46  ;;  %v231_v51 = vpop.f32.mrb[1].mxu0 }
  0xe6   :  { %v14861_v54 = vadd.f32 %v14843_v46, %v231_v51 }
  0xe8   :  { %v14871_v56 = vpack.c.bf16 %v14852_v50, %v14861_v54  ;;  %v12461_v57 = vpop.f32.mrb[2].mxu0 }
  0xe9   :  { %v14874_v58 = vadd.f32 %v12461_v57, %v14843_v46  ;;  %v241_v59 = vpop.f32.mrb[3].mxu0 }
  0xea   :  { %13568 = vmatprep.subr.msk.bf16.mxu1 %vm14865_vm2, %v14871_v56  ;;  %13616 = vmatprep.subr.msk.bf16.mxu0 %vm14865_vm2, %v14871_v56  ;;  %v14889_v62 = vadd.f32 %v14843_v46, %v241_v59 }
  0xeb   :  { %13571 = vmatpush3.bf16.xpose.msk.msra.mxu1 %vm14865_vm2, %v14871_v56  ;;  %13619 = vmatpush3.bf16.xpose.msk.msra.mxu0 %vm14865_vm2, %v14871_v56 }
  0xec   :  { %v14899_v63 = vpack.c.bf16 %v14874_v58, %v14889_v62  ;;  %v12464_v0 = vpop.f32.mrb[4].mxu0 }
  0xed   :  { %v14902_v1 = vadd.f32 %v12464_v0, %v14843_v46  ;;  %v251_v2 = vpop.f32.mrb[5].mxu0  ;;  %v850_v0 = vld [vmem:[%s18776_s4 + $0x48] sm:$0xff] }
  0xee   :  { %13574 = vmatprep.subr.msk.bf16.mxu1 %vm14865_vm2, %v14899_v63  ;;  %13622 = vmatprep.subr.msk.bf16.mxu0 %vm14865_vm2, %v14899_v63  ;;  %v14917_v5 = vadd.f32 %v14843_v46, %v251_v2  ;;  %v855_v2 = vld [vmem:[%s18776_s4 + $0x70] sm:$0xff] }
  0xf0   :  { %v14921_v6 = vpack.c.bf16 %v14902_v1, %v14917_v5  ;;  %v12467_v7 = vpop.f32.mrb[6].mxu0 }
  0xf1   :  { %v261_v8 = vpop.f32.mrb[7].mxu0  ;;  %v14942_v11 = vadd.f32 %v12467_v7, %v14843_v46  ;;  %v856_v7 = vld [vmem:[%s18776_s4 + $0x78] sm:$0xff] }
  0xf2   :  { %v14945_v12 = vadd.f32 %v14843_v46, %v261_v8 }
  0xf3   :  { %13577 = vmatpush3.bf16.xpose.msk.msra.mxu1 %vm14865_vm2, %v14899_v63  ;;  %13625 = vmatpush3.bf16.xpose.msk.msra.mxu0 %vm14865_vm2, %v14899_v63 }
  0xf4   :  { %13580 = vmatprep.subr.msk.bf16.mxu1 %vm14865_vm2, %v14921_v6  ;;  %13628 = vmatprep.subr.msk.bf16.mxu0 %vm14865_vm2, %v14921_v6  ;;  %v12470_v13 = vpop.f32.mrb[8].mxu0  ;;  %v14955_v17 = vpack.c.bf16 %v14942_v11, %v14945_v12 }
  0xf5   :  { %v271_v14 = vpop.f32.mrb[9].mxu0  ;;  %v14976_v22 = vadd.f32 %v12470_v13, %v14843_v46 }
  0xf6   :  { %v14979_v23 = vadd.f32 %v14843_v46, %v271_v14 }
  0xf8   :  { %v12473_v18 = vpop.f32.mrb[10].mxu0  ;;  %v13590_v28 = vpack.c.bf16 %v14976_v22, %v14979_v23 }
  0xf9   :  { %v281_v19 = vpop.f32.mrb[11].mxu0  ;;  %v15000_v31 = vadd.f32 %v12473_v18, %v14843_v46 }
  0xfa   :  { %v15003_v32 = vadd.f32 %v14843_v46, %v281_v19 }
  0xfb   :  { %13583 = vmatpush3.bf16.xpose.msk.msra.mxu1 %vm14865_vm2, %v14921_v6  ;;  %13631 = vmatpush3.bf16.xpose.msk.msra.mxu0 %vm14865_vm2, %v14921_v6 }
  0xfc   :  { %13586 = vmatprep.subr.msk.bf16.mxu1 %vm14865_vm2, %v14955_v17  ;;  %13634 = vmatprep.subr.msk.bf16.mxu0 %vm14865_vm2, %v14955_v17  ;;  %v12476_v24 = vpop.f32.mrb[12].mxu0  ;;  %v13596_v33 = vpack.c.bf16 %v15000_v31, %v15003_v32 }
  0xfd   :  { %v291_v25 = vpop.f32.mrb[13].mxu0  ;;  %v15016_v34 = vadd.f32 %v12476_v24, %v14843_v46 }
  0xfe   :  { %v15019_v35 = vadd.f32 %v14843_v46, %v291_v25 }
  0xff   :  { %18777 = vst [vmem:[#allocation3_spill] sm:$0xff] %v15016_v34 }
 0x100   :  { %v12479_v29 = vpop.f32.mrb[14].mxu0  ;;  %18778 = vst [vmem:[#allocation4_spill] sm:$0xff] %v15019_v35  ;;  %v13602_v36 = vpack.c.bf16 %v15016_v34, %v15019_v35 }
 0x101   :  { %v301_v30 = vpop.f32.mrb[15].mxu0  ;;  %v15032_v37 = vadd.f32 %v12479_v29, %v14843_v46 }
 0x102   :  { %v15035_v38 = vadd.f32 %v14843_v46, %v301_v30  ;;  %v873_v46 = vpop.trf.xlu0 }
 0x103   :  { %13589 = vmatpush3.bf16.xpose.msk.msra.mxu1 %vm14865_vm2, %v14955_v17  ;;  %13637 = vmatpush3.bf16.xpose.msk.msra.mxu0 %vm14865_vm2, %v14955_v17  ;;  %18779 = vst [vmem:[#allocation5_spill] sm:$0xff] %v15032_v37 }
 0x104   :  { %13592 = vmatprep.subr.msk.bf16.mxu1 %vm14865_vm2, %v13590_v28  ;;  %13640 = vmatprep.subr.msk.bf16.mxu0 %vm14865_vm2, %v13590_v28  ;;  %18780 = vst [vmem:[#allocation6_spill] sm:$0xff] %v15035_v38  ;;  %v13608_v39 = vpack.c.bf16 %v15032_v37, %v15035_v38 }
 0x10b   :  { %13595 = vmatpush3.bf16.xpose.msk.msra.mxu1 %vm14865_vm2, %v13590_v28  ;;  %13643 = vmatpush3.bf16.xpose.msk.msra.mxu0 %vm14865_vm2, %v13590_v28 }
 0x10c   :  { %13598 = vmatprep.subr.msk.bf16.mxu1 %vm14865_vm2, %v13596_v33  ;;  %13646 = vmatprep.subr.msk.bf16.mxu0 %vm14865_vm2, %v13596_v33 }
 0x113   :  { %13601 = vmatpush3.bf16.xpose.msk.msra.mxu1 %vm14865_vm2, %v13596_v33  ;;  %13649 = vmatpush3.bf16.xpose.msk.msra.mxu0 %vm14865_vm2, %v13596_v33 }
 0x114   :  { %13604 = vmatprep.subr.msk.bf16.mxu1 %vm14865_vm2, %v13602_v36  ;;  %13652 = vmatprep.subr.msk.bf16.mxu0 %vm14865_vm2, %v13602_v36 }
 0x11b   :  { %13607 = vmatpush3.bf16.xpose.msk.msra.mxu1 %vm14865_vm2, %v13602_v36  ;;  %13655 = vmatpush3.bf16.xpose.msk.msra.mxu0 %vm14865_vm2, %v13602_v36 }
 0x11c   :  { %13610 = vmatprep.subr.msk.bf16.mxu1 %vm14865_vm2, %v13608_v39  ;;  %13658 = vmatprep.subr.msk.bf16.mxu0 %vm14865_vm2, %v13608_v39 }
 0x123   :  { %13613 = vmatpush3.bf16.xpose.msk.msra.mxu1 %vm14865_vm2, %v13608_v39  ;;  %13661 = vmatpush3.bf16.xpose.msk.msra.mxu0 %vm14865_vm2, %v13608_v39 }
 0x124   :  { %13664 = vmatprep.subr.msk.bf16.mxu1 %vm14865_vm2, %v14871_v56 }
 0x12a   :  { %12513 = vmatmul.mubr.msk.f32.vlgmr.msra.gmra.mrb[0].mxu1 %vm454_vm1, %v374_v40  ;;  %12551 = vmatmul.mubr.msk.f32.vlgmr.msra.gmra.mrb[16].mxu0 %vm454_vm1, %v664_v41 }
 0x12b   :  { %13667 = vmatpush3.bf16.xpose.msk.msra.mxu1 %vm14865_vm2, %v14871_v56  ;;  %12515 = vmatprep.mubr.msk.f32.mxu1 %vm454_vm1, %v406_v42 }
 0x12c   :  { %13670 = vmatprep.subr.msk.bf16.mxu1 %vm14865_vm2, %v14899_v63  ;;  %12553 = vmatprep.mubr.msk.f32.mxu0 %vm454_vm1, %v696_v44 }
 0x12e   :  { %12516 = vmatmul.mubr.msk.f32.gmra.mrb[2].mxu1 %vm454_vm1, %v438_v43  ;;  %12554 = vmatmul.mubr.msk.f32.gmra.mrb[18].mxu0 %vm454_vm1, %v728_v45 }
 0x12f   :  { %12588 = vmatprep.mubr.msk.f32.mxu1 %vm454_vm1, %v873_v46 }
 0x133   :  { %13673 = vmatpush3.bf16.xpose.msk.msra.mxu1 %vm14865_vm2, %v14899_v63  ;;  %v854_v63 = vld [vmem:[%s18776_s4 + $0x68] sm:$0xff] }
 0x134   :  { %13676 = vmatprep.subr.msk.bf16.mxu1 %vm14865_vm2, %v14921_v6 }
 0x13b   :  { %13679 = vmatpush3.bf16.xpose.msk.msra.mxu1 %vm14865_vm2, %v14921_v6 }
 0x13c   :  { %13682 = vmatprep.subr.msk.bf16.mxu1 %vm14865_vm2, %v14955_v17 }
 0x143   :  { %13685 = vmatpush3.bf16.xpose.msk.msra.mxu1 %vm14865_vm2, %v14955_v17 }
 0x144   :  { %13688 = vmatprep.subr.msk.bf16.mxu1 %vm14865_vm2, %v13590_v28 }
 0x14b   :  { %13691 = vmatpush3.bf16.xpose.msk.msra.mxu1 %vm14865_vm2, %v13590_v28 }
 0x14c   :  { %13694 = vmatprep.subr.msk.bf16.mxu1 %vm14865_vm2, %v13596_v33 }
 0x153   :  { %13697 = vmatpush3.bf16.xpose.msk.msra.mxu1 %vm14865_vm2, %v13596_v33 }
 0x154   :  { %13700 = vmatprep.subr.msk.bf16.mxu1 %vm14865_vm2, %v13602_v36 }
 0x15b   :  { %13703 = vmatpush3.bf16.xpose.msk.msra.mxu1 %vm14865_vm2, %v13602_v36 }
 0x15c   :  { %13706 = vmatprep.subr.msk.bf16.mxu1 %vm14865_vm2, %v13608_v39 }
 0x163   :  { %13709 = vmatpush3.bf16.xpose.msk.msra.mxu1 %vm14865_vm2, %v13608_v39 }
 0x16a   :  { %12589 = vmatmul.mubr.msk.f32.vlgmr.msra.gmra.mrb[4].mxu1 %vm454_vm1, %v905_v47 }
 0x1fd   :  { %v12514_v48 = vpop.f32.mrb[0].mxu1  ;;  %v12552_v49 = vpop.f32.mrb[16].mxu0 }
 0x1fe   :  { %1308 = vxpose.xlu1.b32.start.end [1/1] (short) %v12514_v48, 128  ;;  %v581_v51 = vpop.f32.mrb[1].mxu1  ;;  %v822_v52 = vpop.f32.mrb[17].mxu0 }
 0x1ff   :  { %1082 = vxpose.xlu0.b32.start.end [1/1] (short) %v581_v51, 128  ;;  %12594 = vmatprep.subr.mxu0 %v822_v52 }
 0x200   :  { %12595 = vmatpush3.msra.mxu0 %v822_v52 }
 0x201   :  { %12620 = vmatprep.subr.mxu0 %v12552_v49  ;;  %v12517_v53 = vpop.f32.mrb[2].mxu1  ;;  %v15099_v57 = vpop.f32.mrb[18].mxu0 }
 0x202   :  { %v591_v56 = vpop.f32.mrb[3].mxu1  ;;  %v15101_v59 = vpop.f32.mrb[19].mxu0 }
 0x203   :  { %13914 = vmatprep.subr.mxu1 %v15101_v59 }
 0x204   :  { %13915 = vmatpush3.msra.mxu1 %v15101_v59 }
 0x23b   :  { %1758 = vxpose.xlu1.b32.start.end [1/1] (short) %v12517_v53, 128 }
 0x23c   :  { %1533 = vxpose.xlu0.b32.start.end [1/1] (short) %v591_v56, 128 }
 0x23d   :  { %v15136_v21 = vpop.f32.mrb[4].mxu1 }
 0x23e   :  { %v15138_v25 = vpop.f32.mrb[5].mxu1 }
 0x23f   :  { %12698 = vmatprep.subr.mxu1 %v15138_v25 }
 0x278   :  { %953 = vxpose.xlu1.b32.start [1/4] (short) (narrow) %v853_v60, 8 }
 0x279   :  { %921 = vxpose.xlu0.b32.start [1/4] (short) (narrow) %v849_v61, 8 }
 0x27c   :  { %954 = vxpose.xlu1.b32.cont [2/4] (short) (narrow) %v854_v63, 8 }
 0x27d   :  { %922 = vxpose.xlu0.b32.cont [2/4] (short) (narrow) %v850_v0, 8 }
 0x27e   :  { %v1324_v3 = vpop.trf.xlu1 }
 0x27f   :  { %v1098_v6 = vpop.trf.xlu0 }
 0x280   :  { %12596 = vmatprep.mubr.msk.f32.mxu0 %vm1114_vm3, %v1098_v6  ;;  %955 = vxpose.xlu1.b32.cont [3/4] (short) (narrow) %v855_v2, 8 }
 0x281   :  { %923 = vxpose.xlu0.b32.cont [3/4] (short) (narrow) %v851_v4, 8 }
 0x282   :  { %v1325_v8 = vpop.trf.xlu1 }
 0x283   :  { %v1099_v10 = vpop.trf.xlu0 }
 0x284   :  { %12597 = vmatmul.mubr.msk.f32.vlgmr.msra.gmra.mrb[20].mxu0 %vm1114_vm3, %v1099_v10  ;;  %956 = vxpose.xlu1.b32.end [4/4] (short) (narrow) %v856_v7, 8 }
 0x285   :  { %12621 = vmatpush3.msra.mxu0 %v12552_v49  ;;  %924 = vxpose.xlu0.b32.end [4/4] (short) (narrow) %v852_v9, 8 }
 0x286   :  { %v1326_v13 = vpop.trf.xlu1  ;;  %12646 = vmatprep.subr.mxu0 %v15101_v59 }
 0x287   :  { %v1100_v14 = vpop.trf.xlu0 }
 0x288   :  { %12599 = vmatprep.mubr.msk.f32.mxu0 %vm1114_vm3, %v1100_v14 }
 0x28a   :  { %v1327_v15 = vpop.trf.xlu1 }
 0x28b   :  { %v1101_v16 = vpop.trf.xlu0 }
 0x28c   :  { %12600 = vmatmul.mubr.msk.f32.gmra.mrb[22].mxu0 %vm1114_vm3, %v1101_v16 }
 0x28e   :  { %v1328_v17 = vpop.trf.xlu1 }
 0x28f   :  { %v1102_v18 = vpop.trf.xlu0 }
 0x290   :  { %12602 = vmatprep.mubr.msk.f32.mxu0 %vm1114_vm3, %v1102_v18 }
 0x292   :  { %v1329_v19 = vpop.trf.xlu1 }
 0x293   :  { %v1103_v20 = vpop.trf.xlu0 }
 0x294   :  { %12603 = vmatmul.mubr.msk.f32.gmra.mrb[24].mxu0 %vm1114_vm3, %v1103_v20 }
 0x296   :  { %v1330_v24 = vpop.trf.xlu1 }
 0x297   :  { %v1104_v26 = vpop.trf.xlu0 }
 0x298   :  { %12605 = vmatprep.mubr.msk.f32.mxu0 %vm1114_vm3, %v1104_v26 }
 0x29a   :  { %v1331_v27 = vpop.trf.xlu1 }
 0x29b   :  { %v1105_v28 = vpop.trf.xlu0 }
 0x29c   :  { %12606 = vmatmul.mubr.msk.f32.gmra.mrb[26].mxu0 %vm1114_vm3, %v1105_v28 }
 0x29e   :  { %v1332_v29 = vpop.trf.xlu1 }
 0x29f   :  { %v1106_v30 = vpop.trf.xlu0 }
 0x2a0   :  { %12608 = vmatprep.mubr.msk.f32.mxu0 %vm1114_vm3, %v1106_v30 }
 0x2a2   :  { %v1333_v33 = vpop.trf.xlu1 }
 0x2a3   :  { %v1107_v36 = vpop.trf.xlu0 }
 0x2a4   :  { %12609 = vmatmul.mubr.msk.f32.gmra.mrb[28].mxu0 %vm1114_vm3, %v1107_v36 }
 0x2a6   :  { %v1334_v39 = vpop.trf.xlu1 }
 0x2a7   :  { %v1108_v40 = vpop.trf.xlu0 }
 0x2a8   :  { %12611 = vmatprep.mubr.msk.f32.mxu0 %vm1114_vm3, %v1108_v40 }
 0x2aa   :  { %v1335_v41 = vpop.trf.xlu1 }
 0x2ab   :  { %v1109_v42 = vpop.trf.xlu0 }
 0x2ac   :  { %12612 = vmatmul.mubr.msk.f32.gmra.mrb[30].mxu0 %vm1114_vm3, %v1109_v42 }
 0x2ae   :  { %v1336_v43 = vpop.trf.xlu1 }
 0x2af   :  { %v1110_v44 = vpop.trf.xlu0 }
 0x2b0   :  { %12614 = vmatprep.mubr.msk.f32.mxu0 %vm1114_vm3, %v1110_v44 }
 0x2b2   :  { %v1337_v45 = vpop.trf.xlu1 }
 0x2b3   :  { %v1111_v46 = vpop.trf.xlu0 }
 0x2b4   :  { %12615 = vmatmul.mubr.msk.f32.gmra.mrb[32].mxu0 %vm1114_vm3, %v1111_v46 }
 0x2b6   :  { %v1338_v47 = vpop.trf.xlu1 }
 0x2b7   :  { %v1112_v48 = vpop.trf.xlu0 }
 0x2b8   :  { %12617 = vmatprep.mubr.msk.f32.mxu0 %vm1114_vm3, %v1112_v48 }
 0x2ba   :  { %v1339_v49 = vpop.trf.xlu1 }
 0x2bb   :  { %v1113_v51 = vpop.trf.xlu0 }
 0x2bc   :  { %12618 = vmatmul.mubr.msk.f32.gmra.mrb[34].mxu0 %vm1114_vm3, %v1113_v51 }
 0x2bd   :  { %12622 = vmatprep.mubr.msk.f32.mxu0 %vm1114_vm3, %v1324_v3 }
 0x2be   :  { %v1774_v52 = vpop.trf.xlu1 }
 0x2bf   :  { %v1549_v53 = vpop.trf.xlu0 }
 0x2c0   :  { %12623 = vmatmul.mubr.msk.f32.vlgmr.msra.gmra.mrb[36].mxu0 %vm1114_vm3, %v1325_v8 }
 0x2c1   :  { %12625 = vmatprep.mubr.msk.f32.mxu0 %vm1114_vm3, %v1326_v13  ;;  %12647 = vmatpush3.msra.mxu0 %v15101_v59 }
 0x2c2   :  { %v1775_v56 = vpop.trf.xlu1  ;;  %12672 = vmatprep.subr.mxu0 %v15099_v57 }
 0x2c3   :  { %v1550_v60 = vpop.trf.xlu0 }
 0x2c4   :  { %12626 = vmatmul.mubr.msk.f32.gmra.mrb[38].mxu0 %vm1114_vm3, %v1327_v15 }
 0x2c5   :  { %12628 = vmatprep.mubr.msk.f32.mxu0 %vm1114_vm3, %v1328_v17 }
 0x2c6   :  { %v1776_v61 = vpop.trf.xlu1 }
 0x2c7   :  { %v1551_v63 = vpop.trf.xlu0 }
 0x2c8   :  { %12629 = vmatmul.mubr.msk.f32.gmra.mrb[40].mxu0 %vm1114_vm3, %v1329_v19 }
 0x2c9   :  { %12631 = vmatprep.mubr.msk.f32.mxu0 %vm1114_vm3, %v1330_v24 }
 0x2ca   :  { %v1777_v0 = vpop.trf.xlu1 }
 0x2cb   :  { %v1552_v2 = vpop.trf.xlu0 }
 0x2cc   :  { %12632 = vmatmul.mubr.msk.f32.gmra.mrb[42].mxu0 %vm1114_vm3, %v1331_v27 }
 0x2cd   :  { %12634 = vmatprep.mubr.msk.f32.mxu0 %vm1114_vm3, %v1332_v29 }
 0x2ce   :  { %v1778_v59 = vpop.trf.xlu1 }
 0x2cf   :  { %v1553_v3 = vpop.trf.xlu0 }
 0x2d0   :  { %12635 = vmatmul.mubr.msk.f32.gmra.mrb[44].mxu0 %vm1114_vm3, %v1333_v33 }
 0x2d1   :  { %12637 = vmatprep.mubr.msk.f32.mxu0 %vm1114_vm3, %v1334_v39 }
 0x2d2   :  { %v1779_v4 = vpop.trf.xlu1 }
 0x2d3   :  { %v1554_v6 = vpop.trf.xlu0 }
 0x2d4   :  { %12638 = vmatmul.mubr.msk.f32.gmra.mrb[46].mxu0 %vm1114_vm3, %v1335_v41 }
 0x2d5   :  { %12640 = vmatprep.mubr.msk.f32.mxu0 %vm1114_vm3, %v1336_v43 }
 0x2d6   :  { %v1780_v7 = vpop.trf.xlu1 }
 0x2d7   :  { %v1555_v8 = vpop.trf.xlu0 }
 0x2d8   :  { %12641 = vmatmul.mubr.msk.f32.gmra.mrb[48].mxu0 %vm1114_vm3, %v1337_v45 }
 0x2d9   :  { %12643 = vmatprep.mubr.msk.f32.mxu0 %vm1114_vm3, %v1338_v47 }
 0x2da   :  { %v1781_v9 = vpop.trf.xlu1 }
 0x2db   :  { %v1556_v10 = vpop.trf.xlu0 }
 0x2dc   :  { %12644 = vmatmul.mubr.msk.f32.gmra.mrb[50].mxu0 %vm1114_vm3, %v1339_v49 }
 0x2dd   :  { %12648 = vmatprep.mubr.msk.f32.mxu0 %vm1114_vm3, %v1549_v53 }
 0x2de   :  { %v1782_v13 = vpop.trf.xlu1 }
 0x2df   :  { %v1557_v14 = vpop.trf.xlu0 }
 0x2e0   :  { %12649 = vmatmul.mubr.msk.f32.vlgmr.msra.gmra.mrb[52].mxu0 %vm1114_vm3, %v1550_v60  ;;  %v15210_v60 = vld [vmem:[%s18781_s25 + $0x8] sm:$0xff] }
 0x2e1   :  { %12651 = vmatprep.mubr.msk.f32.mxu0 %vm1114_vm3, %v1551_v63  ;;  %12673 = vmatpush3.msra.mxu0 %v15099_v57  ;;  %v15215_v63 = vld [vmem:[%s18781_s25] sm:$0xff] }
 0x2e2   :  { %v1783_v15 = vpop.trf.xlu1  ;;  %12724 = vmatprep.subr.mxu0 %v15136_v21 }
 0x2e3   :  { %v1558_v16 = vpop.trf.xlu0 }
 0x2e4   :  { %12652 = vmatmul.mubr.msk.f32.gmra.mrb[54].mxu0 %vm1114_vm3, %v1552_v2 }
 0x2e5   :  { %12654 = vmatprep.mubr.msk.f32.mxu0 %vm1114_vm3, %v1553_v3 }
 0x2e6   :  { %v1784_v17 = vpop.trf.xlu1 }
 0x2e7   :  { %v1559_v18 = vpop.trf.xlu0 }
 0x2e8   :  { %12655 = vmatmul.mubr.msk.f32.gmra.mrb[56].mxu0 %vm1114_vm3, %v1554_v6 }
 0x2e9   :  { %12674 = vmatprep.mubr.msk.f32.mxu0 %vm1114_vm3, %v1774_v52 }
 0x2ea   :  { %v1785_v19 = vpop.trf.xlu1 }
 0x2eb   :  { %v1560_v20 = vpop.trf.xlu0 }
 0x2ec   :  { %12675 = vmatmul.mubr.msk.f32.vlgmr.msra.gmra.mrb[58].mxu0 %vm1114_vm3, %v1775_v56 }
 0x2ed   :  { %12677 = vmatprep.mubr.msk.f32.mxu0 %vm1114_vm3, %v1776_v61  ;;  %12725 = vmatpush3.xpose.msra.mxu0 %v15136_v21 }
 0x2ee   :  { %v1786_v57 = vpop.trf.xlu1 }
 0x2ef   :  { %v1561_v24 = vpop.trf.xlu0 }
 0x2f0   :  { %12678 = vmatmul.mubr.msk.f32.gmra.mrb[60].mxu0 %vm1114_vm3, %v1777_v0 }
 0x2f1   :  { %12680 = vmatprep.mubr.msk.f32.mxu0 %vm1114_vm3, %v1778_v59 }
 0x2f2   :  { %v1787_v26 = vpop.trf.xlu1 }
 0x2f3   :  { %v1562_v27 = vpop.trf.xlu0 }
 0x2f4   :  { %12681 = vmatmul.mubr.msk.f32.gmra.mrb[62].mxu0 %vm1114_vm3, %v1779_v4 }
 0x2f5   :  { %12683 = vmatprep.mubr.msk.f32.mxu0 %vm1114_vm3, %v1780_v7 }
 0x2f6   :  { %v1788_v28 = vpop.trf.xlu1 }
 0x2f7   :  { %v1563_v29 = vpop.trf.xlu0 }
 0x2f8   :  { %12684 = vmatmul.mubr.msk.f32.gmra.mrb[64].mxu0 %vm1114_vm3, %v1781_v9 }
 0x2f9   :  { %12686 = vmatprep.mubr.msk.f32.mxu0 %vm1114_vm3, %v1782_v13 }
 0x2fa   :  { %v1789_v30 = vpop.trf.xlu1 }
 0x2fb   :  { %v1564_v21 = vpop.trf.xlu0 }
 0x2fc   :  { %12687 = vmatmul.mubr.msk.f32.gmra.mrb[66].mxu0 %vm1114_vm3, %v1783_v15 }
 0x2fd   :  { %12689 = vmatprep.mubr.msk.f32.mxu0 %vm1114_vm3, %v1784_v17 }
 0x2fe   :  { %v969_v33 = vpop.trf.xlu1 }
 0x2ff   :  { %v937_v36 = vpop.trf.xlu0 }
 0x300   :  { %12591 = vmatprep.mubr.msk.f32.mxu1 %vm454_vm1, %v937_v36  ;;  %12690 = vmatmul.mubr.msk.f32.gmra.mrb[68].mxu0 %vm1114_vm3, %v1785_v19  ;;  %v15239_v36 = vld [vmem:[%s18781_s25 + $0x20] sm:$0xff] }
 0x301   :  { %12592 = vmatmul.mubr.msk.f32.gmra.mrb[6].mxu1 %vm454_vm1, %v969_v33  ;;  %12692 = vmatprep.mubr.msk.f32.mxu0 %vm1114_vm3, %v1786_v57 }
 0x302   :  { %12657 = vmatprep.mubr.msk.f32.mxu1 %vm1114_vm3, %v1555_v8 }
 0x304   :  { %12693 = vmatmul.mubr.msk.f32.gmra.mrb[70].mxu0 %vm1114_vm3, %v1787_v26 }
 0x305   :  { %12658 = vmatmul.mubr.msk.f32.vlgmr.msra.gmra.mrb[8].mxu1 %vm1114_vm3, %v1556_v10  ;;  %12695 = vmatprep.mubr.msk.f32.mxu0 %vm1114_vm3, %v1788_v28 }
 0x306   :  { %12660 = vmatprep.mubr.msk.f32.mxu1 %vm1114_vm3, %v1557_v14  ;;  %12699 = vmatpush3.xpose.msra.mxu1 %v15138_v25  ;;  %v15222_v14 = vld [vmem:[%s18781_s25 + $0x18] sm:$0xff] }
 0x308   :  { %12696 = vmatmul.mubr.msk.f32.gmra.mrb[72].mxu0 %vm1114_vm3, %v1789_v30 }
 0x309   :  { %12661 = vmatmul.mubr.msk.f32.gmra.mrb[10].mxu1 %vm1114_vm3, %v1558_v16  ;;  %v15227_v16 = vld [vmem:[%s18781_s25 + $0x10] sm:$0xff] }
 0x30a   :  { %12663 = vmatprep.mubr.msk.f32.mxu1 %vm1114_vm3, %v1559_v18 }
 0x30d   :  { %12664 = vmatmul.mubr.msk.f32.gmra.mrb[12].mxu1 %vm1114_vm3, %v1560_v20 }
 0x30e   :  { %12666 = vmatprep.mubr.msk.f32.mxu1 %vm1114_vm3, %v1561_v24 }
 0x311   :  { %12667 = vmatmul.mubr.msk.f32.gmra.mrb[14].mxu1 %vm1114_vm3, %v1562_v27 }
 0x312   :  { %12669 = vmatprep.mubr.msk.f32.mxu1 %vm1114_vm3, %v1563_v29 }
 0x315   :  { %12670 = vmatmul.mubr.msk.f32.gmra.mrb[16].mxu1 %vm1114_vm3, %v1564_v21  ;;  %v15234_v21 = vld [vmem:[%s18781_s25 + $0x28] sm:$0xff] }
 0x357   :  { %v12598_v39 = vpop.f32.mrb[20].mxu0 }
 0x358   :  { %v1984_v40 = vmul.f32 0.35355338, %v12598_v39  ;;  %v1229_v41 = vpop.f32.mrb[21].mxu0 }
 0x359   :  { %v1983_v25 = vmul.f32 0.35355338, %v1229_v41 }
 0x35a   :  { %v11181_v42 = vclamps-f32 %v1984_v40, 5.0 }
 0x35b   :  { %v11180_v43 = vclamps-f32 %v1983_v25, 5.0 }
 0x35c   :  { %v2177_v44 = vmul.f32 1.442695, %v11181_v42 }
 0x35d   :  { %v2175_v45 = vmul.f32 1.442695, %v11180_v43 }
 0x35e   :  { %13917 = vpow2.f32 %v2177_v44 }
 0x35f   :  { %13919 = vpow2.f32 %v2175_v45  ;;  %v12601_v46 = vpop.f32.mrb[22].mxu0 }
 0x360   :  { %v1986_v47 = vmul.f32 0.35355338, %v12601_v46  ;;  %v1239_v48 = vpop.f32.mrb[23].mxu0 }
 0x361   :  { %v1985_v49 = vmul.f32 0.35355338, %v1239_v48 }
 0x362   :  { %v11183_v51 = vclamps-f32 %v1986_v47, 5.0 }
 0x363   :  { %v11182_v52 = vclamps-f32 %v1985_v49, 5.0  ;;  %v15246_v49 = vld [vmem:[%s18781_s25 + $0x38] sm:$0xff] }
 0x364   :  { %v2181_v53 = vmul.f32 1.442695, %v11183_v51 }
 0x365   :  { %v2179_v56 = vmul.f32 1.442695, %v11182_v52  ;;  %v15251_v52 = vld [vmem:[%s18781_s25 + $0x30] sm:$0xff] }
 0x366   :  { %13921 = vpow2.f32 %v2181_v53 }
 0x367   :  { %13923 = vpow2.f32 %v2179_v56  ;;  %v12604_v61 = vpop.f32.mrb[24].mxu0 }
 0x368   :  { %v13918_v0 = vpop.eup %13917  ;;  %v1988_v2 = vmul.f32 0.35355338, %v12604_v61  ;;  %v1249_v59 = vpop.f32.mrb[25].mxu0 }
 0x369   :  { %v13920_v3 = vpop.eup %13919  ;;  %v1987_v4 = vmul.f32 0.35355338, %v1249_v59  ;;  %v2304_v6 = vmul.f32 %v13918_v0, %v15210_v60 }
 0x36a   :  { %v11185_v7 = vclamps-f32 %v1988_v2, 5.0  ;;  %v2303_v8 = vmul.f32 %v13920_v3, %v15215_v63 }
 0x36b   :  { %v11184_v9 = vclamps-f32 %v1987_v4, 5.0  ;;  %2369 = vadd.xlane.f32.xlu1 %v2304_v6 }
 0x36c   :  { %v2185_v10 = vmul.f32 1.442695, %v11185_v7  ;;  %2367 = vadd.xlane.f32.xlu0 %v2303_v8  ;;  %12700 = vmatprep.mubr.f32.mxu1 %v2303_v8 }
 0x36d   :  { %v2183_v13 = vmul.f32 1.442695, %v11184_v9  ;;  %12701 = vmatmul.mubr.f32.vlgmr.msra.gmra.mrb[18].mxu1 %v2304_v6  ;;  %v15258_v9 = vld [vmem:[%s18781_s25 + $0x48] sm:$0xff] }
 0x36e   :  { %13925 = vpow2.f32 %v2185_v10 }
 0x36f   :  { %13927 = vpow2.f32 %v2183_v13  ;;  %v12607_v15 = vpop.f32.mrb[26].mxu0  ;;  %v15263_v13 = vld [vmem:[%s18781_s25 + $0x40] sm:$0xff] }
 0x370   :  { %v13922_v17 = vpop.eup %13921  ;;  %v1990_v18 = vmul.f32 0.35355338, %v12607_v15  ;;  %v1259_v19 = vpop.f32.mrb[27].mxu0 }
 0x371   :  { %v13924_v20 = vpop.eup %13923  ;;  %v1989_v57 = vmul.f32 0.35355338, %v1259_v19  ;;  %v2306_v24 = vmul.f32 %v13922_v17, %v15222_v14 }
 0x372   :  { %v11187_v26 = vclamps-f32 %v1990_v18, 5.0  ;;  %v2305_v27 = vmul.f32 %v13924_v20, %v15227_v16 }
 0x373   :  { %v11186_v28 = vclamps-f32 %v1989_v57, 5.0  ;;  %2373 = vadd.xlane.f32.xlu1 %v2306_v24 }
 0x374   :  { %v2189_v29 = vmul.f32 1.442695, %v11187_v26  ;;  %2371 = vadd.xlane.f32.xlu0 %v2305_v27  ;;  %12703 = vmatprep.mubr.f32.mxu1 %v2305_v27 }
 0x375   :  { %v2187_v30 = vmul.f32 1.442695, %v11186_v28  ;;  %12704 = vmatmul.mubr.f32.gmra.mrb[20].mxu1 %v2306_v24 }
 0x376   :  { %13929 = vpow2.f32 %v2189_v29 }
 0x377   :  { %13931 = vpow2.f32 %v2187_v30  ;;  %v12610_v33 = vpop.f32.mrb[28].mxu0  ;;  %v15270_v30 = vld [vmem:[%s18781_s25 + $0x58] sm:$0xff] }
 0x378   :  { %v13926_v39 = vpop.eup %13925  ;;  %v1992_v40 = vmul.f32 0.35355338, %v12610_v33  ;;  %v1269_v41 = vpop.f32.mrb[29].mxu0 }
 0x379   :  { %v13928_v25 = vpop.eup %13927  ;;  %v1991_v42 = vmul.f32 0.35355338, %v1269_v41  ;;  %v2308_v43 = vmul.f32 %v13926_v39, %v15234_v21  ;;  %v15275_v39 = vld [vmem:[%s18781_s25 + $0x50] sm:$0xff] }
 0x37a   :  { %v11189_v44 = vclamps-f32 %v1992_v40, 5.0  ;;  %v2307_v45 = vmul.f32 %v13928_v25, %v15239_v36 }
 0x37b   :  { %v11188_v46 = vclamps-f32 %v1991_v42, 5.0  ;;  %2377 = vadd.xlane.f32.xlu1 %v2308_v43 }
 0x37c   :  { %v2193_v47 = vmul.f32 1.442695, %v11189_v44  ;;  %2375 = vadd.xlane.f32.xlu0 %v2307_v45  ;;  %12706 = vmatprep.mubr.f32.mxu1 %v2307_v45 }
 0x37d   :  { %v2191_v48 = vmul.f32 1.442695, %v11188_v46  ;;  %12707 = vmatmul.mubr.f32.gmra.mrb[22].mxu1 %v2308_v43 }
 0x37e   :  { %13933 = vpow2.f32 %v2193_v47 }
 0x37f   :  { %13935 = vpow2.f32 %v2191_v48  ;;  %v12613_v51 = vpop.f32.mrb[30].mxu0 }
 0x380   :  { %v13930_v53 = vpop.eup %13929  ;;  %v1994_v56 = vmul.f32 0.35355338, %v12613_v51  ;;  %v1279_v61 = vpop.f32.mrb[31].mxu0 }
 0x381   :  { %v13932_v0 = vpop.eup %13931  ;;  %v1993_v2 = vmul.f32 0.35355338, %v1279_v61  ;;  %v2310_v59 = vmul.f32 %v13930_v53, %v15246_v49 }
 0x382   :  { %v11191_v3 = vclamps-f32 %v1994_v56, 5.0  ;;  %v2309_v4 = vmul.f32 %v13932_v0, %v15251_v52 }
 0x383   :  { %v11190_v6 = vclamps-f32 %v1993_v2, 5.0  ;;  %2381 = vadd.xlane.f32.xlu1 %v2310_v59 }
 0x384   :  { %v2197_v7 = vmul.f32 1.442695, %v11191_v3  ;;  %2379 = vadd.xlane.f32.xlu0 %v2309_v4  ;;  %12709 = vmatprep.mubr.f32.mxu1 %v2309_v4 }
 0x385   :  { %v2195_v8 = vmul.f32 1.442695, %v11190_v6  ;;  %12710 = vmatmul.mubr.f32.gmra.mrb[24].mxu1 %v2310_v59  ;;  %v15282_v59 = vld [vmem:[%s18781_s25 + $0x68] sm:$0xff]  ;;  %v15287_v6 = vld [vmem:[%s18781_s25 + $0x60] sm:$0xff] }
 0x386   :  { %13937 = vpow2.f32 %v2197_v7 }
 0x387   :  { %13939 = vpow2.f32 %v2195_v8  ;;  %v12616_v10 = vpop.f32.mrb[32].mxu0 }
 0x388   :  { %v13934_v15 = vpop.eup %13933  ;;  %v1996_v17 = vmul.f32 0.35355338, %v12616_v10  ;;  %v1289_v18 = vpop.f32.mrb[33].mxu0 }
 0x389   :  { %v13936_v19 = vpop.eup %13935  ;;  %v1995_v20 = vmul.f32 0.35355338, %v1289_v18  ;;  %v2312_v57 = vmul.f32 %v13934_v15, %v15258_v9 }
 0x38a   :  { %v11193_v24 = vclamps-f32 %v1996_v17, 5.0  ;;  %v2311_v26 = vmul.f32 %v13936_v19, %v15263_v13 }
 0x38b   :  { %v11192_v27 = vclamps-f32 %v1995_v20, 5.0  ;;  %2385 = vadd.xlane.f32.xlu1 %v2312_v57 }
 0x38c   :  { %v2201_v28 = vmul.f32 1.442695, %v11193_v24  ;;  %2383 = vadd.xlane.f32.xlu0 %v2311_v26  ;;  %12712 = vmatprep.mubr.f32.mxu1 %v2311_v26 }
 0x38d   :  { %v2199_v29 = vmul.f32 1.442695, %v11192_v27  ;;  %12713 = vmatmul.mubr.f32.gmra.mrb[26].mxu1 %v2312_v57 }
 0x38e   :  { %13941 = vpow2.f32 %v2201_v28 }
 0x38f   :  { %13943 = vpow2.f32 %v2199_v29  ;;  %v12619_v33 = vpop.f32.mrb[34].mxu0 }
 0x390   :  { %v13938_v40 = vpop.eup %13937  ;;  %v1998_v41 = vmul.f32 0.35355338, %v12619_v33  ;;  %v1299_v25 = vpop.f32.mrb[35].mxu0 }
 0x391   :  { %v13940_v42 = vpop.eup %13939  ;;  %v1997_v43 = vmul.f32 0.35355338, %v1299_v25  ;;  %v2314_v44 = vmul.f32 %v13938_v40, %v15270_v30 }
 0x392   :  { %v11195_v45 = vclamps-f32 %v1998_v41, 5.0  ;;  %v2313_v46 = vmul.f32 %v13940_v42, %v15275_v39  ;;  %v15294_v42 = vld [vmem:[%s18781_s25 + $0x78] sm:$0xff] }
 0x393   :  { %v11194_v47 = vclamps-f32 %v1997_v43, 5.0  ;;  %v12624_v48 = vpop.f32.mrb[36].mxu0  ;;  %2389 = vadd.xlane.f32.xlu1 %v2314_v44 }
 0x394   :  { %v2205_v51 = vmul.f32 1.442695, %v11195_v45  ;;  %v2000_v53 = vmul.f32 0.35355338, %v12624_v48  ;;  %v1454_v56 = vpop.f32.mrb[37].mxu0  ;;  %2387 = vadd.xlane.f32.xlu0 %v2313_v46  ;;  %12715 = vmatprep.mubr.f32.mxu1 %v2313_v46  ;;  %v15299_v45 = vld [vmem:[%s18781_s25 + $0x70] sm:$0xff] }
 0x395   :  { %v2203_v61 = vmul.f32 1.442695, %v11194_v47  ;;  %v1999_v0 = vmul.f32 0.35355338, %v1454_v56  ;;  %12716 = vmatmul.mubr.f32.gmra.mrb[28].mxu1 %v2314_v44 }
 0x396   :  { %13945 = vpow2.f32 %v2205_v51  ;;  %v11197_v2 = vclamps-f32 %v2000_v53, 5.0 }
 0x397   :  { %13947 = vpow2.f32 %v2203_v61  ;;  %v11196_v3 = vclamps-f32 %v1999_v0, 5.0  ;;  %v12627_v4 = vpop.f32.mrb[38].mxu0 }
 0x398   :  { %v13942_v7 = vpop.eup %13941  ;;  %v2209_v8 = vmul.f32 1.442695, %v11197_v2  ;;  %v2002_v10 = vmul.f32 0.35355338, %v12627_v4  ;;  %v1464_v15 = vpop.f32.mrb[39].mxu0 }
 0x399   :  { %v13944_v17 = vpop.eup %13943  ;;  %v2207_v18 = vmul.f32 1.442695, %v11196_v3  ;;  %v2001_v19 = vmul.f32 0.35355338, %v1464_v15  ;;  %v2316_v20 = vmul.f32 %v13942_v7, %v15282_v59 }
 0x39a   :  { %13949 = vpow2.f32 %v2209_v8  ;;  %v11199_v57 = vclamps-f32 %v2002_v10, 5.0  ;;  %v2315_v24 = vmul.f32 %v13944_v17, %v15287_v6 }
 0x39b   :  { %13951 = vpow2.f32 %v2207_v18  ;;  %v11198_v26 = vclamps-f32 %v2001_v19, 5.0  ;;  %v12630_v27 = vpop.f32.mrb[40].mxu0  ;;  %2393 = vadd.xlane.f32.xlu1 %v2316_v20 }
 0x39c   :  { %v2213_v28 = vmul.f32 1.442695, %v11199_v57  ;;  %v2004_v29 = vmul.f32 0.35355338, %v12630_v27  ;;  %v1474_v33 = vpop.f32.mrb[41].mxu0  ;;  %2391 = vadd.xlane.f32.xlu0 %v2315_v24  ;;  %12718 = vmatprep.mubr.f32.mxu1 %v2315_v24 }
 0x39d   :  { %v2211_v40 = vmul.f32 1.442695, %v11198_v26  ;;  %v2003_v41 = vmul.f32 0.35355338, %v1474_v33  ;;  %12719 = vmatmul.mubr.f32.gmra.mrb[30].mxu1 %v2316_v20 }
 0x39e   :  { %13953 = vpow2.f32 %v2213_v28  ;;  %v11201_v25 = vclamps-f32 %v2004_v29, 5.0 }
 0x39f   :  { %13955 = vpow2.f32 %v2211_v40  ;;  %v11200_v43 = vclamps-f32 %v2003_v41, 5.0  ;;  %v12633_v44 = vpop.f32.mrb[42].mxu0 }
 0x3a0   :  { %v13946_v46 = vpop.eup %13945  ;;  %v2217_v47 = vmul.f32 1.442695, %v11201_v25  ;;  %v2006_v48 = vmul.f32 0.35355338, %v12633_v44  ;;  %v1484_v51 = vpop.f32.mrb[43].mxu0 }
 0x3a1   :  { %v13948_v53 = vpop.eup %13947  ;;  %v2215_v56 = vmul.f32 1.442695, %v11200_v43  ;;  %v2005_v61 = vmul.f32 0.35355338, %v1484_v51  ;;  %v2318_v0 = vmul.f32 %v13946_v46, %v15294_v42 }
 0x3a2   :  { %13957 = vpow2.f32 %v2217_v47  ;;  %v11203_v2 = vclamps-f32 %v2006_v48, 5.0  ;;  %v2317_v3 = vmul.f32 %v13948_v53, %v15299_v45 }
 0x3a3   :  { %13959 = vpow2.f32 %v2215_v56  ;;  %v11202_v4 = vclamps-f32 %v2005_v61, 5.0  ;;  %v12636_v7 = vpop.f32.mrb[44].mxu0  ;;  %2397 = vadd.xlane.f32.xlu1 %v2318_v0 }
 0x3a4   :  { %v13950_v8 = vpop.eup %13949  ;;  %v2221_v10 = vmul.f32 1.442695, %v11203_v2  ;;  %v2008_v15 = vmul.f32 0.35355338, %v12636_v7  ;;  %v1494_v17 = vpop.f32.mrb[45].mxu0  ;;  %2395 = vadd.xlane.f32.xlu0 %v2317_v3  ;;  %12721 = vmatprep.mubr.f32.mxu1 %v2317_v3 }
 0x3a5   :  { %v13952_v18 = vpop.eup %13951  ;;  %v2219_v19 = vmul.f32 1.442695, %v11202_v4  ;;  %v2007_v20 = vmul.f32 0.35355338, %v1494_v17  ;;  %12722 = vmatmul.mubr.f32.gmra.mrb[32].mxu1 %v2318_v0  ;;  %v2320_v57 = vmul.f32 %v13950_v8, %v15210_v60 }
 0x3a6   :  { %13961 = vpow2.f32 %v2221_v10  ;;  %v11205_v24 = vclamps-f32 %v2008_v15, 5.0  ;;  %v2319_v26 = vmul.f32 %v13952_v18, %v15215_v63 }
 0x3a7   :  { %13963 = vpow2.f32 %v2219_v19  ;;  %v11204_v27 = vclamps-f32 %v2007_v20, 5.0  ;;  %v12639_v28 = vpop.f32.mrb[46].mxu0  ;;  %2401 = vadd.xlane.f32.xlu1 %v2320_v57 }
 0x3a8   :  { %v13954_v29 = vpop.eup %13953  ;;  %v2225_v33 = vmul.f32 1.442695, %v11205_v24  ;;  %v2010_v40 = vmul.f32 0.35355338, %v12639_v28  ;;  %v1504_v41 = vpop.f32.mrb[47].mxu0  ;;  %12726 = vmatprep.mubr.f32.mxu0 %v2319_v26 }
 0x3a9   :  { %v13956_v25 = vpop.eup %13955  ;;  %v2223_v43 = vmul.f32 1.442695, %v11204_v27  ;;  %v2009_v44 = vmul.f32 0.35355338, %v1504_v41  ;;  %12727 = vmatmul.mubr.f32.vlgmr.msra.gmra.mrb[74].mxu0 %v2320_v57  ;;  %v2322_v53 = vmul.f32 %v13954_v29, %v15222_v14 }
 0x3aa   :  { %13965 = vpow2.f32 %v2225_v33  ;;  %v11207_v46 = vclamps-f32 %v2010_v40, 5.0  ;;  %v2321_v47 = vmul.f32 %v13956_v25, %v15227_v16 }
 0x3ab   :  { %13967 = vpow2.f32 %v2223_v43  ;;  %v11206_v48 = vclamps-f32 %v2009_v44, 5.0  ;;  %v12642_v51 = vpop.f32.mrb[48].mxu0  ;;  %2399 = vadd.xlane.f32.xlu1 %v2319_v26 }
 0x3ac   :  { %v13958_v56 = vpop.eup %13957  ;;  %v2229_v61 = vmul.f32 1.442695, %v11207_v46  ;;  %v2012_v0 = vmul.f32 0.35355338, %v12642_v51  ;;  %v1514_v2 = vpop.f32.mrb[49].mxu0  ;;  %12729 = vmatprep.mubr.f32.mxu0 %v2321_v47  ;;  %2403 = vadd.xlane.f32.xlu0 %v2321_v47 }
 0x3ad   :  { %v13960_v3 = vpop.eup %13959  ;;  %v2227_v4 = vmul.f32 1.442695, %v11206_v48  ;;  %v2011_v7 = vmul.f32 0.35355338, %v1514_v2  ;;  %12730 = vmatmul.mubr.f32.gmra.mrb[76].mxu0 %v2322_v53  ;;  %v2324_v18 = vmul.f32 %v13958_v56, %v15234_v21 }
 0x3ae   :  { %13969 = vpow2.f32 %v2229_v61  ;;  %v11209_v8 = vclamps-f32 %v2012_v0, 5.0  ;;  %v2323_v10 = vmul.f32 %v13960_v3, %v15239_v36 }
 0x3af   :  { %13971 = vpow2.f32 %v2227_v4  ;;  %v11208_v15 = vclamps-f32 %v2011_v7, 5.0  ;;  %v12645_v17 = vpop.f32.mrb[50].mxu0  ;;  %2405 = vadd.xlane.f32.xlu1 %v2322_v53 }
 0x3b0   :  { %v13962_v19 = vpop.eup %13961  ;;  %v2233_v20 = vmul.f32 1.442695, %v11209_v8  ;;  %v2014_v57 = vmul.f32 0.35355338, %v12645_v17  ;;  %v1524_v24 = vpop.f32.mrb[51].mxu0  ;;  %12732 = vmatprep.mubr.f32.mxu0 %v2323_v10  ;;  %2407 = vadd.xlane.f32.xlu0 %v2323_v10 }
 0x3b1   :  { %v13964_v26 = vpop.eup %13963  ;;  %v2231_v27 = vmul.f32 1.442695, %v11208_v15  ;;  %v2013_v28 = vmul.f32 0.35355338, %v1524_v24  ;;  %12733 = vmatmul.mubr.f32.gmra.mrb[78].mxu0 %v2324_v18  ;;  %v2326_v25 = vmul.f32 %v13962_v19, %v15246_v49 }
 0x3b2   :  { %13973 = vpow2.f32 %v2233_v20  ;;  %v11211_v29 = vclamps-f32 %v2014_v57, 5.0  ;;  %v2325_v33 = vmul.f32 %v13964_v26, %v15251_v52 }
 0x3b3   :  { %13975 = vpow2.f32 %v2231_v27  ;;  %v11210_v40 = vclamps-f32 %v2013_v28, 5.0  ;;  %v12650_v41 = vpop.f32.mrb[52].mxu0  ;;  %2409 = vadd.xlane.f32.xlu1 %v2324_v18 }
 0x3b4   :  { %v13966_v43 = vpop.eup %13965  ;;  %v2237_v44 = vmul.f32 1.442695, %v11211_v29  ;;  %v2016_v46 = vmul.f32 0.35355338, %v12650_v41  ;;  %v1679_v47 = vpop.f32.mrb[53].mxu0  ;;  %12735 = vmatprep.mubr.f32.mxu0 %v2325_v33  ;;  %2411 = vadd.xlane.f32.xlu0 %v2325_v33 }
 0x3b5   :  { %v13968_v48 = vpop.eup %13967  ;;  %v2235_v51 = vmul.f32 1.442695, %v11210_v40  ;;  %v2015_v53 = vmul.f32 0.35355338, %v1679_v47  ;;  %12736 = vmatmul.mubr.f32.gmra.mrb[80].mxu0 %v2326_v25  ;;  %v2328_v3 = vmul.f32 %v13966_v43, %v15258_v9 }
 0x3b6   :  { %13977 = vpow2.f32 %v2237_v44  ;;  %v11213_v56 = vclamps-f32 %v2016_v46, 5.0  ;;  %v2327_v61 = vmul.f32 %v13968_v48, %v15263_v13 }
 0x3b7   :  { %13979 = vpow2.f32 %v2235_v51  ;;  %v11212_v0 = vclamps-f32 %v2015_v53, 5.0  ;;  %v12653_v2 = vpop.f32.mrb[54].mxu0  ;;  %2413 = vadd.xlane.f32.xlu1 %v2326_v25 }
 0x3b8   :  { %v13970_v4 = vpop.eup %13969  ;;  %v2241_v7 = vmul.f32 1.442695, %v11213_v56  ;;  %v1689_v8 = vpop.f32.mrb[55].mxu0  ;;  %12738 = vmatprep.mubr.f32.mxu0 %v2327_v61  ;;  %2415 = vadd.xlane.f32.xlu0 %v2327_v61  ;;  %v2018_v17 = vmul.f32 0.35355338, %v12653_v2 }
 0x3b9   :  { %v13972_v10 = vpop.eup %13971  ;;  %v2239_v15 = vmul.f32 1.442695, %v11212_v0  ;;  %12739 = vmatmul.mubr.f32.gmra.mrb[82].mxu0 %v2328_v3  ;;  %v2017_v19 = vmul.f32 0.35355338, %v1689_v8  ;;  %v2330_v57 = vmul.f32 %v13970_v4, %v15270_v30 }
 0x3ba   :  { %v2329_v18 = vmul.f32 %v13972_v10, %v15275_v39  ;;  %v11215_v28 = vclamps-f32 %v2018_v17, 5.0 }
 0x3bb   :  { %13981 = vpow2.f32 %v2239_v15  ;;  %v12656_v20 = vpop.f32.mrb[56].mxu0  ;;  %2417 = vadd.xlane.f32.xlu1 %v2328_v3  ;;  %v11214_v33 = vclamps-f32 %v2017_v19, 5.0 }
 0x3bc   :  { %v13974_v24 = vpop.eup %13973  ;;  %13983 = vpow2.f32 %v2241_v7  ;;  %v1699_v26 = vpop.f32.mrb[57].mxu0  ;;  %12741 = vmatprep.mubr.f32.mxu0 %v2329_v18  ;;  %2419 = vadd.xlane.f32.xlu0 %v2329_v18  ;;  %v2245_v47 = vmul.f32 1.442695, %v11215_v28  ;;  %v2020_v48 = vmul.f32 0.35355338, %v12656_v20 }
 0x3bd   :  { %v13976_v27 = vpop.eup %13975  ;;  %12742 = vmatmul.mubr.f32.gmra.mrb[84].mxu0 %v2330_v57  ;;  %v2332_v41 = vmul.f32 %v13974_v24, %v15282_v59  ;;  %v2019_v53 = vmul.f32 0.35355338, %v1699_v26  ;;  %v2243_v0 = vmul.f32 1.442695, %v11214_v33 }
 0x3be   :  { %v2331_v29 = vmul.f32 %v13976_v27, %v15287_v6  ;;  %13985 = vpow2.f32 %v2245_v47  ;;  %v11217_v17 = vclamps-f32 %v2020_v48, 5.0 }
 0x3bf   :  { %v12676_v40 = vpop.f32.mrb[58].mxu0  ;;  %2421 = vadd.xlane.f32.xlu1 %v2330_v57  ;;  %v11216_v57 = vclamps-f32 %v2019_v53, 5.0 }
 0x3c0   :  { %v13978_v25 = vpop.eup %13977  ;;  %v2032_v43 = vmul.f32 0.35355338, %v12676_v40  ;;  %v1904_v44 = vpop.f32.mrb[59].mxu0  ;;  %12744 = vmatprep.mubr.f32.mxu0 %v2331_v29  ;;  %2423 = vadd.xlane.f32.xlu0 %v2331_v29 }
 0x3c1   :  { %v13980_v46 = vpop.eup %13979  ;;  %v2031_v51 = vmul.f32 0.35355338, %v1904_v44  ;;  %12745 = vmatmul.mubr.f32.gmra.mrb[86].mxu0 %v2332_v41  ;;  %v2334_v4 = vmul.f32 %v13978_v25, %v15294_v42 }
 0x3c2   :  { %v11229_v56 = vclamps-f32 %v2032_v43, 5.0  ;;  %v2333_v61 = vmul.f32 %v13980_v46, %v15299_v45  ;;  %v2247_v46 = vmul.f32 1.442695, %v11216_v57 }
 0x3c3   :  { %v11228_v2 = vclamps-f32 %v2031_v51, 5.0  ;;  %v12679_v3 = vpop.f32.mrb[60].mxu0  ;;  %2425 = vadd.xlane.f32.xlu1 %v2332_v41  ;;  %v2249_v41 = vmul.f32 1.442695, %v11217_v17 }
 0x3c4   :  { %v2273_v7 = vmul.f32 1.442695, %v11229_v56  ;;  %v2034_v8 = vmul.f32 0.35355338, %v12679_v3  ;;  %v1914_v10 = vpop.f32.mrb[61].mxu0  ;;  %12747 = vmatprep.mubr.f32.mxu0 %v2333_v61  ;;  %2427 = vadd.xlane.f32.xlu0 %v2333_v61 }
 0x3c5   :  { %v13982_v15 = vpop.eup %13981  ;;  %v2271_v18 = vmul.f32 1.442695, %v11228_v2  ;;  %v2033_v19 = vmul.f32 0.35355338, %v1914_v10  ;;  %12748 = vmatmul.mubr.f32.gmra.mrb[88].mxu0 %v2334_v4 }
 0x3c6   :  { %v13984_v20 = vpop.eup %13983  ;;  %13987 = vpow2.f32 %v2273_v7  ;;  %v11231_v24 = vclamps-f32 %v2034_v8, 5.0  ;;  %v2335_v26 = vmul.f32 %v13982_v15, %v15215_v63 }
 0x3c7   :  { %13989 = vpow2.f32 %v2271_v18  ;;  %v11230_v27 = vclamps-f32 %v2033_v19, 5.0  ;;  %v12682_v28 = vpop.f32.mrb[62].mxu0  ;;  %2429 = vadd.xlane.f32.xlu1 %v2334_v4  ;;  %v15321_v44 = vmul.f32 %v13984_v20, %v15210_v60 }
 0x3c8   :  { %13991 = vpow2.f32 %v2243_v0  ;;  %v2277_v29 = vmul.f32 1.442695, %v11231_v24  ;;  %v2036_v33 = vmul.f32 0.35355338, %v12682_v28  ;;  %v1924_v40 = vpop.f32.mrb[63].mxu0  ;;  %2431 = vadd.xlane.f32.xlu0 %v2335_v26  ;;  %12752 = vmatprep.mubr.f32.mxu1 %v2335_v26  ;;  %v13986_v4 = vpop.eup %13985 }
 0x3c9   :  { %v2275_v25 = vmul.f32 1.442695, %v11230_v27  ;;  %v2035_v43 = vmul.f32 0.35355338, %v1924_v40 }
 0x3ca   :  { %v11233_v47 = vclamps-f32 %v2036_v33, 5.0 }
 0x3cb   :  { %13993 = vpow2.f32 %v2275_v25  ;;  %v11232_v48 = vclamps-f32 %v2035_v43, 5.0  ;;  %v12685_v51 = vpop.f32.mrb[64].mxu0  ;;  %2433 = vadd.xlane.f32.xlu1 %v15321_v44 }
 0x3cc   :  { %13995 = vpow2.f32 %v2277_v29  ;;  %v2281_v53 = vmul.f32 1.442695, %v11233_v47  ;;  %v2038_v56 = vmul.f32 0.35355338, %v12685_v51  ;;  %v1934_v61 = vpop.f32.mrb[65].mxu0 }
 0x3cd   :  { %13997 = vpow2.f32 %v2249_v41  ;;  %v2279_v0 = vmul.f32 1.442695, %v11232_v48  ;;  %v2037_v2 = vmul.f32 0.35355338, %v1934_v61 }
 0x3ce   :  { %13999 = vpow2.f32 %v2247_v46  ;;  %v11235_v3 = vclamps-f32 %v2038_v56, 5.0 }
 0x3cf   :  { %14001 = vpow2.f32 %v2279_v0  ;;  %v11234_v7 = vclamps-f32 %v2037_v2, 5.0  ;;  %v12688_v8 = vpop.f32.mrb[66].mxu0 }
 0x3d0   :  { %v13988_v10 = vpop.eup %13987  ;;  %14003 = vpow2.f32 %v2281_v53  ;;  %v2040_v15 = vmul.f32 0.35355338, %v12688_v8  ;;  %v1944_v17 = vpop.f32.mrb[67].mxu0  ;;  %v2285_v26 = vmul.f32 1.442695, %v11235_v3 }
 0x3d1   :  { %v13990_v18 = vpop.eup %13989  ;;  %v2283_v19 = vmul.f32 1.442695, %v11234_v7  ;;  %v2039_v20 = vmul.f32 0.35355338, %v1944_v17  ;;  %v2352_v57 = vmul.f32 %v13988_v10, %v15210_v60  ;;  %v2338_v60 = vmul.f32 %v13986_v4, %v15222_v14 }
 0x3d2   :  { %v13992_v24 = vpop.eup %13991  ;;  %v11237_v27 = vclamps-f32 %v2040_v15, 5.0  ;;  %v2351_v28 = vmul.f32 %v13990_v18, %v15215_v63  ;;  %v3459_v63 = vld [vmem:[%s18782_s26] sm:$0xff] }
 0x3d3   :  { %14005 = vpow2.f32 %v2283_v19  ;;  %v11236_v29 = vclamps-f32 %v2039_v20, 5.0  ;;  %v12691_v33 = vpop.f32.mrb[68].mxu0  ;;  %2465 = vadd.xlane.f32.xlu1 %v2352_v57  ;;  %v2337_v61 = vmul.f32 %v13992_v24, %v15227_v16 }
 0x3d4   :  { %v2042_v40 = vmul.f32 0.35355338, %v12691_v33  ;;  %v12593_v41 = vpop.f32.mrb[6].mxu1  ;;  %v1954_v25 = vpop.f32.mrb[69].mxu0  ;;  %12778 = vmatprep.mubr.f32.mxu0 %v2351_v28  ;;  %2463 = vadd.xlane.f32.xlu0 %v2351_v28  ;;  %14007 = vpow2.f32 %v2285_v26  ;;  %v2289_v53 = vmul.f32 1.442695, %v11237_v27 }
 0x3d5   :  { %v13994_v43 = vpop.eup %13993  ;;  %v2287_v46 = vmul.f32 1.442695, %v11236_v29  ;;  %v2041_v47 = vmul.f32 0.35355338, %v1954_v25  ;;  %v1073_v48 = vpop.f32.mrb[7].mxu1  ;;  %12776 = vmatprep.subr.mxu0 %v12593_v41 }
 0x3d6   :  { %v13996_v51 = vpop.eup %13995  ;;  %v11239_v56 = vclamps-f32 %v2042_v40, 5.0  ;;  %12750 = vmatprep.subr.mxu1 %v1073_v48  ;;  %12777 = vmatpush3.xpose.msra.mxu0 %v12593_v41  ;;  %v2353_v15 = vmul.f32 %v13994_v43, %v15227_v16 }
 0x3d7   :  { %v13998_v0 = vpop.eup %13997  ;;  %14009 = vpow2.f32 %v2287_v46  ;;  %v11238_v2 = vclamps-f32 %v2041_v47, 5.0  ;;  %v12694_v3 = vpop.f32.mrb[70].mxu0  ;;  %2437 = vadd.xlane.f32.xlu1 %v2338_v60  ;;  %12751 = vmatpush3.xpose.msra.mxu1 %v1073_v48  ;;  %v2354_v24 = vmul.f32 %v13996_v51, %v15222_v14 }
 0x3d8   :  { %v14000_v7 = vpop.eup %13999  ;;  %v2044_v4 = vmul.f32 0.35355338, %v12694_v3  ;;  %v12659_v8 = vpop.f32.mrb[8].mxu1  ;;  %2435 = vadd.xlane.f32.xlu0 %v2337_v61  ;;  %12802 = vmatprep.subr.mxu1 %v3459_v63  ;;  %14011 = vpow2.f32 %v2289_v53  ;;  %v2293_v27 = vmul.f32 1.442695, %v11239_v56  ;;  %v2340_v33 = vmul.f32 %v13998_v0, %v15234_v21 }
 0x3d9   :  { %v1964_v10 = vpop.f32.mrb[71].mxu0  ;;  %v14002_v17 = vpop.eup %14001  ;;  %v2291_v18 = vmul.f32 1.442695, %v11238_v2  ;;  %v2022_v19 = vmul.f32 0.35355338, %v12659_v8  ;;  %12779 = vmatmul.mubr.f32.vlgmr.msra.gmra.mrb[90].mxu0 %v2352_v57  ;;  %v2339_v48 = vmul.f32 %v14000_v7, %v15239_v36 }
 0x3da   :  { %v2043_v20 = vmul.f32 0.35355338, %v1964_v10  ;;  %v14004_v26 = vpop.eup %14003  ;;  %v11241_v28 = vclamps-f32 %v2044_v4, 5.0  ;;  %v1709_v29 = vpop.f32.mrb[9].mxu1  ;;  %12753 = vmatmul.mubr.f32.vlgmr.msra.gmra.mrb[34].mxu1 %v15321_v44  ;;  %12781 = vmatprep.mubr.f32.mxu0 %v2353_v15  ;;  %v2355_v47 = vmul.f32 %v14002_v17, %v15239_v36 }
 0x3db   :  { %14013 = vpow2.f32 %v2291_v18  ;;  %v11219_v16 = vclamps-f32 %v2022_v19, 5.0  ;;  %v2021_v41 = vmul.f32 0.35355338, %v1709_v29  ;;  %v12697_v25 = vpop.f32.mrb[72].mxu0  ;;  %2469 = vadd.xlane.f32.xlu1 %v2354_v24  ;;  %12755 = vmatprep.mubr.f32.mxu1 %v2337_v61  ;;  %v2356_v2 = vmul.f32 %v14004_v26, %v15234_v21 }
 0x3dc   :  { %v11240_v40 = vclamps-f32 %v2043_v20, 5.0  ;;  %v2297_v57 = vmul.f32 1.442695, %v11241_v28  ;;  %v2046_v43 = vmul.f32 0.35355338, %v12697_v25  ;;  %v12662_v14 = vpop.f32.mrb[10].mxu1  ;;  %2467 = vadd.xlane.f32.xlu0 %v2353_v15  ;;  %12803 = vmatpush3.msra.mxu1 %v3459_v63  ;;  %14015 = vpow2.f32 %v2293_v27 }
 0x3dd   :  { %v1974_v46 = vpop.f32.mrb[73].mxu0  ;;  %v14006_v44 = vpop.eup %14005  ;;  %v2253_v51 = vmul.f32 1.442695, %v11219_v16  ;;  %v11218_v56 = vclamps-f32 %v2021_v41, 5.0  ;;  %12782 = vmatmul.mubr.f32.gmra.mrb[92].mxu0 %v2354_v24  ;;  %v2024_v3 = vmul.f32 0.35355338, %v12662_v14 }
 0x3de   :  { %v2295_v53 = vmul.f32 1.442695, %v11240_v40  ;;  %v1719_v0 = vpop.f32.mrb[11].mxu1  ;;  %v11243_v61 = vclamps-f32 %v2046_v43, 5.0  ;;  %v2045_v4 = vmul.f32 0.35355338, %v1974_v46  ;;  %12756 = vmatmul.mubr.f32.gmra.mrb[36].mxu1 %v2338_v60  ;;  %12784 = vmatprep.mubr.f32.mxu0 %v2355_v47  ;;  %v15339_v36 = vmul.f32 %v14006_v44, %v15251_v52  ;;  %v14008_v63 = vpop.eup %14007 }
 0x3df   :  { %14017 = vpow2.f32 %v2253_v51  ;;  %v2251_v8 = vmul.f32 1.442695, %v11218_v56  ;;  %v2023_v10 = vmul.f32 0.35355338, %v1719_v0  ;;  %2441 = vadd.xlane.f32.xlu1 %v2340_v33  ;;  %12758 = vmatprep.mubr.f32.mxu1 %v2339_v48  ;;  %v11221_v15 = vclamps-f32 %v2024_v3, 5.0 }
 0x3e0   :  { %14019 = vpow2.f32 %v2295_v53  ;;  %v2301_v7 = vmul.f32 1.442695, %v11243_v61  ;;  %v11242_v17 = vclamps-f32 %v2045_v4, 5.0  ;;  %v12665_v21 = vpop.f32.mrb[12].mxu1  ;;  %2439 = vadd.xlane.f32.xlu0 %v2339_v48  ;;  %v2358_v16 = vmul.f32 %v14008_v63, %v15246_v49 }
 0x3e1   :  { %v14010_v18 = vpop.eup %14009  ;;  %14021 = vpow2.f32 %v2251_v8  ;;  %v11220_v19 = vclamps-f32 %v2023_v10, 5.0  ;;  %v2026_v60 = vmul.f32 0.35355338, %v12665_v21  ;;  %v1729_v20 = vpop.f32.mrb[13].mxu1  ;;  %12785 = vmatmul.mubr.f32.gmra.mrb[94].mxu0 %v2356_v2  ;;  %v2257_v24 = vmul.f32 1.442695, %v11221_v15 }
 0x3e2   :  { %14023 = vpow2.f32 %v2297_v57  ;;  %v2299_v26 = vmul.f32 1.442695, %v11242_v17  ;;  %v2025_v27 = vmul.f32 0.35355338, %v1729_v20  ;;  %12759 = vmatmul.mubr.f32.gmra.mrb[38].mxu1 %v2340_v33  ;;  %12787 = vmatprep.mubr.f32.mxu0 %v15339_v36  ;;  %v14012_v40 = vpop.eup %14011  ;;  %v15344_v43 = vmul.f32 %v14010_v18, %v15263_v13 }
 0x3e3   :  { %14025 = vpow2.f32 %v2301_v7  ;;  %v2255_v28 = vmul.f32 1.442695, %v11220_v19  ;;  %v11223_v29 = vclamps-f32 %v2026_v60, 5.0  ;;  %2473 = vadd.xlane.f32.xlu1 %v2356_v2  ;;  %v2360_v53 = vmul.f32 %v14012_v40, %v15258_v9 }
 0x3e4   :  { %14027 = vpow2.f32 %v2257_v24  ;;  %v11222_v41 = vclamps-f32 %v2025_v27, 5.0  ;;  %v12668_v25 = vpop.f32.mrb[14].mxu1  ;;  %2471 = vadd.xlane.f32.xlu0 %v2355_v47 }
 0x3e5   :  { %v14014_v57 = vpop.eup %14013  ;;  %14029 = vpow2.f32 %v2299_v26  ;;  %v2261_v14 = vmul.f32 1.442695, %v11223_v29  ;;  %v2028_v33 = vmul.f32 0.35355338, %v12668_v25  ;;  %v1739_v46 = vpop.f32.mrb[15].mxu1  ;;  %12788 = vmatmul.mubr.f32.gmra.mrb[96].mxu0 %v2358_v16 }
 0x3e6   :  { %14031 = vpow2.f32 %v2255_v28  ;;  %v2259_v48 = vmul.f32 1.442695, %v11222_v41  ;;  %v2027_v44 = vmul.f32 0.35355338, %v1739_v46  ;;  %12790 = vmatprep.mubr.f32.mxu0 %v15344_v43  ;;  %v14016_v56 = vpop.eup %14015  ;;  %v15349_v2 = vmul.f32 %v14014_v57, %v15275_v39 }
 0x3e7   :  { %v11225_v51 = vclamps-f32 %v2028_v33, 5.0  ;;  %v2362_v18 = vmul.f32 %v14016_v56, %v15270_v30 }
 0x3e8   :  { %14033 = vpow2.f32 %v2259_v48  ;;  %v11224_v47 = vclamps-f32 %v2027_v44, 5.0  ;;  %v12671_v0 = vpop.f32.mrb[16].mxu1 }
 0x3e9   :  { %v14018_v61 = vpop.eup %14017  ;;  %14035 = vpow2.f32 %v2261_v14  ;;  %v2265_v3 = vmul.f32 1.442695, %v11225_v51  ;;  %v2030_v4 = vmul.f32 0.35355338, %v12671_v0  ;;  %v1749_v8 = vpop.f32.mrb[17].mxu1  ;;  %12791 = vmatmul.mubr.f32.gmra.mrb[98].mxu0 %v2360_v53 }
 0x3ea   :  { %v14020_v10 = vpop.eup %14019  ;;  %v2263_v63 = vmul.f32 1.442695, %v11224_v47  ;;  %v2029_v7 = vmul.f32 0.35355338, %v1749_v8  ;;  %12793 = vmatprep.mubr.f32.mxu0 %v15349_v2  ;;  %v2342_v15 = vmul.f32 %v14018_v61, %v15246_v49 }
 0x3eb   :  { %v14022_v17 = vpop.eup %14021  ;;  %v11227_v21 = vclamps-f32 %v2030_v4, 5.0  ;;  %v2363_v27 = vmul.f32 %v14020_v10, %v15287_v6 }
 0x3ec   :  { %v14024_v19 = vpop.eup %14023  ;;  %14037 = vpow2.f32 %v2263_v63  ;;  %v11226_v60 = vclamps-f32 %v2029_v7, 5.0  ;;  %2445 = vadd.xlane.f32.xlu1 %v2342_v15  ;;  %v2341_v20 = vmul.f32 %v14022_v17, %v15251_v52  ;;  %v3461_v17 = vld [vmem:[%s18782_s26 + $0x10] sm:$0xff] }
 0x3ed   :  { %v14026_v24 = vpop.eup %14025  ;;  %14039 = vpow2.f32 %v2265_v3  ;;  %v2269_v26 = vmul.f32 1.442695, %v11227_v21  ;;  %12794 = vmatmul.mubr.f32.gmra.mrb[100].mxu0 %v2362_v18  ;;  %v2364_v40 = vmul.f32 %v14024_v19, %v15282_v59  ;;  %v15387_v21 = vld [vmem:[%s18782_s26 + $0x18] sm:$0xff]  ;;  %12854 = vmatprep.subr.mxu1 %v3461_v17 }
 0x3ee   :  { %v14028_v28 = vpop.eup %14027  ;;  %v2267_v29 = vmul.f32 1.442695, %v11226_v60  ;;  %2443 = vadd.xlane.f32.xlu0 %v2341_v20  ;;  %12761 = vmatprep.mubr.f32.mxu1 %v2341_v20  ;;  %v2366_v46 = vmul.f32 %v14026_v24, %v15294_v42 }
 0x3ef   :  { %v14030_v49 = vpop.eup %14029  ;;  %12762 = vmatmul.mubr.f32.gmra.mrb[40].mxu1 %v2342_v15  ;;  %12796 = vmatprep.mubr.f32.mxu0 %v2363_v27  ;;  %v2344_v14 = vmul.f32 %v14028_v28, %v15258_v9 }
 0x3f0   :  { %v14032_v41 = vpop.eup %14031  ;;  %14041 = vpow2.f32 %v2267_v29  ;;  %2477 = vadd.xlane.f32.xlu1 %v2358_v16  ;;  %v2365_v52 = vmul.f32 %v14030_v49, %v15299_v45 }
 0x3f1   :  { %14043 = vpow2.f32 %v2269_v26  ;;  %12797 = vmatmul.mubr.f32.gmra.mrb[102].mxu0 %v2364_v40  ;;  %v2343_v25 = vmul.f32 %v14032_v41, %v15263_v13 }
 0x3f2   :  { %v14034_v57 = vpop.eup %14033  ;;  %2475 = vadd.xlane.f32.xlu0 %v15339_v36  ;;  %12799 = vmatprep.mubr.f32.mxu0 %v2365_v52 }
 0x3f3   :  { %v14036_v33 = vpop.eup %14035  ;;  %12764 = vmatprep.mubr.f32.mxu1 %v2343_v25  ;;  %v2345_v48 = vmul.f32 %v14034_v57, %v15275_v39 }
 0x3f4   :  { %12765 = vmatmul.mubr.f32.gmra.mrb[42].mxu1 %v2344_v14  ;;  %2449 = vadd.xlane.f32.xlu1 %v2344_v14  ;;  %v2346_v13 = vmul.f32 %v14036_v33, %v15270_v30 }
 0x3f5   :  { %12800 = vmatmul.mubr.f32.gmra.mrb[104].mxu0 %v2366_v46  ;;  %12767 = vmatprep.mubr.f32.mxu1 %v2345_v48 }
 0x3f6   :  { %v14038_v16 = vpop.eup %14037  ;;  %2447 = vadd.xlane.f32.xlu0 %v2343_v25 }
 0x3f7   :  { %v14040_v44 = vpop.eup %14039  ;;  %v2347_v36 = vmul.f32 %v14038_v16, %v15287_v6  ;;  %v3460_v6 = vld [vmem:[%s18782_s26 + $0x8] sm:$0xff] }
 0x3f8   :  { %12768 = vmatmul.mubr.f32.gmra.mrb[44].mxu1 %v2346_v13  ;;  %2481 = vadd.xlane.f32.xlu1 %v2360_v53  ;;  %v2348_v51 = vmul.f32 %v14040_v44, %v15282_v59  ;;  %v2370_v59 = vpop.xlane.xlu1 %2369 }
 0x3f9   :  { %12770 = vmatprep.mubr.f32.mxu1 %v2347_v36  ;;  %12828 = vmatprep.subr.mxu0 %v3460_v6  ;;  %v2496_v4 = vadd.f32 1e-06, %v2370_v59 }
 0x3fa   :  { %v14042_v9 = vpop.eup %14041  ;;  %2479 = vadd.xlane.f32.xlu0 %v15344_v43  ;;  %12829 = vmatpush3.msra.mxu0 %v3460_v6 }
 0x3fb   :  { %v14044_v39 = vpop.eup %14043  ;;  %v2349_v56 = vmul.f32 %v14042_v9, %v15299_v45  ;;  %v2368_v45 = vpop.xlane.xlu0 %2367  ;;  %12880 = vmatprep.subr.mxu0 %v15387_v21 }
 0x3fc   :  { %12771 = vmatmul.mubr.f32.gmra.mrb[46].mxu1 %v2348_v51  ;;  %2453 = vadd.xlane.f32.xlu1 %v2346_v13  ;;  %v2350_v30 = vmul.f32 %v14044_v39, %v15294_v42 }
 0x3fd   :  { %12773 = vmatprep.mubr.f32.mxu1 %v2349_v56 }
 0x3fe   :  { %2451 = vadd.xlane.f32.xlu0 %v2345_v48 }
 0x400   :  { %12774 = vmatmul.mubr.f32.gmra.mrb[48].mxu1 %v2350_v30  ;;  %2485 = vadd.xlane.f32.xlu1 %v2362_v18  ;;  %v2374_v42 = vpop.xlane.xlu1 %2373 }
 0x401   :  { %v2372_v53 = vpop.xlane.xlu0 %2371  ;;  %v2498_v18 = vadd.f32 1e-06, %v2374_v42 }
 0x402   :  { %2483 = vadd.xlane.f32.xlu0 %v15349_v2  ;;  %v2495_v2 = vadd.f32 1e-06, %v2368_v45  ;;  %v2497_v15 = vadd.f32 1e-06, %v2372_v53 }
 0x404   :  { %2457 = vadd.xlane.f32.xlu1 %v2348_v51  ;;  %14045 = vrcp.f32 %v2495_v2 }
 0x405   :  { %14047 = vrcp.f32 %v2496_v4 }
 0x406   :  { %2455 = vadd.xlane.f32.xlu0 %v2347_v36  ;;  %14049 = vrcp.f32 %v2497_v15 }
 0x407   :  { %14051 = vrcp.f32 %v2498_v18 }
 0x408   :  { %2489 = vadd.xlane.f32.xlu1 %v2364_v40  ;;  %v2378_v43 = vpop.xlane.xlu1 %2377 }
 0x409   :  { %v2376_v0 = vpop.xlane.xlu0 %2375  ;;  %v2500_v49 = vadd.f32 1e-06, %v2378_v43 }
 0x40a   :  { %2487 = vadd.xlane.f32.xlu0 %v2363_v27  ;;  %v2499_v28 = vadd.f32 1e-06, %v2376_v0 }
 0x40c   :  { %2461 = vadd.xlane.f32.xlu1 %v2350_v30  ;;  %14053 = vrcp.f32 %v2499_v28 }
 0x40d   :  { %14055 = vrcp.f32 %v2500_v49 }
 0x40e   :  { %2459 = vadd.xlane.f32.xlu0 %v2349_v56  ;;  %v14046_v24 = vpop.eup %14045 }
 0x40f   :  { %v14048_v27 = vpop.eup %14047  ;;  %v3203_v29 = vmul.f32 %v14046_v24, %v2495_v2 }
 0x410   :  { %2493 = vadd.xlane.f32.xlu1 %v2366_v46  ;;  %v2382_v47 = vpop.xlane.xlu1 %2381  ;;  %v3204_v41 = vmul.f32 %v14048_v27, %v2496_v4  ;;  %v14050_v14 = vpop.eup %14049 }
 0x411   :  { %v2380_v3 = vpop.xlane.xlu0 %2379  ;;  %v3267_v25 = vsub.f32 2.0, %v3203_v29  ;;  %v14052_v48 = vpop.eup %14051  ;;  %v3205_v13 = vmul.f32 %v14050_v14, %v2497_v15  ;;  %v2502_v44 = vadd.f32 1e-06, %v2382_v47 }
 0x412   :  { %2491 = vadd.xlane.f32.xlu0 %v2365_v52  ;;  %v3268_v33 = vsub.f32 2.0, %v3204_v41  ;;  %v2501_v16 = vadd.f32 1e-06, %v2380_v3  ;;  %v3206_v39 = vmul.f32 %v14052_v48, %v2498_v18 }
 0x413   :  { %v3331_v51 = vmul.f32 %v14046_v24, %v3267_v25  ;;  %v3269_v45 = vsub.f32 2.0, %v3205_v13 }
 0x414   :  { %v3332_v56 = vmul.f32 %v14048_v27, %v3268_v33  ;;  %14057 = vrcp.f32 %v2501_v16  ;;  %v3270_v47 = vsub.f32 2.0, %v3206_v39 }
 0x415   :  { %14059 = vrcp.f32 %v2502_v44  ;;  %v3333_v27 = vmul.f32 %v14050_v14, %v3269_v45 }
 0x416   :  { %v14054_v53 = vpop.eup %14053  ;;  %v3334_v41 = vmul.f32 %v14052_v48, %v3270_v47 }
 0x417   :  { %v14056_v3 = vpop.eup %14055  ;;  %v3207_v4 = vmul.f32 %v14054_v53, %v2499_v28 }
 0x418   :  { %v15373_v61 = vpop.xlane.xlu1 %2385  ;;  %v3208_v29 = vmul.f32 %v14056_v3, %v2500_v49 }
 0x419   :  { %v2384_v10 = vpop.xlane.xlu0 %2383  ;;  %v2504_v15 = vadd.f32 1e-06, %v15373_v61 }
 0x41a   :  { %v2503_v2 = vadd.f32 1e-06, %v2384_v10  ;;  %v3272_v61 = vsub.f32 2.0, %v3208_v29 }
 0x41c   :  { %14061 = vrcp.f32 %v2503_v2  ;;  %v3336_v45 = vmul.f32 %v14056_v3, %v3272_v61 }
 0x41d   :  { %14063 = vrcp.f32 %v2504_v15 }
 0x41e   :  { %v14058_v10 = vpop.eup %14057 }
 0x41f   :  { %v3209_v49 = vmul.f32 %v14058_v10, %v2501_v16 }
 0x420   :  { %v15375_v8 = vpop.xlane.xlu1 %2389 }
 0x421   :  { %v15379_v7 = vpop.xlane.xlu0 %2387  ;;  %v2506_v14 = vadd.f32 1e-06, %v15375_v8 }
 0x422   :  { %v2505_v28 = vadd.f32 1e-06, %v15379_v7 }
 0x424   :  { %14065 = vrcp.f32 %v2505_v28 }
 0x425   :  { %14067 = vrcp.f32 %v2506_v14 }
 0x428   :  { %v15377_v63 = vpop.xlane.xlu1 %2393 }
 0x429   :  { %v15392_v60 = vpop.xlane.xlu0 %2391 }
 0x430   :  { %v15389_v19 = vpop.xlane.xlu1 %2397 }
 0x431   :  { %v15396_v26 = vpop.xlane.xlu0 %2395 }
 0x434   :  { %v15394_v20 = vpop.xlane.xlu1 %2401 }
 0x438   :  { %v15398_v40 = vpop.xlane.xlu1 %2399 }
 0x439   :  { %v15400_v52 = vpop.xlane.xlu0 %2403 }
 0x43c   :  { %v15402_v57 = vpop.xlane.xlu1 %2405 }
 0x43d   :  { %v15404_v46 = vpop.xlane.xlu0 %2407 }
 0x440   :  { %v15406_v36 = vpop.xlane.xlu1 %2409  ;;  %v12702_v9 = vpop.f32.mrb[18].mxu1 }
 0x441   :  { %v15408_v30 = vpop.xlane.xlu0 %2411  ;;  %v2625_v6 = vpop.f32.mrb[19].mxu1  ;;  %v3396_v42 = vmul.f32 %v12702_v9, %v3332_v56 }
 0x442   :  { %v3395_v59 = vmul.f32 %v3331_v51, %v2625_v6  ;;  %v3271_v51 = vsub.f32 2.0, %v3207_v4 }
 0x444   :  { %v15410_v43 = vpop.xlane.xlu1 %2413  ;;  %12804 = vmatprep.mubr.msk.f32.mxu1 %vm1114_vm3, %v3395_v59  ;;  %v3335_v6 = vmul.f32 %v14054_v53, %v3271_v51 }
 0x445   :  { %v15413_v0 = vpop.xlane.xlu0 %2415  ;;  %12805 = vmatmul.mubr.msk.f32.vlgmr.msra.gmra.mrb[50].mxu1 %vm1114_vm3, %v3396_v42 }
 0x446   :  { %12855 = vmatpush3.msra.mxu1 %v3461_v17  ;;  %v14060_v17 = vpop.eup %14059 }
 0x447   :  { %v3210_v59 = vmul.f32 %v14060_v17, %v2502_v44  ;;  %v14062_v7 = vpop.eup %14061  ;;  %v2507_v44 = vadd.f32 1e-06, %v15392_v60 }
 0x448   :  { %v15417_v18 = vpop.xlane.xlu1 %2417  ;;  %v12705_v24 = vpop.f32.mrb[20].mxu1  ;;  %v3211_v3 = vmul.f32 %v14062_v7, %v2503_v2  ;;  %v2509_v2 = vadd.f32 1e-06, %v15396_v26  ;;  %v2512_v26 = vadd.f32 1e-06, %v15394_v20 }
 0x449   :  { %v2635_v25 = vpop.f32.mrb[21].mxu1  ;;  %v3398_v13 = vmul.f32 %v12705_v24, %v3334_v41  ;;  %v15419_v9 = vpop.xlane.xlu0 %2419  ;;  %v3274_v16 = vsub.f32 2.0, %v3210_v59  ;;  %v2508_v41 = vadd.f32 1e-06, %v15377_v63  ;;  %14069 = vrcp.f32 %v2507_v44 }
 0x44a   :  { %v3397_v33 = vmul.f32 %v3333_v27, %v2635_v25  ;;  %v3273_v27 = vsub.f32 2.0, %v3209_v49  ;;  %v14064_v8 = vpop.eup %14063 }
 0x44b   :  { %v3338_v51 = vmul.f32 %v14060_v17, %v3274_v16  ;;  %14071 = vrcp.f32 %v2508_v41  ;;  %v14066_v60 = vpop.eup %14065 }
 0x44c   :  { %v15421_v39 = vpop.xlane.xlu1 %2421  ;;  %12807 = vmatprep.mubr.msk.f32.mxu1 %vm1114_vm3, %v3397_v33  ;;  %v3337_v33 = vmul.f32 %v14058_v10, %v3273_v27  ;;  %v14068_v63 = vpop.eup %14067  ;;  %v2510_v10 = vadd.f32 1e-06, %v15389_v19  ;;  %14073 = vrcp.f32 %v2509_v2 }
 0x44d   :  { %12808 = vmatmul.mubr.msk.f32.gmra.mrb[52].mxu1 %vm1114_vm3, %v3398_v13  ;;  %v15429_v42 = vpop.xlane.xlu0 %2423  ;;  %v3212_v13 = vmul.f32 %v14064_v8, %v2504_v15  ;;  %v3213_v15 = vmul.f32 %v14066_v60, %v2505_v28  ;;  %v3214_v27 = vmul.f32 %v14068_v63, %v2506_v14 }
 0x44e   :  { %14075 = vrcp.f32 %v2510_v10 }
 0x450   :  { %v15427_v48 = vpop.xlane.xlu1 %2425  ;;  %v12708_v56 = vpop.f32.mrb[22].mxu1 }
 0x451   :  { %v2645_v47 = vpop.f32.mrb[23].mxu1  ;;  %v3400_v24 = vmul.f32 %v12708_v56, %v3336_v45  ;;  %v15436_v53 = vpop.xlane.xlu0 %2427  ;;  %v3276_v45 = vsub.f32 2.0, %v3212_v13  ;;  %v2511_v13 = vadd.f32 1e-06, %v15398_v40 }
 0x452   :  { %v3399_v4 = vmul.f32 %v3335_v6, %v2645_v47  ;;  %v3275_v6 = vsub.f32 2.0, %v3211_v3 }
 0x453   :  { %v3340_v16 = vmul.f32 %v14064_v8, %v3276_v45  ;;  %v14070_v19 = vpop.eup %14069  ;;  %14077 = vrcp.f32 %v2511_v13 }
 0x454   :  { %12810 = vmatprep.mubr.msk.f32.mxu1 %vm1114_vm3, %v3399_v4  ;;  %v15433_v29 = vpop.xlane.xlu1 %2429  ;;  %v3215_v40 = vmul.f32 %v14070_v19, %v2507_v44  ;;  %14079 = vrcp.f32 %v2512_v26  ;;  %v15467_v44 = vadd.f32 1e-06, %v15406_v36 }
 0x455   :  { %12811 = vmatmul.mubr.msk.f32.gmra.mrb[54].mxu1 %vm1114_vm3, %v3400_v24  ;;  %v15442_v47 = vpop.xlane.xlu0 %2431  ;;  %v3339_v24 = vmul.f32 %v14062_v7, %v3275_v6  ;;  %v3278_v7 = vsub.f32 2.0, %v3214_v27  ;;  %v14072_v8 = vpop.eup %14071 }
 0x456   :  { %v3216_v45 = vmul.f32 %v14072_v8, %v2508_v41 }
 0x458   :  { %v12711_v25 = vpop.f32.mrb[24].mxu1  ;;  %v15439_v59 = vpop.xlane.xlu1 %2433  ;;  %v3280_v41 = vsub.f32 2.0, %v3216_v45 }
 0x459   :  { %v2655_v61 = vpop.f32.mrb[25].mxu1  ;;  %v3402_v56 = vmul.f32 %v12711_v25, %v3338_v51 }
 0x45a   :  { %v3401_v49 = vmul.f32 %v3337_v33, %v2655_v61  ;;  %v3277_v61 = vsub.f32 2.0, %v3213_v15  ;;  %v3344_v45 = vmul.f32 %v14072_v8, %v3280_v41 }
 0x45c   :  { %12813 = vmatprep.mubr.msk.f32.mxu1 %vm1114_vm3, %v3401_v49  ;;  %v2513_v49 = vadd.f32 1e-06, %v15400_v52  ;;  %v3341_v20 = vmul.f32 %v14066_v60, %v3277_v61  ;;  %v3279_v52 = vsub.f32 2.0, %v3215_v40  ;;  %v15478_v61 = vadd.f32 1e-06, %v15410_v43 }
 0x45d   :  { %12814 = vmatmul.mubr.msk.f32.gmra.mrb[56].mxu1 %vm1114_vm3, %v3402_v56  ;;  %v2514_v56 = vadd.f32 1e-06, %v15402_v57  ;;  %v14074_v57 = vpop.eup %14073 }
 0x45e   :  { %14081 = vrcp.f32 %v2513_v49  ;;  %v14076_v60 = vpop.eup %14075 }
 0x45f   :  { %14083 = vrcp.f32 %v2514_v56  ;;  %v14078_v40 = vpop.eup %14077 }
 0x460   :  { %v15447_v17 = vpop.xlane.xlu1 %2465  ;;  %v12714_v4 = vpop.f32.mrb[26].mxu1  ;;  %v3219_v43 = vmul.f32 %v14078_v40, %v2511_v13 }
 0x461   :  { %v15449_v3 = vpop.xlane.xlu0 %2463  ;;  %v2665_v25 = vpop.f32.mrb[27].mxu1  ;;  %v3404_v51 = vmul.f32 %v12714_v4, %v3340_v16  ;;  %v3342_v4 = vmul.f32 %v14068_v63, %v3278_v7  ;;  %v2515_v16 = vadd.f32 1e-06, %v15404_v46  ;;  %v15472_v63 = vadd.f32 1e-06, %v15408_v30 }
 0x462   :  { %v3403_v33 = vmul.f32 %v3339_v24, %v2665_v25  ;;  %v3343_v7 = vmul.f32 %v14070_v19, %v3279_v52  ;;  %v15484_v30 = vadd.f32 1e-06, %v15413_v0  ;;  %v15488_v19 = vadd.f32 1e-06, %v15417_v18 }
 0x463   :  { %14085 = vrcp.f32 %v2515_v16  ;;  %v15502_v18 = vadd.f32 1e-06, %v15421_v39 }
 0x464   :  { %v15453_v28 = vpop.xlane.xlu1 %2437  ;;  %12816 = vmatprep.mubr.msk.f32.mxu1 %vm1114_vm3, %v3403_v33  ;;  %14087 = vrcp.f32 %v15467_v44 }
 0x465   :  { %v15456_v14 = vpop.xlane.xlu0 %2435  ;;  %12817 = vmatmul.mubr.msk.f32.gmra.mrb[58].mxu1 %vm1114_vm3, %v3404_v51  ;;  %v3217_v51 = vmul.f32 %v14074_v57, %v2509_v2  ;;  %14089 = vrcp.f32 %v15472_v63 }
 0x466   :  { %14091 = vrcp.f32 %v15478_v61 }
 0x467   :  { %v3281_v55 = vsub.f32 2.0, %v3217_v51  ;;  %14093 = vrcp.f32 %v15484_v30  ;;  %v15496_v51 = vadd.f32 1e-06, %v15419_v9 }
 0x468   :  { %v12717_v6 = vpop.f32.mrb[28].mxu1  ;;  %v15461_v15 = vpop.xlane.xlu1 %2469  ;;  %14095 = vrcp.f32 %v15488_v19 }
 0x469   :  { %v2675_v24 = vpop.f32.mrb[29].mxu1  ;;  %v3406_v25 = vmul.f32 %v12717_v6, %v3342_v4  ;;  %v15464_v33 = vpop.xlane.xlu0 %2467  ;;  %v3218_v6 = vmul.f32 %v14076_v60, %v2510_v10  ;;  %14097 = vrcp.f32 %v15496_v51 }
 0x46a   :  { %v3405_v27 = vmul.f32 %v3341_v20, %v2675_v24  ;;  %v14080_v24 = vpop.eup %14079  ;;  %14099 = vrcp.f32 %v15502_v18 }
 0x46b   :  { %v3282_v10 = vsub.f32 2.0, %v3218_v6  ;;  %v3220_v8 = vmul.f32 %v14080_v24, %v2512_v26 }
 0x46c   :  { %12819 = vmatprep.mubr.msk.f32.mxu1 %vm1114_vm3, %v3405_v27  ;;  %v15474_v46 = vpop.xlane.xlu1 %2441 }
 0x46d   :  { %12820 = vmatmul.mubr.msk.f32.gmra.mrb[60].mxu1 %vm1114_vm3, %v3406_v25  ;;  %v15480_v20 = vpop.xlane.xlu0 %2439  ;;  %v14082_v25 = vpop.eup %14081 }
 0x46e   :  { %v14084_v41 = vpop.eup %14083  ;;  %v3221_v0 = vmul.f32 %v14082_v25, %v2513_v49 }
 0x46f   :  { %v14086_v6 = vpop.eup %14085 }
 0x470   :  { %v12720_v36 = vpop.f32.mrb[30].mxu1  ;;  %v15491_v52 = vpop.xlane.xlu1 %2473  ;;  %v3285_v37 = vsub.f32 2.0, %v3221_v0  ;;  %v3223_v34 = vmul.f32 %v14086_v6, %v2515_v16 }
 0x471   :  { %v2685_v4 = vpop.f32.mrb[31].mxu1  ;;  %v3408_v2 = vmul.f32 %v12720_v36, %v3344_v45  ;;  %v15498_v13 = vpop.xlane.xlu0 %2471  ;;  %v3283_v36 = vsub.f32 2.0, %v3219_v43  ;;  %v3284_v45 = vsub.f32 2.0, %v3220_v8  ;;  %v15508_v43 = vadd.f32 1e-06, %v15429_v42 }
 0x472   :  { %v3407_v27 = vmul.f32 %v3343_v7, %v2685_v4  ;;  %v3345_v7 = vmul.f32 %v14074_v57, %v3281_v55  ;;  %v3222_v4 = vmul.f32 %v14084_v41, %v2514_v56  ;;  %v14088_v38 = vpop.eup %14087  ;;  %v15514_v55 = vadd.f32 1e-06, %v15427_v48 }
 0x473   :  { %v3347_v57 = vmul.f32 %v14078_v40, %v3283_v36  ;;  %v3224_v8 = vmul.f32 %v14088_v38, %v15467_v44  ;;  %v3348_v0 = vmul.f32 %v14080_v24, %v3284_v45  ;;  %14101 = vrcp.f32 %v15508_v43 }
 0x474   :  { %12822 = vmatprep.mubr.msk.f32.mxu1 %vm1114_vm3, %v3407_v27  ;;  %v3346_v27 = vmul.f32 %v14076_v60, %v3282_v10  ;;  %v14090_v60 = vpop.eup %14089  ;;  %v3286_v10 = vsub.f32 2.0, %v3222_v4  ;;  %v15523_v48 = vadd.f32 1e-06, %v15436_v53  ;;  %v3349_v40 = vmul.f32 %v14082_v25, %v3285_v37 }
 0x475   :  { %12823 = vmatmul.mubr.msk.f32.gmra.mrb[62].mxu1 %vm1114_vm3, %v3408_v2  ;;  %v14092_v16 = vpop.eup %14091  ;;  %v3287_v36 = vsub.f32 2.0, %v3223_v34  ;;  %v3225_v44 = vmul.f32 %v14090_v60, %v15472_v63  ;;  %14103 = vrcp.f32 %v15514_v55  ;;  %v15530_v24 = vadd.f32 1e-06, %v15433_v29 }
 0x476   :  { %v14094_v45 = vpop.eup %14093  ;;  %v3288_v4 = vsub.f32 2.0, %v3224_v8  ;;  %v3226_v53 = vmul.f32 %v14092_v16, %v15478_v61  ;;  %14105 = vrcp.f32 %v15523_v48 }
 0x477   :  { %v14096_v34 = vpop.eup %14095  ;;  %v3289_v25 = vsub.f32 2.0, %v3225_v44  ;;  %v3227_v8 = vmul.f32 %v14094_v45, %v15484_v30  ;;  %14107 = vrcp.f32 %v15530_v24 }
 0x478   :  { %v12723_v26 = vpop.f32.mrb[32].mxu1 }
 0x479   :  { %v15504_v49 = vpop.xlane.xlu1 %2445  ;;  %v2695_v2 = vpop.f32.mrb[33].mxu1  ;;  %v3410_v35 = vmul.f32 %v12723_v26, %v3346_v27  ;;  %v3291_v30 = vsub.f32 2.0, %v3227_v8  ;;  %v15555_v8 = vadd.f32 1e-06, %v15442_v47 }
 0x47a   :  { %v3409_v9 = vmul.f32 %v3345_v7, %v2695_v2 }
 0x47b   :  { %v15510_v39 = vpop.xlane.xlu0 %2443  ;;  %14109 = vrcp.f32 %v15555_v8 }
 0x47c   :  { %v12728_v56 = vpop.f32.mrb[74].mxu0  ;;  %12825 = vmatprep.mubr.msk.f32.mxu1 %vm1114_vm3, %v3409_v9  ;;  %v3350_v9 = vmul.f32 %v14084_v41, %v3286_v10  ;;  %v3351_v41 = vmul.f32 %v14086_v6, %v3287_v36  ;;  %v14098_v10 = vpop.eup %14097  ;;  %v3353_v6 = vmul.f32 %v14090_v60, %v3289_v25  ;;  %v3355_v60 = vmul.f32 %v14094_v45, %v3291_v30 }
 0x47d   :  { %v15518_v42 = vpop.xlane.xlu1 %2477  ;;  %v2770_v26 = vpop.f32.mrb[75].mxu0  ;;  %12826 = vmatmul.mubr.msk.f32.gmra.mrb[64].mxu1 %vm1114_vm3, %v3410_v35  ;;  %v3412_v27 = vmul.f32 %v12728_v56, %v3348_v0  ;;  %v3290_v0 = vsub.f32 2.0, %v3226_v53  ;;  %v15570_v45 = vadd.f32 1e-06, %v15447_v17 }
 0x47e   :  { %v3411_v7 = vmul.f32 %v3347_v57, %v2770_v26  ;;  %v3228_v26 = vmul.f32 %v14096_v34, %v15488_v19 }
 0x47f   :  { %v15525_v2 = vpop.xlane.xlu0 %2475 }
 0x480   :  { %v12731_v35 = vpop.f32.mrb[76].mxu0  ;;  %12830 = vmatprep.mubr.msk.f32.mxu0 %vm1114_vm3, %v3411_v7  ;;  %v3352_v7 = vmul.f32 %v14088_v38, %v3288_v4  ;;  %v3292_v19 = vsub.f32 2.0, %v3228_v26  ;;  %v3354_v4 = vmul.f32 %v14092_v16, %v3290_v0 }
 0x481   :  { %v15534_v56 = vpop.xlane.xlu1 %2449  ;;  %v2780_v57 = vpop.f32.mrb[77].mxu0  ;;  %12831 = vmatmul.mubr.msk.f32.vlgmr.msra.gmra.mrb[106].mxu0 %vm1114_vm3, %v3412_v27  ;;  %v3414_v29 = vmul.f32 %v12731_v35, %v3350_v9  ;;  %v3229_v9 = vmul.f32 %v14098_v10, %v15496_v51 }
 0x482   :  { %v3413_v37 = vmul.f32 %v3349_v40, %v2780_v57  ;;  %12881 = vmatpush3.msra.mxu0 %v15387_v21  ;;  %v14100_v27 = vpop.eup %14099  ;;  %v3356_v0 = vmul.f32 %v14096_v34, %v3292_v19  ;;  %v15574_v34 = vadd.f32 1e-06, %v15449_v3 }
 0x483   :  { %v15539_v63 = vpop.xlane.xlu0 %2447  ;;  %v14102_v36 = vpop.eup %14101  ;;  %v3230_v38 = vmul.f32 %v14100_v27, %v15502_v18 }
 0x484   :  { %v12734_v61 = vpop.f32.mrb[78].mxu0  ;;  %12833 = vmatprep.mubr.msk.f32.mxu0 %vm1114_vm3, %v3413_v37 }
 0x485   :  { %v2790_v21 = vpop.f32.mrb[79].mxu0  ;;  %12834 = vmatmul.mubr.msk.f32.gmra.mrb[108].mxu0 %vm1114_vm3, %v3414_v29  ;;  %v3416_v35 = vmul.f32 %v12734_v61, %v3352_v7  ;;  %v15546_v44 = vpop.xlane.xlu1 %2481  ;;  %v3231_v7 = vmul.f32 %v14102_v36, %v15508_v43  ;;  %v3294_v26 = vsub.f32 2.0, %v3230_v38 }
 0x486   :  { %v3415_v40 = vmul.f32 %v3351_v41, %v2790_v21  ;;  %v14104_v29 = vpop.eup %14103  ;;  %v3293_v41 = vsub.f32 2.0, %v3229_v9 }
 0x487   :  { %v15549_v57 = vpop.xlane.xlu0 %2479  ;;  %v14106_v25 = vpop.eup %14105  ;;  %v3232_v18 = vmul.f32 %v14104_v29, %v15514_v55  ;;  %v3295_v55 = vsub.f32 2.0, %v3231_v7 }
 0x488   :  { %v12737_v37 = vpop.f32.mrb[80].mxu0  ;;  %12836 = vmatprep.mubr.msk.f32.mxu0 %vm1114_vm3, %v3415_v40  ;;  %v14108_v47 = vpop.eup %14107 }
 0x489   :  { %v2800_v53 = vpop.f32.mrb[81].mxu0  ;;  %12837 = vmatmul.mubr.msk.f32.gmra.mrb[110].mxu0 %vm1114_vm3, %v3416_v35  ;;  %v3418_v51 = vmul.f32 %v12737_v37, %v3354_v4  ;;  %v15560_v16 = vpop.xlane.xlu1 %2453  ;;  %v15564_v35 = vadd.f32 1e-06, %v15439_v59  ;;  %v3233_v37 = vmul.f32 %v14106_v25, %v15523_v48  ;;  %v3357_v59 = vmul.f32 %v14098_v10, %v3293_v41 }
 0x48a   :  { %v3417_v61 = vmul.f32 %v3353_v6, %v2800_v53  ;;  %v3296_v19 = vsub.f32 2.0, %v3232_v18  ;;  %v3234_v38 = vmul.f32 %v14108_v47, %v15530_v24  ;;  %v15579_v4 = vadd.f32 1e-06, %v15453_v28 }
 0x48b   :  { %v15566_v9 = vpop.xlane.xlu0 %2451  ;;  %v3358_v53 = vmul.f32 %v14100_v27, %v3294_v26  ;;  %14111 = vrcp.f32 %v15564_v35  ;;  %v2529_v48 = vadd.f32 1e-06, %v15456_v14  ;;  %v3297_v24 = vsub.f32 2.0, %v3233_v37 }
 0x48c   :  { %v12740_v21 = vpop.f32.mrb[82].mxu0  ;;  %12839 = vmatprep.mubr.msk.f32.mxu0 %vm1114_vm3, %v3417_v61  ;;  %14113 = vrcp.f32 %v15570_v45  ;;  %v2546_v61 = vadd.f32 1e-06, %v15461_v15  ;;  %v2545_v28 = vadd.f32 1e-06, %v15464_v33  ;;  %v3359_v7 = vmul.f32 %v14102_v36, %v3295_v55  ;;  %v14110_v36 = vpop.eup %14109 }
 0x48d   :  { %v2810_v40 = vpop.f32.mrb[83].mxu0  ;;  %12840 = vmatmul.mubr.msk.f32.gmra.mrb[112].mxu0 %vm1114_vm3, %v3418_v51  ;;  %v3420_v30 = vmul.f32 %v12740_v21, %v3356_v0  ;;  %v15586_v10 = vpop.xlane.xlu1 %2485  ;;  %14115 = vrcp.f32 %v15574_v34  ;;  %v3298_v14 = vsub.f32 2.0, %v3234_v38  ;;  %v3360_v21 = vmul.f32 %v14104_v29, %v3296_v19 }
 0x48e   :  { %v3419_v43 = vmul.f32 %v3355_v60, %v2810_v40  ;;  %14117 = vrcp.f32 %v15579_v4  ;;  %v15596_v33 = vadd.f32 1e-06, %v15474_v46  ;;  %v3361_v0 = vmul.f32 %v14106_v25, %v3297_v24 }
 0x48f   :  { %v15590_v27 = vpop.xlane.xlu0 %2483  ;;  %14119 = vrcp.f32 %v2529_v48  ;;  %v15600_v40 = vadd.f32 1e-06, %v15498_v13  ;;  %v15608_v46 = vadd.f32 1e-06, %v15480_v20  ;;  %v15612_v25 = vadd.f32 1e-06, %v15491_v52 }
 0x490   :  { %v12743_v6 = vpop.f32.mrb[84].mxu0  ;;  %12842 = vmatprep.mubr.msk.f32.mxu0 %vm1114_vm3, %v3419_v43  ;;  %14121 = vrcp.f32 %v2546_v61  ;;  %v3362_v43 = vmul.f32 %v14108_v47, %v3298_v14  ;;  %v15619_v20 = vadd.f32 1e-06, %v15525_v2  ;;  %v15624_v52 = vadd.f32 1e-06, %v15518_v42 }
 0x491   :  { %v2820_v17 = vpop.f32.mrb[85].mxu0  ;;  %12843 = vmatmul.mubr.msk.f32.gmra.mrb[114].mxu0 %vm1114_vm3, %v3420_v30  ;;  %v3422_v51 = vmul.f32 %v12743_v6, %v3358_v53  ;;  %14123 = vrcp.f32 %v2545_v28  ;;  %v15602_v29 = vpop.xlane.xlu1 %2457 }
 0x492   :  { %v3421_v3 = vmul.f32 %v3357_v59, %v2820_v17  ;;  %14125 = vrcp.f32 %v15596_v33  ;;  %v3235_v17 = vmul.f32 %v14110_v36, %v15555_v8  ;;  %v15632_v8 = vadd.f32 1e-06, %v15549_v57 }
 0x493   :  { %v15605_v55 = vpop.xlane.xlu0 %2455  ;;  %14127 = vrcp.f32 %v15600_v40 }
 0x494   :  { %v12746_v41 = vpop.f32.mrb[86].mxu0  ;;  %12845 = vmatprep.mubr.msk.f32.mxu0 %vm1114_vm3, %v3421_v3  ;;  %14129 = vrcp.f32 %v15608_v46 }
 0x495   :  { %v2830_v60 = vpop.f32.mrb[87].mxu0  ;;  %12846 = vmatmul.mubr.msk.f32.gmra.mrb[116].mxu0 %vm1114_vm3, %v3422_v51  ;;  %v3424_v26 = vmul.f32 %v12746_v41, %v3360_v21  ;;  %v14112_v59 = vpop.eup %14111  ;;  %14131 = vrcp.f32 %v15612_v25 }
 0x496   :  { %v3423_v15 = vmul.f32 %v3359_v7, %v2830_v60  ;;  %v14114_v13 = vpop.eup %14113  ;;  %v2490_v38 = vpop.xlane.xlu1 %2489  ;;  %v3236_v24 = vmul.f32 %v14112_v59, %v15564_v35  ;;  %14133 = vrcp.f32 %v15619_v20  ;;  %v3299_v60 = vsub.f32 2.0, %v3235_v17 }
 0x497   :  { %v14116_v47 = vpop.eup %14115  ;;  %v2488_v3 = vpop.xlane.xlu0 %2487  ;;  %v3252_v41 = vmul.f32 %v14114_v13, %v15570_v45  ;;  %14135 = vrcp.f32 %v15624_v52  ;;  %v15660_v17 = vadd.f32 1e-06, %v15510_v39 }
 0x498   :  { %v12749_v18 = vpop.f32.mrb[88].mxu0  ;;  %12848 = vmatprep.mubr.msk.f32.mxu0 %vm1114_vm3, %v3423_v15  ;;  %v14118_v19 = vpop.eup %14117  ;;  %v3251_v14 = vmul.f32 %v14116_v47, %v15574_v34  ;;  %v15636_v15 = vadd.f32 1e-06, %v15546_v44  ;;  %v3300_v35 = vsub.f32 2.0, %v3236_v24  ;;  %14137 = vrcp.f32 %v15632_v8 }
 0x499   :  { %v2840_v30 = vpop.f32.mrb[89].mxu0  ;;  %12849 = vmatmul.mubr.msk.f32.gmra.mrb[118].mxu0 %vm1114_vm3, %v3424_v26  ;;  %v3426_v6 = vmul.f32 %v12749_v18, %v3362_v43  ;;  %v14120_v53 = vpop.eup %14119  ;;  %v3238_v2 = vmul.f32 %v14118_v19, %v15579_v4  ;;  %v3316_v45 = vsub.f32 2.0, %v3252_v41  ;;  %v15651_v44 = vadd.f32 1e-06, %v15590_v27 }
 0x49a   :  { %v3425_v37 = vmul.f32 %v3361_v0, %v2840_v30  ;;  %v14122_v51 = vpop.eup %14121  ;;  %v3237_v21 = vmul.f32 %v14120_v53, %v2529_v48  ;;  %v15638_v18 = vpop.xlane.xlu1 %2461  ;;  %v3315_v4 = vsub.f32 2.0, %v3251_v14  ;;  %v15643_v48 = vadd.f32 1e-06, %v15504_v49 }
 0x49b   :  { %v14124_v7 = vpop.eup %14123  ;;  %v3254_v42 = vmul.f32 %v14122_v51, %v2546_v61  ;;  %v15645_v57 = vpop.xlane.xlu0 %2459  ;;  %v3302_v61 = vsub.f32 2.0, %v3238_v2  ;;  %14139 = vrcp.f32 %v15636_v15  ;;  %v15655_v30 = vadd.f32 1e-06, %v15586_v10 }
 0x49c   :  { %12851 = vmatprep.mubr.msk.f32.mxu0 %vm1114_vm3, %v3425_v37  ;;  %v3253_v26 = vmul.f32 %v14124_v7, %v2545_v28  ;;  %v15640_v34 = vpop.eup %14125  ;;  %v3301_v43 = vsub.f32 2.0, %v3237_v21  ;;  %v3363_v37 = vmul.f32 %v14110_v36, %v3299_v60  ;;  %v3380_v24 = vmul.f32 %v14114_v13, %v3316_v45 }
 0x49d   :  { %12852 = vmatmul.mubr.msk.f32.gmra.mrb[120].mxu0 %vm1114_vm3, %v3426_v6  ;;  %v15647_v0 = vpop.eup %14127  ;;  %v3318_v28 = vsub.f32 2.0, %v3254_v42  ;;  %v3364_v41 = vmul.f32 %v14112_v59, %v3300_v35  ;;  %v15666_v27 = vmul.f32 %v15640_v34, %v15596_v33  ;;  %14141 = vrcp.f32 %v15643_v48 }
 0x49e   :  { %v15657_v49 = vpop.eup %14129  ;;  %v3317_v6 = vsub.f32 2.0, %v3253_v26  ;;  %v3255_v2 = vmul.f32 %v15647_v0, %v15600_v40  ;;  %v3379_v10 = vmul.f32 %v14116_v47, %v3315_v4  ;;  %14143 = vrcp.f32 %v15651_v44  ;;  %v2494_v39 = vpop.xlane.xlu1 %2493 }
 0x49f   :  { %v15662_v14 = vpop.eup %14131  ;;  %v15672_v36 = vadd.f32 1e-06, %v2488_v3  ;;  %v3366_v21 = vmul.f32 %v14118_v19, %v3302_v61  ;;  %v3365_v13 = vmul.f32 %v14120_v53, %v3301_v43  ;;  %v15676_v59 = vmul.f32 %v15657_v49, %v15608_v46  ;;  %v2492_v60 = vpop.xlane.xlu0 %2491 }
 0x4a0   :  { %14145 = vrcp.f32 %v15655_v30  ;;  %v15679_v33 = vadd.f32 1e-06, %v2490_v38  ;;  %v3382_v42 = vmul.f32 %v14122_v51, %v3318_v28  ;;  %v15681_v35 = vpop.eup %14133  ;;  %v3256_v47 = vmul.f32 %v15662_v14, %v15612_v25 }
 0x4a1   :  { %14147 = vrcp.f32 %v15660_v17  ;;  %v15687_v19 = vadd.f32 1e-06, %v15534_v56  ;;  %v3381_v3 = vmul.f32 %v14124_v7, %v3317_v6  ;;  %v15689_v45 = vpop.eup %14135  ;;  %v3304_v38 = vsub.f32 2.0, %v15666_v27 }
 0x4a2   :  { %v3319_v26 = vsub.f32 2.0, %v3255_v2  ;;  %v15693_v51 = vadd.f32 1e-06, %v15539_v63  ;;  %14149 = vrcp.f32 %v15672_v36  ;;  %v15696_v25 = vadd.f32 1e-06, %v2492_v60  ;;  %v15704_v63 = vpop.eup %14137 }
 0x4a3   :  { %v3257_v28 = vmul.f32 %v15681_v35, %v15619_v20  ;;  %14151 = vrcp.f32 %v15679_v33  ;;  %v15701_v7 = vadd.f32 1e-06, %v2494_v39  ;;  %v3303_v2 = vsub.f32 2.0, %v15676_v59 }
 0x4a4   :  { %14153 = vrcp.f32 %v15687_v19  ;;  %v15716_v39 = vadd.f32 1e-06, %v15566_v9  ;;  %v3259_v9 = vmul.f32 %v15704_v63, %v15632_v8 }
 0x4a5   :  { %14155 = vrcp.f32 %v15693_v51  ;;  %v3367_v8 = vmul.f32 %v15657_v49, %v3303_v2 }
 0x4a6   :  { %14157 = vrcp.f32 %v15696_v25 }
 0x4a7   :  { %14159 = vrcp.f32 %v15701_v7 }
 0x4a8   :  { %14161 = vrcp.f32 %v15716_v39 }
 0x4ac   :  { %v12780_v40 = vpop.f32.mrb[90].mxu0 }
 0x4ad   :  { %v12754_v53 = vpop.f32.mrb[34].mxu1  ;;  %v3060_v46 = vpop.f32.mrb[91].mxu0  ;;  %v3444_v43 = vmul.f32 %v12780_v40, %v3380_v24  ;;  %v3258_v24 = vmul.f32 %v15689_v45, %v15624_v52  ;;  %v3383_v52 = vmul.f32 %v15647_v0, %v3319_v26  ;;  %v15721_v40 = vadd.f32 1e-06, %v15560_v16 }
 0x4ae   :  { %v3443_v4 = vmul.f32 %v3379_v10, %v3060_v46  ;;  %v2915_v61 = vpop.f32.mrb[35].mxu1  ;;  %v3428_v6 = vmul.f32 %v12754_v53, %v3364_v41  ;;  %v3320_v10 = vsub.f32 2.0, %v3256_v47  ;;  %v15712_v41 = vpop.eup %14139 }
 0x4af   :  { %v3427_v56 = vmul.f32 %v3363_v37, %v2915_v61  ;;  %v15724_v46 = vpop.eup %14141  ;;  %v3322_v16 = vsub.f32 2.0, %v3258_v24  ;;  %v3260_v26 = vmul.f32 %v15712_v41, %v15636_v15  ;;  %14163 = vrcp.f32 %v15721_v40 }
 0x4b0   :  { %v12783_v27 = vpop.f32.mrb[92].mxu0  ;;  %12882 = vmatprep.mubr.msk.f32.mxu0 %vm1114_vm3, %v3443_v4  ;;  %v3321_v4 = vsub.f32 2.0, %v3257_v28  ;;  %v15730_v0 = vpop.eup %14143  ;;  %v3368_v28 = vmul.f32 %v15640_v34, %v3304_v38 }
 0x4b1   :  { %v12757_v37 = vpop.f32.mrb[36].mxu1  ;;  %v3070_v20 = vpop.f32.mrb[93].mxu0  ;;  %12856 = vmatprep.mubr.msk.f32.mxu1 %vm1114_vm3, %v3427_v56  ;;  %12883 = vmatmul.mubr.msk.f32.vlgmr.msra.gmra.mrb[122].mxu0 %vm1114_vm3, %v3444_v43  ;;  %v3446_v47 = vmul.f32 %v12783_v27, %v3382_v42  ;;  %v15742_v56 = vadd.f32 1e-06, %v15605_v55  ;;  %v15750_v27 = vadd.f32 1e-06, %v15602_v29  ;;  %v3261_v55 = vmul.f32 %v15730_v0, %v15651_v44 }
 0x4b2   :  { %v3445_v59 = vmul.f32 %v3381_v3, %v3070_v20  ;;  %v2925_v60 = vpop.f32.mrb[37].mxu1  ;;  %12857 = vmatmul.mubr.msk.f32.vlgmr.msra.gmra.mrb[66].mxu1 %vm1114_vm3, %v3428_v6  ;;  %v3430_v3 = vmul.f32 %v12757_v37, %v3366_v21  ;;  %v15738_v21 = vpop.eup %14145  ;;  %v3385_v34 = vmul.f32 %v15681_v35, %v3321_v4  ;;  %v3242_v20 = vmul.f32 %v15724_v46, %v15643_v48 }
 0x4b3   :  { %v3429_v53 = vmul.f32 %v3365_v13, %v2925_v60  ;;  %v3384_v13 = vmul.f32 %v15662_v14, %v3320_v10  ;;  %v15746_v14 = vpop.eup %14147  ;;  %v3323_v10 = vsub.f32 2.0, %v3259_v9  ;;  %v3262_v29 = vmul.f32 %v15738_v21, %v15655_v30 }
 0x4b4   :  { %v12786_v61 = vpop.f32.mrb[94].mxu0  ;;  %12885 = vmatprep.mubr.msk.f32.mxu0 %vm1114_vm3, %v3445_v59  ;;  %v15756_v38 = vpop.eup %14149  ;;  %v3324_v59 = vsub.f32 2.0, %v3260_v26  ;;  %v3386_v60 = vmul.f32 %v15689_v45, %v3322_v16  ;;  %v3241_v35 = vmul.f32 %v15746_v14, %v15660_v17  ;;  %14165 = vrcp.f32 %v15742_v56 }
 0x4b5   :  { %v12760_v42 = vpop.f32.mrb[38].mxu1  ;;  %v3080_v43 = vpop.f32.mrb[95].mxu0  ;;  %12859 = vmatprep.mubr.msk.f32.mxu1 %vm1114_vm3, %v3429_v53  ;;  %12886 = vmatmul.mubr.msk.f32.gmra.mrb[124].mxu0 %vm1114_vm3, %v3446_v47  ;;  %v3448_v49 = vmul.f32 %v12786_v61, %v3384_v13  ;;  %v15769_v47 = vadd.f32 1e-06, %v15645_v57  ;;  %14167 = vrcp.f32 %v15750_v27  ;;  %v15776_v45 = vadd.f32 1e-06, %v15638_v18 }
 0x4b6   :  { %v3447_v15 = vmul.f32 %v3383_v52, %v3080_v43  ;;  %v2935_v6 = vpop.f32.mrb[39].mxu1  ;;  %12860 = vmatmul.mubr.msk.f32.gmra.mrb[68].mxu1 %vm1114_vm3, %v3430_v3  ;;  %v3432_v24 = vmul.f32 %v12760_v42, %v3368_v28  ;;  %v14152_v44 = vpop.eup %14151  ;;  %v3325_v9 = vsub.f32 2.0, %v3261_v55  ;;  %v3263_v17 = vmul.f32 %v15756_v38, %v15672_v36 }
 0x4b7   :  { %v3431_v2 = vmul.f32 %v3367_v8, %v2935_v6  ;;  %v15772_v30 = vpop.eup %14153  ;;  %v3387_v57 = vmul.f32 %v15704_v63, %v3323_v10  ;;  %v3326_v16 = vsub.f32 2.0, %v3262_v29  ;;  %v3264_v26 = vmul.f32 %v14152_v44, %v15679_v33 }
 0x4b8   :  { %v12789_v37 = vpop.f32.mrb[96].mxu0  ;;  %12888 = vmatprep.mubr.msk.f32.mxu0 %vm1114_vm3, %v3447_v15  ;;  %v14156_v4 = vpop.eup %14155  ;;  %v3388_v13 = vmul.f32 %v15712_v41, %v3324_v59  ;;  %v3306_v43 = vsub.f32 2.0, %v3242_v20  ;;  %v3305_v8 = vsub.f32 2.0, %v3241_v35  ;;  %14169 = vrcp.f32 %v15769_v47 }
 0x4b9   :  { %v3090_v52 = vpop.f32.mrb[97].mxu0  ;;  %12862 = vmatprep.mubr.msk.f32.mxu1 %vm1114_vm3, %v3431_v2  ;;  %12889 = vmatmul.mubr.msk.f32.gmra.mrb[126].mxu0 %vm1114_vm3, %v3448_v49  ;;  %v3450_v53 = vmul.f32 %v12789_v37, %v3386_v60  ;;  %v15782_v61 = vpop.eup %14157  ;;  %v3244_v28 = vmul.f32 %v15772_v30, %v15687_v19  ;;  %v3243_v63 = vmul.f32 %v14156_v4, %v15693_v51  ;;  %14171 = vrcp.f32 %v15776_v45 }
 0x4ba   :  { %v3449_v48 = vmul.f32 %v3385_v34, %v3090_v52  ;;  %12863 = vmatmul.mubr.msk.f32.gmra.mrb[70].mxu1 %vm1114_vm3, %v3432_v24  ;;  %v14160_v42 = vpop.eup %14159  ;;  %v3327_v6 = vsub.f32 2.0, %v3263_v17  ;;  %v3265_v41 = vmul.f32 %v15782_v61, %v15696_v25  ;;  %v3389_v2 = vmul.f32 %v15730_v0, %v3325_v9 }
 0x4bb   :  { %v14162_v33 = vpop.eup %14161  ;;  %v3328_v55 = vsub.f32 2.0, %v3264_v26  ;;  %v3266_v24 = vmul.f32 %v14160_v42, %v15701_v7  ;;  %v3390_v19 = vmul.f32 %v15738_v21, %v3326_v16  ;;  %v3370_v34 = vmul.f32 %v15724_v46, %v3306_v43 }
 0x4bc   :  { %v12792_v3 = vpop.f32.mrb[98].mxu0  ;;  %12891 = vmatprep.mubr.msk.f32.mxu0 %vm1114_vm3, %v3449_v48  ;;  %v14164_v10 = vpop.eup %14163  ;;  %v3369_v25 = vmul.f32 %v15746_v14, %v3305_v8  ;;  %v3308_v59 = vsub.f32 2.0, %v3244_v28  ;;  %v3307_v29 = vsub.f32 2.0, %v3243_v63  ;;  %v3245_v60 = vmul.f32 %v14162_v33, %v15716_v39 }
 0x4bd   :  { %v3100_v18 = vpop.f32.mrb[99].mxu0  ;;  %12892 = vmatmul.mubr.msk.f32.gmra.mrb[128].mxu0 %vm1114_vm3, %v3450_v53  ;;  %v3452_v15 = vmul.f32 %v12792_v3, %v3388_v13  ;;  %v3246_v7 = vmul.f32 %v14164_v10, %v15721_v40  ;;  %v3329_v48 = vsub.f32 2.0, %v3265_v41  ;;  %v3391_v9 = vmul.f32 %v15756_v38, %v3327_v6 }
 0x4be   :  { %v3451_v36 = vmul.f32 %v3387_v57, %v3100_v18  ;;  %v14166_v35 = vpop.eup %14165  ;;  %v3330_v17 = vsub.f32 2.0, %v3266_v24  ;;  %v3392_v14 = vmul.f32 %v14152_v44, %v3328_v55  ;;  %v3309_v16 = vsub.f32 2.0, %v3245_v60 }
 0x4bf   :  { %v14168_v46 = vpop.eup %14167  ;;  %v3247_v40 = vmul.f32 %v14166_v35, %v15742_v56  ;;  %v3371_v18 = vmul.f32 %v14156_v4, %v3307_v29  ;;  %v3310_v38 = vsub.f32 2.0, %v3246_v7  ;;  %v3372_v44 = vmul.f32 %v15772_v30, %v3308_v59 }
 0x4c0   :  { %v12795_v49 = vpop.f32.mrb[100].mxu0  ;;  %12894 = vmatprep.mubr.msk.f32.mxu0 %vm1114_vm3, %v3451_v36  ;;  %v3248_v8 = vmul.f32 %v14168_v46, %v15750_v27  ;;  %v3393_v63 = vmul.f32 %v15782_v61, %v3329_v48  ;;  %v3394_v56 = vmul.f32 %v14160_v42, %v3330_v17  ;;  %v3373_v30 = vmul.f32 %v14162_v33, %v3309_v16 }
 0x4c1   :  { %v3110_v51 = vpop.f32.mrb[101].mxu0  ;;  %12895 = vmatmul.mubr.msk.f32.gmra.mrb[130].mxu0 %vm1114_vm3, %v3452_v15  ;;  %v3454_v0 = vmul.f32 %v12795_v49, %v3390_v19  ;;  %v3374_v61 = vmul.f32 %v14164_v10, %v3310_v38 }
 0x4c2   :  { %v12763_v37 = vpop.f32.mrb[40].mxu1  ;;  %v3453_v20 = vmul.f32 %v3389_v2, %v3110_v51  ;;  %v14170_v43 = vpop.eup %14169  ;;  %v3311_v2 = vsub.f32 2.0, %v3247_v40  ;;  %v3312_v19 = vsub.f32 2.0, %v3248_v8 }
 0x4c3   :  { %v2945_v52 = vpop.f32.mrb[41].mxu1  ;;  %v3434_v3 = vmul.f32 %v12763_v37, %v3370_v34  ;;  %v14172_v15 = vpop.eup %14171  ;;  %v3249_v55 = vmul.f32 %v14170_v43, %v15769_v47 }
 0x4c4   :  { %v3433_v21 = vmul.f32 %v3369_v25, %v2945_v52  ;;  %v12798_v53 = vpop.f32.mrb[102].mxu0  ;;  %12897 = vmatprep.mubr.msk.f32.mxu0 %vm1114_vm3, %v3453_v20  ;;  %v3250_v51 = vmul.f32 %v14172_v15, %v15776_v45  ;;  %v3375_v25 = vmul.f32 %v14166_v35, %v3311_v2  ;;  %v3376_v33 = vmul.f32 %v14168_v46, %v3312_v19 }
 0x4c5   :  { %v3120_v57 = vpop.f32.mrb[103].mxu0  ;;  %12898 = vmatmul.mubr.msk.f32.gmra.mrb[132].mxu0 %vm1114_vm3, %v3454_v0  ;;  %v3456_v26 = vmul.f32 %v12798_v53, %v3392_v14  ;;  %v3313_v20 = vsub.f32 2.0, %v3249_v55 }
 0x4c6   :  { %v3455_v39 = vmul.f32 %v3391_v9, %v3120_v57  ;;  %12865 = vmatprep.mubr.msk.f32.mxu1 %vm1114_vm3, %v3433_v21  ;;  %v3314_v59 = vsub.f32 2.0, %v3250_v51 }
 0x4c7   :  { %v12766_v13 = vpop.f32.mrb[42].mxu1  ;;  %12866 = vmatmul.mubr.msk.f32.gmra.mrb[72].mxu1 %vm1114_vm3, %v3434_v3  ;;  %v3377_v0 = vmul.f32 %v14170_v43, %v3313_v20 }
 0x4c8   :  { %v2955_v36 = vpop.f32.mrb[43].mxu1  ;;  %v12801_v28 = vpop.f32.mrb[104].mxu0  ;;  %12900 = vmatprep.mubr.msk.f32.mxu0 %vm1114_vm3, %v3455_v39  ;;  %v3436_v4 = vmul.f32 %v12766_v13, %v3372_v44  ;;  %v3378_v52 = vmul.f32 %v14172_v15, %v3314_v59 }
 0x4c9   :  { %v3435_v6 = vmul.f32 %v3371_v18, %v2955_v36  ;;  %v3130_v41 = vpop.f32.mrb[105].mxu0  ;;  %12901 = vmatmul.mubr.msk.f32.gmra.mrb[134].mxu0 %vm1114_vm3, %v3456_v26  ;;  %v3458_v27 = vmul.f32 %v12801_v28, %v3394_v56 }
 0x4ca   :  { %v3457_v49 = vmul.f32 %v3393_v63, %v3130_v41 }
 0x4cb   :  { %v12769_v24 = vpop.f32.mrb[44].mxu1  ;;  %12868 = vmatprep.mubr.msk.f32.mxu1 %vm1114_vm3, %v3435_v6 }
 0x4cc   :  { %v2965_v37 = vpop.f32.mrb[45].mxu1  ;;  %12869 = vmatmul.mubr.msk.f32.gmra.mrb[74].mxu1 %vm1114_vm3, %v3436_v4  ;;  %12903 = vmatprep.mubr.msk.f32.mxu0 %vm1114_vm3, %v3457_v49  ;;  %v3438_v34 = vmul.f32 %v12769_v24, %v3374_v61 }
 0x4cd   :  { %v3437_v42 = vmul.f32 %v3373_v30, %v2965_v37  ;;  %12904 = vmatmul.mubr.msk.f32.gmra.mrb[136].mxu0 %vm1114_vm3, %v3458_v27 }
 0x4cf   :  { %v12772_v47 = vpop.f32.mrb[46].mxu1  ;;  %12871 = vmatprep.mubr.msk.f32.mxu1 %vm1114_vm3, %v3437_v42 }
 0x4d0   :  { %v2975_v29 = vpop.f32.mrb[47].mxu1  ;;  %12872 = vmatmul.mubr.msk.f32.gmra.mrb[76].mxu1 %vm1114_vm3, %v3438_v34  ;;  %v3440_v10 = vmul.f32 %v12772_v47, %v3376_v33 }
 0x4d1   :  { %v3439_v45 = vmul.f32 %v3375_v25, %v2975_v29 }
 0x4d3   :  { %v12775_v60 = vpop.f32.mrb[48].mxu1  ;;  %12874 = vmatprep.mubr.msk.f32.mxu1 %vm1114_vm3, %v3439_v45 }
 0x4d4   :  { %v2985_v7 = vpop.f32.mrb[49].mxu1  ;;  %12875 = vmatmul.mubr.msk.f32.gmra.mrb[78].mxu1 %vm1114_vm3, %v3440_v10  ;;  %v3442_v21 = vmul.f32 %v12775_v60, %v3378_v52 }
 0x4d5   :  { %v3441_v48 = vmul.f32 %v3377_v0, %v2985_v7 }
 0x4d7   :  { %12877 = vmatprep.mubr.msk.f32.mxu1 %vm1114_vm3, %v3441_v48 }
 0x4d8   :  { %12878 = vmatmul.mubr.msk.f32.gmra.mrb[80].mxu1 %vm1114_vm3, %v3442_v21 }
 0x518   :  { %v12806_v35 = vpop.f32.mrb[50].mxu1 }
 0x519   :  { %v3577_v53 = vpop.f32.mrb[51].mxu1  ;;  %v4242_v44 = vsel %vm454_vm1, %v12806_v35, 0.0 }
 0x51a   :  { %v4235_v63 = vsel %vm454_vm1, %v3577_v53, 0.0 }
 0x520   :  { %v12809_v9 = vpop.f32.mrb[52].mxu1 }
 0x521   :  { %v3587_v46 = vpop.f32.mrb[53].mxu1  ;;  %v4256_v4 = vsel %vm454_vm1, %v12809_v9, 0.0 }
 0x522   :  { %v4249_v55 = vsel %vm454_vm1, %v3587_v46, 0.0 }
 0x528   :  { %v12812_v17 = vpop.f32.mrb[54].mxu1 }
 0x529   :  { %v3597_v3 = vpop.f32.mrb[55].mxu1  ;;  %v4270_v51 = vsel %vm454_vm1, %v12812_v17, 0.0 }
 0x52a   :  { %v4263_v42 = vsel %vm454_vm1, %v3597_v3, 0.0 }
 0x530   :  { %v12815_v14 = vpop.f32.mrb[56].mxu1 }
 0x531   :  { %v3607_v57 = vpop.f32.mrb[57].mxu1  ;;  %v4284_v59 = vsel %vm454_vm1, %v12815_v14, 0.0 }
 0x532   :  { %v4277_v45 = vsel %vm454_vm1, %v3607_v57, 0.0 }
 0x538   :  { %v12818_v39 = vpop.f32.mrb[58].mxu1 }
 0x539   :  { %v3617_v16 = vpop.f32.mrb[59].mxu1  ;;  %v4298_v7 = vsel %vm454_vm1, %v12818_v39, 0.0 }
 0x53a   :  { %v4291_v35 = vsel %vm454_vm1, %v3617_v16, 0.0 }
 0x540   :  { %v12821_v40 = vpop.f32.mrb[60].mxu1 }
 0x541   :  { %v3627_v26 = vpop.f32.mrb[61].mxu1  ;;  %v4312_v3 = vsel %vm454_vm1, %v12821_v40, 0.0 }
 0x548   :  { %v12824_v13 = vpop.f32.mrb[62].mxu1 }
 0x549   :  { %v3637_v18 = vpop.f32.mrb[63].mxu1 }
 0x550   :  { %v12827_v43 = vpop.f32.mrb[64].mxu1 }
 0x551   :  { %v3647_v38 = vpop.f32.mrb[65].mxu1 }
 0x554   :  { %v12832_v8 = vpop.f32.mrb[106].mxu0 }
 0x555   :  { %v4243_v36 = vsel %vm454_vm1, %v12832_v8, 0.0  ;;  %v3770_v28 = vpop.f32.mrb[107].mxu0  ;;  %v4305_v8 = vsel %vm454_vm1, %v3627_v26, 0.0 }
 0x556   :  { %v15829_v15 = vadd.f32 %v4243_v36, %v4242_v44  ;;  %v4236_v6 = vsel %vm454_vm1, %v3770_v28, 0.0  ;;  %v4326_v28 = vsel %vm454_vm1, %v12824_v13, 0.0 }
 0x557   :  { %v15832_v56 = vadd.f32 %v4236_v6, %v4235_v63 }
 0x558   :  { %v12835_v41 = vpop.f32.mrb[108].mxu0 }
 0x559   :  { %v4257_v49 = vsel %vm454_vm1, %v12835_v41, 0.0  ;;  %v3780_v2 = vpop.f32.mrb[109].mxu0  ;;  %v4319_v41 = vsel %vm454_vm1, %v3637_v18, 0.0 }
 0x55a   :  { %v15837_v27 = vadd.f32 %v4257_v49, %v4256_v4  ;;  %v4250_v24 = vsel %vm454_vm1, %v3780_v2, 0.0  ;;  %v4340_v2 = vsel %vm454_vm1, %v12827_v43, 0.0 }
 0x55b   :  { %v15840_v30 = vadd.f32 %v4250_v24, %v4249_v55 }
 0x55c   :  { %v12838_v19 = vpop.f32.mrb[110].mxu0 }
 0x55d   :  { %v4271_v61 = vsel %vm454_vm1, %v12838_v19, 0.0  ;;  %v3790_v37 = vpop.f32.mrb[111].mxu0  ;;  %v4333_v19 = vsel %vm454_vm1, %v3647_v38, 0.0  ;;  %v15897_v38 = vld [vmem:[%s18710_s8] ss:$0 sm:$0xff] }
 0x55e   :  { %v15845_v34 = vadd.f32 %v4271_v61, %v4270_v51  ;;  %v4264_v20 = vsel %vm454_vm1, %v3790_v37, 0.0 }
 0x55f   :  { %v15848_v47 = vadd.f32 %v4264_v20, %v4263_v42 }
 0x560   :  { %v12841_v25 = vpop.f32.mrb[112].mxu0 }
 0x561   :  { %v4285_v33 = vsel %vm454_vm1, %v12841_v25, 0.0  ;;  %v3800_v29 = vpop.f32.mrb[113].mxu0 }
 0x562   :  { %v15853_v10 = vadd.f32 %v4285_v33, %v4284_v59  ;;  %v4278_v60 = vsel %vm454_vm1, %v3800_v29, 0.0 }
 0x563   :  { %v15856_v0 = vadd.f32 %v4278_v60, %v4277_v45 }
 0x564   :  { %v12844_v52 = vpop.f32.mrb[114].mxu0 }
 0x565   :  { %v4299_v48 = vsel %vm454_vm1, %v12844_v52, 0.0  ;;  %v3810_v21 = vpop.f32.mrb[115].mxu0 }
 0x566   :  { %v15861_v53 = vadd.f32 %v4299_v48, %v4298_v7  ;;  %v4292_v9 = vsel %vm454_vm1, %v3810_v21, 0.0 }
 0x567   :  { %v15864_v46 = vadd.f32 %v4292_v9, %v4291_v35 }
 0x568   :  { %v12847_v17 = vpop.f32.mrb[116].mxu0 }
 0x569   :  { %v4313_v14 = vsel %vm454_vm1, %v12847_v17, 0.0  ;;  %v3820_v57 = vpop.f32.mrb[117].mxu0 }
 0x56a   :  { %v15869_v39 = vadd.f32 %v4313_v14, %v4312_v3  ;;  %v4306_v44 = vsel %vm454_vm1, %v3820_v57, 0.0 }
 0x56b   :  { %v15872_v36 = vadd.f32 %v4306_v44, %v4305_v8 }
 0x56c   :  { %v12850_v16 = vpop.f32.mrb[118].mxu0 }
 0x56d   :  { %v4327_v63 = vsel %vm454_vm1, %v12850_v16, 0.0  ;;  %v3830_v6 = vpop.f32.mrb[119].mxu0 }
 0x56e   :  { %v15877_v40 = vadd.f32 %v4327_v63, %v4326_v28  ;;  %v4320_v4 = vsel %vm454_vm1, %v3830_v6, 0.0 }
 0x56f   :  { %v15880_v49 = vadd.f32 %v4320_v4, %v4319_v41 }
 0x570   :  { %v12853_v26 = vpop.f32.mrb[120].mxu0 }
 0x571   :  { %v4341_v55 = vsel %vm454_vm1, %v12853_v26, 0.0  ;;  %v3840_v24 = vpop.f32.mrb[121].mxu0 }
 0x572   :  { %v15885_v13 = vadd.f32 %v4341_v55, %v4340_v2  ;;  %v4334_v51 = vsel %vm454_vm1, %v3840_v24, 0.0 }
 0x573   :  { %v15888_v61 = vadd.f32 %v4334_v51, %v4333_v19 }
 0x584   :  { %v12884_v18 = vpop.f32.mrb[122].mxu0 }
 0x585   :  { %v12858_v37 = vpop.f32.mrb[66].mxu1  ;;  %v4156_v42 = vpop.f32.mrb[123].mxu0  ;;  %v4247_v33 = vsel %vm454_vm1, %v12884_v18, 0.0 }
 0x586   :  { %v4245_v20 = vsel %vm454_vm1, %v12858_v37, 0.0  ;;  %v3963_v25 = vpop.f32.mrb[67].mxu1  ;;  %v4240_v52 = vsel %vm454_vm1, %v4156_v42, 0.0 }
 0x587   :  { %v4246_v59 = vadd.f32 %v4245_v20, %v15829_v15  ;;  %v4238_v43 = vsel %vm454_vm1, %v3963_v25, 0.0 }
 0x588   :  { %v4239_v29 = vadd.f32 %v4238_v43, %v15832_v56  ;;  %v12887_v45 = vpop.f32.mrb[124].mxu0 }
 0x589   :  { %v4248_v60 = vadd.f32 %v4247_v33, %v4246_v59  ;;  %v12861_v7 = vpop.f32.mrb[68].mxu1  ;;  %v4166_v48 = vpop.f32.mrb[125].mxu0  ;;  %v4261_v56 = vsel %vm454_vm1, %v12887_v45, 0.0 }
 0x58a   :  { %v4241_v21 = vadd.f32 %v4240_v52, %v4239_v29  ;;  %v4259_v15 = vsel %vm454_vm1, %v12861_v7, 0.0  ;;  %v3973_v35 = vpop.f32.mrb[69].mxu1  ;;  %v4254_v16 = vsel %vm454_vm1, %v4166_v48, 0.0 }
 0x58b   :  { %v4355_v9 = vadd.f32 %v15897_v38, %v4248_v60  ;;  %v4260_v17 = vadd.f32 %v4259_v15, %v15837_v27  ;;  %v4252_v3 = vsel %vm454_vm1, %v3973_v35, 0.0 }
 0x58c   :  { %v4354_v14 = vadd.f32 %v15897_v38, %v4241_v21  ;;  %v4253_v57 = vadd.f32 %v4252_v3, %v15840_v30  ;;  %v12890_v8 = vpop.f32.mrb[126].mxu0 }
 0x58d   :  { %v4262_v44 = vadd.f32 %v4261_v56, %v4260_v17  ;;  %v12864_v28 = vpop.f32.mrb[70].mxu1  ;;  %v4176_v63 = vpop.f32.mrb[127].mxu0  ;;  %v15910_v6 = vadd.f32 %v4355_v9, %v14852_v50  ;;  %v4275_v50 = vsel %vm454_vm1, %v12890_v8, 0.0 }
 0x58e   :  { %v4255_v41 = vadd.f32 %v4254_v16, %v4253_v57  ;;  %v4273_v27 = vsel %vm454_vm1, %v12864_v28, 0.0  ;;  %v3983_v4 = vpop.f32.mrb[71].mxu1  ;;  %v15914_v26 = vadd.f32 %v4354_v14, %v14861_v54  ;;  %v4268_v42 = vsel %vm454_vm1, %v4176_v63, 0.0 }
 0x58f   :  { %v4357_v2 = vadd.f32 %v15897_v38, %v4262_v44  ;;  %v4274_v30 = vadd.f32 %v4273_v27, %v15845_v34  ;;  %v4266_v55 = vsel %vm454_vm1, %v3983_v4, 0.0  ;;  %v4391_v24 = vsel %vm454_vm1, %v15910_v6, 0.0 }
 0x590   :  { %v4356_v19 = vadd.f32 %v15897_v38, %v4255_v41  ;;  %v4267_v51 = vadd.f32 %v4266_v55, %v15848_v47  ;;  %v12893_v18 = vpop.f32.mrb[128].mxu0  ;;  %4392 = vadd.xlane.f32.xlu1 %v4391_v24  ;;  %v4388_v54 = vsel %vm454_vm1, %v15914_v26, 0.0 }
 0x591   :  { %v4276_v37 = vadd.f32 %v4275_v50, %v4274_v30  ;;  %v4186_v34 = vpop.f32.mrb[129].mxu0  ;;  %4389 = vadd.xlane.f32.xlu0 %v4388_v54  ;;  %v15928_v20 = vadd.f32 %v4357_v2, %v14874_v58  ;;  %v4289_v3 = vsel %vm454_vm1, %v12893_v18, 0.0 }
 0x592   :  { %v4269_v25 = vadd.f32 %v4268_v42, %v4267_v51  ;;  %v15931_v59 = vadd.f32 %v4356_v19, %v14889_v62  ;;  %v4282_v57 = vsel %vm454_vm1, %v4186_v34, 0.0 }
 0x593   :  { %v4359_v43 = vadd.f32 %v15897_v38, %v4276_v37  ;;  %v4397_v47 = vsel %vm454_vm1, %v15928_v20, 0.0 }
 0x594   :  { %v4358_v33 = vadd.f32 %v15897_v38, %v4269_v25  ;;  %v12896_v29 = vpop.f32.mrb[130].mxu0  ;;  %4398 = vadd.xlane.f32.xlu1 %v4397_v47  ;;  %v4394_v45 = vsel %vm454_vm1, %v15931_v59, 0.0 }
 0x595   :  { %v4196_v60 = vpop.f32.mrb[131].mxu0  ;;  %4395 = vadd.xlane.f32.xlu0 %v4394_v45  ;;  %v15940_v58 = vadd.f32 %v4359_v43, %v14902_v1 }
 0x596   :  { %v15943_v62 = vadd.f32 %v4358_v33, %v14917_v5  ;;  %v4296_v19 = vsel %vm454_vm1, %v4196_v60, 0.0 }
 0x597   :  { %v4403_v52 = vsel %vm454_vm1, %v15940_v58, 0.0 }
 0x598   :  { %v12899_v7 = vpop.f32.mrb[132].mxu0  ;;  %4404 = vadd.xlane.f32.xlu1 %v4403_v52  ;;  %v4400_v48 = vsel %vm454_vm1, %v15943_v62, 0.0 }
 0x599   :  { %v4206_v21 = vpop.f32.mrb[133].mxu0  ;;  %4401 = vadd.xlane.f32.xlu0 %v4400_v48 }
 0x59a   :  { %v12867_v15 = vpop.f32.mrb[72].mxu1  ;;  %v4310_v33 = vsel %vm454_vm1, %v4206_v21, 0.0 }
 0x59b   :  { %v4287_v35 = vsel %vm454_vm1, %v12867_v15, 0.0  ;;  %v3993_v9 = vpop.f32.mrb[73].mxu1 }
 0x59c   :  { %v4288_v1 = vadd.f32 %v4287_v35, %v15853_v10  ;;  %v4280_v17 = vsel %vm454_vm1, %v3993_v9, 0.0  ;;  %v12902_v5 = vpop.f32.mrb[134].mxu0 }
 0x59d   :  { %v4281_v14 = vadd.f32 %v4280_v17, %v15856_v0  ;;  %v4216_v56 = vpop.f32.mrb[135].mxu0  ;;  %v4303_v0 = vsel %vm454_vm1, %v12896_v29, 0.0  ;;  %v4331_v9 = vsel %vm454_vm1, %v12902_v5, 0.0 }
 0x59e   :  { %v4290_v8 = vadd.f32 %v4289_v3, %v4288_v1  ;;  %v4324_v17 = vsel %vm454_vm1, %v4216_v56, 0.0 }
 0x59f   :  { %v4283_v44 = vadd.f32 %v4282_v57, %v4281_v14  ;;  %v12870_v16 = vpop.f32.mrb[74].mxu1 }
 0x5a0   :  { %v4361_v28 = vadd.f32 %v15897_v38, %v4290_v8  ;;  %v4301_v63 = vsel %vm454_vm1, %v12870_v16, 0.0  ;;  %v4003_v41 = vpop.f32.mrb[75].mxu1  ;;  %v12905_v27 = vpop.f32.mrb[136].mxu0 }
 0x5a1   :  { %v4360_v10 = vadd.f32 %v15897_v38, %v4283_v44  ;;  %v4302_v4 = vadd.f32 %v4301_v63, %v15861_v53  ;;  %v4294_v2 = vsel %vm454_vm1, %v4003_v41, 0.0  ;;  %v4226_v30 = vpop.f32.mrb[137].mxu0  ;;  %v4345_v63 = vsel %vm454_vm1, %v12905_v27, 0.0 }
 0x5a2   :  { %v4295_v55 = vadd.f32 %v4294_v2, %v15864_v46  ;;  %v15963_v24 = vadd.f32 %v4361_v28, %v14942_v11 }
 0x5a3   :  { %v4304_v50 = vadd.f32 %v4303_v0, %v4302_v4  ;;  %v12873_v51 = vpop.f32.mrb[76].mxu1  ;;  %v15967_v18 = vadd.f32 %v4360_v10, %v14945_v12  ;;  %v4317_v12 = vsel %vm454_vm1, %v12899_v7, 0.0  ;;  %v4338_v10 = vsel %vm454_vm1, %v4226_v30, 0.0 }
 0x5a4   :  { %v4297_v54 = vadd.f32 %v4296_v19, %v4295_v55  ;;  %v4315_v53 = vsel %vm454_vm1, %v12873_v51, 0.0  ;;  %v4013_v37 = vpop.f32.mrb[77].mxu1  ;;  %v4409_v42 = vsel %vm454_vm1, %v15963_v24, 0.0  ;;  %v18784_v55 = vld [vmem:[#allocation4_spill] sm:$0xff]  ;;  %v18785_v51 = vld [vmem:[#allocation5_spill] sm:$0xff] }
 0x5a5   :  { %v4363_v34 = vadd.f32 %v15897_v38, %v4304_v50  ;;  %v4316_v46 = vadd.f32 %v4315_v53, %v15869_v39  ;;  %v4308_v11 = vsel %vm454_vm1, %v4013_v37, 0.0  ;;  %4410 = vadd.xlane.f32.xlu1 %v4409_v42  ;;  %v4406_v25 = vsel %vm454_vm1, %v15967_v18, 0.0  ;;  %v18786_v53 = vld [vmem:[#allocation6_spill] sm:$0xff] }
 0x5a6   :  { %v4362_v43 = vadd.f32 %v15897_v38, %v4297_v54  ;;  %v4309_v47 = vadd.f32 %v4308_v11, %v15872_v36  ;;  %4407 = vadd.xlane.f32.xlu0 %v4406_v25 }
 0x5a7   :  { %v4318_v29 = vadd.f32 %v4317_v12, %v4316_v46  ;;  %v12876_v45 = vpop.f32.mrb[78].mxu1  ;;  %v15982_v60 = vadd.f32 %v4363_v34, %v14976_v22 }
 0x5a8   :  { %v4311_v39 = vadd.f32 %v4310_v33, %v4309_v47  ;;  %v4329_v52 = vsel %vm454_vm1, %v12876_v45, 0.0  ;;  %v4023_v48 = vpop.f32.mrb[79].mxu1  ;;  %v15986_v15 = vadd.f32 %v4362_v43, %v14979_v23 }
 0x5a9   :  { %v4365_v7 = vadd.f32 %v15897_v38, %v4318_v29  ;;  %v4330_v35 = vadd.f32 %v4329_v52, %v15877_v40  ;;  %v4322_v36 = vsel %vm454_vm1, %v4023_v48, 0.0  ;;  %v4415_v21 = vsel %vm454_vm1, %v15982_v60, 0.0 }
 0x5aa   :  { %v4364_v22 = vadd.f32 %v15897_v38, %v4311_v39  ;;  %v4323_v1 = vadd.f32 %v4322_v36, %v15880_v49  ;;  %4416 = vadd.xlane.f32.xlu1 %v4415_v21  ;;  %v4412_v23 = vsel %vm454_vm1, %v15986_v15, 0.0 }
 0x5ab   :  { %v4332_v3 = vadd.f32 %v4331_v9, %v4330_v35  ;;  %4413 = vadd.xlane.f32.xlu0 %v4412_v23  ;;  %v12879_v40 = vpop.f32.mrb[80].mxu1  ;;  %v16000_v14 = vadd.f32 %v4365_v7, %v15000_v31 }
 0x5ac   :  { %v4325_v57 = vadd.f32 %v4324_v17, %v4323_v1  ;;  %v4343_v8 = vsel %vm454_vm1, %v12879_v40, 0.0  ;;  %v4033_v5 = vpop.f32.mrb[81].mxu1  ;;  %v16004_v44 = vadd.f32 %v4364_v22, %v15003_v32 }
 0x5ad   :  { %v4367_v49 = vadd.f32 %v15897_v38, %v4332_v3  ;;  %v4344_v16 = vadd.f32 %v4343_v8, %v15885_v13  ;;  %v4336_v28 = vsel %vm454_vm1, %v4033_v5, 0.0  ;;  %v4421_v56 = vsel %vm454_vm1, %v16000_v14, 0.0  ;;  %v18783_v13 = vld [vmem:[#allocation3_spill] sm:$0xff] }
 0x5ae   :  { %v4366_v31 = vadd.f32 %v15897_v38, %v4325_v57  ;;  %v4337_v41 = vadd.f32 %v4336_v28, %v15888_v61  ;;  %4422 = vadd.xlane.f32.xlu1 %v4421_v56  ;;  %v4418_v32 = vsel %vm454_vm1, %v16004_v44, 0.0 }
 0x5af   :  { %v4346_v4 = vadd.f32 %v4345_v63, %v4344_v16  ;;  %4419 = vadd.xlane.f32.xlu0 %v4418_v32  ;;  %v16018_v2 = vadd.f32 %v4367_v49, %v18783_v13 }
 0x5b0   :  { %v4339_v0 = vadd.f32 %v4338_v10, %v4337_v41  ;;  %v16021_v19 = vadd.f32 %v4366_v31, %v18784_v55 }
 0x5b1   :  { %v4369_v27 = vadd.f32 %v15897_v38, %v4346_v4  ;;  %v4427_v61 = vsel %vm454_vm1, %v16018_v2, 0.0 }
 0x5b2   :  { %v4368_v50 = vadd.f32 %v15897_v38, %v4339_v0  ;;  %4428 = vadd.xlane.f32.xlu1 %v4427_v61  ;;  %v4424_v30 = vsel %vm454_vm1, %v16021_v19, 0.0 }
 0x5b3   :  { %4425 = vadd.xlane.f32.xlu0 %v4424_v30  ;;  %v16030_v54 = vadd.f32 %v4369_v27, %v18785_v51 }
 0x5b4   :  { %v16033_v37 = vadd.f32 %v4368_v50, %v18786_v53 }
 0x5b5   :  { %v4433_v42 = vsel %vm454_vm1, %v16030_v54, 0.0 }
 0x5b6   :  { %4434 = vadd.xlane.f32.xlu1 %v4433_v42  ;;  %v4430_v34 = vsel %vm454_vm1, %v16033_v37, 0.0 }
 0x5b7   :  { %4431 = vadd.xlane.f32.xlu0 %v4430_v34 }
 0x61d   :  { %v4393_v38 = vpop.xlane.xlu1 %4392 }
 0x61e   :  { %v4438_v46 = vmul.f32 0.03125, %v4393_v38  ;;  %v4390_v11 = vpop.xlane.xlu0 %4389 }
 0x61f   :  { %v4437_v25 = vmul.f32 0.03125, %v4390_v11 }
 0x620   :  { %v16040_v12 = vsub.f32 %v15910_v6, %v4438_v46 }
 0x621   :  { %v16043_v43 = vsub.f32 %v15914_v26, %v4437_v25  ;;  %v4399_v47 = vpop.xlane.xlu1 %4398  ;;  %v4641_v25 = vld [vmem:[%s18711_s11] sm:$0xff] }
 0x622   :  { %v4440_v33 = vmul.f32 0.03125, %v4399_v47  ;;  %v4396_v29 = vpop.xlane.xlu0 %4395  ;;  %v4470_v45 = vmul.f32 %v16040_v12, %v16040_v12 }
 0x623   :  { %v4439_v39 = vmul.f32 0.03125, %v4396_v29  ;;  %v4469_v52 = vmul.f32 %v16043_v43, %v16043_v43 }
 0x624   :  { %v16050_v48 = vsub.f32 %v15928_v20, %v4440_v33  ;;  %v4488_v7 = vsel %vm454_vm1, %v4470_v45, 0.0 }
 0x625   :  { %v16054_v6 = vsub.f32 %v15931_v59, %v4439_v39  ;;  %v4405_v26 = vpop.xlane.xlu1 %4404  ;;  %4489 = vadd.xlane.f32.xlu1 %v4488_v7  ;;  %v4485_v35 = vsel %vm454_vm1, %v4469_v52, 0.0 }
 0x626   :  { %v4442_v36 = vmul.f32 0.03125, %v4405_v26  ;;  %v4402_v21 = vpop.xlane.xlu0 %4401  ;;  %4486 = vadd.xlane.f32.xlu0 %v4485_v35  ;;  %v4472_v9 = vmul.f32 %v16050_v48, %v16050_v48 }
 0x627   :  { %v4441_v22 = vmul.f32 0.03125, %v4402_v21  ;;  %v4471_v20 = vmul.f32 %v16054_v6, %v16054_v6 }
 0x628   :  { %v16062_v1 = vsub.f32 %v15940_v58, %v4442_v36  ;;  %v4494_v59 = vsel %vm454_vm1, %v4472_v9, 0.0 }
 0x629   :  { %v16066_v23 = vsub.f32 %v15943_v62, %v4441_v22  ;;  %4495 = vadd.xlane.f32.xlu1 %v4494_v59  ;;  %v4491_v17 = vsel %vm454_vm1, %v4471_v20, 0.0 }
 0x62a   :  { %4492 = vadd.xlane.f32.xlu0 %v4491_v17  ;;  %v4474_v3 = vmul.f32 %v16062_v1, %v16062_v1 }
 0x62b   :  { %v4473_v40 = vmul.f32 %v16066_v23, %v16066_v23 }
 0x62c   :  { %v4500_v57 = vsel %vm454_vm1, %v4474_v3, 0.0 }
 0x62d   :  { %4501 = vadd.xlane.f32.xlu1 %v4500_v57  ;;  %v4497_v58 = vsel %vm454_vm1, %v4473_v40, 0.0 }
 0x62e   :  { %4498 = vadd.xlane.f32.xlu0 %v4497_v58  ;;  %v4862_v58 = vld [vmem:[%s18712_s13 + $0x8] sm:$0xff] }
 0x632   :  { %v4411_v8 = vpop.xlane.xlu1 %4410 }
 0x633   :  { %v4444_v5 = vmul.f32 0.03125, %v4411_v8  ;;  %v4408_v62 = vpop.xlane.xlu0 %4407  ;;  %v4863_v8 = vld [vmem:[%s18712_s13 + $0x10] sm:$0xff] }
 0x634   :  { %v4443_v49 = vmul.f32 0.03125, %v4408_v62  ;;  %v4864_v62 = vld [vmem:[%s18712_s13 + $0x18] sm:$0xff] }
 0x635   :  { %v16076_v16 = vsub.f32 %v15963_v24, %v4444_v5 }
 0x636   :  { %v16079_v28 = vsub.f32 %v15967_v18, %v4443_v49  ;;  %v13722_v49 = vpack.c.bf16 %v4864_v62, %v4863_v8 }
 0x637   :  { %v4417_v56 = vpop.xlane.xlu1 %4416  ;;  %v4476_v63 = vmul.f32 %v16076_v16, %v16076_v16 }
 0x638   :  { %v4446_v31 = vmul.f32 0.03125, %v4417_v56  ;;  %v4414_v41 = vpop.xlane.xlu0 %4413  ;;  %v4475_v32 = vmul.f32 %v16079_v28, %v16079_v28  ;;  %v4865_v56 = vld [vmem:[%s18712_s13 + $0x20] sm:$0xff] }
 0x639   :  { %v4445_v10 = vmul.f32 0.03125, %v4414_v41  ;;  %v4506_v4 = vsel %vm454_vm1, %v4476_v63, 0.0  ;;  %v4866_v63 = vld [vmem:[%s18712_s13 + $0x28] sm:$0xff] }
 0x63a   :  { %v16087_v13 = vsub.f32 %v15982_v60, %v4446_v31  ;;  %4507 = vadd.xlane.f32.xlu1 %v4506_v4  ;;  %v4503_v24 = vsel %vm454_vm1, %v4475_v32, 0.0  ;;  %v13726_v31 = vpack.c.bf16 %v4866_v63, %v4865_v56 }
 0x63b   :  { %v16091_v18 = vsub.f32 %v15986_v15, %v4445_v10  ;;  %v4423_v0 = vpop.xlane.xlu1 %4422  ;;  %4504 = vadd.xlane.f32.xlu0 %v4503_v24 }
 0x63c   :  { %v4448_v55 = vmul.f32 0.03125, %v4423_v0  ;;  %v4420_v27 = vpop.xlane.xlu0 %4419  ;;  %v4478_v61 = vmul.f32 %v16087_v13, %v16087_v13 }
 0x63d   :  { %v4447_v50 = vmul.f32 0.03125, %v4420_v27  ;;  %v4477_v30 = vmul.f32 %v16091_v18, %v16091_v18 }
 0x63e   :  { %v16098_v60 = vsub.f32 %v16000_v14, %v4448_v55  ;;  %v4512_v51 = vsel %vm454_vm1, %v4478_v61, 0.0 }
 0x63f   :  { %v16102_v53 = vsub.f32 %v16004_v44, %v4447_v50  ;;  %v4429_v15 = vpop.xlane.xlu1 %4428  ;;  %4513 = vadd.xlane.f32.xlu1 %v4512_v51  ;;  %v4509_v42 = vsel %vm454_vm1, %v4477_v30, 0.0  ;;  %v4642_v44 = vld [vmem:[%s18711_s11 + $0x8] sm:$0xff] }
 0x640   :  { %v4450_v34 = vmul.f32 0.03125, %v4429_v15  ;;  %v4426_v38 = vpop.xlane.xlu0 %4425  ;;  %4510 = vadd.xlane.f32.xlu0 %v4509_v42  ;;  %v4480_v46 = vmul.f32 %v16098_v60, %v16098_v60  ;;  %v13710_v29 = vpack.c.bf16 %v4642_v44, %v4641_v25  ;;  %v16168_v25 = vld [vmem:[%s18713_s9] ss:$0 sm:$0xff] }
 0x641   :  { %v4449_v11 = vmul.f32 0.03125, %v4426_v38  ;;  %v4479_v14 = vmul.f32 %v16102_v53, %v16102_v53 }
 0x642   :  { %v16116_v47 = vsub.f32 %v16018_v2, %v4450_v34  ;;  %v4518_v33 = vsel %vm454_vm1, %v4480_v46, 0.0  ;;  %13711 = vmatprep.subr.bf16.mxu1 %v13710_v29  ;;  %v4643_v2 = vld [vmem:[%s18711_s11 + $0x10] sm:$0xff] }
 0x643   :  { %v16120_v45 = vsub.f32 %v16021_v19, %v4449_v11  ;;  %4519 = vadd.xlane.f32.xlu1 %v4518_v33  ;;  %v4435_v39 = vpop.xlane.xlu1 %4434  ;;  %v4515_v52 = vsel %vm454_vm1, %v4479_v14, 0.0  ;;  %v4644_v19 = vld [vmem:[%s18711_s11 + $0x18] sm:$0xff]  ;;  %13713 = vmatpush3.bf16.msra.mxu1 %v13710_v29 }
 0x644   :  { %v4452_v7 = vmul.f32 0.03125, %v4435_v39  ;;  %4516 = vadd.xlane.f32.xlu0 %v4515_v52  ;;  %v4432_v26 = vpop.xlane.xlu0 %4431  ;;  %v4482_v35 = vmul.f32 %v16116_v47, %v16116_v47  ;;  %v13714_v9 = vpack.c.bf16 %v4644_v19, %v4643_v2  ;;  %v16176_v52 = vld [vmem:[%s18714_s10] ss:$0 sm:$0xff] }
 0x645   :  { %v4451_v36 = vmul.f32 0.03125, %v4432_v26  ;;  %v4481_v21 = vmul.f32 %v16120_v45, %v16120_v45 }
 0x646   :  { %v16134_v22 = vsub.f32 %v16030_v54, %v4452_v7  ;;  %v4524_v20 = vsel %vm454_vm1, %v4482_v35, 0.0  ;;  %13715 = vmatprep.subr.bf16.mxu1 %v13714_v9 }
 0x647   :  { %v16138_v59 = vsub.f32 %v16033_v37, %v4451_v36  ;;  %4525 = vadd.xlane.f32.xlu1 %v4524_v20  ;;  %v4521_v17 = vsel %vm454_vm1, %v4481_v21, 0.0  ;;  %13717 = vmatpush3.bf16.msra.mxu1 %v13714_v9  ;;  %v4861_v37 = vld [vmem:[%s18712_s13] sm:$0xff] }
 0x648   :  { %4522 = vadd.xlane.f32.xlu0 %v4521_v17  ;;  %v4484_v3 = vmul.f32 %v16134_v22, %v16134_v22  ;;  %v13718_v5 = vpack.c.bf16 %v4862_v58, %v4861_v37 }
 0x649   :  { %v4483_v40 = vmul.f32 %v16138_v59, %v16138_v59 }
 0x64a   :  { %v4530_v54 = vsel %vm454_vm1, %v4484_v3, 0.0  ;;  %13719 = vmatprep.subr.bf16.mxu0 %v13718_v5 }
 0x64b   :  { %4531 = vadd.xlane.f32.xlu1 %v4530_v54  ;;  %v4527_v57 = vsel %vm454_vm1, %v4483_v40, 0.0  ;;  %13721 = vmatpush3.bf16.msra.mxu0 %v13718_v5 }
 0x64c   :  { %4528 = vadd.xlane.f32.xlu0 %v4527_v57  ;;  %13723 = vmatprep.subr.bf16.mxu0 %v13722_v49 }
 0x64f   :  { %13725 = vmatpush3.bf16.msra.mxu0 %v13722_v49 }
 0x650   :  { %13727 = vmatprep.subr.bf16.mxu0 %v13726_v31 }
 0x653   :  { %13729 = vmatpush3.bf16.msra.mxu0 %v13726_v31 }
 0x6b2   :  { %v4490_v41 = vpop.xlane.xlu1 %4489 }
 0x6b3   :  { %v4534_v32 = vmul.f32 0.03125, %v4490_v41  ;;  %v4487_v10 = vpop.xlane.xlu0 %4486 }
 0x6b4   :  { %v4533_v4 = vmul.f32 0.03125, %v4487_v10 }
 0x6b5   :  { %v4550_v24 = vadd.f32 1e-05, %v4534_v32 }
 0x6b6   :  { %v4549_v0 = vadd.f32 1e-05, %v4533_v4  ;;  %v4496_v55 = vpop.xlane.xlu1 %4495 }
 0x6b7   :  { %14173 = vrsqrt.f32 %v4550_v24  ;;  %v4536_v27 = vmul.f32 0.03125, %v4496_v55  ;;  %v4493_v61 = vpop.xlane.xlu0 %4492 }
 0x6b8   :  { %14175 = vrsqrt.f32 %v4549_v0  ;;  %v4535_v50 = vmul.f32 0.03125, %v4493_v61 }
 0x6b9   :  { %v4552_v30 = vadd.f32 1e-05, %v4536_v27 }
 0x6ba   :  { %v4551_v51 = vadd.f32 1e-05, %v4535_v50  ;;  %v4502_v15 = vpop.xlane.xlu1 %4501 }
 0x6bb   :  { %14177 = vrsqrt.f32 %v4552_v30  ;;  %v4538_v42 = vmul.f32 0.03125, %v4502_v15  ;;  %v4499_v34 = vpop.xlane.xlu0 %4498 }
 0x6bc   :  { %14179 = vrsqrt.f32 %v4551_v51  ;;  %v4537_v38 = vmul.f32 0.03125, %v4499_v34 }
 0x6bd   :  { %v4554_v46 = vadd.f32 1e-05, %v4538_v42 }
 0x6be   :  { %v4553_v11 = vadd.f32 1e-05, %v4537_v38 }
 0x6bf   :  { %14181 = vrsqrt.f32 %v4554_v46 }
 0x6c0   :  { %14183 = vrsqrt.f32 %v4553_v11 }
 0x6c1   :  { %v14174_v14 = vpop.eup %14173 }
 0x6c2   :  { %v14176_v44 = vpop.eup %14175  ;;  %v4582_v33 = vmul.f32 %v14174_v14, %v16040_v12 }
 0x6c3   :  { %v4581_v29 = vmul.f32 %v14176_v44, %v16043_v43 }
 0x6c4   :  { %v4604_v39 = vmul.f32 %v16168_v25, %v4582_v33 }
 0x6c5   :  { %v14178_v7 = vpop.eup %14177  ;;  %v4603_v26 = vmul.f32 %v16168_v25, %v4581_v29 }
 0x6c6   :  { %v14180_v35 = vpop.eup %14179  ;;  %v4584_v2 = vmul.f32 %v14178_v7, %v16050_v48  ;;  %v16185_v9 = vadd.f32 %v16176_v52, %v4604_v39 }
 0x6c7   :  { %v4508_v19 = vpop.xlane.xlu1 %4507  ;;  %v16181_v36 = vadd.f32 %v16176_v52, %v4603_v26  ;;  %v4583_v12 = vmul.f32 %v14180_v35, %v16054_v6 }
 0x6c8   :  { %v4540_v43 = vmul.f32 0.03125, %v4508_v19  ;;  %v4505_v21 = vpop.xlane.xlu0 %4504  ;;  %v4606_v20 = vmul.f32 %v16168_v25, %v4584_v2 }
 0x6c9   :  { %v14182_v17 = vpop.eup %14181  ;;  %v4539_v3 = vmul.f32 0.03125, %v4505_v21  ;;  %12914 = vmatprep.mubr.msk.f32.mxu1 %vm454_vm1, %v16181_v36  ;;  %v4605_v48 = vmul.f32 %v16168_v25, %v4583_v12 }
 0x6ca   :  { %v14184_v40 = vpop.eup %14183  ;;  %v4556_v54 = vadd.f32 1e-05, %v4540_v43  ;;  %12915 = vmatmul.mubr.msk.f32.vlgmr.msra.gmra.mrb[82].mxu1 %vm454_vm1, %v16185_v9  ;;  %v4586_v6 = vmul.f32 %v14182_v17, %v16062_v1  ;;  %v16199_v5 = vadd.f32 %v16176_v52, %v4606_v20 }
 0x6cb   :  { %v4555_v57 = vadd.f32 1e-05, %v4539_v3  ;;  %v16195_v37 = vadd.f32 %v16176_v52, %v4605_v48  ;;  %v4585_v58 = vmul.f32 %v14184_v40, %v16066_v23 }
 0x6cc   :  { %14185 = vrsqrt.f32 %v4556_v54  ;;  %v4514_v8 = vpop.xlane.xlu1 %4513  ;;  %v4608_v62 = vmul.f32 %v16168_v25, %v4586_v6 }
 0x6cd   :  { %14187 = vrsqrt.f32 %v4555_v57  ;;  %v4542_v49 = vmul.f32 0.03125, %v4514_v8  ;;  %v4511_v56 = vpop.xlane.xlu0 %4510  ;;  %12917 = vmatprep.mubr.msk.f32.mxu1 %vm454_vm1, %v16195_v37  ;;  %v4607_v1 = vmul.f32 %v16168_v25, %v4585_v58 }
 0x6ce   :  { %v4541_v63 = vmul.f32 0.03125, %v4511_v56  ;;  %12918 = vmatmul.mubr.msk.f32.gmra.mrb[84].mxu1 %vm454_vm1, %v16199_v5  ;;  %v16211_v10 = vadd.f32 %v16176_v52, %v4608_v62 }
 0x6cf   :  { %v4558_v23 = vadd.f32 1e-05, %v4542_v49  ;;  %v16208_v31 = vadd.f32 %v16176_v52, %v4607_v1 }
 0x6d0   :  { %v4557_v41 = vadd.f32 1e-05, %v4541_v63  ;;  %v4520_v32 = vpop.xlane.xlu1 %4519 }
 0x6d1   :  { %14189 = vrsqrt.f32 %v4558_v23  ;;  %v4544_v4 = vmul.f32 0.03125, %v4520_v32  ;;  %v4517_v24 = vpop.xlane.xlu0 %4516  ;;  %12920 = vmatprep.mubr.msk.f32.mxu1 %vm454_vm1, %v16208_v31 }
 0x6d2   :  { %14191 = vrsqrt.f32 %v4557_v41  ;;  %v4543_v0 = vmul.f32 0.03125, %v4517_v24  ;;  %12921 = vmatmul.mubr.msk.f32.gmra.mrb[86].mxu1 %vm454_vm1, %v16211_v10 }
 0x6d3   :  { %v4560_v55 = vadd.f32 1e-05, %v4544_v4 }
 0x6d4   :  { %v4559_v27 = vadd.f32 1e-05, %v4543_v0  ;;  %v4526_v61 = vpop.xlane.xlu1 %4525 }
 0x6d5   :  { %14193 = vrsqrt.f32 %v4560_v55  ;;  %v4546_v50 = vmul.f32 0.03125, %v4526_v61  ;;  %v4523_v30 = vpop.xlane.xlu0 %4522 }
 0x6d6   :  { %v14186_v51 = vpop.eup %14185  ;;  %14195 = vrsqrt.f32 %v4559_v27  ;;  %v4545_v15 = vmul.f32 0.03125, %v4523_v30 }
 0x6d7   :  { %v14188_v42 = vpop.eup %14187  ;;  %v4562_v34 = vadd.f32 1e-05, %v4546_v50  ;;  %v4588_v38 = vmul.f32 %v14186_v51, %v16076_v16 }
 0x6d8   :  { %v4561_v46 = vadd.f32 1e-05, %v4545_v15  ;;  %v4532_v11 = vpop.xlane.xlu1 %4531  ;;  %v4587_v14 = vmul.f32 %v14188_v42, %v16079_v28 }
 0x6d9   :  { %14197 = vrsqrt.f32 %v4562_v34  ;;  %v4548_v44 = vmul.f32 0.03125, %v4532_v11  ;;  %v4529_v33 = vpop.xlane.xlu0 %4528  ;;  %v4610_v29 = vmul.f32 %v16168_v25, %v4588_v38 }
 0x6da   :  { %14199 = vrsqrt.f32 %v4561_v46  ;;  %v4547_v39 = vmul.f32 0.03125, %v4529_v33  ;;  %v4609_v7 = vmul.f32 %v16168_v25, %v4587_v14 }
 0x6db   :  { %v14190_v26 = vpop.eup %14189  ;;  %v4564_v35 = vadd.f32 1e-05, %v4548_v44  ;;  %v16226_v28 = vadd.f32 %v16176_v52, %v4610_v29 }
 0x6dc   :  { %v14192_v2 = vpop.eup %14191  ;;  %v4563_v19 = vadd.f32 1e-05, %v4547_v39  ;;  %v16222_v12 = vadd.f32 %v16176_v52, %v4609_v7  ;;  %v4590_v16 = vmul.f32 %v14190_v26, %v16087_v13 }
 0x6dd   :  { %14201 = vrsqrt.f32 %v4564_v35  ;;  %v4589_v43 = vmul.f32 %v14192_v2, %v16091_v18 }
 0x6de   :  { %14203 = vrsqrt.f32 %v4563_v19  ;;  %12923 = vmatprep.mubr.msk.f32.mxu1 %vm454_vm1, %v16222_v12  ;;  %v4612_v21 = vmul.f32 %v16168_v25, %v4590_v16 }
 0x6df   :  { %v14194_v20 = vpop.eup %14193  ;;  %12924 = vmatmul.mubr.msk.f32.gmra.mrb[88].mxu1 %vm454_vm1, %v16226_v28  ;;  %v4611_v17 = vmul.f32 %v16168_v25, %v4589_v43 }
 0x6e0   :  { %v14196_v3 = vpop.eup %14195  ;;  %v4592_v13 = vmul.f32 %v14194_v20, %v16098_v60  ;;  %v16241_v40 = vadd.f32 %v16176_v52, %v4612_v21 }
 0x6e1   :  { %v16237_v48 = vadd.f32 %v16176_v52, %v4611_v17  ;;  %v4591_v18 = vmul.f32 %v14196_v3, %v16102_v53 }
 0x6e2   :  { %v4614_v54 = vmul.f32 %v16168_v25, %v4592_v13 }
 0x6e3   :  { %v14198_v6 = vpop.eup %14197  ;;  %12926 = vmatprep.mubr.msk.f32.mxu1 %vm454_vm1, %v16237_v48  ;;  %v4613_v57 = vmul.f32 %v16168_v25, %v4591_v18 }
 0x6e4   :  { %v14200_v58 = vpop.eup %14199  ;;  %12927 = vmatmul.mubr.msk.f32.gmra.mrb[90].mxu1 %vm454_vm1, %v16241_v40  ;;  %v4594_v60 = vmul.f32 %v14198_v6, %v16116_v47  ;;  %v16255_v62 = vadd.f32 %v16176_v52, %v4614_v54 }
 0x6e5   :  { %v16251_v8 = vadd.f32 %v16176_v52, %v4613_v57  ;;  %v4593_v53 = vmul.f32 %v14200_v58, %v16120_v45 }
 0x6e6   :  { %v4616_v49 = vmul.f32 %v16168_v25, %v4594_v60 }
 0x6e7   :  { %v14202_v56 = vpop.eup %14201  ;;  %12929 = vmatprep.mubr.msk.f32.mxu1 %vm454_vm1, %v16251_v8  ;;  %v4615_v1 = vmul.f32 %v16168_v25, %v4593_v53 }
 0x6e8   :  { %v14204_v63 = vpop.eup %14203  ;;  %12930 = vmatmul.mubr.msk.f32.gmra.mrb[92].mxu1 %vm454_vm1, %v16255_v62  ;;  %v4596_v47 = vmul.f32 %v14202_v56, %v16134_v22  ;;  %v16269_v41 = vadd.f32 %v16176_v52, %v4616_v49 }
 0x6e9   :  { %v16265_v23 = vadd.f32 %v16176_v52, %v4615_v1  ;;  %v4595_v45 = vmul.f32 %v14204_v63, %v16138_v59  ;;  %v4867_v59 = vld [vmem:[%s18712_s13 + $0x30] sm:$0xff] }
 0x6ea   :  { %v4618_v32 = vmul.f32 %v16168_v25, %v4596_v47 }
 0x6eb   :  { %12932 = vmatprep.mubr.msk.f32.mxu1 %vm454_vm1, %v16265_v23  ;;  %v4617_v4 = vmul.f32 %v16168_v25, %v4595_v45  ;;  %v4868_v25 = vld [vmem:[%s18712_s13 + $0x38] sm:$0xff] }
 0x6ec   :  { %12933 = vmatmul.mubr.msk.f32.gmra.mrb[94].mxu1 %vm454_vm1, %v16269_v41  ;;  %v16281_v24 = vadd.f32 %v16176_v52, %v4618_v32  ;;  %v13730_v0 = vpack.c.bf16 %v4868_v25, %v4867_v59 }
 0x6ed   :  { %v16278_v22 = vadd.f32 %v16176_v52, %v4617_v4  ;;  %v11311_v52 = vld [vmem:[%s18715_s12] ss:$0 sm:$0xff] }
 0x6ee   :  { %13731 = vmatprep.subr.bf16.mxu0 %v13730_v0 }
 0x6ef   :  { %12935 = vmatprep.mubr.msk.f32.mxu1 %vm454_vm1, %v16278_v22  ;;  %13733 = vmatpush3.bf16.msra.mxu0 %v13730_v0 }
 0x6f0   :  { %12936 = vmatmul.mubr.msk.f32.gmra.mrb[96].mxu1 %vm454_vm1, %v16281_v24 }
 0x79d   :  { %v12916_v55 = vpop.f32.mrb[82].mxu1 }
 0x79e   :  { %v4772_v27 = vadd.f32 %v12916_v55, %v11311_v52  ;;  %v4766_v61 = vpop.f32.mrb[83].mxu1 }
 0x79f   :  { %v4767_v50 = vadd.f32 %v11311_v52, %v4766_v61 }
 0x7a0   :  { %v4846_v15 = vmax.f32 %v4772_v27, 0.0  ;;  %v16315_v27 = vld [vmem:[%s18716_s14] ss:$0 sm:$0xff] }
 0x7a1   :  { %v4845_v30 = vmax.f32 %v4767_v50, 0.0  ;;  %v12919_v51 = vpop.f32.mrb[84].mxu1 }
 0x7a2   :  { %v4782_v42 = vadd.f32 %v12919_v51, %v11311_v52  ;;  %v4776_v34 = vpop.f32.mrb[85].mxu1 }
 0x7a3   :  { %v4777_v38 = vadd.f32 %v11311_v52, %v4776_v34  ;;  %12954 = vmatprep.mubr.msk.f32.mxu0 %vm4876_vm4, %v4845_v30 }
 0x7a4   :  { %12955 = vmatmul.mubr.msk.f32.vlgmr.msra.gmra.mrb[138].mxu0 %vm4876_vm4, %v4846_v15  ;;  %v4848_v14 = vmax.f32 %v4782_v42, 0.0 }
 0x7a5   :  { %v4847_v46 = vmax.f32 %v4777_v38, 0.0  ;;  %v12922_v11 = vpop.f32.mrb[86].mxu1 }
 0x7a6   :  { %v4792_v44 = vadd.f32 %v12922_v11, %v11311_v52  ;;  %v4786_v33 = vpop.f32.mrb[87].mxu1 }
 0x7a7   :  { %v4787_v29 = vadd.f32 %v11311_v52, %v4786_v33  ;;  %12957 = vmatprep.mubr.msk.f32.mxu0 %vm4876_vm4, %v4847_v46 }
 0x7a8   :  { %12958 = vmatmul.mubr.msk.f32.gmra.mrb[140].mxu0 %vm4876_vm4, %v4848_v14  ;;  %v4850_v7 = vmax.f32 %v4792_v44, 0.0 }
 0x7a9   :  { %v4849_v39 = vmax.f32 %v4787_v29, 0.0 }
 0x7ab   :  { %12960 = vmatprep.mubr.msk.f32.mxu0 %vm4876_vm4, %v4849_v39 }
 0x7ac   :  { %12961 = vmatmul.mubr.msk.f32.gmra.mrb[142].mxu0 %vm4876_vm4, %v4850_v7 }
 0x7b2   :  { %v12925_v26 = vpop.f32.mrb[88].mxu1 }
 0x7b3   :  { %v4802_v35 = vadd.f32 %v12925_v26, %v11311_v52  ;;  %v4796_v2 = vpop.f32.mrb[89].mxu1 }
 0x7b4   :  { %v4797_v19 = vadd.f32 %v11311_v52, %v4796_v2 }
 0x7b5   :  { %v4852_v43 = vmax.f32 %v4802_v35, 0.0 }
 0x7b6   :  { %v4851_v16 = vmax.f32 %v4797_v19, 0.0 }
 0x7b7   :  { %v12928_v21 = vpop.f32.mrb[90].mxu1 }
 0x7b8   :  { %v4812_v20 = vadd.f32 %v12928_v21, %v11311_v52  ;;  %v4806_v17 = vpop.f32.mrb[91].mxu1  ;;  %12963 = vmatprep.mubr.msk.f32.mxu0 %vm4876_vm4, %v4851_v16 }
 0x7b9   :  { %v4807_v3 = vadd.f32 %v11311_v52, %v4806_v17  ;;  %12964 = vmatmul.mubr.msk.f32.gmra.mrb[144].mxu0 %vm4876_vm4, %v4852_v43 }
 0x7ba   :  { %v4854_v54 = vmax.f32 %v4812_v20, 0.0 }
 0x7bb   :  { %v4853_v13 = vmax.f32 %v4807_v3, 0.0  ;;  %v12931_v18 = vpop.f32.mrb[92].mxu1 }
 0x7bc   :  { %v4822_v6 = vadd.f32 %v12931_v18, %v11311_v52  ;;  %v4816_v57 = vpop.f32.mrb[93].mxu1 }
 0x7bd   :  { %v4817_v58 = vadd.f32 %v11311_v52, %v4816_v57  ;;  %12966 = vmatprep.mubr.msk.f32.mxu0 %vm4876_vm4, %v4853_v13 }
 0x7be   :  { %12967 = vmatmul.mubr.msk.f32.gmra.mrb[146].mxu0 %vm4876_vm4, %v4854_v54  ;;  %v4856_v49 = vmax.f32 %v4822_v6, 0.0 }
 0x7bf   :  { %v4855_v60 = vmax.f32 %v4817_v58, 0.0  ;;  %v12934_v53 = vpop.f32.mrb[94].mxu1 }
 0x7c0   :  { %v4832_v56 = vadd.f32 %v12934_v53, %v11311_v52  ;;  %v4826_v1 = vpop.f32.mrb[95].mxu1 }
 0x7c1   :  { %v4827_v63 = vadd.f32 %v11311_v52, %v4826_v1  ;;  %12969 = vmatprep.mubr.msk.f32.mxu0 %vm4876_vm4, %v4855_v60 }
 0x7c2   :  { %12970 = vmatmul.mubr.msk.f32.gmra.mrb[148].mxu0 %vm4876_vm4, %v4856_v49  ;;  %v4858_v32 = vmax.f32 %v4832_v56, 0.0 }
 0x7c3   :  { %v4857_v47 = vmax.f32 %v4827_v63, 0.0  ;;  %v12937_v45 = vpop.f32.mrb[96].mxu1 }
 0x7c4   :  { %v4842_v4 = vadd.f32 %v12937_v45, %v11311_v52  ;;  %v4836_v59 = vpop.f32.mrb[97].mxu1 }
 0x7c5   :  { %v4837_v25 = vadd.f32 %v11311_v52, %v4836_v59  ;;  %12972 = vmatprep.mubr.msk.f32.mxu0 %vm4876_vm4, %v4857_v47 }
 0x7c6   :  { %12973 = vmatmul.mubr.msk.f32.gmra.mrb[150].mxu0 %vm4876_vm4, %v4858_v32  ;;  %v4860_v55 = vmax.f32 %v4842_v4, 0.0 }
 0x7c7   :  { %v4859_v0 = vmax.f32 %v4837_v25, 0.0 }
 0x7c9   :  { %12975 = vmatprep.mubr.msk.f32.mxu0 %vm4876_vm4, %v4859_v0 }
 0x7ca   :  { %12976 = vmatmul.mubr.msk.f32.gmra.mrb[152].mxu0 %vm4876_vm4, %v4860_v55 }
 0x877   :  { %v12956_v61 = vpop.f32.mrb[138].mxu0 }
 0x878   :  { %v4997_v50 = vadd.f32 %v12956_v61, %v16315_v27  ;;  %v4991_v30 = vpop.f32.mrb[139].mxu0 }
 0x879   :  { %v4992_v52 = vadd.f32 %v16315_v27, %v4991_v30 }
 0x87a   :  { %v16320_v51 = vadd.f32 %v4997_v50, %v16185_v9 }
 0x87b   :  { %v16323_v15 = vadd.f32 %v4992_v52, %v16181_v36  ;;  %v12959_v42 = vpop.f32.mrb[140].mxu0 }
 0x87c   :  { %v5007_v34 = vadd.f32 %v12959_v42, %v16315_v27  ;;  %v5001_v38 = vpop.f32.mrb[141].mxu0  ;;  %v5091_v46 = vsel %vm454_vm1, %v16320_v51, 0.0 }
 0x87d   :  { %v5002_v11 = vadd.f32 %v16315_v27, %v5001_v38  ;;  %5092 = vadd.xlane.f32.xlu1 %v5091_v46  ;;  %v5088_v14 = vsel %vm454_vm1, %v16323_v15, 0.0 }
 0x87e   :  { %v16332_v44 = vadd.f32 %v5007_v34, %v16199_v5  ;;  %5089 = vadd.xlane.f32.xlu0 %v5088_v14 }
 0x87f   :  { %v16335_v36 = vadd.f32 %v5002_v11, %v16195_v37  ;;  %v12962_v9 = vpop.f32.mrb[142].mxu0 }
 0x880   :  { %v5017_v33 = vadd.f32 %v12962_v9, %v16315_v27  ;;  %v5011_v29 = vpop.f32.mrb[143].mxu0  ;;  %v5097_v39 = vsel %vm454_vm1, %v16332_v44, 0.0 }
 0x881   :  { %v5012_v7 = vadd.f32 %v16315_v27, %v5011_v29  ;;  %5098 = vadd.xlane.f32.xlu1 %v5097_v39  ;;  %v5094_v26 = vsel %vm454_vm1, %v16335_v36, 0.0 }
 0x882   :  { %v16344_v5 = vadd.f32 %v5017_v33, %v16211_v10  ;;  %5095 = vadd.xlane.f32.xlu0 %v5094_v26 }
 0x883   :  { %v16347_v37 = vadd.f32 %v5012_v7, %v16208_v31 }
 0x884   :  { %v5103_v35 = vsel %vm454_vm1, %v16344_v5, 0.0 }
 0x885   :  { %5104 = vadd.xlane.f32.xlu1 %v5103_v35  ;;  %v5100_v2 = vsel %vm454_vm1, %v16347_v37, 0.0 }
 0x886   :  { %5101 = vadd.xlane.f32.xlu0 %v5100_v2 }
 0x88c   :  { %v12965_v19 = vpop.f32.mrb[144].mxu0 }
 0x88d   :  { %v5027_v16 = vadd.f32 %v12965_v19, %v16315_v27  ;;  %v5021_v43 = vpop.f32.mrb[145].mxu0 }
 0x88e   :  { %v5022_v21 = vadd.f32 %v16315_v27, %v5021_v43 }
 0x88f   :  { %v16356_v10 = vadd.f32 %v5027_v16, %v16226_v28 }
 0x890   :  { %v16359_v31 = vadd.f32 %v5022_v21, %v16222_v12 }
 0x891   :  { %v12968_v20 = vpop.f32.mrb[146].mxu0  ;;  %v5109_v17 = vsel %vm454_vm1, %v16356_v10, 0.0 }
 0x892   :  { %v5037_v3 = vadd.f32 %v12968_v20, %v16315_v27  ;;  %v5031_v13 = vpop.f32.mrb[147].mxu0  ;;  %5110 = vadd.xlane.f32.xlu1 %v5109_v17  ;;  %v5106_v18 = vsel %vm454_vm1, %v16359_v31, 0.0 }
 0x893   :  { %v5032_v54 = vadd.f32 %v16315_v27, %v5031_v13  ;;  %5107 = vadd.xlane.f32.xlu0 %v5106_v18 }
 0x894   :  { %v16368_v28 = vadd.f32 %v5037_v3, %v16241_v40 }
 0x895   :  { %v16371_v12 = vadd.f32 %v5032_v54, %v16237_v48  ;;  %v12971_v6 = vpop.f32.mrb[148].mxu0 }
 0x896   :  { %v5047_v57 = vadd.f32 %v12971_v6, %v16315_v27  ;;  %v5041_v58 = vpop.f32.mrb[149].mxu0  ;;  %v5115_v60 = vsel %vm454_vm1, %v16368_v28, 0.0 }
 0x897   :  { %v5042_v53 = vadd.f32 %v16315_v27, %v5041_v58  ;;  %5116 = vadd.xlane.f32.xlu1 %v5115_v60  ;;  %v5112_v49 = vsel %vm454_vm1, %v16371_v12, 0.0 }
 0x898   :  { %v16380_v56 = vadd.f32 %v5047_v57, %v16255_v62  ;;  %5113 = vadd.xlane.f32.xlu0 %v5112_v49 }
 0x899   :  { %v16383_v48 = vadd.f32 %v5042_v53, %v16251_v8  ;;  %v12974_v40 = vpop.f32.mrb[150].mxu0 }
 0x89a   :  { %v5057_v1 = vadd.f32 %v12974_v40, %v16315_v27  ;;  %v5051_v63 = vpop.f32.mrb[151].mxu0  ;;  %v5121_v47 = vsel %vm454_vm1, %v16380_v56, 0.0 }
 0x89b   :  { %v5052_v45 = vadd.f32 %v16315_v27, %v5051_v63  ;;  %5122 = vadd.xlane.f32.xlu1 %v5121_v47  ;;  %v5118_v32 = vsel %vm454_vm1, %v16383_v48, 0.0 }
 0x89c   :  { %v16392_v62 = vadd.f32 %v5057_v1, %v16269_v41  ;;  %5119 = vadd.xlane.f32.xlu0 %v5118_v32 }
 0x89d   :  { %v16395_v8 = vadd.f32 %v5052_v45, %v16265_v23  ;;  %v12977_v4 = vpop.f32.mrb[152].mxu0 }
 0x89e   :  { %v5067_v59 = vadd.f32 %v12977_v4, %v16315_v27  ;;  %v5061_v25 = vpop.f32.mrb[153].mxu0  ;;  %v5127_v0 = vsel %vm454_vm1, %v16392_v62, 0.0 }
 0x89f   :  { %v5062_v55 = vadd.f32 %v16315_v27, %v5061_v25  ;;  %5128 = vadd.xlane.f32.xlu1 %v5127_v0  ;;  %v5124_v61 = vsel %vm454_vm1, %v16395_v8, 0.0 }
 0x8a0   :  { %v16404_v41 = vadd.f32 %v5067_v59, %v16281_v24  ;;  %5125 = vadd.xlane.f32.xlu0 %v5124_v61 }
 0x8a1   :  { %v16407_v23 = vadd.f32 %v5062_v55, %v16278_v22 }
 0x8a2   :  { %v5133_v50 = vsel %vm454_vm1, %v16404_v41, 0.0 }
 0x8a3   :  { %5134 = vadd.xlane.f32.xlu1 %v5133_v50  ;;  %v5130_v30 = vsel %vm454_vm1, %v16407_v23, 0.0 }
 0x8a4   :  { %5131 = vadd.xlane.f32.xlu0 %v5130_v30 }
 0x90a   :  { %v5093_v27 = vpop.xlane.xlu1 %5092 }
 0x90b   :  { %v5137_v52 = vmul.f32 0.03125, %v5093_v27  ;;  %v5090_v42 = vpop.xlane.xlu0 %5089 }
 0x90c   :  { %v5136_v34 = vmul.f32 0.03125, %v5090_v42 }
 0x90d   :  { %v16414_v38 = vsub.f32 %v16320_v51, %v5137_v52 }
 0x90e   :  { %v16417_v24 = vsub.f32 %v16323_v15, %v5136_v34  ;;  %v5099_v22 = vpop.xlane.xlu1 %5098 }
 0x90f   :  { %v5139_v46 = vmul.f32 0.03125, %v5099_v22  ;;  %v5096_v11 = vpop.xlane.xlu0 %5095  ;;  %v5169_v14 = vmul.f32 %v16414_v38, %v16414_v38 }
 0x910   :  { %v5138_v9 = vmul.f32 0.03125, %v5096_v11  ;;  %v5168_v33 = vmul.f32 %v16417_v24, %v16417_v24 }
 0x911   :  { %v16424_v29 = vsub.f32 %v16332_v44, %v5139_v46  ;;  %v5187_v39 = vsel %vm454_vm1, %v5169_v14, 0.0 }
 0x912   :  { %v16428_v51 = vsub.f32 %v16335_v36, %v5138_v9  ;;  %v5105_v15 = vpop.xlane.xlu1 %5104  ;;  %5188 = vadd.xlane.f32.xlu1 %v5187_v39  ;;  %v5184_v7 = vsel %vm454_vm1, %v5168_v33, 0.0 }
 0x913   :  { %v5141_v26 = vmul.f32 0.03125, %v5105_v15  ;;  %5185 = vadd.xlane.f32.xlu0 %v5184_v7  ;;  %v5102_v35 = vpop.xlane.xlu0 %5101  ;;  %v5171_v2 = vmul.f32 %v16424_v29, %v16424_v29 }
 0x914   :  { %v5140_v19 = vmul.f32 0.03125, %v5102_v35  ;;  %v5170_v44 = vmul.f32 %v16428_v51, %v16428_v51 }
 0x915   :  { %v16436_v16 = vsub.f32 %v16344_v5, %v5141_v26  ;;  %v5193_v36 = vsel %vm454_vm1, %v5171_v2, 0.0 }
 0x916   :  { %v16440_v43 = vsub.f32 %v16347_v37, %v5140_v19  ;;  %5194 = vadd.xlane.f32.xlu1 %v5193_v36  ;;  %v5190_v21 = vsel %vm454_vm1, %v5170_v44, 0.0  ;;  %v11348_v44 = vld [vmem:[%s18770_s2 + $0x88] sm:$0xff]  ;;  %v11351_v36 = vld [vmem:[%s18770_s2 + $0xa0] sm:$0xff] }
 0x917   :  { %5191 = vadd.xlane.f32.xlu0 %v5190_v21  ;;  %v5173_v20 = vmul.f32 %v16436_v16, %v16436_v16  ;;  %v11349_v21 = vld [vmem:[%s18770_s2 + $0x90] sm:$0xff] }
 0x918   :  { %v5172_v17 = vmul.f32 %v16440_v43, %v16440_v43 }
 0x919   :  { %v5199_v3 = vsel %vm454_vm1, %v5173_v20, 0.0  ;;  %v11352_v20 = vld [vmem:[%s18770_s2 + $0xa8] sm:$0xff] }
 0x91a   :  { %5200 = vadd.xlane.f32.xlu1 %v5199_v3  ;;  %v5196_v5 = vsel %vm454_vm1, %v5172_v17, 0.0  ;;  %v11350_v17 = vld [vmem:[%s18770_s2 + $0x98] sm:$0xff]  ;;  %v11353_v3 = vld [vmem:[%s18770_s2 + $0xb0] sm:$0xff] }
 0x91b   :  { %5197 = vadd.xlane.f32.xlu0 %v5196_v5  ;;  %v11383_v5 = vld [vmem:[%s18771_s24 + $0x80] sm:$0xff] }
 0x91f   :  { %v5111_v13 = vpop.xlane.xlu1 %5110 }
 0x920   :  { %v5143_v18 = vmul.f32 0.03125, %v5111_v13  ;;  %v5108_v37 = vpop.xlane.xlu0 %5107  ;;  %v11354_v13 = vld [vmem:[%s18770_s2 + $0xb8] sm:$0xff] }
 0x921   :  { %v5142_v54 = vmul.f32 0.03125, %v5108_v37  ;;  %v11387_v37 = vld [vmem:[%s18771_s24 + $0xa0] sm:$0xff] }
 0x922   :  { %v16450_v6 = vsub.f32 %v16356_v10, %v5143_v18  ;;  %v11384_v18 = vld [vmem:[%s18771_s24 + $0x88] sm:$0xff] }
 0x923   :  { %v16453_v57 = vsub.f32 %v16359_v31, %v5142_v54  ;;  %v11385_v54 = vld [vmem:[%s18771_s24 + $0x90] sm:$0xff] }
 0x924   :  { %v5117_v58 = vpop.xlane.xlu1 %5116  ;;  %v5175_v60 = vmul.f32 %v16450_v6, %v16450_v6 }
 0x925   :  { %v5145_v53 = vmul.f32 0.03125, %v5117_v58  ;;  %v5114_v49 = vpop.xlane.xlu0 %5113  ;;  %v5174_v40 = vmul.f32 %v16453_v57, %v16453_v57  ;;  %v11388_v58 = vld [vmem:[%s18771_s24 + $0xa8] sm:$0xff] }
 0x926   :  { %v5144_v1 = vmul.f32 0.03125, %v5114_v49  ;;  %v5205_v63 = vsel %vm454_vm1, %v5175_v60, 0.0  ;;  %v11386_v60 = vld [vmem:[%s18771_s24 + $0x98] sm:$0xff]  ;;  %v11355_v49 = vld [vmem:[%s18770_s2 + $0xc0] sm:$0xff] }
 0x927   :  { %v16461_v47 = vsub.f32 %v16368_v28, %v5145_v53  ;;  %5206 = vadd.xlane.f32.xlu1 %v5205_v63  ;;  %v5202_v10 = vsel %vm454_vm1, %v5174_v40, 0.0  ;;  %v11389_v53 = vld [vmem:[%s18771_s24 + $0xb0] sm:$0xff]  ;;  %v11390_v40 = vld [vmem:[%s18771_s24 + $0xb8] sm:$0xff]  ;;  %v11359_v63 = vld [vmem:[%s18770_s2 + $0xe0] sm:$0xff] }
 0x928   :  { %v16465_v31 = vsub.f32 %v16371_v12, %v5144_v1  ;;  %v5123_v45 = vpop.xlane.xlu1 %5122  ;;  %5203 = vadd.xlane.f32.xlu0 %v5202_v10  ;;  %v11356_v1 = vld [vmem:[%s18770_s2 + $0xc8] sm:$0xff]  ;;  %v11357_v10 = vld [vmem:[%s18770_s2 + $0xd0] sm:$0xff] }
 0x929   :  { %v5147_v32 = vmul.f32 0.03125, %v5123_v45  ;;  %v5120_v4 = vpop.xlane.xlu0 %5119  ;;  %v5177_v59 = vmul.f32 %v16461_v47, %v16461_v47  ;;  %v11360_v45 = vld [vmem:[%s18770_s2 + $0xe8] sm:$0xff] }
 0x92a   :  { %v5146_v25 = vmul.f32 0.03125, %v5120_v4  ;;  %v5176_v0 = vmul.f32 %v16465_v31, %v16465_v31  ;;  %v11361_v4 = vld [vmem:[%s18770_s2 + $0xf0] sm:$0xff] }
 0x92b   :  { %v16472_v28 = vsub.f32 %v16380_v56, %v5147_v32  ;;  %v5211_v55 = vsel %vm454_vm1, %v5177_v59, 0.0  ;;  %v11358_v32 = vld [vmem:[%s18770_s2 + $0xd8] sm:$0xff] }
 0x92c   :  { %v16476_v61 = vsub.f32 %v16383_v48, %v5146_v25  ;;  %v5129_v12 = vpop.xlane.xlu1 %5128  ;;  %5212 = vadd.xlane.f32.xlu1 %v5211_v55  ;;  %v5208_v50 = vsel %vm454_vm1, %v5176_v0, 0.0  ;;  %v11362_v59 = vld [vmem:[%s18770_s2 + $0xf8] sm:$0xff] }
 0x92d   :  { %v5149_v30 = vmul.f32 0.03125, %v5129_v12  ;;  %5209 = vadd.xlane.f32.xlu0 %v5208_v50  ;;  %v5126_v27 = vpop.xlane.xlu0 %5125  ;;  %v5179_v52 = vmul.f32 %v16472_v28, %v16472_v28 }
 0x92e   :  { %v5148_v42 = vmul.f32 0.03125, %v5126_v27  ;;  %v5178_v56 = vmul.f32 %v16476_v61, %v16476_v61 }
 0x92f   :  { %v16484_v34 = vsub.f32 %v16392_v62, %v5149_v30  ;;  %v5217_v48 = vsel %vm454_vm1, %v5179_v52, 0.0 }
 0x930   :  { %v16488_v22 = vsub.f32 %v16395_v8, %v5148_v42  ;;  %5218 = vadd.xlane.f32.xlu1 %v5217_v48  ;;  %v5135_v46 = vpop.xlane.xlu1 %5134  ;;  %v5214_v11 = vsel %vm454_vm1, %v5178_v56, 0.0 }
 0x931   :  { %v5151_v14 = vmul.f32 0.03125, %v5135_v46  ;;  %5215 = vadd.xlane.f32.xlu0 %v5214_v11  ;;  %v5132_v9 = vpop.xlane.xlu0 %5131  ;;  %v5181_v33 = vmul.f32 %v16484_v34, %v16484_v34 }
 0x932   :  { %v5150_v39 = vmul.f32 0.03125, %v5132_v9  ;;  %v5180_v62 = vmul.f32 %v16488_v22, %v16488_v22 }
 0x933   :  { %v16496_v15 = vsub.f32 %v16404_v41, %v5151_v14  ;;  %v5223_v8 = vsel %vm454_vm1, %v5181_v33, 0.0 }
 0x934   :  { %v16500_v7 = vsub.f32 %v16407_v23, %v5150_v39  ;;  %5224 = vadd.xlane.f32.xlu1 %v5223_v8  ;;  %v5220_v26 = vsel %vm454_vm1, %v5180_v62, 0.0  ;;  %v11347_v23 = vld [vmem:[%s18770_s2 + $0x80] sm:$0xff] }
 0x935   :  { %5221 = vadd.xlane.f32.xlu0 %v5220_v26  ;;  %v5183_v35 = vmul.f32 %v16496_v15, %v16496_v15  ;;  %v16584_v26 = vld [vmem:[%s18717_s15] ss:$0 sm:$0xff] }
 0x936   :  { %v5182_v2 = vmul.f32 %v16500_v7, %v16500_v7 }
 0x937   :  { %v5229_v19 = vsel %vm454_vm1, %v5183_v35, 0.0 }
 0x938   :  { %5230 = vadd.xlane.f32.xlu1 %v5229_v19  ;;  %v5226_v41 = vsel %vm454_vm1, %v5182_v2, 0.0  ;;  %v16590_v19 = vld [vmem:[%s18718_s16] ss:$0 sm:$0xff] }
 0x939   :  { %5227 = vadd.xlane.f32.xlu0 %v5226_v41 }
 0x966   :  { %5357 = vxpose.xlu0.b32.start [1/4] (short) (narrow) %v11347_v23, 8 }
 0x96a   :  { %5358 = vxpose.xlu0.b32.cont [2/4] (short) (narrow) %v11348_v44, 8  ;;  %v11391_v44 = vld [vmem:[%s18771_s24 + $0xc0] sm:$0xff] }
 0x96b   :  { %5389 = vxpose.xlu1.b32.start [1/4] (short) (narrow) %v11351_v36, 8  ;;  %v11395_v36 = vld [vmem:[%s18771_s24 + $0xe0] sm:$0xff] }
 0x96e   :  { %5359 = vxpose.xlu0.b32.cont [3/4] (short) (narrow) %v11349_v21, 8 }
 0x96f   :  { %5390 = vxpose.xlu1.b32.cont [2/4] (short) (narrow) %v11352_v20, 8 }
 0x972   :  { %5360 = vxpose.xlu0.b32.end [4/4] (short) (narrow) %v11350_v17, 8 }
 0x973   :  { %5391 = vxpose.xlu1.b32.cont [3/4] (short) (narrow) %v11353_v3, 8  ;;  %v11392_v3 = vld [vmem:[%s18771_s24 + $0xc8] sm:$0xff] }
 0x976   :  { %5647 = vxpose.xlu0.b32.start [1/4] (short) (narrow) %v11383_v5, 8  ;;  %v11396_v5 = vld [vmem:[%s18771_s24 + $0xe8] sm:$0xff] }
 0x977   :  { %5392 = vxpose.xlu1.b32.end [4/4] (short) (narrow) %v11354_v13, 8 }
 0x97a   :  { %5648 = vxpose.xlu0.b32.cont [2/4] (short) (narrow) %v11384_v18, 8 }
 0x97b   :  { %5679 = vxpose.xlu1.b32.start [1/4] (short) (narrow) %v11387_v37, 8 }
 0x97e   :  { %5649 = vxpose.xlu0.b32.cont [3/4] (short) (narrow) %v11385_v54, 8 }
 0x97f   :  { %5680 = vxpose.xlu1.b32.cont [2/4] (short) (narrow) %v11388_v58, 8 }
 0x982   :  { %5650 = vxpose.xlu0.b32.end [4/4] (short) (narrow) %v11386_v60, 8 }
 0x983   :  { %5681 = vxpose.xlu1.b32.cont [3/4] (short) (narrow) %v11389_v53, 8 }
 0x986   :  { %5421 = vxpose.xlu0.b32.start [1/4] (short) (narrow) %v11355_v49, 8 }
 0x987   :  { %5682 = vxpose.xlu1.b32.end [4/4] (short) (narrow) %v11390_v40, 8 }
 0x98a   :  { %5422 = vxpose.xlu0.b32.cont [2/4] (short) (narrow) %v11356_v1, 8 }
 0x98b   :  { %5453 = vxpose.xlu1.b32.start [1/4] (short) (narrow) %v11359_v63, 8 }
 0x98e   :  { %5423 = vxpose.xlu0.b32.cont [3/4] (short) (narrow) %v11357_v10, 8 }
 0x98f   :  { %5454 = vxpose.xlu1.b32.cont [2/4] (short) (narrow) %v11360_v45, 8  ;;  %v11393_v45 = vld [vmem:[%s18771_s24 + $0xd0] sm:$0xff] }
 0x992   :  { %5424 = vxpose.xlu0.b32.end [4/4] (short) (narrow) %v11358_v32, 8  ;;  %v11397_v32 = vld [vmem:[%s18771_s24 + $0xf0] sm:$0xff] }
 0x993   :  { %5455 = vxpose.xlu1.b32.cont [3/4] (short) (narrow) %v11361_v4, 8 }
 0x996   :  { %5711 = vxpose.xlu0.b32.start [1/4] (short) (narrow) %v11391_v44, 8 }
 0x997   :  { %5456 = vxpose.xlu1.b32.end [4/4] (short) (narrow) %v11362_v59, 8 }
 0x99a   :  { %5712 = vxpose.xlu0.b32.cont [2/4] (short) (narrow) %v11392_v3, 8 }
 0x99b   :  { %5743 = vxpose.xlu1.b32.start [1/4] (short) (narrow) %v11395_v36, 8 }
 0x99e   :  { %5713 = vxpose.xlu0.b32.cont [3/4] (short) (narrow) %v11393_v45, 8 }
 0x99f   :  { %v5189_v25 = vpop.xlane.xlu1 %5188  ;;  %5744 = vxpose.xlu1.b32.cont [2/4] (short) (narrow) %v11396_v5, 8 }
 0x9a0   :  { %v5233_v0 = vmul.f32 0.03125, %v5189_v25  ;;  %v5186_v55 = vpop.xlane.xlu0 %5185 }
 0x9a1   :  { %v5232_v12 = vmul.f32 0.03125, %v5186_v55 }
 0x9a2   :  { %v5249_v50 = vadd.f32 1e-05, %v5233_v0  ;;  %v11421_v0 = vld [vmem:[%s18776_s4 + $0x90] sm:$0xff] }
 0x9a3   :  { %v5248_v30 = vadd.f32 1e-05, %v5232_v12  ;;  %v5195_v27 = vpop.xlane.xlu1 %5194  ;;  %5745 = vxpose.xlu1.b32.cont [3/4] (short) (narrow) %v11397_v32, 8 }
 0x9a4   :  { %14205 = vrsqrt.f32 %v5249_v50  ;;  %v5235_v52 = vmul.f32 0.03125, %v5195_v27  ;;  %v5192_v42 = vpop.xlane.xlu0 %5191 }
 0x9a5   :  { %14207 = vrsqrt.f32 %v5248_v30  ;;  %v5234_v56 = vmul.f32 0.03125, %v5192_v42  ;;  %v11398_v42 = vld [vmem:[%s18771_s24 + $0xf8] sm:$0xff] }
 0x9a6   :  { %v5251_v48 = vadd.f32 1e-05, %v5235_v52  ;;  %v11394_v52 = vld [vmem:[%s18771_s24 + $0xd8] sm:$0xff] }
 0x9a7   :  { %v5250_v46 = vadd.f32 1e-05, %v5234_v56  ;;  %v5201_v11 = vpop.xlane.xlu1 %5200  ;;  %5714 = vxpose.xlu0.b32.end [4/4] (short) (narrow) %v11394_v52, 8  ;;  %5746 = vxpose.xlu1.b32.end [4/4] (short) (narrow) %v11398_v42, 8 }
 0x9a8   :  { %14209 = vrsqrt.f32 %v5251_v48  ;;  %v5237_v14 = vmul.f32 0.03125, %v5201_v11  ;;  %v5198_v9 = vpop.xlane.xlu0 %5197 }
 0x9a9   :  { %14211 = vrsqrt.f32 %v5250_v46  ;;  %v5236_v33 = vmul.f32 0.03125, %v5198_v9 }
 0x9aa   :  { %v5253_v39 = vadd.f32 1e-05, %v5237_v14 }
 0x9ab   :  { %v5252_v62 = vadd.f32 1e-05, %v5236_v33 }
 0x9ac   :  { %14213 = vrsqrt.f32 %v5253_v39 }
 0x9ad   :  { %14215 = vrsqrt.f32 %v5252_v62 }
 0x9ae   :  { %v14206_v8 = vpop.eup %14205 }
 0x9af   :  { %v14208_v35 = vpop.eup %14207  ;;  %v5281_v2 = vmul.f32 %v14206_v8, %v16414_v38 }
 0x9b0   :  { %v5280_v41 = vmul.f32 %v14208_v35, %v16417_v24 }
 0x9b1   :  { %v5303_v23 = vmul.f32 %v16584_v26, %v5281_v2 }
 0x9b2   :  { %v14210_v21 = vpop.eup %14209  ;;  %v5302_v38 = vmul.f32 %v16584_v26, %v5280_v41 }
 0x9b3   :  { %v14212_v20 = vpop.eup %14211  ;;  %v16602_v17 = vadd.f32 %v16590_v19, %v5303_v23  ;;  %v5283_v24 = vmul.f32 %v14210_v21, %v16424_v29 }
 0x9b4   :  { %v16612_v13 = vadd.f32 %v16590_v19, %v5302_v38  ;;  %v5282_v18 = vmul.f32 %v14212_v20, %v16428_v51  ;;  %v5207_v37 = vpop.xlane.xlu1 %5206 }
 0x9b5   :  { %18787 = vst [vmem:[#allocation3_spill] sm:$0xff] %v16602_v17  ;;  %v5305_v54 = vmul.f32 %v16584_v26, %v5283_v24  ;;  %v5239_v58 = vmul.f32 0.03125, %v5207_v37  ;;  %v5204_v60 = vpop.xlane.xlu0 %5203 }
 0x9b6   :  { %18788 = vst [vmem:[#allocation4_spill] sm:$0xff] %v16612_v13  ;;  %v14214_v53 = vpop.eup %14213  ;;  %v5304_v29 = vmul.f32 %v16584_v26, %v5282_v18  ;;  %v5238_v49 = vmul.f32 0.03125, %v5204_v60  ;;  %v16619_v40 = vpack.c.bf16 %v16602_v17, %v16612_v13 }
 0x9b7   :  { %v14216_v1 = vpop.eup %14215  ;;  %v16622_v63 = vadd.f32 %v16590_v19, %v5305_v54  ;;  %v5285_v51 = vmul.f32 %v14214_v53, %v16436_v16  ;;  %v5255_v10 = vadd.f32 1e-05, %v5239_v58 }
 0x9b8   :  { %v16632_v4 = vadd.f32 %v16590_v19, %v5304_v29  ;;  %v5284_v59 = vmul.f32 %v14216_v1, %v16440_v43  ;;  %v5254_v25 = vadd.f32 1e-05, %v5238_v49  ;;  %13736 = vmatprep.subr.msk.bf16.mxu1 %vm14865_vm2, %v16619_v40  ;;  %13784 = vmatprep.subr.msk.bf16.mxu0 %vm14865_vm2, %v16619_v40 }
 0x9b9   :  { %18789 = vst [vmem:[#allocation5_spill] sm:$0xff] %v16622_v63  ;;  %v5307_v16 = vmul.f32 %v16584_v26, %v5285_v51  ;;  %14217 = vrsqrt.f32 %v5255_v10  ;;  %v5213_v55 = vpop.xlane.xlu1 %5212  ;;  %13739 = vmatpush3.bf16.xpose.msk.msra.mxu1 %vm14865_vm2, %v16619_v40  ;;  %13787 = vmatpush3.bf16.xpose.msk.msra.mxu0 %vm14865_vm2, %v16619_v40 }
 0x9ba   :  { %18790 = vst [vmem:[#allocation6_spill] sm:$0xff] %v16632_v4  ;;  %v5306_v43 = vmul.f32 %v16584_v26, %v5284_v59  ;;  %14219 = vrsqrt.f32 %v5254_v25  ;;  %v5241_v12 = vmul.f32 0.03125, %v5213_v55  ;;  %v5210_v50 = vpop.xlane.xlu0 %5209  ;;  %v16651_v30 = vpack.c.bf16 %v16622_v63, %v16632_v4 }
 0x9bb   :  { %v5240_v27 = vmul.f32 0.03125, %v5210_v50  ;;  %v16660_v56 = vadd.f32 %v16590_v19, %v5307_v16 }
 0x9bc   :  { %v16663_v48 = vadd.f32 %v16590_v19, %v5306_v43  ;;  %v5257_v46 = vadd.f32 1e-05, %v5241_v12  ;;  %13742 = vmatprep.subr.msk.bf16.mxu1 %vm14865_vm2, %v16651_v30  ;;  %13790 = vmatprep.subr.msk.bf16.mxu0 %vm14865_vm2, %v16651_v30 }
 0x9bd   :  { %18792 = vst [vmem:[#allocation2_spill] sm:$0xff] %v16660_v56  ;;  %v5256_v11 = vadd.f32 1e-05, %v5240_v27  ;;  %v5219_v14 = vpop.xlane.xlu1 %5218 }
 0x9be   :  { %18793 = vst [vmem:[#allocation7_spill] sm:$0xff] %v16663_v48  ;;  %14221 = vrsqrt.f32 %v5257_v46  ;;  %v5243_v9 = vmul.f32 0.03125, %v5219_v14  ;;  %v5216_v33 = vpop.xlane.xlu0 %5215  ;;  %v16673_v8 = vpack.c.bf16 %v16660_v56, %v16663_v48 }
 0x9bf   :  { %14223 = vrsqrt.f32 %v5256_v11  ;;  %v5242_v39 = vmul.f32 0.03125, %v5216_v33 }
 0x9c0   :  { %v5259_v62 = vadd.f32 1e-05, %v5243_v9 }
 0x9c1   :  { %v5258_v35 = vadd.f32 1e-05, %v5242_v39  ;;  %v5225_v2 = vpop.xlane.xlu1 %5224  ;;  %13745 = vmatpush3.bf16.xpose.msk.msra.mxu1 %vm14865_vm2, %v16651_v30  ;;  %13793 = vmatpush3.bf16.xpose.msk.msra.mxu0 %vm14865_vm2, %v16651_v30 }
 0x9c2   :  { %14225 = vrsqrt.f32 %v5259_v62  ;;  %v5245_v41 = vmul.f32 0.03125, %v5225_v2  ;;  %v5222_v23 = vpop.xlane.xlu0 %5221  ;;  %13748 = vmatprep.subr.msk.bf16.mxu1 %vm14865_vm2, %v16673_v8  ;;  %13796 = vmatprep.subr.msk.bf16.mxu0 %vm14865_vm2, %v16673_v8 }
 0x9c3   :  { %v14218_v44 = vpop.eup %14217  ;;  %14227 = vrsqrt.f32 %v5258_v35  ;;  %v5244_v36 = vmul.f32 0.03125, %v5222_v23 }
 0x9c4   :  { %v14220_v21 = vpop.eup %14219  ;;  %v5287_v38 = vmul.f32 %v14218_v44, %v16450_v6  ;;  %v5261_v20 = vadd.f32 1e-05, %v5245_v41 }
 0x9c5   :  { %v5286_v24 = vmul.f32 %v14220_v21, %v16453_v57  ;;  %v5260_v3 = vadd.f32 1e-05, %v5244_v36  ;;  %v5231_v5 = vpop.xlane.xlu1 %5230 }
 0x9c6   :  { %v5309_v18 = vmul.f32 %v16584_v26, %v5287_v38  ;;  %14229 = vrsqrt.f32 %v5261_v20  ;;  %v5247_v37 = vmul.f32 0.03125, %v5231_v5  ;;  %v5228_v54 = vpop.xlane.xlu0 %5227  ;;  %v11422_v5 = vld [vmem:[%s18776_s4 + $0x98] sm:$0xff] }
 0x9c7   :  { %v5308_v58 = vmul.f32 %v16584_v26, %v5286_v24  ;;  %14231 = vrsqrt.f32 %v5260_v3  ;;  %v5246_v60 = vmul.f32 0.03125, %v5228_v54  ;;  %v11420_v3 = vld [vmem:[%s18776_s4 + $0x88] sm:$0xff]  ;;  %v11425_v54 = vld [vmem:[%s18776_s4 + $0xb0] sm:$0xff] }
 0x9c8   :  { %v14222_v53 = vpop.eup %14221  ;;  %v16692_v29 = vadd.f32 %v16590_v19, %v5309_v18  ;;  %v5263_v51 = vadd.f32 1e-05, %v5247_v37  ;;  %v11423_v18 = vld [vmem:[%s18776_s4 + $0xa0] sm:$0xff]  ;;  %v11424_v37 = vld [vmem:[%s18776_s4 + $0xa8] sm:$0xff] }
 0x9c9   :  { %v14224_v49 = vpop.eup %14223  ;;  %v16695_v6 = vadd.f32 %v16590_v19, %v5308_v58  ;;  %v5289_v57 = vmul.f32 %v14222_v53, %v16461_v47  ;;  %13751 = vmatpush3.bf16.xpose.msk.msra.mxu1 %vm14865_vm2, %v16673_v8  ;;  %13799 = vmatpush3.bf16.xpose.msk.msra.mxu0 %vm14865_vm2, %v16673_v8  ;;  %v5262_v45 = vadd.f32 1e-05, %v5246_v60  ;;  %v11426_v58 = vld [vmem:[%s18776_s4 + $0xb8] sm:$0xff]  ;;  %v11427_v60 = vld [vmem:[%s18776_s4 + $0xc0] sm:$0xff]  ;;  %v11428_v53 = vld [vmem:[%s18776_s4 + $0xc8] sm:$0xff] }
 0x9ca   :  { %18794 = vst [vmem:[#allocation8_spill] sm:$0xff] %v16692_v29  ;;  %v5288_v1 = vmul.f32 %v14224_v49, %v16465_v31  ;;  %14233 = vrsqrt.f32 %v5263_v51  ;;  %v11429_v49 = vld [vmem:[%s18776_s4 + $0xd0] sm:$0xff]  ;;  %v11432_v51 = vld [vmem:[%s18776_s4 + $0xe8] sm:$0xff] }
 0x9cb   :  { %18795 = vst [vmem:[#allocation9_spill] sm:$0xff] %v16695_v6  ;;  %v5311_v10 = vmul.f32 %v16584_v26, %v5289_v57  ;;  %v16708_v32 = vpack.c.bf16 %v16692_v29, %v16695_v6  ;;  %14235 = vrsqrt.f32 %v5262_v45  ;;  %v11430_v57 = vld [vmem:[%s18776_s4 + $0xd8] sm:$0xff] }
 0x9cc   :  { %v14226_v59 = vpop.eup %14225  ;;  %v5310_v47 = vmul.f32 %v16584_v26, %v5288_v1  ;;  %v11431_v1 = vld [vmem:[%s18776_s4 + $0xe0] sm:$0xff]  ;;  %v11434_v45 = vld [vmem:[%s18776_s4 + $0xf8] sm:$0xff] }
 0x9cd   :  { %v14228_v25 = vpop.eup %14227  ;;  %v16712_v16 = vadd.f32 %v16590_v19, %v5311_v10  ;;  %v5291_v55 = vmul.f32 %v14226_v59, %v16472_v28  ;;  %13754 = vmatprep.subr.msk.bf16.mxu1 %vm14865_vm2, %v16708_v32  ;;  %13802 = vmatprep.subr.msk.bf16.mxu0 %vm14865_vm2, %v16708_v32  ;;  %v11433_v10 = vld [vmem:[%s18776_s4 + $0xf0] sm:$0xff] }
 0x9ce   :  { %v16722_v31 = vadd.f32 %v16590_v19, %v5310_v47  ;;  %v5290_v43 = vmul.f32 %v14228_v25, %v16476_v61 }
 0x9cf   :  { %18796 = vst [vmem:[#allocation10_spill] sm:$0xff] %v16712_v16  ;;  %v5313_v50 = vmul.f32 %v16584_v26, %v5291_v55 }
 0x9d0   :  { %18797 = vst [vmem:[#allocation11_spill] sm:$0xff] %v16722_v31  ;;  %v14230_v12 = vpop.eup %14229  ;;  %v5312_v28 = vmul.f32 %v16584_v26, %v5290_v43  ;;  %v13758_v27 = vpack.c.bf16 %v16712_v16, %v16722_v31 }
 0x9d1   :  { %v14232_v52 = vpop.eup %14231  ;;  %13757 = vmatpush3.bf16.xpose.msk.msra.mxu1 %vm14865_vm2, %v16708_v32  ;;  %13805 = vmatpush3.bf16.xpose.msk.msra.mxu0 %vm14865_vm2, %v16708_v32  ;;  %v16740_v61 = vadd.f32 %v16590_v19, %v5313_v50  ;;  %v5293_v46 = vmul.f32 %v14230_v12, %v16484_v34 }
 0x9d2   :  { %13760 = vmatprep.subr.msk.bf16.mxu1 %vm14865_vm2, %v13758_v27  ;;  %13808 = vmatprep.subr.msk.bf16.mxu0 %vm14865_vm2, %v13758_v27  ;;  %v16743_v42 = vadd.f32 %v16590_v19, %v5312_v28  ;;  %v5292_v11 = vmul.f32 %v14232_v52, %v16488_v22 }
 0x9d3   :  { %18798 = vst [vmem:[#allocation12_spill] sm:$0xff] %v16740_v61  ;;  %v5315_v9 = vmul.f32 %v16584_v26, %v5293_v46 }
 0x9d4   :  { %18799 = vst [vmem:[#allocation13_spill] sm:$0xff] %v16743_v42  ;;  %v14234_v14 = vpop.eup %14233  ;;  %v5314_v33 = vmul.f32 %v16584_v26, %v5292_v11  ;;  %v13764_v39 = vpack.c.bf16 %v16740_v61, %v16743_v42 }
 0x9d5   :  { %v14236_v62 = vpop.eup %14235  ;;  %v16760_v34 = vadd.f32 %v16590_v19, %v5315_v9  ;;  %v5295_v35 = vmul.f32 %v14234_v14, %v16496_v15 }
 0x9d6   :  { %v16763_v22 = vadd.f32 %v16590_v19, %v5314_v33  ;;  %v5294_v2 = vmul.f32 %v14236_v62, %v16500_v7 }
 0x9d7   :  { %18800 = vst [vmem:[#allocation14_spill] sm:$0xff] %v16760_v34  ;;  %v5317_v41 = vmul.f32 %v16584_v26, %v5295_v35 }
 0x9d8   :  { %18801 = vst [vmem:[#allocation15_spill] sm:$0xff] %v16763_v22  ;;  %v5316_v23 = vmul.f32 %v16584_v26, %v5294_v2  ;;  %v13770_v44 = vpack.c.bf16 %v16760_v34, %v16763_v22 }
 0x9d9   :  { %13763 = vmatpush3.bf16.xpose.msk.msra.mxu1 %vm14865_vm2, %v13758_v27  ;;  %13811 = vmatpush3.bf16.xpose.msk.msra.mxu0 %vm14865_vm2, %v13758_v27  ;;  %v16780_v15 = vadd.f32 %v16590_v19, %v5317_v41 }
 0x9da   :  { %13766 = vmatprep.subr.msk.bf16.mxu1 %vm14865_vm2, %v13764_v39  ;;  %13814 = vmatprep.subr.msk.bf16.mxu0 %vm14865_vm2, %v13764_v39  ;;  %v16783_v7 = vadd.f32 %v16590_v19, %v5316_v23 }
 0x9db   :  { %18802 = vst [vmem:[#allocation16_spill] sm:$0xff] %v16780_v15 }
 0x9dc   :  { %18803 = vst [vmem:[#allocation17_spill] sm:$0xff] %v16783_v7  ;;  %v13776_v36 = vpack.c.bf16 %v16780_v15, %v16783_v7 }
 0x9e1   :  { %13769 = vmatpush3.bf16.xpose.msk.msra.mxu1 %vm14865_vm2, %v13764_v39  ;;  %13817 = vmatpush3.bf16.xpose.msk.msra.mxu0 %vm14865_vm2, %v13764_v39 }
 0x9e2   :  { %13772 = vmatprep.subr.msk.bf16.mxu1 %vm14865_vm2, %v13770_v44  ;;  %13820 = vmatprep.subr.msk.bf16.mxu0 %vm14865_vm2, %v13770_v44 }
 0x9e6   :  { %v5373_v26 = vpop.trf.xlu0 }
 0x9e7   :  { %13010 = vmatprep.mubr.msk.f32.mxu1 %vm454_vm1, %v5373_v26 }
 0x9e9   :  { %13775 = vmatpush3.bf16.xpose.msk.msra.mxu1 %vm14865_vm2, %v13770_v44  ;;  %13823 = vmatpush3.bf16.xpose.msk.msra.mxu0 %vm14865_vm2, %v13770_v44 }
 0x9ea   :  { %13778 = vmatprep.subr.msk.bf16.mxu1 %vm14865_vm2, %v13776_v36  ;;  %13826 = vmatprep.subr.msk.bf16.mxu0 %vm14865_vm2, %v13776_v36 }
 0x9eb   :  { %v5405_v19 = vpop.trf.xlu1 }
 0x9f1   :  { %13781 = vmatpush3.bf16.xpose.msk.msra.mxu1 %vm14865_vm2, %v13776_v36  ;;  %13829 = vmatpush3.bf16.xpose.msk.msra.mxu0 %vm14865_vm2, %v13776_v36 }
 0x9f2   :  { %13832 = vmatprep.subr.msk.bf16.mxu1 %vm14865_vm2, %v16619_v40 }
 0x9f6   :  { %v5663_v21 = vpop.trf.xlu0 }
 0x9f7   :  { %13048 = vmatprep.mubr.msk.f32.mxu0 %vm454_vm1, %v5663_v21 }
 0x9f8   :  { %13011 = vmatmul.mubr.msk.f32.vlgmr.msra.gmra.mrb[98].mxu1 %vm454_vm1, %v5405_v19 }
 0x9f9   :  { %13835 = vmatpush3.bf16.xpose.msk.msra.mxu1 %vm14865_vm2, %v16619_v40 }
 0x9fa   :  { %13838 = vmatprep.subr.msk.bf16.mxu1 %vm14865_vm2, %v16651_v30 }
 0x9fb   :  { %v5695_v38 = vpop.trf.xlu1 }
 0x9fc   :  { %13049 = vmatmul.mubr.msk.f32.vlgmr.msra.gmra.mrb[154].mxu0 %vm454_vm1, %v5695_v38 }
 0xa01   :  { %13841 = vmatpush3.bf16.xpose.msk.msra.mxu1 %vm14865_vm2, %v16651_v30  ;;  %v11419_v30 = vld [vmem:[%s18776_s4 + $0x80] sm:$0xff] }
 0xa02   :  { %13844 = vmatprep.subr.msk.bf16.mxu1 %vm14865_vm2, %v16673_v8  ;;  %5889 = vxpose.xlu1.b32.start [1/4] (short) (narrow) %v11419_v30, 8 }
 0xa06   :  { %v5437_v20 = vpop.trf.xlu0  ;;  %5890 = vxpose.xlu1.b32.cont [2/4] (short) (narrow) %v11420_v3, 8 }
 0xa07   :  { %13013 = vmatprep.mubr.msk.f32.mxu1 %vm454_vm1, %v5437_v20 }
 0xa09   :  { %13847 = vmatpush3.bf16.xpose.msk.msra.mxu1 %vm14865_vm2, %v16673_v8 }
 0xa0a   :  { %13850 = vmatprep.subr.msk.bf16.mxu1 %vm14865_vm2, %v16708_v32  ;;  %5891 = vxpose.xlu1.b32.cont [3/4] (short) (narrow) %v11421_v0, 8 }
 0xa0b   :  { %v5469_v40 = vpop.trf.xlu1 }
 0xa0c   :  { %13014 = vmatmul.mubr.msk.f32.gmra.mrb[100].mxu1 %vm454_vm1, %v5469_v40 }
 0xa0e   :  { %5892 = vxpose.xlu1.b32.end [4/4] (short) (narrow) %v11422_v5, 8 }
 0xa11   :  { %13853 = vmatpush3.bf16.xpose.msk.msra.mxu1 %vm14865_vm2, %v16708_v32 }
 0xa12   :  { %13856 = vmatprep.subr.msk.bf16.mxu1 %vm14865_vm2, %v13758_v27  ;;  %5921 = vxpose.xlu1.b32.start [1/4] (short) (narrow) %v11423_v18, 8 }
 0xa16   :  { %5922 = vxpose.xlu1.b32.cont [2/4] (short) (narrow) %v11424_v37, 8 }
 0xa19   :  { %13859 = vmatpush3.bf16.xpose.msk.msra.mxu1 %vm14865_vm2, %v13758_v27 }
 0xa1a   :  { %13862 = vmatprep.subr.msk.bf16.mxu1 %vm14865_vm2, %v13764_v39  ;;  %5923 = vxpose.xlu1.b32.cont [3/4] (short) (narrow) %v11425_v54, 8 }
 0xa1b   :  { %v5727_v8 = vpop.trf.xlu0  ;;  %v5759_v24 = vpop.trf.xlu1 }
 0xa1c   :  { %13051 = vmatprep.mubr.msk.f32.mxu0 %vm454_vm1, %v5727_v8 }
 0xa1d   :  { %13052 = vmatmul.mubr.msk.f32.gmra.mrb[156].mxu0 %vm454_vm1, %v5759_v24 }
 0xa1e   :  { %5924 = vxpose.xlu1.b32.end [4/4] (short) (narrow) %v11426_v58, 8 }
 0xa21   :  { %13865 = vmatpush3.bf16.xpose.msk.msra.mxu1 %vm14865_vm2, %v13764_v39 }
 0xa22   :  { %13868 = vmatprep.subr.msk.bf16.mxu1 %vm14865_vm2, %v13770_v44  ;;  %5953 = vxpose.xlu1.b32.start [1/4] (short) (narrow) %v11427_v60, 8 }
 0xa26   :  { %5954 = vxpose.xlu1.b32.cont [2/4] (short) (narrow) %v11428_v53, 8 }
 0xa29   :  { %13871 = vmatpush3.bf16.xpose.msk.msra.mxu1 %vm14865_vm2, %v13770_v44 }
 0xa2a   :  { %13874 = vmatprep.subr.msk.bf16.mxu1 %vm14865_vm2, %v13776_v36  ;;  %5955 = vxpose.xlu1.b32.cont [3/4] (short) (narrow) %v11429_v49, 8 }
 0xa2e   :  { %5956 = vxpose.xlu1.b32.end [4/4] (short) (narrow) %v11430_v57, 8 }
 0xa31   :  { %13877 = vmatpush3.bf16.xpose.msk.msra.mxu1 %vm14865_vm2, %v13776_v36 }
 0xa32   :  { %5985 = vxpose.xlu1.b32.start [1/4] (short) (narrow) %v11431_v1, 8 }
 0xa36   :  { %5986 = vxpose.xlu1.b32.cont [2/4] (short) (narrow) %v11432_v51, 8 }
 0xa3a   :  { %5987 = vxpose.xlu1.b32.cont [3/4] (short) (narrow) %v11433_v10, 8 }
 0xa3e   :  { %5988 = vxpose.xlu1.b32.end [4/4] (short) (narrow) %v11434_v45, 8 }
 0xa82   :  { %v5905_v55 = vpop.trf.xlu1 }
 0xa83   :  { %13086 = vmatprep.mubr.msk.f32.mxu1 %vm454_vm1, %v5905_v55 }
 0xa92   :  { %v5937_v43 = vpop.trf.xlu1 }
 0xa93   :  { %13087 = vmatmul.mubr.msk.f32.vlgmr.msra.gmra.mrb[102].mxu1 %vm454_vm1, %v5937_v43 }
 0xaa2   :  { %v5969_v28 = vpop.trf.xlu1 }
 0xaa3   :  { %13089 = vmatprep.mubr.msk.f32.mxu1 %vm454_vm1, %v5969_v28 }
 0xab2   :  { %v6001_v27 = vpop.trf.xlu1 }
 0xab3   :  { %13090 = vmatmul.mubr.msk.f32.gmra.mrb[104].mxu1 %vm454_vm1, %v6001_v27 }
 0xacb   :  { %v13012_v32 = vpop.f32.mrb[98].mxu1 }
 0xacc   :  { %v5611_v59 = vpop.f32.mrb[99].mxu1 }
 0xacd   :  { %6114 = vxpose.xlu0.b32.start.end [1/1] (short) %v5611_v59, 128 }
 0xacf   :  { %v13050_v47 = vpop.f32.mrb[154].mxu0 }
 0xad0   :  { %v5853_v25 = vpop.f32.mrb[155].mxu0 }
 0xad1   :  { %13092 = vmatprep.subr.mxu0 %v5853_v25 }
 0xad2   :  { %13093 = vmatpush3.msra.mxu0 %v5853_v25 }
 0xad3   :  { %13118 = vmatprep.subr.mxu0 %v13050_v47 }
 0xadf   :  { %v13015_v12 = vpop.f32.mrb[100].mxu1 }
 0xae0   :  { %v5621_v50 = vpop.f32.mrb[101].mxu1  ;;  %6789 = vxpose.xlu1.b32.start.end [1/1] (short) %v13015_v12, 128 }
 0xaf0   :  { %v13053_v46 = vpop.f32.mrb[156].mxu0 }
 0xaf1   :  { %v5863_v11 = vpop.f32.mrb[157].mxu0 }
 0xaf2   :  { %13144 = vmatprep.subr.mxu1 %v5863_v11 }
 0xaf3   :  { %13145 = vmatpush3.msra.mxu1 %v5863_v11 }
 0xb0a   :  { %6339 = vxpose.xlu0.b32.start.end [1/1] (short) %v13012_v32, 128 }
 0xb47   :  { %6564 = vxpose.xlu0.b32.start.end [1/1] (short) %v5621_v50, 128 }
 0xb4d   :  { %v6130_v52 = vpop.trf.xlu0 }
 0xb4e   :  { %13094 = vmatprep.mubr.msk.f32.mxu0 %vm1114_vm3, %v6130_v52 }
 0xb51   :  { %v6131_v14 = vpop.trf.xlu0 }
 0xb52   :  { %13095 = vmatmul.mubr.msk.f32.vlgmr.msra.gmra.mrb[158].mxu0 %vm1114_vm3, %v6131_v14 }
 0xb53   :  { %13119 = vmatpush3.msra.mxu0 %v13050_v47 }
 0xb54   :  { %13170 = vmatprep.subr.mxu0 %v13053_v46 }
 0xb55   :  { %v6132_v9 = vpop.trf.xlu0 }
 0xb56   :  { %13097 = vmatprep.mubr.msk.f32.mxu0 %vm1114_vm3, %v6132_v9 }
 0xb59   :  { %v6133_v33 = vpop.trf.xlu0 }
 0xb5a   :  { %13098 = vmatmul.mubr.msk.f32.gmra.mrb[160].mxu0 %vm1114_vm3, %v6133_v33 }
 0xb5d   :  { %v6134_v39 = vpop.trf.xlu0 }
 0xb5e   :  { %13100 = vmatprep.mubr.msk.f32.mxu0 %vm1114_vm3, %v6134_v39 }
 0xb60   :  { %v6805_v40 = vpop.trf.xlu1 }
 0xb61   :  { %v6135_v62 = vpop.trf.xlu0 }
 0xb62   :  { %13101 = vmatmul.mubr.msk.f32.gmra.mrb[162].mxu0 %vm1114_vm3, %v6135_v62 }
 0xb64   :  { %v6806_v8 = vpop.trf.xlu1 }
 0xb65   :  { %v6136_v35 = vpop.trf.xlu0 }
 0xb66   :  { %13103 = vmatprep.mubr.msk.f32.mxu0 %vm1114_vm3, %v6136_v35  ;;  %v13088_v51 = vpop.f32.mrb[102].mxu1 }
 0xb67   :  { %v6095_v10 = vpop.f32.mrb[103].mxu1 }
 0xb68   :  { %v6807_v0 = vpop.trf.xlu1  ;;  %13196 = vmatprep.subr.mxu1 %v6095_v10 }
 0xb69   :  { %v6137_v2 = vpop.trf.xlu0 }
 0xb6a   :  { %13104 = vmatmul.mubr.msk.f32.gmra.mrb[164].mxu0 %vm1114_vm3, %v6137_v2 }
 0xb6c   :  { %v6808_v18 = vpop.trf.xlu1 }
 0xb6d   :  { %v6138_v41 = vpop.trf.xlu0 }
 0xb6e   :  { %13106 = vmatprep.mubr.msk.f32.mxu0 %vm1114_vm3, %v6138_v41 }
 0xb70   :  { %v6809_v58 = vpop.trf.xlu1 }
 0xb71   :  { %v6139_v23 = vpop.trf.xlu0 }
 0xb72   :  { %13107 = vmatmul.mubr.msk.f32.gmra.mrb[166].mxu0 %vm1114_vm3, %v6139_v23 }
 0xb74   :  { %v6810_v53 = vpop.trf.xlu1 }
 0xb75   :  { %v6140_v44 = vpop.trf.xlu0 }
 0xb76   :  { %13109 = vmatprep.mubr.msk.f32.mxu0 %vm1114_vm3, %v6140_v44 }
 0xb78   :  { %v6811_v1 = vpop.trf.xlu1 }
 0xb79   :  { %v6141_v26 = vpop.trf.xlu0 }
 0xb7a   :  { %13110 = vmatmul.mubr.msk.f32.gmra.mrb[168].mxu0 %vm1114_vm3, %v6141_v26 }
 0xb7c   :  { %v6812_v32 = vpop.trf.xlu1 }
 0xb7d   :  { %v6142_v36 = vpop.trf.xlu0 }
 0xb7e   :  { %13112 = vmatprep.mubr.msk.f32.mxu0 %vm1114_vm3, %v6142_v36 }
 0xb80   :  { %v6813_v25 = vpop.trf.xlu1 }
 0xb81   :  { %v6143_v19 = vpop.trf.xlu0 }
 0xb82   :  { %13113 = vmatmul.mubr.msk.f32.gmra.mrb[170].mxu0 %vm1114_vm3, %v6143_v19 }
 0xb84   :  { %v6814_v43 = vpop.trf.xlu1 }
 0xb85   :  { %v6144_v21 = vpop.trf.xlu0 }
 0xb86   :  { %13115 = vmatprep.mubr.msk.f32.mxu0 %vm1114_vm3, %v6144_v21 }
 0xb88   :  { %v6815_v28 = vpop.trf.xlu1 }
 0xb89   :  { %v6145_v38 = vpop.trf.xlu0 }
 0xb8a   :  { %13116 = vmatmul.mubr.msk.f32.gmra.mrb[172].mxu0 %vm1114_vm3, %v6145_v38 }
 0xb8c   :  { %v6816_v52 = vpop.trf.xlu1 }
 0xb8d   :  { %v6355_v20 = vpop.trf.xlu0 }
 0xb8e   :  { %13120 = vmatprep.mubr.msk.f32.mxu0 %vm1114_vm3, %v6355_v20 }
 0xb90   :  { %v6817_v14 = vpop.trf.xlu1 }
 0xb91   :  { %v6356_v30 = vpop.trf.xlu0 }
 0xb92   :  { %13121 = vmatmul.mubr.msk.f32.vlgmr.msra.gmra.mrb[174].mxu0 %vm1114_vm3, %v6356_v30  ;;  %v16963_v30 = vpop.f32.mrb[104].mxu1 }
 0xb93   :  { %13171 = vmatpush3.msra.mxu0 %v13053_v46 }
 0xb94   :  { %13222 = vmatprep.subr.mxu0 %v13088_v51  ;;  %v6818_v33 = vpop.trf.xlu1 }
 0xb95   :  { %v6357_v24 = vpop.trf.xlu0 }
 0xb96   :  { %13123 = vmatprep.mubr.msk.f32.mxu0 %vm1114_vm3, %v6357_v24 }
 0xb98   :  { %v6819_v35 = vpop.trf.xlu1 }
 0xb99   :  { %v6358_v3 = vpop.trf.xlu0 }
 0xb9a   :  { %13124 = vmatmul.mubr.msk.f32.gmra.mrb[176].mxu0 %vm1114_vm3, %v6358_v3 }
 0xb9c   :  { %v6820_v41 = vpop.trf.xlu1 }
 0xb9d   :  { %v6359_v5 = vpop.trf.xlu0 }
 0xb9e   :  { %13126 = vmatprep.mubr.msk.f32.mxu0 %vm1114_vm3, %v6359_v5 }
 0xba1   :  { %v6360_v37 = vpop.trf.xlu0 }
 0xba2   :  { %13127 = vmatmul.mubr.msk.f32.gmra.mrb[178].mxu0 %vm1114_vm3, %v6360_v37 }
 0xba5   :  { %v6361_v54 = vpop.trf.xlu0 }
 0xba6   :  { %13129 = vmatprep.mubr.msk.f32.mxu0 %vm1114_vm3, %v6361_v54 }
 0xba9   :  { %v6362_v60 = vpop.trf.xlu0 }
 0xbaa   :  { %13130 = vmatmul.mubr.msk.f32.gmra.mrb[180].mxu0 %vm1114_vm3, %v6362_v60 }
 0xbad   :  { %v6363_v49 = vpop.trf.xlu0 }
 0xbae   :  { %13132 = vmatprep.mubr.msk.f32.mxu0 %vm1114_vm3, %v6363_v49 }
 0xbb1   :  { %v6364_v57 = vpop.trf.xlu0 }
 0xbb2   :  { %13133 = vmatmul.mubr.msk.f32.gmra.mrb[182].mxu0 %vm1114_vm3, %v6364_v57 }
 0xbb5   :  { %v6365_v45 = vpop.trf.xlu0 }
 0xbb6   :  { %13135 = vmatprep.mubr.msk.f32.mxu0 %vm1114_vm3, %v6365_v45 }
 0xbb9   :  { %v6366_v59 = vpop.trf.xlu0 }
 0xbba   :  { %13136 = vmatmul.mubr.msk.f32.gmra.mrb[184].mxu0 %vm1114_vm3, %v6366_v59 }
 0xbbd   :  { %v6367_v47 = vpop.trf.xlu0 }
 0xbbe   :  { %13138 = vmatprep.mubr.msk.f32.mxu0 %vm1114_vm3, %v6367_v47 }
 0xbc1   :  { %v6368_v55 = vpop.trf.xlu0 }
 0xbc2   :  { %13139 = vmatmul.mubr.msk.f32.gmra.mrb[186].mxu0 %vm1114_vm3, %v6368_v55 }
 0xbc5   :  { %v6369_v12 = vpop.trf.xlu0 }
 0xbc6   :  { %13141 = vmatprep.mubr.msk.f32.mxu0 %vm1114_vm3, %v6369_v12 }
 0xbc9   :  { %v6370_v50 = vpop.trf.xlu0 }
 0xbca   :  { %13142 = vmatmul.mubr.msk.f32.gmra.mrb[188].mxu0 %vm1114_vm3, %v6370_v50 }
 0xbcb   :  { %13172 = vmatprep.mubr.msk.f32.mxu0 %vm1114_vm3, %v6805_v40 }
 0xbcd   :  { %v6580_v27 = vpop.trf.xlu0 }
 0xbce   :  { %13146 = vmatprep.mubr.msk.f32.mxu1 %vm1114_vm3, %v6580_v27  ;;  %13173 = vmatmul.mubr.msk.f32.vlgmr.msra.gmra.mrb[190].mxu0 %vm1114_vm3, %v6806_v8  ;;  %v6105_v8 = vpop.f32.mrb[105].mxu1 }
 0xbcf   :  { %13175 = vmatprep.mubr.msk.f32.mxu0 %vm1114_vm3, %v6807_v0  ;;  %13223 = vmatpush3.xpose.msra.mxu0 %v13088_v51 }
 0xbd0   :  { %13274 = vmatprep.subr.mxu0 %v16963_v30 }
 0xbd1   :  { %v6581_v46 = vpop.trf.xlu0 }
 0xbd2   :  { %13147 = vmatmul.mubr.msk.f32.vlgmr.msra.gmra.mrb[106].mxu1 %vm1114_vm3, %v6581_v46  ;;  %13176 = vmatmul.mubr.msk.f32.gmra.mrb[192].mxu0 %vm1114_vm3, %v6808_v18 }
 0xbd3   :  { %13178 = vmatprep.mubr.msk.f32.mxu0 %vm1114_vm3, %v6809_v58  ;;  %13197 = vmatpush3.xpose.msra.mxu1 %v6095_v10 }
 0xbd4   :  { %13248 = vmatprep.subr.mxu1 %v6105_v8 }
 0xbd5   :  { %v6582_v11 = vpop.trf.xlu0 }
 0xbd6   :  { %13149 = vmatprep.mubr.msk.f32.mxu1 %vm1114_vm3, %v6582_v11  ;;  %13179 = vmatmul.mubr.msk.f32.gmra.mrb[194].mxu0 %vm1114_vm3, %v6810_v53 }
 0xbd7   :  { %13181 = vmatprep.mubr.msk.f32.mxu0 %vm1114_vm3, %v6811_v1 }
 0xbd9   :  { %v6583_v9 = vpop.trf.xlu0 }
 0xbda   :  { %13150 = vmatmul.mubr.msk.f32.gmra.mrb[108].mxu1 %vm1114_vm3, %v6583_v9  ;;  %13182 = vmatmul.mubr.msk.f32.gmra.mrb[196].mxu0 %vm1114_vm3, %v6812_v32 }
 0xbdb   :  { %13184 = vmatprep.mubr.msk.f32.mxu0 %vm1114_vm3, %v6813_v25 }
 0xbdd   :  { %v6584_v39 = vpop.trf.xlu0 }
 0xbde   :  { %13152 = vmatprep.mubr.msk.f32.mxu1 %vm1114_vm3, %v6584_v39  ;;  %13185 = vmatmul.mubr.msk.f32.gmra.mrb[198].mxu0 %vm1114_vm3, %v6814_v43  ;;  %v16969_v43 = vld [vmem:[%s18781_s25 + $0x8] sm:$0xff] }
 0xbdf   :  { %13187 = vmatprep.mubr.msk.f32.mxu0 %vm1114_vm3, %v6815_v28  ;;  %v16975_v28 = vld [vmem:[%s18781_s25] sm:$0xff] }
 0xbe1   :  { %v6585_v62 = vpop.trf.xlu0 }
 0xbe2   :  { %13153 = vmatmul.mubr.msk.f32.gmra.mrb[110].mxu1 %vm1114_vm3, %v6585_v62  ;;  %13188 = vmatmul.mubr.msk.f32.gmra.mrb[200].mxu0 %vm1114_vm3, %v6816_v52 }
 0xbe3   :  { %13190 = vmatprep.mubr.msk.f32.mxu0 %vm1114_vm3, %v6817_v14 }
 0xbe5   :  { %v6586_v2 = vpop.trf.xlu0 }
 0xbe6   :  { %13155 = vmatprep.mubr.msk.f32.mxu1 %vm1114_vm3, %v6586_v2  ;;  %13191 = vmatmul.mubr.msk.f32.gmra.mrb[202].mxu0 %vm1114_vm3, %v6818_v33 }
 0xbe7   :  { %13193 = vmatprep.mubr.msk.f32.mxu0 %vm1114_vm3, %v6819_v35 }
 0xbe9   :  { %v6587_v23 = vpop.trf.xlu0 }
 0xbea   :  { %13156 = vmatmul.mubr.msk.f32.gmra.mrb[112].mxu1 %vm1114_vm3, %v6587_v23  ;;  %13194 = vmatmul.mubr.msk.f32.gmra.mrb[204].mxu0 %vm1114_vm3, %v6820_v41  ;;  %v16981_v23 = vld [vmem:[%s18781_s25 + $0x10] sm:$0xff] }
 0xbed   :  { %v6588_v44 = vpop.trf.xlu0 }
 0xbee   :  { %13158 = vmatprep.mubr.msk.f32.mxu1 %vm1114_vm3, %v6588_v44 }
 0xbf1   :  { %v6589_v26 = vpop.trf.xlu0 }
 0xbf2   :  { %13159 = vmatmul.mubr.msk.f32.gmra.mrb[114].mxu1 %vm1114_vm3, %v6589_v26 }
 0xbf5   :  { %v6590_v36 = vpop.trf.xlu0 }
 0xbf6   :  { %13161 = vmatprep.mubr.msk.f32.mxu1 %vm1114_vm3, %v6590_v36  ;;  %v16989_v36 = vld [vmem:[%s18781_s25 + $0x18] sm:$0xff] }
 0xbf9   :  { %v6591_v19 = vpop.trf.xlu0 }
 0xbfa   :  { %13162 = vmatmul.mubr.msk.f32.gmra.mrb[116].mxu1 %vm1114_vm3, %v6591_v19 }
 0xbfd   :  { %v6592_v21 = vpop.trf.xlu0 }
 0xbfe   :  { %13164 = vmatprep.mubr.msk.f32.mxu1 %vm1114_vm3, %v6592_v21 }
 0xc01   :  { %v6593_v38 = vpop.trf.xlu0 }
 0xc02   :  { %13165 = vmatmul.mubr.msk.f32.gmra.mrb[118].mxu1 %vm1114_vm3, %v6593_v38 }
 0xc05   :  { %v6594_v20 = vpop.trf.xlu0 }
 0xc06   :  { %13167 = vmatprep.mubr.msk.f32.mxu1 %vm1114_vm3, %v6594_v20 }
 0xc09   :  { %v6595_v40 = vpop.trf.xlu0 }
 0xc0a   :  { %13168 = vmatmul.mubr.msk.f32.gmra.mrb[120].mxu1 %vm1114_vm3, %v6595_v40 }
 0xc25   :  { %v13096_v24 = vpop.f32.mrb[158].mxu0 }
 0xc26   :  { %v7015_v3 = vmul.f32 0.35355338, %v13096_v24  ;;  %v6260_v0 = vpop.f32.mrb[159].mxu0 }
 0xc27   :  { %v7014_v5 = vmul.f32 0.35355338, %v6260_v0 }
 0xc28   :  { %v11520_v18 = vclamps-f32 %v7015_v3, 5.0 }
 0xc29   :  { %v11519_v37 = vclamps-f32 %v7014_v5, 5.0 }
 0xc2a   :  { %v7208_v54 = vmul.f32 1.442695, %v11520_v18  ;;  %v16999_v18 = vld [vmem:[%s18781_s25 + $0x20] sm:$0xff] }
 0xc2b   :  { %v7206_v58 = vmul.f32 1.442695, %v11519_v37 }
 0xc2c   :  { %14237 = vpow2.f32 %v7208_v54 }
 0xc2d   :  { %14239 = vpow2.f32 %v7206_v58  ;;  %v13099_v60 = vpop.f32.mrb[160].mxu0  ;;  %v17007_v58 = vld [vmem:[%s18781_s25 + $0x28] sm:$0xff] }
 0xc2e   :  { %v7017_v53 = vmul.f32 0.35355338, %v13099_v60  ;;  %v6270_v49 = vpop.f32.mrb[161].mxu0 }
 0xc2f   :  { %v7016_v57 = vmul.f32 0.35355338, %v6270_v49 }
 0xc30   :  { %v11522_v1 = vclamps-f32 %v7017_v53, 5.0 }
 0xc31   :  { %v11521_v51 = vclamps-f32 %v7016_v57, 5.0 }
 0xc32   :  { %v7212_v10 = vmul.f32 1.442695, %v11522_v1 }
 0xc33   :  { %v7210_v45 = vmul.f32 1.442695, %v11521_v51 }
 0xc34   :  { %14241 = vpow2.f32 %v7212_v10 }
 0xc35   :  { %14243 = vpow2.f32 %v7210_v45  ;;  %v13102_v32 = vpop.f32.mrb[162].mxu0 }
 0xc36   :  { %v14238_v59 = vpop.eup %14237  ;;  %v7019_v47 = vmul.f32 0.35355338, %v13102_v32  ;;  %v6280_v25 = vpop.f32.mrb[163].mxu0 }
 0xc37   :  { %v14240_v55 = vpop.eup %14239  ;;  %v7335_v12 = vmul.f32 %v16969_v43, %v14238_v59  ;;  %v7018_v50 = vmul.f32 0.35355338, %v6280_v25 }
 0xc38   :  { %v7334_v27 = vmul.f32 %v16975_v28, %v14240_v55  ;;  %v11524_v52 = vclamps-f32 %v7019_v47, 5.0  ;;  %v17017_v47 = vld [vmem:[%s18781_s25 + $0x30] sm:$0xff] }
 0xc39   :  { %7400 = vadd.xlane.f32.xlu0 %v7335_v12  ;;  %v11523_v46 = vclamps-f32 %v7018_v50, 5.0 }
 0xc3a   :  { %13198 = vmatprep.mubr.f32.mxu1 %v7334_v27  ;;  %7398 = vadd.xlane.f32.xlu1 %v7334_v27  ;;  %v7216_v11 = vmul.f32 1.442695, %v11524_v52 }
 0xc3b   :  { %13199 = vmatmul.mubr.f32.vlgmr.msra.gmra.mrb[122].mxu1 %v7335_v12  ;;  %v7214_v14 = vmul.f32 1.442695, %v11523_v46  ;;  %v17025_v12 = vld [vmem:[%s18781_s25 + $0x38] sm:$0xff] }
 0xc3c   :  { %14245 = vpow2.f32 %v7216_v11  ;;  %13249 = vmatpush3.xpose.msra.mxu1 %v6105_v8 }
 0xc3d   :  { %14247 = vpow2.f32 %v7214_v14  ;;  %v13105_v9 = vpop.f32.mrb[164].mxu0 }
 0xc3e   :  { %v14242_v33 = vpop.eup %14241  ;;  %v7021_v39 = vmul.f32 0.35355338, %v13105_v9  ;;  %v6290_v62 = vpop.f32.mrb[165].mxu0 }
 0xc3f   :  { %v14244_v35 = vpop.eup %14243  ;;  %v7020_v2 = vmul.f32 0.35355338, %v6290_v62  ;;  %v16992_v19 = vmul.f32 %v16989_v36, %v14242_v33 }
 0xc40   :  { %v11526_v41 = vclamps-f32 %v7021_v39, 5.0  ;;  %v16984_v44 = vmul.f32 %v16981_v23, %v14244_v35  ;;  %v17035_v35 = vld [vmem:[%s18781_s25 + $0x40] sm:$0xff] }
 0xc41   :  { %v11525_v26 = vclamps-f32 %v7020_v2, 5.0 }
 0xc42   :  { %v7220_v21 = vmul.f32 1.442695, %v11526_v41  ;;  %13201 = vmatprep.mubr.f32.mxu1 %v16984_v44 }
 0xc43   :  { %v7218_v38 = vmul.f32 1.442695, %v11525_v26  ;;  %13202 = vmatmul.mubr.f32.gmra.mrb[124].mxu1 %v16992_v19  ;;  %v17043_v26 = vld [vmem:[%s18781_s25 + $0x48] sm:$0xff] }
 0xc44   :  { %14249 = vpow2.f32 %v7220_v21 }
 0xc45   :  { %14251 = vpow2.f32 %v7218_v38  ;;  %v13108_v20 = vpop.f32.mrb[166].mxu0 }
 0xc46   :  { %v14246_v40 = vpop.eup %14245  ;;  %v7023_v8 = vmul.f32 0.35355338, %v13108_v20  ;;  %v6300_v24 = vpop.f32.mrb[167].mxu0 }
 0xc47   :  { %v14248_v3 = vpop.eup %14247  ;;  %v7022_v0 = vmul.f32 0.35355338, %v6300_v24  ;;  %v17010_v60 = vmul.f32 %v17007_v58, %v14246_v40 }
 0xc48   :  { %v11528_v5 = vclamps-f32 %v7023_v8, 5.0  ;;  %v17002_v37 = vmul.f32 %v16999_v18, %v14248_v3 }
 0xc49   :  { %v11527_v54 = vclamps-f32 %v7022_v0, 5.0 }
 0xc4a   :  { %v7224_v53 = vmul.f32 1.442695, %v11528_v5  ;;  %13204 = vmatprep.mubr.f32.mxu1 %v17002_v37 }
 0xc4b   :  { %v7222_v49 = vmul.f32 1.442695, %v11527_v54  ;;  %13205 = vmatmul.mubr.f32.gmra.mrb[126].mxu1 %v17010_v60 }
 0xc4c   :  { %14253 = vpow2.f32 %v7224_v53  ;;  %v17053_v53 = vld [vmem:[%s18781_s25 + $0x50] sm:$0xff] }
 0xc4d   :  { %14255 = vpow2.f32 %v7222_v49  ;;  %v13111_v57 = vpop.f32.mrb[168].mxu0 }
 0xc4e   :  { %v14250_v1 = vpop.eup %14249  ;;  %v7025_v51 = vmul.f32 0.35355338, %v13111_v57  ;;  %v6310_v10 = vpop.f32.mrb[169].mxu0 }
 0xc4f   :  { %v14252_v45 = vpop.eup %14251  ;;  %v7024_v32 = vmul.f32 0.35355338, %v6310_v10  ;;  %v17028_v50 = vmul.f32 %v17025_v12, %v14250_v1  ;;  %v17061_v1 = vld [vmem:[%s18781_s25 + $0x58] sm:$0xff] }
 0xc50   :  { %v11530_v59 = vclamps-f32 %v7025_v51, 5.0  ;;  %v17020_v25 = vmul.f32 %v17017_v47, %v14252_v45 }
 0xc51   :  { %v11529_v55 = vclamps-f32 %v7024_v32, 5.0 }
 0xc52   :  { %v7228_v27 = vmul.f32 1.442695, %v11530_v59  ;;  %13207 = vmatprep.mubr.f32.mxu1 %v17020_v25 }
 0xc53   :  { %v7226_v52 = vmul.f32 1.442695, %v11529_v55  ;;  %13208 = vmatmul.mubr.f32.gmra.mrb[128].mxu1 %v17028_v50 }
 0xc54   :  { %14257 = vpow2.f32 %v7228_v27 }
 0xc55   :  { %14259 = vpow2.f32 %v7226_v52  ;;  %v13114_v46 = vpop.f32.mrb[170].mxu0 }
 0xc56   :  { %v14254_v11 = vpop.eup %14253  ;;  %v7027_v14 = vmul.f32 0.35355338, %v13114_v46  ;;  %v6320_v9 = vpop.f32.mrb[171].mxu0 }
 0xc57   :  { %v14256_v33 = vpop.eup %14255  ;;  %v7026_v39 = vmul.f32 0.35355338, %v6320_v9  ;;  %v17046_v21 = vmul.f32 %v17043_v26, %v14254_v11 }
 0xc58   :  { %v11532_v62 = vclamps-f32 %v7027_v14, 5.0  ;;  %v17038_v2 = vmul.f32 %v17035_v35, %v14256_v33  ;;  %v17071_v14 = vld [vmem:[%s18781_s25 + $0x60] sm:$0xff] }
 0xc59   :  { %v11531_v41 = vclamps-f32 %v7026_v39, 5.0  ;;  %v17079_v39 = vld [vmem:[%s18781_s25 + $0x68] sm:$0xff] }
 0xc5a   :  { %v7232_v38 = vmul.f32 1.442695, %v11532_v62  ;;  %13210 = vmatprep.mubr.f32.mxu1 %v17038_v2 }
 0xc5b   :  { %v7230_v20 = vmul.f32 1.442695, %v11531_v41  ;;  %13211 = vmatmul.mubr.f32.gmra.mrb[130].mxu1 %v17046_v21 }
 0xc5c   :  { %14261 = vpow2.f32 %v7232_v38 }
 0xc5d   :  { %14263 = vpow2.f32 %v7230_v20  ;;  %v13117_v40 = vpop.f32.mrb[172].mxu0 }
 0xc5e   :  { %v14258_v8 = vpop.eup %14257  ;;  %v7029_v24 = vmul.f32 0.35355338, %v13117_v40  ;;  %v6330_v3 = vpop.f32.mrb[173].mxu0 }
 0xc5f   :  { %v14260_v0 = vpop.eup %14259  ;;  %v7028_v5 = vmul.f32 0.35355338, %v6330_v3  ;;  %v17064_v51 = vmul.f32 %v17061_v1, %v14258_v8 }
 0xc60   :  { %v11534_v54 = vclamps-f32 %v7029_v24, 5.0  ;;  %v17056_v49 = vmul.f32 %v17053_v53, %v14260_v0 }
 0xc61   :  { %v11533_v57 = vclamps-f32 %v7028_v5, 5.0 }
 0xc62   :  { %v7236_v10 = vmul.f32 1.442695, %v11534_v54  ;;  %13213 = vmatprep.mubr.f32.mxu1 %v17056_v49  ;;  %v17089_v54 = vld [vmem:[%s18781_s25 + $0x70] sm:$0xff] }
 0xc63   :  { %v7234_v45 = vmul.f32 1.442695, %v11533_v57  ;;  %13214 = vmatmul.mubr.f32.gmra.mrb[132].mxu1 %v17064_v51 }
 0xc64   :  { %14265 = vpow2.f32 %v7236_v10 }
 0xc65   :  { %14267 = vpow2.f32 %v7234_v45  ;;  %v13122_v32 = vpop.f32.mrb[174].mxu0  ;;  %v17097_v45 = vld [vmem:[%s18781_s25 + $0x78] sm:$0xff] }
 0xc66   :  { %v14262_v59 = vpop.eup %14261  ;;  %v7031_v55 = vmul.f32 0.35355338, %v13122_v32  ;;  %v6485_v27 = vpop.f32.mrb[175].mxu0 }
 0xc67   :  { %v14264_v52 = vpop.eup %14263  ;;  %v7030_v46 = vmul.f32 0.35355338, %v6485_v27  ;;  %v17082_v62 = vmul.f32 %v17079_v39, %v14262_v59 }
 0xc68   :  { %v11536_v11 = vclamps-f32 %v7031_v55, 5.0  ;;  %v17074_v9 = vmul.f32 %v17071_v14, %v14264_v52 }
 0xc69   :  { %v11535_v33 = vclamps-f32 %v7030_v46, 5.0 }
 0xc6a   :  { %v7240_v41 = vmul.f32 1.442695, %v11536_v11  ;;  %13216 = vmatprep.mubr.f32.mxu1 %v17074_v9 }
 0xc6b   :  { %v7238_v38 = vmul.f32 1.442695, %v11535_v33  ;;  %13217 = vmatmul.mubr.f32.gmra.mrb[134].mxu1 %v17082_v62 }
 0xc6c   :  { %14269 = vpow2.f32 %v7240_v41 }
 0xc6d   :  { %14271 = vpow2.f32 %v7238_v38  ;;  %v13125_v20 = vpop.f32.mrb[176].mxu0 }
 0xc6e   :  { %v14266_v40 = vpop.eup %14265  ;;  %v7033_v8 = vmul.f32 0.35355338, %v13125_v20  ;;  %v6495_v24 = vpop.f32.mrb[177].mxu0 }
 0xc6f   :  { %v14268_v3 = vpop.eup %14267  ;;  %v7032_v0 = vmul.f32 0.35355338, %v6495_v24  ;;  %v17100_v32 = vmul.f32 %v17097_v45, %v14266_v40 }
 0xc70   :  { %v11538_v5 = vclamps-f32 %v7033_v8, 5.0  ;;  %v17092_v57 = vmul.f32 %v17089_v54, %v14268_v3 }
 0xc71   :  { %v11537_v10 = vclamps-f32 %v7032_v0, 5.0 }
 0xc72   :  { %v7244_v59 = vmul.f32 1.442695, %v11538_v5  ;;  %13219 = vmatprep.mubr.f32.mxu1 %v17092_v57 }
 0xc73   :  { %v7242_v55 = vmul.f32 1.442695, %v11537_v10  ;;  %13220 = vmatmul.mubr.f32.gmra.mrb[136].mxu1 %v17100_v32 }
 0xc74   :  { %14273 = vpow2.f32 %v7244_v59 }
 0xc75   :  { %14275 = vpow2.f32 %v7242_v55  ;;  %v13128_v27 = vpop.f32.mrb[178].mxu0 }
 0xc76   :  { %v14270_v52 = vpop.eup %14269  ;;  %v7035_v46 = vmul.f32 0.35355338, %v13128_v27  ;;  %v6505_v11 = vpop.f32.mrb[179].mxu0 }
 0xc77   :  { %v14272_v33 = vpop.eup %14271  ;;  %v7034_v41 = vmul.f32 0.35355338, %v6505_v11  ;;  %v17108_v8 = vmul.f32 %v16969_v43, %v14270_v52 }
 0xc78   :  { %v11540_v38 = vclamps-f32 %v7035_v46, 5.0  ;;  %v17105_v20 = vmul.f32 %v16975_v28, %v14272_v33 }
 0xc79   :  { %v11539_v40 = vclamps-f32 %v7034_v41, 5.0 }
 0xc7a   :  { %v7248_v24 = vmul.f32 1.442695, %v11540_v38  ;;  %13224 = vmatprep.mubr.f32.mxu0 %v17105_v20 }
 0xc7b   :  { %v7246_v3 = vmul.f32 1.442695, %v11539_v40  ;;  %13225 = vmatmul.mubr.f32.vlgmr.msra.gmra.mrb[206].mxu0 %v17108_v8 }
 0xc7c   :  { %14277 = vpow2.f32 %v7248_v24  ;;  %13275 = vmatpush3.xpose.msra.mxu0 %v16963_v30 }
 0xc7d   :  { %14279 = vpow2.f32 %v7246_v3  ;;  %v13131_v0 = vpop.f32.mrb[180].mxu0 }
 0xc7e   :  { %v14274_v5 = vpop.eup %14273  ;;  %v7037_v10 = vmul.f32 0.35355338, %v13131_v0  ;;  %v6515_v59 = vpop.f32.mrb[181].mxu0 }
 0xc7f   :  { %v14276_v55 = vpop.eup %14275  ;;  %v7036_v27 = vmul.f32 0.35355338, %v6515_v59  ;;  %v17117_v33 = vmul.f32 %v16989_v36, %v14274_v5 }
 0xc80   :  { %v11542_v46 = vclamps-f32 %v7037_v10, 5.0  ;;  %v17114_v52 = vmul.f32 %v16981_v23, %v14276_v55 }
 0xc81   :  { %v11541_v11 = vclamps-f32 %v7036_v27, 5.0 }
 0xc82   :  { %v7252_v41 = vmul.f32 1.442695, %v11542_v46  ;;  %13227 = vmatprep.mubr.f32.mxu0 %v17114_v52 }
 0xc83   :  { %v7250_v38 = vmul.f32 1.442695, %v11541_v11  ;;  %13228 = vmatmul.mubr.f32.gmra.mrb[208].mxu0 %v17117_v33 }
 0xc84   :  { %14281 = vpow2.f32 %v7252_v41 }
 0xc85   :  { %14283 = vpow2.f32 %v7250_v38  ;;  %v13134_v30 = vpop.f32.mrb[182].mxu0 }
 0xc86   :  { %v14278_v40 = vpop.eup %14277  ;;  %v7039_v24 = vmul.f32 0.35355338, %v13134_v30  ;;  %v6525_v3 = vpop.f32.mrb[183].mxu0 }
 0xc87   :  { %v14280_v0 = vpop.eup %14279  ;;  %v7038_v10 = vmul.f32 0.35355338, %v6525_v3  ;;  %v17125_v27 = vmul.f32 %v17007_v58, %v14278_v40 }
 0xc88   :  { %v11544_v59 = vclamps-f32 %v7039_v24, 5.0  ;;  %v17122_v55 = vmul.f32 %v16999_v18, %v14280_v0 }
 0xc89   :  { %v11543_v5 = vclamps-f32 %v7038_v10, 5.0 }
 0xc8a   :  { %v7256_v46 = vmul.f32 1.442695, %v11544_v59  ;;  %13230 = vmatprep.mubr.f32.mxu0 %v17122_v55 }
 0xc8b   :  { %v7254_v11 = vmul.f32 1.442695, %v11543_v5  ;;  %13231 = vmatmul.mubr.f32.gmra.mrb[210].mxu0 %v17125_v27  ;;  %v17138_v5 = vld [vmem:[%s18782_s26 + $0x20] sm:$0xff] }
 0xc8c   :  { %14285 = vpow2.f32 %v7256_v46  ;;  %13300 = vmatprep.subr.mxu1 %v17138_v5 }
 0xc8d   :  { %14287 = vpow2.f32 %v7254_v11  ;;  %v13137_v41 = vpop.f32.mrb[184].mxu0 }
 0xc8e   :  { %v14282_v38 = vpop.eup %14281  ;;  %v7041_v30 = vmul.f32 0.35355338, %v13137_v41  ;;  %v6535_v3 = vpop.f32.mrb[185].mxu0 }
 0xc8f   :  { %v14284_v24 = vpop.eup %14283  ;;  %v7040_v7 = vmul.f32 0.35355338, %v6535_v3  ;;  %v17133_v59 = vmul.f32 %v17025_v12, %v14282_v38 }
 0xc90   :  { %v11546_v0 = vclamps-f32 %v7041_v30, 5.0  ;;  %v17130_v10 = vmul.f32 %v17017_v47, %v14284_v24 }
 0xc91   :  { %v11545_v40 = vclamps-f32 %v7040_v7, 5.0 }
 0xc92   :  { %18804 = vst [vmem:[#allocation18_spill] sm:$0xff] %v17130_v10  ;;  %v7260_v46 = vmul.f32 1.442695, %v11546_v0  ;;  %13233 = vmatprep.mubr.f32.mxu0 %v17130_v10 }
 0xc93   :  { %v7258_v11 = vmul.f32 1.442695, %v11545_v40  ;;  %13234 = vmatmul.mubr.f32.gmra.mrb[212].mxu0 %v17133_v59 }
 0xc94   :  { %14289 = vpow2.f32 %v7260_v46 }
 0xc95   :  { %14291 = vpow2.f32 %v7258_v11  ;;  %v13140_v41 = vpop.f32.mrb[186].mxu0 }
 0xc96   :  { %v14286_v7 = vpop.eup %14285  ;;  %v7043_v30 = vmul.f32 0.35355338, %v13140_v41  ;;  %v6545_v38 = vpop.f32.mrb[187].mxu0 }
 0xc97   :  { %v14288_v3 = vpop.eup %14287  ;;  %v7042_v24 = vmul.f32 0.35355338, %v6545_v38  ;;  %v17147_v34 = vmul.f32 %v17043_v26, %v14286_v7 }
 0xc98   :  { %v11548_v15 = vclamps-f32 %v7043_v30, 5.0  ;;  %v17144_v22 = vmul.f32 %v17035_v35, %v14288_v3 }
 0xc99   :  { %v11547_v0 = vclamps-f32 %v7042_v24, 5.0  ;;  %18805 = vst [vmem:[#allocation19_spill] sm:$0xff] %v17147_v34 }
 0xc9a   :  { %v7264_v42 = vmul.f32 1.442695, %v11548_v15  ;;  %13236 = vmatprep.mubr.f32.mxu0 %v17144_v22 }
 0xc9b   :  { %v7262_v40 = vmul.f32 1.442695, %v11547_v0  ;;  %13237 = vmatmul.mubr.f32.gmra.mrb[214].mxu0 %v17147_v34 }
 0xc9c   :  { %14293 = vpow2.f32 %v7264_v42 }
 0xc9d   :  { %14295 = vpow2.f32 %v7262_v40  ;;  %v13143_v46 = vpop.f32.mrb[188].mxu0 }
 0xc9e   :  { %v14290_v11 = vpop.eup %14289  ;;  %v7045_v41 = vmul.f32 0.35355338, %v13143_v46  ;;  %v6555_v38 = vpop.f32.mrb[189].mxu0 }
 0xc9f   :  { %v14292_v30 = vpop.eup %14291  ;;  %v7044_v61 = vmul.f32 0.35355338, %v6555_v38  ;;  %v17155_v15 = vmul.f32 %v17061_v1, %v14290_v11 }
 0xca0   :  { %v11550_v3 = vclamps-f32 %v7045_v41, 5.0  ;;  %v17152_v24 = vmul.f32 %v17053_v53, %v14292_v30 }
 0xca1   :  { %v11549_v7 = vclamps-f32 %v7044_v61, 5.0  ;;  %v13174_v31 = vpop.f32.mrb[190].mxu0  ;;  %18806 = vst [vmem:[#allocation20_spill] sm:$0xff] %v17155_v15 }
 0xca2   :  { %v7268_v0 = vmul.f32 1.442695, %v11550_v3  ;;  %v7063_v16 = vmul.f32 0.35355338, %v13174_v31  ;;  %13239 = vmatprep.mubr.f32.mxu0 %v17152_v24  ;;  %v6935_v42 = vpop.f32.mrb[191].mxu0 }
 0xca3   :  { %v7266_v40 = vmul.f32 1.442695, %v11549_v7  ;;  %v7062_v6 = vmul.f32 0.35355338, %v6935_v42  ;;  %13240 = vmatmul.mubr.f32.gmra.mrb[216].mxu0 %v17155_v15 }
 0xca4   :  { %14297 = vpow2.f32 %v7268_v0  ;;  %v11568_v46 = vclamps-f32 %v7063_v16, 5.0 }
 0xca5   :  { %v13148_v41 = vpop.f32.mrb[106].mxu1  ;;  %14299 = vpow2.f32 %v7266_v40  ;;  %v11567_v38 = vclamps-f32 %v7062_v6, 5.0  ;;  %v13177_v30 = vpop.f32.mrb[192].mxu0 }
 0xca6   :  { %v14294_v61 = vpop.eup %14293  ;;  %v7047_v29 = vmul.f32 0.35355338, %v13148_v41  ;;  %v6710_v48 = vpop.f32.mrb[107].mxu1  ;;  %v7304_v11 = vmul.f32 1.442695, %v11568_v46 }
 0xca7   :  { %v6945_v56 = vpop.f32.mrb[193].mxu0  ;;  %v14296_v3 = vpop.eup %14295  ;;  %v7046_v31 = vmul.f32 0.35355338, %v6710_v48  ;;  %v7302_v4 = vmul.f32 1.442695, %v11567_v38  ;;  %v17163_v40 = vmul.f32 %v17079_v39, %v14294_v61 }
 0xca8   :  { %v7065_v63 = vmul.f32 0.35355338, %v13177_v30  ;;  %v11552_v13 = vclamps-f32 %v7047_v29, 5.0  ;;  %14301 = vpow2.f32 %v7304_v11  ;;  %v7064_v7 = vmul.f32 0.35355338, %v6945_v56 }
 0xca9   :  { %v17160_v42 = vmul.f32 %v17071_v14, %v14296_v3  ;;  %v11551_v16 = vclamps-f32 %v7046_v31, 5.0  ;;  %14303 = vpow2.f32 %v7302_v4  ;;  %v13180_v6 = vpop.f32.mrb[194].mxu0  ;;  %18807 = vst [vmem:[#allocation21_spill] sm:$0xff] %v17163_v40 }
 0xcaa   :  { %v11570_v0 = vclamps-f32 %v7065_v63, 5.0  ;;  %v7272_v41 = vmul.f32 1.442695, %v11552_v13  ;;  %v11569_v46 = vclamps-f32 %v7064_v7, 5.0  ;;  %v7067_v17 = vmul.f32 0.35355338, %v13180_v6 }
 0xcab   :  { %13242 = vmatprep.mubr.f32.mxu0 %v17160_v42  ;;  %v6955_v48 = vpop.f32.mrb[195].mxu0  ;;  %v7270_v38 = vmul.f32 1.442695, %v11551_v16 }
 0xcac   :  { %v7308_v29 = vmul.f32 1.442695, %v11570_v0  ;;  %v7066_v30 = vmul.f32 0.35355338, %v6955_v48  ;;  %13243 = vmatmul.mubr.f32.gmra.mrb[218].mxu0 %v17163_v40  ;;  %14305 = vpow2.f32 %v7272_v41  ;;  %v7306_v56 = vmul.f32 1.442695, %v11569_v46 }
 0xcad   :  { %v11572_v11 = vclamps-f32 %v7067_v17, 5.0  ;;  %14307 = vpow2.f32 %v7270_v38  ;;  %v13151_v63 = vpop.f32.mrb[108].mxu1  ;;  %v13183_v3 = vpop.f32.mrb[196].mxu0 }
 0xcae   :  { %v11571_v4 = vclamps-f32 %v7066_v30, 5.0  ;;  %v14298_v61 = vpop.eup %14297  ;;  %v7049_v31 = vmul.f32 0.35355338, %v13151_v63  ;;  %v6720_v13 = vpop.f32.mrb[109].mxu1  ;;  %14309 = vpow2.f32 %v7308_v29  ;;  %v7069_v0 = vmul.f32 0.35355338, %v13183_v3 }
 0xcaf   :  { %v7312_v7 = vmul.f32 1.442695, %v11572_v11  ;;  %v6965_v6 = vpop.f32.mrb[197].mxu0  ;;  %v14300_v15 = vpop.eup %14299  ;;  %v7048_v34 = vmul.f32 0.35355338, %v6720_v13  ;;  %14311 = vpow2.f32 %v7306_v56  ;;  %v17171_v63 = vmul.f32 %v17097_v45, %v14298_v61 }
 0xcb0   :  { %v7310_v16 = vmul.f32 1.442695, %v11571_v4  ;;  %v11554_v48 = vclamps-f32 %v7049_v31, 5.0  ;;  %v7068_v41 = vmul.f32 0.35355338, %v6965_v6  ;;  %v17168_v17 = vmul.f32 %v17089_v54, %v14300_v15 }
 0xcb1   :  { %14313 = vpow2.f32 %v7312_v7  ;;  %v11553_v46 = vclamps-f32 %v7048_v34, 5.0  ;;  %v11574_v38 = vclamps-f32 %v7069_v0, 5.0  ;;  %v13186_v30 = vpop.f32.mrb[198].mxu0  ;;  %18808 = vst [vmem:[#allocation22_spill] sm:$0xff] %v17171_v63 }
 0xcb2   :  { %14315 = vpow2.f32 %v7310_v16  ;;  %v14302_v29 = vpop.eup %14301  ;;  %v7276_v11 = vmul.f32 1.442695, %v11554_v48  ;;  %v11573_v40 = vclamps-f32 %v7068_v41, 5.0  ;;  %v7071_v13 = vmul.f32 0.35355338, %v13186_v30  ;;  %13245 = vmatprep.mubr.f32.mxu0 %v17168_v17  ;;  %v6975_v56 = vpop.f32.mrb[199].mxu0 }
 0xcb3   :  { %v14304_v4 = vpop.eup %14303  ;;  %v7274_v3 = vmul.f32 1.442695, %v11553_v46  ;;  %v7316_v31 = vmul.f32 1.442695, %v11574_v38  ;;  %v7070_v7 = vmul.f32 0.35355338, %v6975_v56  ;;  %13246 = vmatmul.mubr.f32.gmra.mrb[220].mxu0 %v17171_v63  ;;  %v17176_v34 = vmul.f32 %v16969_v43, %v14302_v29 }
 0xcb4   :  { %14317 = vpow2.f32 %v7276_v11  ;;  %v7314_v15 = vmul.f32 1.442695, %v11573_v40  ;;  %v11576_v61 = vclamps-f32 %v7071_v13, 5.0  ;;  %v17179_v6 = vmul.f32 %v16975_v28, %v14304_v4 }
 0xcb5   :  { %14319 = vpow2.f32 %v7274_v3  ;;  %v13154_v16 = vpop.f32.mrb[110].mxu1  ;;  %v11575_v0 = vclamps-f32 %v7070_v7, 5.0  ;;  %v13189_v48 = vpop.f32.mrb[200].mxu0 }
 0xcb6   :  { %v14306_v41 = vpop.eup %14305  ;;  %v7051_v30 = vmul.f32 0.35355338, %v13154_v16  ;;  %v6730_v46 = vpop.f32.mrb[111].mxu1  ;;  %14321 = vpow2.f32 %v7316_v31  ;;  %v7320_v38 = vmul.f32 1.442695, %v11576_v61  ;;  %13276 = vmatprep.mubr.f32.mxu0 %v17179_v6 }
 0xcb7   :  { %v6985_v56 = vpop.f32.mrb[201].mxu0  ;;  %v14308_v29 = vpop.eup %14307  ;;  %v7050_v63 = vmul.f32 0.35355338, %v6730_v46  ;;  %v7367_v40 = vmul.f32 %v16969_v43, %v14306_v41  ;;  %14323 = vpow2.f32 %v7314_v15  ;;  %v7318_v11 = vmul.f32 1.442695, %v11575_v0  ;;  %13277 = vmatmul.mubr.f32.vlgmr.msra.gmra.mrb[222].mxu0 %v17176_v34 }
 0xcb8   :  { %v14310_v13 = vpop.eup %14309  ;;  %v11556_v4 = vclamps-f32 %v7051_v30, 5.0  ;;  %v7366_v3 = vmul.f32 %v16975_v28, %v14308_v29  ;;  %14325 = vpow2.f32 %v7320_v38  ;;  %v7073_v7 = vmul.f32 0.35355338, %v13189_v48 }
 0xcb9   :  { %v14312_v16 = vpop.eup %14311  ;;  %v11555_v31 = vclamps-f32 %v7050_v63, 5.0  ;;  %7464 = vadd.xlane.f32.xlu1 %v7367_v40  ;;  %14327 = vpow2.f32 %v7318_v11  ;;  %v7072_v61 = vmul.f32 0.35355338, %v6985_v56  ;;  %v13192_v10 = vpop.f32.mrb[202].mxu0  ;;  %v17186_v46 = vmul.f32 %v16989_v36, %v14310_v13 }
 0xcba   :  { %v7280_v15 = vmul.f32 1.442695, %v11556_v4  ;;  %13250 = vmatprep.mubr.f32.mxu1 %v7366_v3  ;;  %7462 = vadd.xlane.f32.xlu0 %v7366_v3  ;;  %v11578_v0 = vclamps-f32 %v7073_v7, 5.0  ;;  %v17189_v41 = vmul.f32 %v16981_v23, %v14312_v16  ;;  %v7075_v28 = vmul.f32 0.35355338, %v13192_v10  ;;  %v6995_v30 = vpop.f32.mrb[203].mxu0 }
 0xcbb   :  { %v14314_v43 = vpop.eup %14313  ;;  %v7278_v38 = vmul.f32 1.442695, %v11555_v31  ;;  %13251 = vmatmul.mubr.f32.vlgmr.msra.gmra.mrb[138].mxu1 %v7367_v40  ;;  %v11577_v63 = vclamps-f32 %v7072_v61, 5.0  ;;  %v7074_v29 = vmul.f32 0.35355338, %v6995_v30 }
 0xcbc   :  { %v14316_v48 = vpop.eup %14315  ;;  %14329 = vpow2.f32 %v7280_v15  ;;  %v7324_v56 = vmul.f32 1.442695, %v11578_v0  ;;  %13279 = vmatprep.mubr.f32.mxu0 %v17189_v41  ;;  %v11580_v11 = vclamps-f32 %v7075_v28, 5.0  ;;  %13301 = vmatpush3.msra.mxu1 %v17138_v5  ;;  %v17199_v3 = vmul.f32 %v17007_v58, %v14314_v43 }
 0xcbd   :  { %v17193_v13 = vmul.f32 %v16999_v18, %v14316_v48  ;;  %14331 = vpow2.f32 %v7278_v38  ;;  %7404 = vadd.xlane.f32.xlu1 %v16992_v19  ;;  %v13157_v10 = vpop.f32.mrb[112].mxu1  ;;  %v7322_v4 = vmul.f32 1.442695, %v11577_v63  ;;  %13280 = vmatmul.mubr.f32.gmra.mrb[224].mxu0 %v17186_v46  ;;  %v11579_v40 = vclamps-f32 %v7074_v29, 5.0  ;;  %v13195_v7 = vpop.f32.mrb[204].mxu0 }
 0xcbe   :  { %v14318_v16 = vpop.eup %14317  ;;  %v7053_v31 = vmul.f32 0.35355338, %v13157_v10  ;;  %v6740_v61 = vpop.f32.mrb[113].mxu1  ;;  %14333 = vpow2.f32 %v7324_v56  ;;  %v7328_v15 = vmul.f32 1.442695, %v11580_v11 }
 0xcbf   :  { %13282 = vmatprep.mubr.f32.mxu0 %v17193_v13  ;;  %v7005_v5 = vpop.f32.mrb[205].mxu0  ;;  %v14320_v0 = vpop.eup %14319  ;;  %v7052_v28 = vmul.f32 0.35355338, %v6740_v61  ;;  %v7369_v19 = vmul.f32 %v16989_v36, %v14318_v16  ;;  %14335 = vpow2.f32 %v7322_v4  ;;  %v7326_v30 = vmul.f32 1.442695, %v11579_v40 }
 0xcc0   :  { %v14322_v48 = vpop.eup %14321  ;;  %v11558_v38 = vclamps-f32 %v7053_v31, 5.0  ;;  %v7368_v43 = vmul.f32 %v16981_v23, %v14320_v0  ;;  %14337 = vpow2.f32 %v7328_v15  ;;  %v7077_v63 = vmul.f32 0.35355338, %v13195_v7 }
 0xcc1   :  { %v14324_v29 = vpop.eup %14323  ;;  %v11557_v10 = vclamps-f32 %v7052_v28, 5.0  ;;  %7402 = vadd.xlane.f32.xlu1 %v16984_v44  ;;  %14339 = vpow2.f32 %v7326_v30  ;;  %13283 = vmatmul.mubr.f32.gmra.mrb[226].mxu0 %v17199_v3  ;;  %v17207_v56 = vmul.f32 %v17025_v12, %v14322_v48  ;;  %v7076_v11 = vmul.f32 0.35355338, %v7005_v5 }
 0xcc2   :  { %v14326_v36 = vpop.eup %14325  ;;  %v7284_v4 = vmul.f32 1.442695, %v11558_v38  ;;  %13253 = vmatprep.mubr.f32.mxu1 %v7368_v43  ;;  %7466 = vadd.xlane.f32.xlu0 %v7368_v43  ;;  %v17210_v40 = vmul.f32 %v17017_v47, %v14324_v29  ;;  %v11582_v23 = vclamps-f32 %v7077_v63, 5.0 }
 0xcc3   :  { %v14328_v7 = vpop.eup %14327  ;;  %v7282_v16 = vmul.f32 1.442695, %v11557_v10  ;;  %13254 = vmatmul.mubr.f32.gmra.mrb[140].mxu1 %v7369_v19  ;;  %v11581_v31 = vclamps-f32 %v7076_v11, 5.0  ;;  %v17218_v0 = vmul.f32 %v17043_v26, %v14326_v36 }
 0xcc4   :  { %14341 = vpow2.f32 %v7284_v4  ;;  %13285 = vmatprep.mubr.f32.mxu0 %v17210_v40  ;;  %v7332_v44 = vmul.f32 1.442695, %v11582_v23  ;;  %v17214_v61 = vmul.f32 %v17035_v35, %v14328_v7 }
 0xcc5   :  { %14343 = vpow2.f32 %v7282_v16  ;;  %7468 = vadd.xlane.f32.xlu1 %v7369_v19  ;;  %v13160_v15 = vpop.f32.mrb[114].mxu1  ;;  %13286 = vmatmul.mubr.f32.gmra.mrb[228].mxu0 %v17207_v56  ;;  %v7330_v5 = vmul.f32 1.442695, %v11581_v31 }
 0xcc6   :  { %v14330_v28 = vpop.eup %14329  ;;  %v7055_v30 = vmul.f32 0.35355338, %v13160_v15  ;;  %v6750_v48 = vpop.f32.mrb[115].mxu1  ;;  %14345 = vpow2.f32 %v7332_v44  ;;  %13288 = vmatprep.mubr.f32.mxu0 %v17214_v61 }
 0xcc7   :  { %v14332_v38 = vpop.eup %14331  ;;  %v7054_v43 = vmul.f32 0.35355338, %v6750_v48  ;;  %v7371_v63 = vmul.f32 %v17007_v58, %v14330_v28  ;;  %14347 = vpow2.f32 %v7330_v5 }
 0xcc8   :  { %v14334_v29 = vpop.eup %14333  ;;  %v11560_v19 = vclamps-f32 %v7055_v30, 5.0  ;;  %v7370_v10 = vmul.f32 %v16999_v18, %v14332_v38 }
 0xcc9   :  { %v14336_v11 = vpop.eup %14335  ;;  %v11559_v4 = vclamps-f32 %v7054_v43, 5.0  ;;  %7408 = vadd.xlane.f32.xlu1 %v17010_v60  ;;  %13289 = vmatmul.mubr.f32.gmra.mrb[230].mxu0 %v17218_v0  ;;  %v17226_v36 = vmul.f32 %v17061_v1, %v14334_v29 }
 0xcca   :  { %v14338_v23 = vpop.eup %14337  ;;  %v7288_v7 = vmul.f32 1.442695, %v11560_v19  ;;  %13256 = vmatprep.mubr.f32.mxu1 %v7370_v10  ;;  %7470 = vadd.xlane.f32.xlu0 %v7370_v10  ;;  %v17229_v58 = vmul.f32 %v17053_v53, %v14336_v11 }
 0xccb   :  { %v14340_v16 = vpop.eup %14339  ;;  %v7286_v31 = vmul.f32 1.442695, %v11559_v4  ;;  %13257 = vmatmul.mubr.f32.gmra.mrb[142].mxu1 %v7371_v63  ;;  %v17238_v44 = vmul.f32 %v17079_v39, %v14338_v23 }
 0xccc   :  { %14349 = vpow2.f32 %v7288_v7  ;;  %13291 = vmatprep.mubr.f32.mxu0 %v17229_v58  ;;  %v17233_v18 = vmul.f32 %v17071_v14, %v14340_v16 }
 0xccd   :  { %14351 = vpow2.f32 %v7286_v31  ;;  %7406 = vadd.xlane.f32.xlu1 %v17002_v37  ;;  %v13163_v60 = vpop.f32.mrb[116].mxu1  ;;  %13292 = vmatmul.mubr.f32.gmra.mrb[232].mxu0 %v17226_v36 }
 0xcce   :  { %v14342_v15 = vpop.eup %14341  ;;  %v7057_v5 = vmul.f32 0.35355338, %v13163_v60  ;;  %v6760_v28 = vpop.f32.mrb[117].mxu1  ;;  %13294 = vmatprep.mubr.f32.mxu0 %v17233_v18 }
 0xccf   :  { %v14344_v30 = vpop.eup %14343  ;;  %v7056_v48 = vmul.f32 0.35355338, %v6760_v28  ;;  %v7373_v38 = vmul.f32 %v17025_v12, %v14342_v15 }
 0xcd0   :  { %v14346_v43 = vpop.eup %14345  ;;  %v11562_v29 = vclamps-f32 %v7057_v5, 5.0  ;;  %v7372_v19 = vmul.f32 %v17017_v47, %v14344_v30 }
 0xcd1   :  { %v14348_v37 = vpop.eup %14347  ;;  %v11561_v10 = vclamps-f32 %v7056_v48, 5.0  ;;  %7472 = vadd.xlane.f32.xlu1 %v7371_v63  ;;  %13295 = vmatmul.mubr.f32.gmra.mrb[234].mxu0 %v17238_v44  ;;  %v17245_v11 = vmul.f32 %v17097_v45, %v14346_v43 }
 0xcd2   :  { %v7292_v4 = vmul.f32 1.442695, %v11562_v29  ;;  %7474 = vadd.xlane.f32.xlu0 %v7372_v19  ;;  %13259 = vmatprep.mubr.f32.mxu1 %v7372_v19  ;;  %v17248_v23 = vmul.f32 %v17089_v54, %v14348_v37 }
 0xcd3   :  { %v7290_v7 = vmul.f32 1.442695, %v11561_v10  ;;  %13260 = vmatmul.mubr.f32.gmra.mrb[144].mxu1 %v7373_v38 }
 0xcd4   :  { %14353 = vpow2.f32 %v7292_v4  ;;  %13297 = vmatprep.mubr.f32.mxu0 %v17248_v23 }
 0xcd5   :  { %14355 = vpow2.f32 %v7290_v7  ;;  %7412 = vadd.xlane.f32.xlu1 %v17028_v50  ;;  %v13166_v47 = vpop.f32.mrb[118].mxu1  ;;  %13298 = vmatmul.mubr.f32.gmra.mrb[236].mxu0 %v17245_v11 }
 0xcd6   :  { %v14350_v12 = vpop.eup %14349  ;;  %v7059_v63 = vmul.f32 0.35355338, %v13166_v47  ;;  %7414 = vadd.xlane.f32.xlu0 %v17038_v2  ;;  %v6770_v16 = vpop.f32.mrb[119].mxu1 }
 0xcd7   :  { %v14352_v31 = vpop.eup %14351  ;;  %v7058_v60 = vmul.f32 0.35355338, %v6770_v16  ;;  %v7375_v15 = vmul.f32 %v17043_v26, %v14350_v12 }
 0xcd8   :  { %v11564_v5 = vclamps-f32 %v7059_v63, 5.0  ;;  %v7374_v28 = vmul.f32 %v17035_v35, %v14352_v31  ;;  %v18812_v31 = vld [vmem:[#allocation21_spill] sm:$0xff] }
 0xcd9   :  { %v11563_v30 = vclamps-f32 %v7058_v60, 5.0  ;;  %7410 = vadd.xlane.f32.xlu1 %v17020_v25  ;;  %v18813_v60 = vld [vmem:[#allocation22_spill] sm:$0xff] }
 0xcda   :  { %v7296_v48 = vmul.f32 1.442695, %v11564_v5  ;;  %7478 = vadd.xlane.f32.xlu0 %v7374_v28  ;;  %13262 = vmatprep.mubr.f32.mxu1 %v7374_v28 }
 0xcdb   :  { %v7294_v50 = vmul.f32 1.442695, %v11563_v30  ;;  %13263 = vmatmul.mubr.f32.gmra.mrb[146].mxu1 %v7375_v15 }
 0xcdc   :  { %14357 = vpow2.f32 %v7296_v48 }
 0xcdd   :  { %14359 = vpow2.f32 %v7294_v50  ;;  %7476 = vadd.xlane.f32.xlu1 %v7373_v38  ;;  %v13169_v2 = vpop.f32.mrb[120].mxu1 }
 0xcde   :  { %v14354_v43 = vpop.eup %14353  ;;  %v7061_v29 = vmul.f32 0.35355338, %v13169_v2  ;;  %7418 = vadd.xlane.f32.xlu0 %v17056_v49  ;;  %v6780_v26 = vpop.f32.mrb[121].mxu1 }
 0xcdf   :  { %v14356_v19 = vpop.eup %14355  ;;  %v7060_v37 = vmul.f32 0.35355338, %v6780_v26  ;;  %v7377_v35 = vmul.f32 %v17061_v1, %v14354_v43 }
 0xce0   :  { %v11566_v10 = vclamps-f32 %v7061_v29, 5.0  ;;  %v7376_v25 = vmul.f32 %v17053_v53, %v14356_v19 }
 0xce1   :  { %v11565_v4 = vclamps-f32 %v7060_v37, 5.0  ;;  %7416 = vadd.xlane.f32.xlu1 %v17046_v21 }
 0xce2   :  { %v7300_v7 = vmul.f32 1.442695, %v11566_v10  ;;  %7482 = vadd.xlane.f32.xlu0 %v7376_v25  ;;  %13265 = vmatprep.mubr.f32.mxu1 %v7376_v25 }
 0xce3   :  { %v7298_v38 = vmul.f32 1.442695, %v11565_v4  ;;  %13266 = vmatmul.mubr.f32.gmra.mrb[148].mxu1 %v7377_v35 }
 0xce4   :  { %14361 = vpow2.f32 %v7300_v7 }
 0xce5   :  { %14363 = vpow2.f32 %v7298_v38  ;;  %7480 = vadd.xlane.f32.xlu1 %v7375_v15 }
 0xce6   :  { %v14358_v49 = vpop.eup %14357  ;;  %7422 = vadd.xlane.f32.xlu0 %v17074_v9  ;;  %v7399_v9 = vpop.xlane.xlu1 %7398 }
 0xce7   :  { %v14360_v47 = vpop.eup %14359  ;;  %v7379_v1 = vmul.f32 %v17079_v39, %v14358_v49 }
 0xce8   :  { %v7378_v12 = vmul.f32 %v17071_v14, %v14360_v47  ;;  %v7401_v14 = vpop.xlane.xlu0 %7400 }
 0xce9   :  { %7420 = vadd.xlane.f32.xlu1 %v17064_v51  ;;  %v7526_v51 = vadd.f32 1e-06, %v7399_v9  ;;  %v7527_v39 = vadd.f32 1e-06, %v7401_v14 }
 0xcea   :  { %7486 = vadd.xlane.f32.xlu0 %v7378_v12  ;;  %13268 = vmatprep.mubr.f32.mxu1 %v7378_v12 }
 0xceb   :  { %13269 = vmatmul.mubr.f32.gmra.mrb[150].mxu1 %v7379_v1  ;;  %14365 = vrcp.f32 %v7526_v51 }
 0xcec   :  { %14367 = vrcp.f32 %v7527_v39 }
 0xced   :  { %7484 = vadd.xlane.f32.xlu1 %v7377_v35 }
 0xcee   :  { %v14362_v21 = vpop.eup %14361  ;;  %7426 = vadd.xlane.f32.xlu0 %v17092_v57 }
 0xcef   :  { %v14364_v53 = vpop.eup %14363  ;;  %v7381_v63 = vmul.f32 %v17097_v45, %v14362_v21 }
 0xcf0   :  { %v7380_v16 = vmul.f32 %v17089_v54, %v14364_v53 }
 0xcf1   :  { %7424 = vadd.xlane.f32.xlu1 %v17082_v62 }
 0xcf2   :  { %7490 = vadd.xlane.f32.xlu0 %v7380_v16  ;;  %13271 = vmatprep.mubr.f32.mxu1 %v7380_v16 }
 0xcf3   :  { %13272 = vmatmul.mubr.f32.gmra.mrb[152].mxu1 %v7381_v63 }
 0xcf5   :  { %7488 = vadd.xlane.f32.xlu1 %v7379_v1  ;;  %v14366_v62 = vpop.eup %14365 }
 0xcf6   :  { %7446 = vadd.xlane.f32.xlu0 %v17144_v22  ;;  %v14368_v54 = vpop.eup %14367  ;;  %v8234_v57 = vmul.f32 %v14366_v62, %v7526_v51 }
 0xcf7   :  { %v8235_v22 = vmul.f32 %v14368_v54, %v7527_v39 }
 0xcf8   :  { %v8298_v45 = vsub.f32 2.0, %v8234_v57 }
 0xcf9   :  { %7428 = vadd.xlane.f32.xlu1 %v17100_v32  ;;  %v8299_v32 = vsub.f32 2.0, %v8235_v22 }
 0xcfa   :  { %7450 = vadd.xlane.f32.xlu0 %v17152_v24 }
 0xcfb   :  { %v8363_v24 = vmul.f32 %v14368_v54, %v8299_v32 }
 0xcfd   :  { %7432 = vadd.xlane.f32.xlu1 %v17108_v8 }
 0xcfe   :  { %7454 = vadd.xlane.f32.xlu0 %v17160_v42 }
 0xd01   :  { %7430 = vadd.xlane.f32.xlu1 %v17105_v20  ;;  %v8362_v20 = vmul.f32 %v14366_v62, %v8298_v45 }
 0xd02   :  { %7458 = vadd.xlane.f32.xlu0 %v17168_v17 }
 0xd05   :  { %7436 = vadd.xlane.f32.xlu1 %v17117_v33 }
 0xd06   :  { %7494 = vadd.xlane.f32.xlu0 %v17179_v6  ;;  %v18809_v6 = vld [vmem:[#allocation18_spill] sm:$0xff] }
 0xd09   :  { %7434 = vadd.xlane.f32.xlu1 %v17114_v52 }
 0xd0a   :  { %7498 = vadd.xlane.f32.xlu0 %v17189_v41 }
 0xd0d   :  { %7440 = vadd.xlane.f32.xlu1 %v17125_v27 }
 0xd0e   :  { %v13200_v8 = vpop.f32.mrb[122].mxu1  ;;  %7502 = vadd.xlane.f32.xlu0 %v17193_v13  ;;  %v18810_v13 = vld [vmem:[#allocation19_spill] sm:$0xff] }
 0xd0f   :  { %v7656_v42 = vpop.f32.mrb[123].mxu1  ;;  %v8427_v33 = vmul.f32 %v13200_v8, %v8363_v24 }
 0xd10   :  { %v8426_v17 = vmul.f32 %v8362_v20, %v7656_v42 }
 0xd11   :  { %7438 = vadd.xlane.f32.xlu1 %v17122_v55 }
 0xd12   :  { %7506 = vadd.xlane.f32.xlu0 %v17210_v40  ;;  %13302 = vmatprep.mubr.msk.f32.mxu1 %vm1114_vm3, %v8426_v17  ;;  %v11584_v40 = vld [vmem:[%s18782_s26 + $0x28] sm:$0xff] }
 0xd13   :  { %13303 = vmatmul.mubr.msk.f32.vlgmr.msra.gmra.mrb[154].mxu1 %vm1114_vm3, %v8427_v33  ;;  %13326 = vmatprep.subr.mxu0 %v11584_v40 }
 0xd14   :  { %13327 = vmatpush3.msra.mxu0 %v11584_v40 }
 0xd15   :  { %7444 = vadd.xlane.f32.xlu1 %v17133_v59  ;;  %v11585_v59 = vld [vmem:[%s18782_s26 + $0x30] sm:$0xff] }
 0xd16   :  { %7510 = vadd.xlane.f32.xlu0 %v17214_v61  ;;  %v17288_v52 = vpop.f32.mrb[124].mxu1  ;;  %13352 = vmatprep.subr.mxu1 %v11585_v59  ;;  %v18811_v61 = vld [vmem:[#allocation20_spill] sm:$0xff] }
 0xd17   :  { %v17290_v27 = vpop.f32.mrb[125].mxu1  ;;  %13353 = vmatpush3.msra.mxu1 %v11585_v59 }
 0xd19   :  { %7442 = vadd.xlane.f32.xlu1 %v18809_v6 }
 0xd1a   :  { %7514 = vadd.xlane.f32.xlu0 %v17229_v58 }
 0xd1d   :  { %7492 = vadd.xlane.f32.xlu1 %v7381_v63 }
 0xd1e   :  { %7518 = vadd.xlane.f32.xlu0 %v17233_v18  ;;  %v17295_v55 = vpop.f32.mrb[126].mxu1 }
 0xd1f   :  { %v17297_v41 = vpop.f32.mrb[127].mxu1 }
 0xd21   :  { %7448 = vadd.xlane.f32.xlu1 %v18810_v13 }
 0xd22   :  { %7522 = vadd.xlane.f32.xlu0 %v17248_v23 }
 0xd25   :  { %7452 = vadd.xlane.f32.xlu1 %v18811_v61 }
 0xd26   :  { %v17308_v58 = vpop.f32.mrb[128].mxu1 }
 0xd27   :  { %v17310_v18 = vpop.f32.mrb[129].mxu1 }
 0xd29   :  { %7456 = vadd.xlane.f32.xlu1 %v18812_v31 }
 0xd2d   :  { %7460 = vadd.xlane.f32.xlu1 %v18813_v60 }
 0xd2e   :  { %v17314_v15 = vpop.f32.mrb[130].mxu1 }
 0xd2f   :  { %v17316_v5 = vpop.f32.mrb[131].mxu1 }
 0xd31   :  { %7496 = vadd.xlane.f32.xlu1 %v17176_v34 }
 0xd35   :  { %7500 = vadd.xlane.f32.xlu1 %v17186_v46 }
 0xd36   :  { %v17320_v23 = vpop.f32.mrb[132].mxu1 }
 0xd37   :  { %v17322_v28 = vpop.f32.mrb[133].mxu1 }
 0xd39   :  { %7504 = vadd.xlane.f32.xlu1 %v17199_v3 }
 0xd3d   :  { %7508 = vadd.xlane.f32.xlu1 %v17207_v56 }
 0xd3e   :  { %v17326_v30 = vpop.f32.mrb[134].mxu1 }
 0xd3f   :  { %v17328_v48 = vpop.f32.mrb[135].mxu1 }
 0xd41   :  { %7512 = vadd.xlane.f32.xlu1 %v17218_v0 }
 0xd45   :  { %7516 = vadd.xlane.f32.xlu1 %v17226_v36 }
 0xd46   :  { %v17332_v50 = vpop.xlane.xlu1 %7464  ;;  %v17334_v34 = vpop.f32.mrb[136].mxu1 }
 0xd47   :  { %v17336_v46 = vpop.f32.mrb[137].mxu1  ;;  %v17346_v26 = vpop.xlane.xlu0 %7462 }
 0xd49   :  { %7520 = vadd.xlane.f32.xlu1 %v17238_v44  ;;  %v17351_v44 = vld [vmem:[%s18782_s26 + $0x38] sm:$0xff] }
 0xd4a   :  { %v7405_v2 = vpop.xlane.xlu1 %7404  ;;  %13378 = vmatprep.subr.mxu0 %v17351_v44 }
 0xd4b   :  { %v7529_v3 = vadd.f32 1e-06, %v7405_v2 }
 0xd4d   :  { %14369 = vrcp.f32 %v7529_v3  ;;  %7524 = vadd.xlane.f32.xlu1 %v17245_v11 }
 0xd4e   :  { %v7403_v56 = vpop.xlane.xlu1 %7402  ;;  %v17340_v43 = vpop.f32.mrb[206].mxu0 }
 0xd4f   :  { %v7528_v29 = vadd.f32 1e-06, %v7403_v56  ;;  %v17342_v0 = vpop.f32.mrb[207].mxu0  ;;  %v17356_v10 = vpop.xlane.xlu0 %7466 }
 0xd51   :  { %14371 = vrcp.f32 %v7528_v29 }
 0xd52   :  { %v17344_v36 = vpop.xlane.xlu1 %7468 }
 0xd56   :  { %v7409_v19 = vpop.xlane.xlu1 %7408  ;;  %v17354_v11 = vpop.f32.mrb[208].mxu0 }
 0xd57   :  { %v14370_v37 = vpop.eup %14369  ;;  %v7531_v35 = vadd.f32 1e-06, %v7409_v19  ;;  %v17358_v25 = vpop.f32.mrb[209].mxu0 }
 0xd58   :  { %v8237_v4 = vmul.f32 %v14370_v37, %v7529_v3  ;;  %v17360_v1 = vpop.xlane.xlu0 %7470 }
 0xd59   :  { %14373 = vrcp.f32 %v7531_v35 }
 0xd5a   :  { %v7407_v7 = vpop.xlane.xlu1 %7406  ;;  %v8301_v49 = vsub.f32 2.0, %v8237_v4 }
 0xd5b   :  { %v14372_v38 = vpop.eup %14371  ;;  %v7530_v47 = vadd.f32 1e-06, %v7407_v7 }
 0xd5c   :  { %v8236_v12 = vmul.f32 %v14372_v38, %v7528_v29  ;;  %v8365_v16 = vmul.f32 %v14370_v37, %v8301_v49 }
 0xd5d   :  { %14375 = vrcp.f32 %v7530_v47 }
 0xd5e   :  { %v8300_v21 = vsub.f32 2.0, %v8236_v12  ;;  %v17362_v53 = vpop.xlane.xlu1 %7472  ;;  %v17364_v63 = vpop.f32.mrb[210].mxu0  ;;  %v8429_v45 = vmul.f32 %v17288_v52, %v8365_v16 }
 0xd5f   :  { %v17366_v9 = vpop.xlane.xlu0 %7474  ;;  %v17368_v14 = vpop.f32.mrb[211].mxu0 }
 0xd60   :  { %v8364_v51 = vmul.f32 %v14372_v38, %v8300_v21 }
 0xd62   :  { %v7413_v39 = vpop.xlane.xlu1 %7412  ;;  %v8428_v62 = vmul.f32 %v8364_v51, %v17290_v27 }
 0xd63   :  { %v14374_v54 = vpop.eup %14373  ;;  %v7533_v57 = vadd.f32 1e-06, %v7413_v39  ;;  %v7415_v22 = vpop.xlane.xlu0 %7414 }
 0xd64   :  { %v8239_v32 = vmul.f32 %v14374_v54, %v7531_v35  ;;  %v7534_v8 = vadd.f32 1e-06, %v7415_v22  ;;  %13305 = vmatprep.mubr.msk.f32.mxu1 %vm1114_vm3, %v8428_v62 }
 0xd65   :  { %14377 = vrcp.f32 %v7533_v57  ;;  %13306 = vmatmul.mubr.msk.f32.gmra.mrb[156].mxu1 %vm1114_vm3, %v8429_v45 }
 0xd66   :  { %14379 = vrcp.f32 %v7534_v8  ;;  %v7411_v20 = vpop.xlane.xlu1 %7410  ;;  %v17374_v24 = vpop.f32.mrb[212].mxu0  ;;  %v8303_v17 = vsub.f32 2.0, %v8239_v32 }
 0xd67   :  { %v14376_v42 = vpop.eup %14375  ;;  %v7532_v33 = vadd.f32 1e-06, %v7411_v20  ;;  %v17376_v27 = vpop.xlane.xlu0 %7478 }
 0xd68   :  { %v17378_v6 = vpop.f32.mrb[213].mxu0  ;;  %v8238_v59 = vmul.f32 %v14376_v42, %v7530_v47  ;;  %v8367_v40 = vmul.f32 %v14374_v54, %v8303_v17 }
 0xd69   :  { %14381 = vrcp.f32 %v7532_v33 }
 0xd6a   :  { %v8302_v52 = vsub.f32 2.0, %v8238_v59  ;;  %v17380_v13 = vpop.xlane.xlu1 %7476  ;;  %v8431_v35 = vmul.f32 %v17295_v55, %v8367_v40 }
 0xd6b   :  { %v7419_v61 = vpop.xlane.xlu0 %7418 }
 0xd6c   :  { %v8366_v31 = vmul.f32 %v14376_v42, %v8302_v52  ;;  %v7536_v60 = vadd.f32 1e-06, %v7419_v61 }
 0xd6e   :  { %14383 = vrcp.f32 %v7536_v60  ;;  %v7417_v2 = vpop.xlane.xlu1 %7416  ;;  %v8430_v3 = vmul.f32 %v8366_v31, %v17297_v41  ;;  %v17383_v56 = vpop.f32.mrb[214].mxu0 }
 0xd6f   :  { %v14378_v29 = vpop.eup %14377  ;;  %v7535_v19 = vadd.f32 1e-06, %v7417_v2  ;;  %v17385_v37 = vpop.xlane.xlu0 %7482 }
 0xd70   :  { %v17388_v4 = vpop.f32.mrb[215].mxu0  ;;  %v14380_v7 = vpop.eup %14379  ;;  %v8241_v38 = vmul.f32 %v14378_v29, %v7533_v57  ;;  %13308 = vmatprep.mubr.msk.f32.mxu1 %vm1114_vm3, %v8430_v3 }
 0xd71   :  { %v8242_v49 = vmul.f32 %v14380_v7, %v7534_v8  ;;  %14385 = vrcp.f32 %v7535_v19  ;;  %13309 = vmatmul.mubr.msk.f32.gmra.mrb[158].mxu1 %vm1114_vm3, %v8431_v35 }
 0xd72   :  { %v17392_v47 = vpop.xlane.xlu1 %7480  ;;  %v8305_v12 = vsub.f32 2.0, %v8241_v38 }
 0xd73   :  { %v14382_v41 = vpop.eup %14381  ;;  %v7423_v21 = vpop.xlane.xlu0 %7422  ;;  %v8306_v16 = vsub.f32 2.0, %v8242_v49 }
 0xd74   :  { %v8240_v51 = vmul.f32 %v14382_v41, %v7532_v33  ;;  %v7538_v39 = vadd.f32 1e-06, %v7423_v21  ;;  %v8369_v57 = vmul.f32 %v14378_v29, %v8305_v12  ;;  %v17419_v21 = vadd.f32 1e-06, %v17356_v10 }
 0xd75   :  { %v8370_v20 = vmul.f32 %v14380_v7, %v8306_v16 }
 0xd76   :  { %v8304_v62 = vsub.f32 2.0, %v8240_v51  ;;  %14387 = vrcp.f32 %v7538_v39  ;;  %v7421_v55 = vpop.xlane.xlu1 %7420  ;;  %v17394_v54 = vpop.f32.mrb[216].mxu0  ;;  %v8433_v31 = vmul.f32 %v17308_v58, %v8369_v57 }
 0xd77   :  { %v7537_v22 = vadd.f32 1e-06, %v7421_v55  ;;  %v17396_v45 = vpop.xlane.xlu0 %7486  ;;  %v17398_v32 = vpop.f32.mrb[217].mxu0  ;;  %v8434_v29 = vmul.f32 %v8370_v20, %v17316_v5  ;;  %v17416_v5 = vadd.f32 1e-06, %v17332_v50 }
 0xd78   :  { %v14384_v8 = vpop.eup %14383  ;;  %v8368_v42 = vmul.f32 %v14382_v41, %v8304_v62  ;;  %v17425_v55 = vadd.f32 1e-06, %v17344_v36 }
 0xd79   :  { %v8244_v17 = vmul.f32 %v14384_v8, %v7536_v60  ;;  %14389 = vrcp.f32 %v7537_v22 }
 0xd7a   :  { %v17400_v59 = vpop.xlane.xlu1 %7484  ;;  %v8432_v33 = vmul.f32 %v8368_v42, %v17310_v18 }
 0xd7b   :  { %v14386_v52 = vpop.eup %14385  ;;  %v8308_v40 = vsub.f32 2.0, %v8244_v17  ;;  %v7427_v61 = vpop.xlane.xlu0 %7426  ;;  %v17444_v17 = vadd.f32 1e-06, %v17362_v53 }
 0xd7c   :  { %v8243_v2 = vmul.f32 %v14386_v52, %v7535_v19  ;;  %v7540_v3 = vadd.f32 1e-06, %v7427_v61  ;;  %13311 = vmatprep.mubr.msk.f32.mxu1 %vm1114_vm3, %v8432_v33  ;;  %v17413_v19 = vadd.f32 1e-06, %v17346_v26 }
 0xd7d   :  { %13312 = vmatmul.mubr.msk.f32.gmra.mrb[160].mxu1 %vm1114_vm3, %v8433_v31  ;;  %v8372_v18 = vmul.f32 %v14384_v8, %v8308_v40 }
 0xd7e   :  { %v8307_v35 = vsub.f32 2.0, %v8243_v2  ;;  %14391 = vrcp.f32 %v7540_v3  ;;  %v7425_v60 = vpop.xlane.xlu1 %7424  ;;  %13314 = vmatprep.mubr.msk.f32.mxu1 %vm1114_vm3, %v8434_v29  ;;  %v17453_v29 = vadd.f32 1e-06, %v17366_v9 }
 0xd7f   :  { %v17408_v7 = vpop.f32.mrb[218].mxu0  ;;  %v7539_v38 = vadd.f32 1e-06, %v7425_v60  ;;  %v17427_v26 = vpop.xlane.xlu0 %7490  ;;  %v8436_v8 = vmul.f32 %v8372_v18, %v17322_v28 }
 0xd80   :  { %18814 = vst [vmem:[#allocation18_spill] sm:$0xff] %v17408_v7  ;;  %v17410_v49 = vpop.f32.mrb[219].mxu0  ;;  %v14388_v58 = vpop.eup %14387  ;;  %v8371_v41 = vmul.f32 %v14386_v52, %v8307_v35 }
 0xd81   :  { %v8246_v12 = vmul.f32 %v14388_v58, %v7538_v39  ;;  %14393 = vrcp.f32 %v7539_v38 }
 0xd82   :  { %v17421_v16 = vpop.xlane.xlu1 %7488  ;;  %v8435_v51 = vmul.f32 %v17314_v15, %v8371_v41  ;;  %14395 = vrcp.f32 %v17413_v19  ;;  %v17436_v15 = vadd.f32 1e-06, %v17360_v1 }
 0xd83   :  { %v14390_v62 = vpop.eup %14389  ;;  %v8310_v57 = vsub.f32 2.0, %v8246_v12  ;;  %14397 = vrcp.f32 %v17416_v5  ;;  %v17446_v40 = vpop.xlane.xlu0 %7446 }
 0xd84   :  { %v8245_v50 = vmul.f32 %v14390_v62, %v7537_v22  ;;  %13315 = vmatmul.mubr.msk.f32.gmra.mrb[162].mxu1 %vm1114_vm3, %v8435_v51  ;;  %14399 = vrcp.f32 %v17419_v21 }
 0xd85   :  { %13317 = vmatprep.mubr.msk.f32.mxu1 %vm1114_vm3, %v8436_v8  ;;  %14401 = vrcp.f32 %v17425_v55  ;;  %v8374_v28 = vmul.f32 %v14388_v58, %v8310_v57 }
 0xd86   :  { %v8309_v36 = vsub.f32 2.0, %v8245_v50  ;;  %v7429_v10 = vpop.xlane.xlu1 %7428  ;;  %v17438_v39 = vpop.f32.mrb[220].mxu0 }
 0xd87   :  { %18815 = vst [vmem:[#allocation19_spill] sm:$0xff] %v17438_v39  ;;  %v7541_v20 = vadd.f32 1e-06, %v7429_v10  ;;  %v17441_v22 = vpop.f32.mrb[221].mxu0  ;;  %v8438_v35 = vmul.f32 %v8374_v28, %v17328_v48 }
 0xd88   :  { %v14392_v42 = vpop.eup %14391  ;;  %v8373_v33 = vmul.f32 %v14390_v62, %v8309_v36  ;;  %v17467_v62 = vpop.xlane.xlu0 %7450 }
 0xd89   :  { %v8248_v52 = vmul.f32 %v14392_v42, %v7540_v3  ;;  %14403 = vrcp.f32 %v7541_v20  ;;  %v17460_v3 = vadd.f32 1e-06, %v17380_v13 }
 0xd8a   :  { %14405 = vrcp.f32 %v17436_v15  ;;  %v7433_v1 = vpop.xlane.xlu1 %7432  ;;  %v8437_v61 = vmul.f32 %v17320_v23, %v8373_v33  ;;  %v17450_v31 = vpop.f32.mrb[222].mxu0 }
 0xd8b   :  { %18816 = vst [vmem:[#allocation20_spill] sm:$0xff] %v17450_v31  ;;  %v14394_v2 = vpop.eup %14393  ;;  %v8312_v53 = vsub.f32 2.0, %v8248_v52  ;;  %v7543_v60 = vadd.f32 1e-06, %v7433_v1  ;;  %v17456_v18 = vpop.f32.mrb[223].mxu0  ;;  %14407 = vrcp.f32 %v17444_v17 }
 0xd8c   :  { %18817 = vst [vmem:[#allocation21_spill] sm:$0xff] %v17456_v18  ;;  %v8247_v58 = vmul.f32 %v14394_v2, %v7539_v38  ;;  %13318 = vmatmul.mubr.msk.f32.gmra.mrb[164].mxu1 %vm1114_vm3, %v8437_v61  ;;  %v14396_v23 = vpop.eup %14395  ;;  %v17531_v18 = vadd.f32 1e-06, %v17400_v59 }
 0xd8d   :  { %14409 = vrcp.f32 %v7543_v60  ;;  %13320 = vmatprep.mubr.msk.f32.mxu1 %vm1114_vm3, %v8438_v35  ;;  %v14398_v48 = vpop.eup %14397  ;;  %v8376_v51 = vmul.f32 %v14392_v42, %v8312_v53  ;;  %v8266_v10 = vmul.f32 %v14396_v23, %v17413_v19  ;;  %v17485_v19 = vadd.f32 1e-06, %v17376_v27 }
 0xd8e   :  { %v8311_v9 = vsub.f32 2.0, %v8247_v58  ;;  %v7431_v41 = vpop.xlane.xlu1 %7430  ;;  %v17464_v12 = vpop.f32.mrb[138].mxu1  ;;  %14411 = vrcp.f32 %v17453_v29  ;;  %v8267_v33 = vmul.f32 %v14398_v48, %v17416_v5  ;;  %v17499_v27 = vadd.f32 1e-06, %v17392_v47 }
 0xd8f   :  { %v7542_v57 = vadd.f32 1e-06, %v7431_v41  ;;  %v7946_v13 = vpop.f32.mrb[139].mxu1  ;;  %v14400_v8 = vpop.eup %14399  ;;  %14413 = vrcp.f32 %v17460_v3  ;;  %v8440_v35 = vmul.f32 %v8376_v51, %v17336_v46 }
 0xd90   :  { %v8375_v38 = vmul.f32 %v14394_v2, %v8311_v9  ;;  %v17470_v50 = vpop.f32.mrb[224].mxu0  ;;  %v14402_v36 = vpop.eup %14401  ;;  %v8268_v61 = vmul.f32 %v14400_v8, %v17419_v21 }
 0xd91   :  { %18818 = vst [vmem:[#allocation22_spill] sm:$0xff] %v17470_v50  ;;  %14415 = vrcp.f32 %v7542_v57  ;;  %v17473_v28 = vpop.f32.mrb[225].mxu0  ;;  %v8269_v58 = vmul.f32 %v14402_v36, %v17425_v55  ;;  %v17490_v41 = vpop.xlane.xlu0 %7454  ;;  %v8331_v55 = vsub.f32 2.0, %v8267_v33 }
 0xd92   :  { %18819 = vst [vmem:[#allocation23_spill] sm:$0xff] %v17473_v28  ;;  %v7437_v52 = vpop.xlane.xlu1 %7436  ;;  %v8439_v42 = vmul.f32 %v17326_v30, %v8375_v38  ;;  %v8330_v30 = vsub.f32 2.0, %v8266_v10  ;;  %v8332_v10 = vsub.f32 2.0, %v8268_v61 }
 0xd93   :  { %v14404_v1 = vpop.eup %14403  ;;  %v17479_v53 = vadd.f32 1e-06, %v7437_v52  ;;  %v8333_v50 = vsub.f32 2.0, %v8269_v58 }
 0xd94   :  { %v17481_v2 = vpop.eup %14405  ;;  %v8249_v9 = vmul.f32 %v14404_v1, %v7541_v20  ;;  %13321 = vmatmul.mubr.msk.f32.gmra.mrb[166].mxu1 %vm1114_vm3, %v8439_v42  ;;  %v17488_v5 = vpop.f32.mrb[226].mxu0  ;;  %v8396_v7 = vmul.f32 %v14400_v8, %v8332_v10  ;;  %v17546_v8 = vadd.f32 1e-06, %v17446_v40 }
 0xd95   :  { %18820 = vst [vmem:[#allocation24_spill] sm:$0xff] %v17488_v5  ;;  %14417 = vrcp.f32 %v17479_v53  ;;  %13323 = vmatprep.mubr.msk.f32.mxu1 %vm1114_vm3, %v8440_v35  ;;  %v17494_v46 = vpop.f32.mrb[227].mxu0  ;;  %v17496_v21 = vpop.eup %14407  ;;  %v8270_v47 = vmul.f32 %v17481_v2, %v17436_v15  ;;  %v17524_v15 = vadd.f32 1e-06, %v17385_v37  ;;  %v8397_v39 = vmul.f32 %v14402_v36, %v8333_v50 }
 0xd96   :  { %18821 = vst [vmem:[#allocation25_spill] sm:$0xff] %v17494_v46  ;;  %v8313_v20 = vsub.f32 2.0, %v8249_v9  ;;  %v7435_v51 = vpop.xlane.xlu1 %7434  ;;  %v17501_v38 = vpop.f32.mrb[140].mxu1  ;;  %14419 = vrcp.f32 %v17485_v19  ;;  %v8394_v9 = vmul.f32 %v14396_v23, %v8330_v30  ;;  %v17519_v58 = vmul.f32 %v17496_v21, %v17444_v17 }
 0xd97   :  { %v14410_v52 = vpop.eup %14409  ;;  %v17503_v42 = vadd.f32 1e-06, %v7435_v51  ;;  %v7956_v5 = vpop.f32.mrb[141].mxu1 }
 0xd98   :  { %v8377_v35 = vmul.f32 %v14404_v1, %v8313_v20  ;;  %v8251_v46 = vmul.f32 %v14410_v52, %v7543_v60  ;;  %v17506_v28 = vpop.f32.mrb[228].mxu0  ;;  %v17508_v33 = vpop.eup %14411  ;;  %v8395_v60 = vmul.f32 %v14398_v48, %v8331_v55  ;;  %v8458_v30 = vmul.f32 %v8394_v9, %v7946_v13 }
 0xd99   :  { %18822 = vst [vmem:[#allocation26_spill] sm:$0xff] %v17506_v28  ;;  %14421 = vrcp.f32 %v17503_v42  ;;  %v17513_v31 = vpop.f32.mrb[229].mxu0  ;;  %v17515_v61 = vpop.eup %14413  ;;  %v8272_v37 = vmul.f32 %v17508_v33, %v17453_v29  ;;  %v8460_v10 = vmul.f32 %v8396_v7, %v7956_v5  ;;  %v17553_v9 = vadd.f32 1e-06, %v17396_v45 }
 0xd9a   :  { %18823 = vst [vmem:[#allocation27_spill] sm:$0xff] %v17513_v31  ;;  %14423 = vrcp.f32 %v17499_v27  ;;  %v7441_v1 = vpop.xlane.xlu1 %7440  ;;  %v8441_v20 = vmul.f32 %v17334_v34, %v8377_v35  ;;  %v8315_v23 = vsub.f32 2.0, %v8251_v46  ;;  %v17526_v28 = vpop.xlane.xlu0 %7458  ;;  %v8334_v34 = vsub.f32 2.0, %v8270_v47 }
 0xd9b   :  { %v14416_v51 = vpop.eup %14415  ;;  %v17528_v31 = vadd.f32 1e-06, %v7441_v1  ;;  %v8273_v13 = vmul.f32 %v17515_v61, %v17460_v3  ;;  %v8459_v36 = vmul.f32 %v17464_v12, %v8395_v60  ;;  %v8336_v60 = vsub.f32 2.0, %v8272_v37 }
 0xd9c   :  { %v8250_v17 = vmul.f32 %v14416_v51, %v7542_v57  ;;  %13324 = vmatmul.mubr.msk.f32.gmra.mrb[168].mxu1 %vm1114_vm3, %v8441_v20  ;;  %v17534_v48 = vpop.f32.mrb[230].mxu0  ;;  %v8335_v57 = vsub.f32 2.0, %v17519_v58  ;;  %v8379_v3 = vmul.f32 %v14410_v52, %v8315_v23  ;;  %v8398_v7 = vmul.f32 %v17481_v2, %v8334_v34 }
 0xd9d   :  { %14425 = vrcp.f32 %v17528_v31  ;;  %13354 = vmatprep.mubr.msk.f32.mxu1 %vm1114_vm3, %v8458_v30  ;;  %v17542_v59 = vpop.f32.mrb[231].mxu0  ;;  %v8337_v1 = vsub.f32 2.0, %v8273_v13  ;;  %v8461_v52 = vmul.f32 %v17501_v38, %v8397_v39  ;;  %v8400_v39 = vmul.f32 %v17508_v33, %v8336_v60 }
 0xd9e   :  { %v8314_v50 = vsub.f32 2.0, %v8250_v17  ;;  %v7439_v46 = vpop.xlane.xlu1 %7438  ;;  %v13258_v55 = vpop.f32.mrb[142].mxu1  ;;  %14427 = vrcp.f32 %v17524_v15  ;;  %v8443_v17 = vmul.f32 %v17340_v43, %v8379_v3 }
 0xd9f   :  { %v14418_v29 = vpop.eup %14417  ;;  %v17550_v35 = vadd.f32 1e-06, %v7439_v46  ;;  %v7966_v47 = vpop.f32.mrb[143].mxu1  ;;  %14429 = vrcp.f32 %v17531_v18  ;;  %v8401_v3 = vmul.f32 %v17515_v61, %v8337_v1 }
 0xda0   :  { %v8378_v40 = vmul.f32 %v14416_v51, %v8314_v50  ;;  %v8253_v58 = vmul.f32 %v14418_v29, %v17479_v53  ;;  %13355 = vmatmul.mubr.msk.f32.vlgmr.msra.gmra.mrb[170].mxu1 %vm1114_vm3, %v8459_v36  ;;  %v17558_v12 = vpop.f32.mrb[232].mxu0  ;;  %v17560_v20 = vpop.xlane.xlu0 %7494  ;;  %v17570_v53 = vadd.f32 1e-06, %v17421_v16  ;;  %v8462_v34 = vmul.f32 %v8398_v7, %v7966_v47 }
 0xda1   :  { %14431 = vrcp.f32 %v17550_v35  ;;  %13357 = vmatprep.mubr.msk.f32.mxu1 %vm1114_vm3, %v8460_v10  ;;  %v17565_v45 = vpop.f32.mrb[233].mxu0  ;;  %v17567_v5 = vpop.eup %14419  ;;  %v8399_v50 = vmul.f32 %v17496_v21, %v8335_v57  ;;  %v17596_v21 = vadd.f32 1e-06, %v17467_v62 }
 0xda2   :  { %14433 = vrcp.f32 %v17546_v8  ;;  %v7445_v51 = vpop.xlane.xlu1 %7444  ;;  %v8442_v23 = vmul.f32 %v8378_v40, %v17342_v0  ;;  %v8317_v2 = vsub.f32 2.0, %v8253_v58  ;;  %v8274_v43 = vmul.f32 %v17567_v5, %v17485_v19 }
 0xda3   :  { %v14422_v30 = vpop.eup %14421  ;;  %v17576_v37 = vadd.f32 1e-06, %v7445_v51  ;;  %14435 = vrcp.f32 %v17553_v9  ;;  %v8463_v57 = vmul.f32 %v13258_v55, %v8399_v50  ;;  %v17608_v55 = vadd.f32 1e-06, %v17490_v41 }
 0xda4   :  { %v17578_v13 = vpop.eup %14423  ;;  %v8252_v16 = vmul.f32 %v14422_v30, %v17503_v42  ;;  %13328 = vmatprep.mubr.msk.f32.mxu0 %vm1114_vm3, %v8442_v23  ;;  %13358 = vmatmul.mubr.msk.f32.gmra.mrb[172].mxu1 %vm1114_vm3, %v8461_v52  ;;  %v17585_v0 = vpop.f32.mrb[234].mxu0  ;;  %v8381_v33 = vmul.f32 %v14418_v29, %v8317_v2  ;;  %v17617_v29 = vadd.f32 1e-06, %v17427_v26  ;;  %v8338_v41 = vsub.f32 2.0, %v8274_v43 }
 0xda5   :  { %14437 = vrcp.f32 %v17576_v37  ;;  %13329 = vmatmul.mubr.msk.f32.vlgmr.msra.gmra.mrb[238].mxu0 %vm1114_vm3, %v8443_v17  ;;  %13360 = vmatprep.mubr.msk.f32.mxu1 %vm1114_vm3, %v8462_v34  ;;  %v17593_v38 = vpop.f32.mrb[235].mxu0  ;;  %v8275_v10 = vmul.f32 %v17578_v13, %v17499_v27  ;;  %v17603_v47 = vpop.xlane.xlu0 %7498  ;;  %v17632_v34 = vadd.f32 1e-06, %v17526_v28 }
 0xda6   :  { %v8316_v42 = vsub.f32 2.0, %v8252_v16  ;;  %v7443_v36 = vpop.xlane.xlu1 %7442  ;;  %v13261_v46 = vpop.f32.mrb[144].mxu1  ;;  %13379 = vmatpush3.msra.mxu0 %v17351_v44  ;;  %14439 = vrcp.f32 %v17570_v53  ;;  %v8445_v26 = vmul.f32 %v17354_v11, %v8381_v33 }
 0xda7   :  { %v14426_v19 = vpop.eup %14425  ;;  %v17605_v40 = vadd.f32 1e-06, %v7443_v36  ;;  %v7976_v62 = vpop.f32.mrb[145].mxu1 }
 0xda8   :  { %v8380_v58 = vmul.f32 %v14422_v30, %v8316_v42  ;;  %v8255_v61 = vmul.f32 %v14426_v19, %v17528_v31  ;;  %v8464_v60 = vmul.f32 %v8400_v39, %v7976_v62  ;;  %13361 = vmatmul.mubr.msk.f32.gmra.mrb[174].mxu1 %vm1114_vm3, %v8463_v57  ;;  %v17612_v44 = vpop.f32.mrb[236].mxu0  ;;  %v17614_v27 = vpop.eup %14427  ;;  %v8465_v31 = vmul.f32 %v13261_v46, %v8401_v3 }
 0xda9   :  { %14441 = vrcp.f32 %v17605_v40  ;;  %v17620_v1 = vpop.f32.mrb[237].mxu0  ;;  %v17622_v7 = vpop.eup %14429  ;;  %v8339_v30 = vsub.f32 2.0, %v8275_v10  ;;  %v8402_v57 = vmul.f32 %v17567_v5, %v8338_v41 }
 0xdaa   :  { %14443 = vrcp.f32 %v17596_v21  ;;  %v7493_v52 = vpop.xlane.xlu1 %7492  ;;  %13363 = vmatprep.mubr.msk.f32.mxu1 %vm1114_vm3, %v8464_v60  ;;  %v8444_v51 = vmul.f32 %v8380_v58, %v17358_v25  ;;  %v8319_v17 = vsub.f32 2.0, %v8255_v61  ;;  %v8276_v25 = vmul.f32 %v17614_v27, %v17524_v15  ;;  %v17640_v50 = vpop.xlane.xlu0 %7502 }
 0xdab   :  { %v14432_v23 = vpop.eup %14431  ;;  %14445 = vrcp.f32 %v17608_v55  ;;  %v8277_v28 = vmul.f32 %v17622_v7, %v17531_v18  ;;  %v8403_v10 = vmul.f32 %v17578_v13, %v8339_v30 }
 0xdac   :  { %v17628_v2 = vpop.eup %14433  ;;  %v8254_v16 = vmul.f32 %v14432_v23, %v17550_v35  ;;  %13331 = vmatprep.mubr.msk.f32.mxu0 %vm1114_vm3, %v8444_v51  ;;  %13364 = vmatmul.mubr.msk.f32.gmra.mrb[176].mxu1 %vm1114_vm3, %v8465_v31  ;;  %14447 = vrcp.f32 %v17617_v29  ;;  %v17647_v35 = vadd.f32 1e-06, %v7493_v52  ;;  %v8383_v46 = vmul.f32 %v14426_v19, %v8319_v17 }
 0xdad   :  { %13332 = vmatmul.mubr.msk.f32.gmra.mrb[240].mxu0 %vm1114_vm3, %v8445_v26  ;;  %v17643_v11 = vpop.eup %14435  ;;  %v8258_v15 = vmul.f32 %v17628_v2, %v17546_v8  ;;  %14449 = vrcp.f32 %v17632_v34  ;;  %v8340_v60 = vsub.f32 2.0, %v8276_v25  ;;  %v8341_v41 = vsub.f32 2.0, %v8277_v28 }
 0xdae   :  { %v8318_v43 = vsub.f32 2.0, %v8254_v16  ;;  %v7449_v39 = vpop.xlane.xlu1 %7448  ;;  %v13264_v42 = vpop.f32.mrb[146].mxu1  ;;  %v17661_v8 = vadd.f32 1e-06, %v17560_v20  ;;  %v17681_v16 = vadd.f32 1e-06, %v17603_v47 }
 0xdaf   :  { %v14438_v36 = vpop.eup %14437  ;;  %v17652_v3 = vadd.f32 1e-06, %v7449_v39  ;;  %v7986_v33 = vpop.f32.mrb[147].mxu1  ;;  %v8467_v5 = vmul.f32 %v13264_v42, %v8403_v10  ;;  %v8322_v17 = vsub.f32 2.0, %v8258_v15 }
 0xdb0   :  { %v8382_v18 = vmul.f32 %v14432_v23, %v8318_v43  ;;  %v8257_v62 = vmul.f32 %v14438_v36, %v17576_v37  ;;  %v8466_v58 = vmul.f32 %v8402_v57, %v7986_v33  ;;  %v17657_v61 = vpop.eup %14439  ;;  %v8447_v37 = vmul.f32 %v17364_v63, %v8383_v46  ;;  %v7507_v52 = vpop.xlane.xlu0 %7506 }
 0xdb1   :  { %14451 = vrcp.f32 %v17652_v3  ;;  %v8404_v63 = vmul.f32 %v17614_v27, %v8340_v60  ;;  %v8405_v43 = vmul.f32 %v17622_v7, %v8341_v41  ;;  %v8386_v46 = vmul.f32 %v17628_v2, %v8322_v17 }
 0xdb2   :  { %v8446_v19 = vmul.f32 %v8382_v18, %v17368_v14  ;;  %14453 = vrcp.f32 %v17647_v35  ;;  %v7453_v13 = vpop.xlane.xlu1 %7452  ;;  %13366 = vmatprep.mubr.msk.f32.mxu1 %vm1114_vm3, %v8466_v58  ;;  %v8321_v51 = vsub.f32 2.0, %v8257_v62  ;;  %v8278_v14 = vmul.f32 %v17643_v11, %v17553_v9 }
 0xdb3   :  { %v14442_v31 = vpop.eup %14441  ;;  %v17667_v23 = vadd.f32 1e-06, %v7453_v13  ;;  %13367 = vmatmul.mubr.msk.f32.gmra.mrb[178].mxu1 %vm1114_vm3, %v8467_v5  ;;  %v8279_v9 = vmul.f32 %v17657_v61, %v17570_v53  ;;  %v8450_v13 = vmul.f32 %v8386_v46, %v17388_v4 }
 0xdb4   :  { %v14444_v30 = vpop.eup %14443  ;;  %v8256_v20 = vmul.f32 %v14442_v31, %v17605_v40  ;;  %13334 = vmatprep.mubr.msk.f32.mxu0 %vm1114_vm3, %v8446_v19  ;;  %v8385_v27 = vmul.f32 %v14438_v36, %v8321_v51  ;;  %v8342_v33 = vsub.f32 2.0, %v8278_v14  ;;  %v7511_v7 = vpop.xlane.xlu0 %7510 }
 0xdb5   :  { %14455 = vrcp.f32 %v17667_v23  ;;  %13335 = vmatmul.mubr.msk.f32.gmra.mrb[242].mxu0 %vm1114_vm3, %v8447_v37  ;;  %v17677_v26 = vpop.eup %14445  ;;  %v8260_v42 = vmul.f32 %v14444_v30, %v17596_v21  ;;  %v17701_v21 = vadd.f32 1e-06, %v17640_v50  ;;  %v8343_v60 = vsub.f32 2.0, %v8279_v9 }
 0xdb6   :  { %14457 = vrcp.f32 %v17661_v8  ;;  %v8320_v25 = vsub.f32 2.0, %v8256_v20  ;;  %v7457_v40 = vpop.xlane.xlu1 %7456  ;;  %v13267_v28 = vpop.f32.mrb[148].mxu1  ;;  %v8262_v18 = vmul.f32 %v17677_v26, %v17608_v55  ;;  %v8449_v41 = vmul.f32 %v17374_v24, %v8385_v27 }
 0xdb7   :  { %v17684_v39 = vpop.eup %14447  ;;  %v17689_v57 = vadd.f32 1e-06, %v7457_v40  ;;  %v7996_v15 = vpop.f32.mrb[149].mxu1  ;;  %v8469_v62 = vmul.f32 %v13267_v28, %v8405_v43  ;;  %v8324_v5 = vsub.f32 2.0, %v8260_v42  ;;  %v17712_v50 = vadd.f32 1e-06, %v7507_v52 }
 0xdb8   :  { %v8384_v47 = vmul.f32 %v14442_v31, %v8320_v25  ;;  %v8468_v10 = vmul.f32 %v8404_v63, %v7996_v15  ;;  %v14450_v58 = vpop.eup %14449  ;;  %v17697_v53 = vmul.f32 %v17684_v39, %v17617_v29  ;;  %v8326_v31 = vsub.f32 2.0, %v8262_v18  ;;  %v7515_v14 = vpop.xlane.xlu0 %7514 }
 0xdb9   :  { %14459 = vrcp.f32 %v17689_v57  ;;  %v8264_v37 = vmul.f32 %v14450_v58, %v17632_v34  ;;  %v8388_v20 = vmul.f32 %v14444_v30, %v8324_v5  ;;  %v8407_v25 = vmul.f32 %v17657_v61, %v8343_v60 }
 0xdba   :  { %14461 = vrcp.f32 %v17681_v16  ;;  %v8448_v2 = vmul.f32 %v8384_v47, %v17378_v6  ;;  %v7461_v36 = vpop.xlane.xlu1 %7460  ;;  %13369 = vmatprep.mubr.msk.f32.mxu1 %vm1114_vm3, %v8468_v10  ;;  %v8344_v24 = vsub.f32 2.0, %v17697_v53  ;;  %v17732_v15 = vadd.f32 1e-06, %v7511_v7 }
 0xdbb   :  { %v14452_v55 = vpop.eup %14451  ;;  %v17706_v19 = vadd.f32 1e-06, %v7461_v36  ;;  %13370 = vmatmul.mubr.msk.f32.gmra.mrb[180].mxu1 %vm1114_vm3, %v8469_v62  ;;  %v8328_v27 = vsub.f32 2.0, %v8264_v37  ;;  %v8452_v10 = vmul.f32 %v8388_v20, %v17398_v32 }
 0xdbc   :  { %v17709_v29 = vpop.eup %14453  ;;  %v8259_v6 = vmul.f32 %v14452_v55, %v17652_v3  ;;  %13337 = vmatprep.mubr.msk.f32.mxu0 %vm1114_vm3, %v8448_v2  ;;  %v8406_v3 = vmul.f32 %v17643_v11, %v8342_v33  ;;  %v8390_v11 = vmul.f32 %v17677_v26, %v8326_v31  ;;  %v7519_v2 = vpop.xlane.xlu0 %7518  ;;  %v8408_v32 = vmul.f32 %v17684_v39, %v8344_v24 }
 0xdbd   :  { %14463 = vrcp.f32 %v17706_v19  ;;  %13338 = vmatmul.mubr.msk.f32.gmra.mrb[244].mxu0 %vm1114_vm3, %v8449_v41  ;;  %v8281_v34 = vmul.f32 %v17709_v29, %v17647_v35  ;;  %v8392_v53 = vmul.f32 %v14450_v58, %v8328_v27 }
 0xdbe   :  { %14465 = vrcp.f32 %v17701_v21  ;;  %v8323_v51 = vsub.f32 2.0, %v8259_v6  ;;  %v7497_v17 = vpop.xlane.xlu1 %7496  ;;  %v13270_v4 = vpop.f32.mrb[150].mxu1  ;;  %13340 = vmatprep.mubr.msk.f32.mxu0 %vm1114_vm3, %v8450_v13 }
 0xdbf   :  { %v14456_v52 = vpop.eup %14455  ;;  %v17725_v63 = vadd.f32 1e-06, %v7497_v17  ;;  %v8006_v40 = vpop.f32.mrb[151].mxu1  ;;  %14467 = vrcp.f32 %v17712_v50  ;;  %v8471_v30 = vmul.f32 %v13270_v4, %v8407_v25  ;;  %v8345_v33 = vsub.f32 2.0, %v8281_v34 }
 0xdc0   :  { %v14458_v28 = vpop.eup %14457  ;;  %v8387_v43 = vmul.f32 %v14452_v55, %v8323_v51  ;;  %v8261_v9 = vmul.f32 %v14456_v52, %v17667_v23  ;;  %v8470_v42 = vmul.f32 %v8406_v3, %v8006_v40  ;;  %v7523_v34 = vpop.xlane.xlu0 %7522 }
 0xdc1   :  { %14469 = vrcp.f32 %v17725_v63  ;;  %v8282_v23 = vmul.f32 %v14458_v28, %v17661_v8  ;;  %v17748_v8 = vadd.f32 1e-06, %v7515_v14  ;;  %v8409_v13 = vmul.f32 %v17709_v29, %v8345_v33  ;;  %v18824_v29 = vld [vmem:[#allocation18_spill] sm:$0xff] }
 0xdc2   :  { %v8451_v35 = vmul.f32 %v17383_v56, %v8387_v43  ;;  %v8325_v46 = vsub.f32 2.0, %v8261_v9  ;;  %v7501_v61 = vpop.xlane.xlu1 %7500  ;;  %13372 = vmatprep.mubr.msk.f32.mxu1 %vm1114_vm3, %v8470_v42  ;;  %v8454_v56 = vmul.f32 %v8390_v11, %v17410_v49  ;;  %v17769_v42 = vadd.f32 1e-06, %v7523_v34 }
 0xdc3   :  { %v14460_v47 = vpop.eup %14459  ;;  %v17738_v18 = vadd.f32 1e-06, %v7501_v61  ;;  %13373 = vmatmul.mubr.msk.f32.gmra.mrb[182].mxu1 %vm1114_vm3, %v8471_v30  ;;  %v8346_v41 = vsub.f32 2.0, %v8282_v23 }
 0xdc4   :  { %v14462_v26 = vpop.eup %14461  ;;  %v8389_v62 = vmul.f32 %v14456_v52, %v8325_v46  ;;  %v8263_v7 = vmul.f32 %v14460_v47, %v17689_v57  ;;  %13341 = vmatmul.mubr.msk.f32.gmra.mrb[246].mxu0 %vm1114_vm3, %v8451_v35  ;;  %v18826_v46 = vld [vmem:[#allocation21_spill] sm:$0xff] }
 0xdc5   :  { %14471 = vrcp.f32 %v17738_v18  ;;  %13343 = vmatprep.mubr.msk.f32.mxu0 %vm1114_vm3, %v8452_v10  ;;  %v8284_v49 = vmul.f32 %v14462_v26, %v17681_v16  ;;  %v17758_v16 = vadd.f32 1e-06, %v7519_v2 }
 0xdc6   :  { %14473 = vrcp.f32 %v17732_v15  ;;  %v8453_v36 = vmul.f32 %v17394_v54, %v8389_v62  ;;  %v8327_v55 = vsub.f32 2.0, %v8263_v7  ;;  %v7505_v57 = vpop.xlane.xlu1 %7504  ;;  %v13273_v60 = vpop.f32.mrb[152].mxu1  ;;  %v8456_v54 = vmul.f32 %v8392_v53, %v17441_v22  ;;  %v18827_v62 = vld [vmem:[#allocation20_spill] sm:$0xff] }
 0xdc7   :  { %v14464_v5 = vpop.eup %14463  ;;  %v7579_v58 = vadd.f32 1e-06, %v7505_v57  ;;  %v8016_v6 = vpop.f32.mrb[153].mxu1  ;;  %v8473_v51 = vmul.f32 %v13273_v60, %v8409_v13  ;;  %v8348_v20 = vsub.f32 2.0, %v8284_v49  ;;  %v8410_v22 = vmul.f32 %v14458_v28, %v8346_v41  ;;  %v18829_v49 = vld [vmem:[#allocation22_spill] sm:$0xff] }
 0xdc8   :  { %v14466_v31 = vpop.eup %14465  ;;  %v8391_v37 = vmul.f32 %v14460_v47, %v8327_v55  ;;  %v8265_v39 = vmul.f32 %v14464_v5, %v17706_v19  ;;  %v8472_v24 = vmul.f32 %v8408_v32, %v8016_v6  ;;  %13344 = vmatmul.mubr.msk.f32.gmra.mrb[248].mxu0 %vm1114_vm3, %v8453_v36  ;;  %v18828_v32 = vld [vmem:[#allocation23_spill] sm:$0xff] }
 0xdc9   :  { %14475 = vrcp.f32 %v7579_v58  ;;  %13346 = vmatprep.mubr.msk.f32.mxu0 %vm1114_vm3, %v8454_v56  ;;  %v14468_v17 = vpop.eup %14467  ;;  %v8286_v14 = vmul.f32 %v14466_v31, %v17701_v21  ;;  %v18825_v21 = vld [vmem:[#allocation19_spill] sm:$0xff]  ;;  %v8474_v61 = vmul.f32 %v8410_v22, %v18826_v46 }
 0xdca   :  { %14477 = vrcp.f32 %v17748_v8  ;;  %v8455_v4 = vmul.f32 %v18824_v29, %v8391_v37  ;;  %v8329_v3 = vsub.f32 2.0, %v8265_v39  ;;  %v7509_v52 = vpop.xlane.xlu1 %7508  ;;  %13375 = vmatprep.mubr.msk.f32.mxu1 %vm1114_vm3, %v8472_v24  ;;  %v8288_v9 = vmul.f32 %v14468_v17, %v17712_v50 }
 0xdcb   :  { %v14470_v19 = vpop.eup %14469  ;;  %v7581_v25 = vadd.f32 1e-06, %v7509_v52  ;;  %13376 = vmatmul.mubr.msk.f32.gmra.mrb[184].mxu1 %vm1114_vm3, %v8473_v51  ;;  %v8350_v35 = vsub.f32 2.0, %v8286_v14  ;;  %v18832_v52 = vld [vmem:[#allocation24_spill] sm:$0xff] }
 0xdcc   :  { %v8393_v40 = vmul.f32 %v14464_v5, %v8329_v3  ;;  %v8283_v43 = vmul.f32 %v14470_v19, %v17725_v63  ;;  %13347 = vmatmul.mubr.msk.f32.gmra.mrb[250].mxu0 %vm1114_vm3, %v8455_v4  ;;  %v8412_v63 = vmul.f32 %v14462_v26, %v8348_v20  ;;  %v8352_v33 = vsub.f32 2.0, %v8288_v9 }
 0xdcd   :  { %14479 = vrcp.f32 %v7581_v25  ;;  %13349 = vmatprep.mubr.msk.f32.mxu0 %vm1114_vm3, %v8456_v54  ;;  %v8414_v55 = vmul.f32 %v14466_v31, %v8350_v35  ;;  %v18830_v54 = vld [vmem:[#allocation25_spill] sm:$0xff] }
 0xdce   :  { %14481 = vrcp.f32 %v17758_v16  ;;  %v8457_v28 = vmul.f32 %v18825_v21, %v8393_v40  ;;  %v8347_v27 = vsub.f32 2.0, %v8283_v43  ;;  %v7513_v11 = vpop.xlane.xlu1 %7512  ;;  %v8476_v36 = vmul.f32 %v8412_v63, %v18828_v32 }
 0xdcf   :  { %v14472_v30 = vpop.eup %14471  ;;  %v7583_v47 = vadd.f32 1e-06, %v7513_v11  ;;  %v8416_v41 = vmul.f32 %v14468_v17, %v8352_v33  ;;  %v8478_v31 = vmul.f32 %v8414_v55, %v18830_v54  ;;  %v18831_v17 = vld [vmem:[#allocation27_spill] sm:$0xff] }
 0xdd0   :  { %v14474_v10 = vpop.eup %14473  ;;  %v8411_v23 = vmul.f32 %v14470_v19, %v8347_v27  ;;  %v8285_v50 = vmul.f32 %v14472_v30, %v17738_v18  ;;  %13350 = vmatmul.mubr.msk.f32.gmra.mrb[252].mxu0 %vm1114_vm3, %v8457_v28  ;;  %v18833_v28 = vld [vmem:[#allocation26_spill] sm:$0xff] }
 0xdd1   :  { %14483 = vrcp.f32 %v7583_v47  ;;  %13380 = vmatprep.mubr.msk.f32.mxu0 %vm1114_vm3, %v8474_v61  ;;  %v8290_v26 = vmul.f32 %v14474_v10, %v17732_v15  ;;  %v8480_v3 = vmul.f32 %v8416_v41, %v18831_v17 }
 0xdd2   :  { %14485 = vrcp.f32 %v17769_v42  ;;  %v8475_v7 = vmul.f32 %v18827_v62, %v8411_v23  ;;  %v8349_v56 = vsub.f32 2.0, %v8285_v50  ;;  %v7517_v53 = vpop.xlane.xlu1 %7516 }
 0xdd3   :  { %v14476_v2 = vpop.eup %14475  ;;  %v7585_v57 = vadd.f32 1e-06, %v7517_v53  ;;  %v8354_v24 = vsub.f32 2.0, %v8290_v26 }
 0xdd4   :  { %v14478_v18 = vpop.eup %14477  ;;  %v8413_v60 = vmul.f32 %v14472_v30, %v8349_v56  ;;  %v8287_v5 = vmul.f32 %v14476_v2, %v7579_v58  ;;  %13381 = vmatmul.mubr.msk.f32.vlgmr.msra.gmra.mrb[254].mxu0 %vm1114_vm3, %v8475_v7 }
 0xdd5   :  { %14487 = vrcp.f32 %v7585_v57  ;;  %13383 = vmatprep.mubr.msk.f32.mxu0 %vm1114_vm3, %v8476_v36  ;;  %v8292_v15 = vmul.f32 %v14478_v18, %v17748_v8  ;;  %v8418_v40 = vmul.f32 %v14474_v10, %v8354_v24 }
 0xdd6   :  { %v8477_v13 = vmul.f32 %v18829_v49, %v8413_v60  ;;  %v8351_v6 = vsub.f32 2.0, %v8287_v5  ;;  %v7521_v37 = vpop.xlane.xlu1 %7520 }
 0xdd7   :  { %v14480_v39 = vpop.eup %14479  ;;  %v7587_v51 = vadd.f32 1e-06, %v7521_v37  ;;  %v8356_v34 = vsub.f32 2.0, %v8292_v15  ;;  %v8482_v61 = vmul.f32 %v8418_v40, %v17542_v59 }
 0xdd8   :  { %v14482_v29 = vpop.eup %14481  ;;  %v8415_v4 = vmul.f32 %v14476_v2, %v8351_v6  ;;  %v8289_v58 = vmul.f32 %v14480_v39, %v7581_v25  ;;  %13384 = vmatmul.mubr.msk.f32.gmra.mrb[0].mxu0 %vm1114_vm3, %v8477_v13 }
 0xdd9   :  { %14489 = vrcp.f32 %v7587_v51  ;;  %13386 = vmatprep.mubr.msk.f32.mxu0 %vm1114_vm3, %v8478_v31  ;;  %v8294_v8 = vmul.f32 %v14482_v29, %v17758_v16  ;;  %v8420_v16 = vmul.f32 %v14478_v18, %v8356_v34 }
 0xdda   :  { %v8479_v19 = vmul.f32 %v18832_v52, %v8415_v4  ;;  %v8353_v20 = vsub.f32 2.0, %v8289_v58  ;;  %v7525_v14 = vpop.xlane.xlu1 %7524 }
 0xddb   :  { %v14484_v22 = vpop.eup %14483  ;;  %v7589_v43 = vadd.f32 1e-06, %v7525_v14  ;;  %v8358_v35 = vsub.f32 2.0, %v8294_v8  ;;  %v8484_v62 = vmul.f32 %v8420_v16, %v17565_v45 }
 0xddc   :  { %v14486_v9 = vpop.eup %14485  ;;  %v8417_v21 = vmul.f32 %v14480_v39, %v8353_v20  ;;  %v8291_v25 = vmul.f32 %v14484_v22, %v7583_v47  ;;  %13387 = vmatmul.mubr.msk.f32.gmra.mrb[2].mxu0 %vm1114_vm3, %v8479_v19 }
 0xddd   :  { %14491 = vrcp.f32 %v7589_v43  ;;  %13389 = vmatprep.mubr.msk.f32.mxu0 %vm1114_vm3, %v8480_v3  ;;  %v8296_v46 = vmul.f32 %v14486_v9, %v17769_v42  ;;  %v8422_v7 = vmul.f32 %v14482_v29, %v8358_v35 }
 0xdde   :  { %v8481_v27 = vmul.f32 %v18833_v28, %v8417_v21  ;;  %v8355_v11 = vsub.f32 2.0, %v8291_v25 }
 0xddf   :  { %v14488_v30 = vpop.eup %14487  ;;  %v8360_v33 = vsub.f32 2.0, %v8296_v46  ;;  %v8486_v32 = vmul.f32 %v8422_v7, %v17593_v38 }
 0xde0   :  { %v8419_v63 = vmul.f32 %v14484_v22, %v8355_v11  ;;  %v8293_v10 = vmul.f32 %v14488_v30, %v7585_v57  ;;  %13390 = vmatmul.mubr.msk.f32.gmra.mrb[4].mxu0 %vm1114_vm3, %v8481_v27 }
 0xde1   :  { %13392 = vmatprep.mubr.msk.f32.mxu0 %vm1114_vm3, %v8482_v61 }
 0xde2   :  { %v8483_v47 = vmul.f32 %v17534_v48, %v8419_v63  ;;  %v8357_v23 = vsub.f32 2.0, %v8293_v10  ;;  %v8424_v48 = vmul.f32 %v14486_v9, %v8360_v33 }
 0xde3   :  { %v14490_v50 = vpop.eup %14489 }
 0xde4   :  { %v8421_v56 = vmul.f32 %v14488_v30, %v8357_v23  ;;  %v8295_v53 = vmul.f32 %v14490_v50, %v7587_v51  ;;  %13393 = vmatmul.mubr.msk.f32.gmra.mrb[6].mxu0 %vm1114_vm3, %v8483_v47  ;;  %v8488_v60 = vmul.f32 %v8424_v48, %v17620_v1 }
 0xde5   :  { %13395 = vmatprep.mubr.msk.f32.mxu0 %vm1114_vm3, %v8484_v62 }
 0xde6   :  { %v8485_v59 = vmul.f32 %v17558_v12, %v8421_v56  ;;  %v8359_v42 = vsub.f32 2.0, %v8295_v53  ;;  %v13304_v2 = vpop.f32.mrb[154].mxu1 }
 0xde7   :  { %v14492_v26 = vpop.eup %14491  ;;  %v8609_v36 = vpop.f32.mrb[155].mxu1  ;;  %v9274_v3 = vsel %vm454_vm1, %v13304_v2, 0.0 }
 0xde8   :  { %v8423_v55 = vmul.f32 %v14490_v50, %v8359_v42  ;;  %v8297_v57 = vmul.f32 %v14492_v26, %v7589_v43  ;;  %13396 = vmatmul.mubr.msk.f32.gmra.mrb[8].mxu0 %vm1114_vm3, %v8485_v59  ;;  %v9267_v20 = vsel %vm454_vm1, %v8609_v36, 0.0 }
 0xde9   :  { %13398 = vmatprep.mubr.msk.f32.mxu0 %vm1114_vm3, %v8486_v32 }
 0xdea   :  { %v8487_v45 = vmul.f32 %v17585_v0, %v8423_v55  ;;  %v8361_v18 = vsub.f32 2.0, %v8297_v57 }
 0xdec   :  { %v8425_v5 = vmul.f32 %v14492_v26, %v8361_v18  ;;  %13399 = vmatmul.mubr.msk.f32.gmra.mrb[10].mxu0 %vm1114_vm3, %v8487_v45 }
 0xded   :  { %13401 = vmatprep.mubr.msk.f32.mxu0 %vm1114_vm3, %v8488_v60 }
 0xdee   :  { %v8489_v12 = vmul.f32 %v17612_v44, %v8425_v5 }
 0xdf0   :  { %13402 = vmatmul.mubr.msk.f32.gmra.mrb[12].mxu0 %vm1114_vm3, %v8489_v12 }
 0xe38   :  { %v13307_v38 = vpop.f32.mrb[156].mxu1 }
 0xe39   :  { %v8619_v41 = vpop.f32.mrb[157].mxu1  ;;  %v9288_v30 = vsel %vm454_vm1, %v13307_v38, 0.0 }
 0xe3a   :  { %v9281_v61 = vsel %vm454_vm1, %v8619_v41, 0.0 }
 0xe44   :  { %v13310_v49 = vpop.f32.mrb[158].mxu1 }
 0xe45   :  { %v8629_v13 = vpop.f32.mrb[159].mxu1  ;;  %v9302_v53 = vsel %vm454_vm1, %v13310_v49, 0.0 }
 0xe46   :  { %v9295_v2 = vsel %vm454_vm1, %v8629_v13, 0.0 }
 0xe50   :  { %v13313_v6 = vpop.f32.mrb[160].mxu1 }
 0xe51   :  { %v8639_v37 = vpop.f32.mrb[161].mxu1  ;;  %v9316_v12 = vsel %vm454_vm1, %v13313_v6, 0.0 }
 0xe52   :  { %v9309_v49 = vsel %vm454_vm1, %v8639_v37, 0.0 }
 0xe57   :  { %v17811_v39 = vpop.f32.mrb[162].mxu1 }
 0xe58   :  { %v17813_v0 = vpop.f32.mrb[163].mxu1 }
 0xe5f   :  { %v17815_v1 = vpop.f32.mrb[164].mxu1 }
 0xe60   :  { %v17817_v24 = vpop.f32.mrb[165].mxu1 }
 0xe67   :  { %v17819_v15 = vpop.f32.mrb[166].mxu1 }
 0xe68   :  { %v17821_v54 = vpop.f32.mrb[167].mxu1 }
 0xe6f   :  { %v17823_v44 = vpop.f32.mrb[168].mxu1 }
 0xe70   :  { %v17825_v31 = vpop.f32.mrb[169].mxu1 }
 0xe73   :  { %v13356_v51 = vpop.f32.mrb[170].mxu1 }
 0xe74   :  { %v8995_v29 = vpop.f32.mrb[171].mxu1  ;;  %v9277_v34 = vsel %vm454_vm1, %v13356_v51, 0.0 }
 0xe75   :  { %v9270_v43 = vsel %vm454_vm1, %v8995_v29, 0.0 }
 0xe77   :  { %v13359_v4 = vpop.f32.mrb[172].mxu1 }
 0xe78   :  { %v13330_v58 = vpop.f32.mrb[238].mxu0  ;;  %v9005_v17 = vpop.f32.mrb[173].mxu1  ;;  %v9291_v10 = vsel %vm454_vm1, %v13359_v4, 0.0 }
 0xe79   :  { %v9275_v52 = vsel %vm454_vm1, %v13330_v58, 0.0  ;;  %v8802_v19 = vpop.f32.mrb[239].mxu0  ;;  %v9284_v23 = vsel %vm454_vm1, %v9005_v17, 0.0 }
 0xe7a   :  { %v9276_v14 = vadd.f32 %v9275_v52, %v9274_v3  ;;  %v9268_v22 = vsel %vm454_vm1, %v8802_v19, 0.0 }
 0xe7b   :  { %v9269_v8 = vadd.f32 %v9268_v22, %v9267_v20  ;;  %v13362_v40 = vpop.f32.mrb[174].mxu1  ;;  %v9330_v20 = vsel %vm454_vm1, %v17811_v39, 0.0  ;;  %v9323_v22 = vsel %vm454_vm1, %v17813_v0, 0.0  ;;  %v9344_v39 = vsel %vm454_vm1, %v17815_v1, 0.0 }
 0xe7c   :  { %v9015_v9 = vpop.f32.mrb[175].mxu1  ;;  %v17833_v21 = vadd.f32 %v9277_v34, %v9276_v14  ;;  %v9305_v48 = vsel %vm454_vm1, %v13362_v40, 0.0  ;;  %v9337_v0 = vsel %vm454_vm1, %v17817_v24, 0.0 }
 0xe7d   :  { %v17835_v25 = vadd.f32 %v9270_v43, %v9269_v8  ;;  %v9298_v55 = vsel %vm454_vm1, %v9015_v9, 0.0 }
 0xe7f   :  { %v13365_v28 = vpop.f32.mrb[176].mxu1 }
 0xe80   :  { %v13333_v27 = vpop.f32.mrb[240].mxu0  ;;  %v9025_v11 = vpop.f32.mrb[177].mxu1  ;;  %v9319_v29 = vsel %vm454_vm1, %v13365_v28, 0.0 }
 0xe81   :  { %v9289_v35 = vsel %vm454_vm1, %v13333_v27, 0.0  ;;  %v8812_v46 = vpop.f32.mrb[241].mxu0  ;;  %v9312_v58 = vsel %vm454_vm1, %v9025_v11, 0.0 }
 0xe82   :  { %v9290_v16 = vadd.f32 %v9289_v35, %v9288_v30  ;;  %v9282_v63 = vsel %vm454_vm1, %v8812_v46, 0.0 }
 0xe83   :  { %v9283_v47 = vadd.f32 %v9282_v63, %v9281_v61 }
 0xe84   :  { %v17843_v50 = vadd.f32 %v9291_v10, %v9290_v16 }
 0xe85   :  { %v17845_v33 = vadd.f32 %v9284_v23, %v9283_v47 }
 0xe86   :  { %v13368_v62 = vpop.f32.mrb[178].mxu1 }
 0xe87   :  { %v9035_v7 = vpop.f32.mrb[179].mxu1  ;;  %v9333_v40 = vsel %vm454_vm1, %v13368_v62, 0.0 }
 0xe88   :  { %v13336_v56 = vpop.f32.mrb[242].mxu0  ;;  %v9326_v9 = vsel %vm454_vm1, %v9035_v7, 0.0  ;;  %v9358_v7 = vsel %vm454_vm1, %v17819_v15, 0.0  ;;  %v9372_v15 = vsel %vm454_vm1, %v17823_v44, 0.0 }
 0xe89   :  { %v9303_v59 = vsel %vm454_vm1, %v13336_v56, 0.0  ;;  %v8822_v42 = vpop.f32.mrb[243].mxu0 }
 0xe8a   :  { %v9304_v26 = vadd.f32 %v9303_v59, %v9302_v53  ;;  %v9296_v32 = vsel %vm454_vm1, %v8822_v42, 0.0  ;;  %v9351_v59 = vsel %vm454_vm1, %v17821_v54, 0.0  ;;  %v9365_v54 = vsel %vm454_vm1, %v17825_v31, 0.0 }
 0xe8b   :  { %v9297_v36 = vadd.f32 %v9296_v32, %v9295_v2 }
 0xe8c   :  { %v17853_v57 = vadd.f32 %v9305_v48, %v9304_v26 }
 0xe8d   :  { %v17855_v45 = vadd.f32 %v9298_v55, %v9297_v36 }
 0xe8e   :  { %v13371_v18 = vpop.f32.mrb[180].mxu1 }
 0xe8f   :  { %v9045_v60 = vpop.f32.mrb[181].mxu1  ;;  %v9347_v16 = vsel %vm454_vm1, %v13371_v18, 0.0 }
 0xe90   :  { %v13339_v5 = vpop.f32.mrb[244].mxu0  ;;  %v9340_v47 = vsel %vm454_vm1, %v9045_v60, 0.0 }
 0xe91   :  { %v9317_v38 = vsel %vm454_vm1, %v13339_v5, 0.0  ;;  %v8832_v41 = vpop.f32.mrb[245].mxu0 }
 0xe92   :  { %v9318_v13 = vadd.f32 %v9317_v38, %v9316_v12  ;;  %v9310_v51 = vsel %vm454_vm1, %v8832_v41, 0.0 }
 0xe93   :  { %v9311_v4 = vadd.f32 %v9310_v51, %v9309_v49 }
 0xe94   :  { %v17863_v17 = vadd.f32 %v9319_v29, %v9318_v13 }
 0xe95   :  { %v17865_v3 = vadd.f32 %v9312_v58, %v9311_v4  ;;  %v17917_v4 = vld [vmem:[%s18710_s8 + $0x1] ss:$0 sm:$0xff] }
 0xe96   :  { %v13374_v52 = vpop.f32.mrb[182].mxu1 }
 0xe97   :  { %v13342_v19 = vpop.f32.mrb[246].mxu0  ;;  %v9055_v6 = vpop.f32.mrb[183].mxu1  ;;  %v9361_v26 = vsel %vm454_vm1, %v13374_v52, 0.0 }
 0xe98   :  { %v9331_v37 = vsel %vm454_vm1, %v13342_v19, 0.0  ;;  %v8842_v14 = vpop.f32.mrb[247].mxu0  ;;  %v9354_v48 = vsel %vm454_vm1, %v9055_v6, 0.0 }
 0xe99   :  { %v9332_v34 = vadd.f32 %v9331_v37, %v9330_v20  ;;  %v9324_v8 = vsel %vm454_vm1, %v8842_v14, 0.0 }
 0xe9a   :  { %v9325_v43 = vadd.f32 %v9324_v8, %v9323_v22 }
 0xe9b   :  { %v13345_v28 = vpop.f32.mrb[248].mxu0  ;;  %v17875_v27 = vadd.f32 %v9333_v40, %v9332_v34 }
 0xe9c   :  { %v9345_v11 = vsel %vm454_vm1, %v13345_v28, 0.0  ;;  %v8852_v30 = vpop.f32.mrb[249].mxu0  ;;  %v17880_v35 = vadd.f32 %v9326_v9, %v9325_v43  ;;  %v18834_v43 = vld [vmem:[#allocation3_spill] sm:$0xff]  ;;  %v18835_v28 = vld [vmem:[#allocation4_spill] sm:$0xff] }
 0xe9d   :  { %v9346_v46 = vadd.f32 %v9345_v11, %v9344_v39  ;;  %v9338_v61 = vsel %vm454_vm1, %v8852_v30, 0.0 }
 0xe9e   :  { %v9339_v63 = vadd.f32 %v9338_v61, %v9337_v0  ;;  %v13377_v10 = vpop.f32.mrb[184].mxu1 }
 0xe9f   :  { %v13348_v23 = vpop.f32.mrb[250].mxu0  ;;  %v9065_v62 = vpop.f32.mrb[185].mxu1  ;;  %v17887_v1 = vadd.f32 %v9347_v16, %v9346_v46  ;;  %v9375_v41 = vsel %vm454_vm1, %v13377_v10, 0.0 }
 0xea0   :  { %v9359_v56 = vsel %vm454_vm1, %v13348_v23, 0.0  ;;  %v8862_v53 = vpop.f32.mrb[251].mxu0  ;;  %v17892_v24 = vadd.f32 %v9340_v47, %v9339_v63  ;;  %v9368_v13 = vsel %vm454_vm1, %v9065_v62, 0.0  ;;  %v18836_v63 = vld [vmem:[#allocation5_spill] sm:$0xff]  ;;  %v18837_v23 = vld [vmem:[#allocation6_spill] sm:$0xff] }
 0xea1   :  { %v9360_v42 = vadd.f32 %v9359_v56, %v9358_v7  ;;  %v9352_v2 = vsel %vm454_vm1, %v8862_v53, 0.0 }
 0xea2   :  { %v9353_v32 = vadd.f32 %v9352_v2, %v9351_v59 }
 0xea3   :  { %v13351_v36 = vpop.f32.mrb[252].mxu0  ;;  %v17899_v55 = vadd.f32 %v9361_v26, %v9360_v42 }
 0xea4   :  { %v9373_v18 = vsel %vm454_vm1, %v13351_v36, 0.0  ;;  %v8872_v60 = vpop.f32.mrb[253].mxu0  ;;  %v17904_v5 = vadd.f32 %v9354_v48, %v9353_v32  ;;  %v18838_v32 = vld [vmem:[#allocation2_spill] sm:$0xff] }
 0xea5   :  { %v9374_v12 = vadd.f32 %v9373_v18, %v9372_v15  ;;  %v9366_v38 = vsel %vm454_vm1, %v8872_v60, 0.0  ;;  %v18839_v15 = vld [vmem:[#allocation7_spill] sm:$0xff] }
 0xea6   :  { %v9367_v49 = vadd.f32 %v9366_v38, %v9365_v54 }
 0xea7   :  { %v13382_v51 = vpop.f32.mrb[254].mxu0  ;;  %v17911_v29 = vadd.f32 %v9375_v41, %v9374_v12 }
 0xea8   :  { %v9279_v44 = vsel %vm454_vm1, %v13382_v51, 0.0  ;;  %v9188_v58 = vpop.f32.mrb[255].mxu0  ;;  %v17919_v31 = vadd.f32 %v9368_v13, %v9367_v49  ;;  %v18840_v51 = vld [vmem:[#allocation8_spill] sm:$0xff] }
 0xea9   :  { %v9280_v52 = vadd.f32 %v9279_v44, %v17833_v21  ;;  %v9272_v19 = vsel %vm454_vm1, %v9188_v58, 0.0 }
 0xeaa   :  { %v9273_v6 = vadd.f32 %v9272_v19, %v17835_v25 }
 0xeab   :  { %v9388_v20 = vadd.f32 %v17917_v4, %v9280_v52  ;;  %v13385_v37 = vpop.f32.mrb[0].mxu0  ;;  %v18841_v52 = vld [vmem:[#allocation9_spill] sm:$0xff] }
 0xeac   :  { %v9387_v14 = vadd.f32 %v17917_v4, %v9273_v6  ;;  %v9293_v22 = vsel %vm454_vm1, %v13385_v37, 0.0  ;;  %v9198_v34 = vpop.f32.mrb[1].mxu0 }
 0xead   :  { %v9294_v8 = vadd.f32 %v9293_v22, %v17843_v50  ;;  %v9286_v40 = vsel %vm454_vm1, %v9198_v34, 0.0  ;;  %v17930_v9 = vadd.f32 %v9388_v20, %v18834_v43 }
 0xeae   :  { %v9287_v21 = vadd.f32 %v9286_v40, %v17845_v33  ;;  %v17934_v39 = vadd.f32 %v9387_v14, %v18835_v28  ;;  %v18842_v40 = vld [vmem:[#allocation10_spill] sm:$0xff]  ;;  %v18843_v28 = vld [vmem:[#allocation11_spill] sm:$0xff] }
 0xeaf   :  { %v9390_v25 = vadd.f32 %v17917_v4, %v9294_v8  ;;  %v13388_v11 = vpop.f32.mrb[2].mxu0  ;;  %v9426_v30 = vsel %vm454_vm1, %v17930_v9, 0.0 }
 0xeb0   :  { %v9389_v0 = vadd.f32 %v17917_v4, %v9287_v21  ;;  %v9307_v50 = vsel %vm454_vm1, %v13388_v11, 0.0  ;;  %9427 = vadd.xlane.f32.xlu1 %v9426_v30  ;;  %v9208_v46 = vpop.f32.mrb[3].mxu0  ;;  %v9423_v61 = vsel %vm454_vm1, %v17934_v39, 0.0 }
 0xeb1   :  { %v9308_v33 = vadd.f32 %v9307_v50, %v17853_v57  ;;  %v9300_v16 = vsel %vm454_vm1, %v9208_v46, 0.0  ;;  %9424 = vadd.xlane.f32.xlu0 %v9423_v61  ;;  %v17946_v10 = vadd.f32 %v9390_v25, %v18836_v63 }
 0xeb2   :  { %v9301_v47 = vadd.f32 %v9300_v16, %v17855_v45  ;;  %v17950_v62 = vadd.f32 %v9389_v0, %v18837_v23  ;;  %v18844_v16 = vld [vmem:[#allocation12_spill] sm:$0xff]  ;;  %v18845_v23 = vld [vmem:[#allocation13_spill] sm:$0xff] }
 0xeb3   :  { %v9392_v7 = vadd.f32 %v17917_v4, %v9308_v33  ;;  %v13391_v56 = vpop.f32.mrb[4].mxu0  ;;  %v9432_v53 = vsel %vm454_vm1, %v17946_v10, 0.0 }
 0xeb4   :  { %v9391_v59 = vadd.f32 %v17917_v4, %v9301_v47  ;;  %v9321_v57 = vsel %vm454_vm1, %v13391_v56, 0.0  ;;  %9433 = vadd.xlane.f32.xlu1 %v9432_v53  ;;  %v9218_v42 = vpop.f32.mrb[5].mxu0  ;;  %v9429_v2 = vsel %vm454_vm1, %v17950_v62, 0.0 }
 0xeb5   :  { %v9322_v45 = vadd.f32 %v9321_v57, %v17863_v17  ;;  %v9314_v26 = vsel %vm454_vm1, %v9218_v42, 0.0  ;;  %9430 = vadd.xlane.f32.xlu0 %v9429_v2  ;;  %v17962_v48 = vadd.f32 %v9392_v7, %v18838_v32 }
 0xeb6   :  { %v9315_v36 = vadd.f32 %v9314_v26, %v17865_v3  ;;  %v17966_v18 = vadd.f32 %v9391_v59, %v18839_v15  ;;  %v18846_v26 = vld [vmem:[#allocation14_spill] sm:$0xff]  ;;  %v18847_v15 = vld [vmem:[#allocation15_spill] sm:$0xff] }
 0xeb7   :  { %v9394_v60 = vadd.f32 %v17917_v4, %v9322_v45  ;;  %v13394_v54 = vpop.f32.mrb[6].mxu0  ;;  %v9438_v12 = vsel %vm454_vm1, %v17962_v48, 0.0 }
 0xeb8   :  { %v9393_v38 = vadd.f32 %v17917_v4, %v9315_v36  ;;  %v9335_v17 = vsel %vm454_vm1, %v13394_v54, 0.0  ;;  %9439 = vadd.xlane.f32.xlu1 %v9438_v12  ;;  %v9228_v41 = vpop.f32.mrb[7].mxu0  ;;  %v9435_v49 = vsel %vm454_vm1, %v17966_v18, 0.0 }
 0xeb9   :  { %v9336_v3 = vadd.f32 %v9335_v17, %v17875_v27  ;;  %v9328_v13 = vsel %vm454_vm1, %v9228_v41, 0.0  ;;  %9436 = vadd.xlane.f32.xlu0 %v9435_v49  ;;  %v17978_v44 = vadd.f32 %v9394_v60, %v18840_v51  ;;  %v18848_v17 = vld [vmem:[#allocation16_spill] sm:$0xff]  ;;  %v18849_v49 = vld [vmem:[#allocation17_spill] sm:$0xff] }
 0xeba   :  { %v9329_v58 = vadd.f32 %v9328_v13, %v17880_v35  ;;  %v17982_v19 = vadd.f32 %v9393_v38, %v18841_v52 }
 0xebb   :  { %v9396_v6 = vadd.f32 %v17917_v4, %v9336_v3  ;;  %v13397_v20 = vpop.f32.mrb[8].mxu0  ;;  %v9444_v37 = vsel %vm454_vm1, %v17978_v44, 0.0 }
 0xebc   :  { %v9395_v14 = vadd.f32 %v17917_v4, %v9329_v58  ;;  %v9349_v27 = vsel %vm454_vm1, %v13397_v20, 0.0  ;;  %9445 = vadd.xlane.f32.xlu1 %v9444_v37  ;;  %v9238_v22 = vpop.f32.mrb[9].mxu0  ;;  %v9441_v34 = vsel %vm454_vm1, %v17982_v19, 0.0 }
 0xebd   :  { %v9350_v35 = vadd.f32 %v9349_v27, %v17887_v1  ;;  %v9342_v8 = vsel %vm454_vm1, %v9238_v22, 0.0  ;;  %9442 = vadd.xlane.f32.xlu0 %v9441_v34  ;;  %v17994_v43 = vadd.f32 %v9396_v6, %v18842_v40 }
 0xebe   :  { %v9343_v21 = vadd.f32 %v9342_v8, %v17892_v24  ;;  %v17998_v25 = vadd.f32 %v9395_v14, %v18843_v28 }
 0xebf   :  { %v9398_v11 = vadd.f32 %v17917_v4, %v9350_v35  ;;  %v13400_v30 = vpop.f32.mrb[10].mxu0  ;;  %v9450_v0 = vsel %vm454_vm1, %v17994_v43, 0.0 }
 0xec0   :  { %v9397_v50 = vadd.f32 %v17917_v4, %v9343_v21  ;;  %v9363_v1 = vsel %vm454_vm1, %v13400_v30, 0.0  ;;  %9451 = vadd.xlane.f32.xlu1 %v9450_v0  ;;  %v9248_v46 = vpop.f32.mrb[11].mxu0  ;;  %v9447_v61 = vsel %vm454_vm1, %v17998_v25, 0.0 }
 0xec1   :  { %v9364_v24 = vadd.f32 %v9363_v1, %v17899_v55  ;;  %v9356_v33 = vsel %vm454_vm1, %v9248_v46, 0.0  ;;  %9448 = vadd.xlane.f32.xlu0 %v9447_v61  ;;  %v18010_v63 = vadd.f32 %v9398_v11, %v18844_v16 }
 0xec2   :  { %v9357_v47 = vadd.f32 %v9356_v33, %v17904_v5  ;;  %v18014_v7 = vadd.f32 %v9397_v50, %v18845_v23 }
 0xec3   :  { %v9400_v56 = vadd.f32 %v17917_v4, %v9364_v24  ;;  %v13403_v53 = vpop.f32.mrb[12].mxu0  ;;  %v9456_v59 = vsel %vm454_vm1, %v18010_v63, 0.0 }
 0xec4   :  { %v9399_v57 = vadd.f32 %v17917_v4, %v9357_v47  ;;  %v9377_v55 = vsel %vm454_vm1, %v13403_v53, 0.0  ;;  %9457 = vadd.xlane.f32.xlu1 %v9456_v59  ;;  %v9258_v42 = vpop.f32.mrb[13].mxu0  ;;  %v9453_v2 = vsel %vm454_vm1, %v18014_v7, 0.0 }
 0xec5   :  { %v9378_v5 = vadd.f32 %v9377_v55, %v17911_v29  ;;  %v9370_v45 = vsel %vm454_vm1, %v9258_v42, 0.0  ;;  %9454 = vadd.xlane.f32.xlu0 %v9453_v2  ;;  %v18026_v32 = vadd.f32 %v9400_v56, %v18846_v26 }
 0xec6   :  { %v9371_v36 = vadd.f32 %v9370_v45, %v17919_v31  ;;  %v18030_v60 = vadd.f32 %v9399_v57, %v18847_v15 }
 0xec7   :  { %v9402_v54 = vadd.f32 %v17917_v4, %v9378_v5  ;;  %v9462_v12 = vsel %vm454_vm1, %v18026_v32, 0.0 }
 0xec8   :  { %v9401_v38 = vadd.f32 %v17917_v4, %v9371_v36  ;;  %9463 = vadd.xlane.f32.xlu1 %v9462_v12  ;;  %v9459_v29 = vsel %vm454_vm1, %v18030_v60, 0.0 }
 0xec9   :  { %9460 = vadd.xlane.f32.xlu0 %v9459_v29  ;;  %v18039_v41 = vadd.f32 %v9402_v54, %v18848_v17 }
 0xeca   :  { %v18042_v31 = vadd.f32 %v9401_v38, %v18849_v49 }
 0xecb   :  { %v9468_v3 = vsel %vm454_vm1, %v18039_v41, 0.0 }
 0xecc   :  { %9469 = vadd.xlane.f32.xlu1 %v9468_v3  ;;  %v9465_v13 = vsel %vm454_vm1, %v18042_v31, 0.0 }
 0xecd   :  { %9466 = vadd.xlane.f32.xlu0 %v9465_v13 }
 0xf3d   :  { %v9428_v4 = vpop.xlane.xlu1 %9427 }
 0xf3e   :  { %v9472_v51 = vmul.f32 0.03125, %v9428_v4  ;;  %v9425_v58 = vpop.xlane.xlu0 %9424 }
 0xf3f   :  { %v9471_v52 = vmul.f32 0.03125, %v9425_v58 }
 0xf40   :  { %v18049_v6 = vsub.f32 %v17930_v9, %v9472_v51 }
 0xf41   :  { %v18052_v20 = vsub.f32 %v17934_v39, %v9471_v52  ;;  %v9434_v37 = vpop.xlane.xlu1 %9433 }
 0xf42   :  { %v9474_v14 = vmul.f32 0.03125, %v9434_v37  ;;  %v9431_v27 = vpop.xlane.xlu0 %9430  ;;  %v9504_v22 = vmul.f32 %v18049_v6, %v18049_v6 }
 0xf43   :  { %v9473_v34 = vmul.f32 0.03125, %v9431_v27  ;;  %v9503_v35 = vmul.f32 %v18052_v20, %v18052_v20 }
 0xf44   :  { %v18059_v8 = vsub.f32 %v17946_v10, %v9474_v14  ;;  %v9522_v40 = vsel %vm454_vm1, %v9504_v22, 0.0 }
 0xf45   :  { %v18063_v9 = vsub.f32 %v17950_v62, %v9473_v34  ;;  %v9440_v39 = vpop.xlane.xlu1 %9439  ;;  %9523 = vadd.xlane.f32.xlu1 %v9522_v40  ;;  %v9519_v21 = vsel %vm454_vm1, %v9503_v35, 0.0 }
 0xf46   :  { %v9476_v28 = vmul.f32 0.03125, %v9440_v39  ;;  %9520 = vadd.xlane.f32.xlu0 %v9519_v21  ;;  %v9437_v11 = vpop.xlane.xlu0 %9436  ;;  %v9506_v30 = vmul.f32 %v18059_v8, %v18059_v8 }
 0xf47   :  { %v9475_v0 = vmul.f32 0.03125, %v9437_v11  ;;  %v9505_v10 = vmul.f32 %v18063_v9, %v18063_v9 }
 0xf48   :  { %v18071_v50 = vsub.f32 %v17962_v48, %v9476_v28  ;;  %v9528_v62 = vsel %vm454_vm1, %v9506_v30, 0.0 }
 0xf49   :  { %v18075_v1 = vsub.f32 %v17966_v18, %v9475_v0  ;;  %v9446_v46 = vpop.xlane.xlu1 %9445  ;;  %9529 = vadd.xlane.f32.xlu1 %v9528_v62  ;;  %v9525_v61 = vsel %vm454_vm1, %v9505_v10, 0.0  ;;  %v11658_v10 = vld [vmem:[%s18711_s11 + $0x28] sm:$0xff] }
 0xf4a   :  { %v9478_v24 = vmul.f32 0.03125, %v9446_v46  ;;  %9526 = vadd.xlane.f32.xlu0 %v9525_v61  ;;  %v9443_v33 = vpop.xlane.xlu0 %9442  ;;  %v9508_v16 = vmul.f32 %v18071_v50, %v18071_v50  ;;  %v11659_v46 = vld [vmem:[%s18711_s11 + $0x30] sm:$0xff]  ;;  %v11660_v61 = vld [vmem:[%s18711_s11 + $0x38] sm:$0xff] }
 0xf4b   :  { %v9477_v47 = vmul.f32 0.03125, %v9443_v33  ;;  %v9507_v48 = vmul.f32 %v18075_v1, %v18075_v1  ;;  %v11679_v33 = vld [vmem:[%s18712_s13 + $0x40] sm:$0xff] }
 0xf4c   :  { %v18083_v23 = vsub.f32 %v17978_v44, %v9478_v24  ;;  %v9534_v18 = vsel %vm454_vm1, %v9508_v16, 0.0  ;;  %v13882_v24 = vpack.c.bf16 %v11660_v61, %v11659_v46  ;;  %v11680_v16 = vld [vmem:[%s18712_s13 + $0x48] sm:$0xff] }
 0xf4d   :  { %v18087_v56 = vsub.f32 %v17982_v19, %v9477_v47  ;;  %v9452_v53 = vpop.xlane.xlu1 %9451  ;;  %9535 = vadd.xlane.f32.xlu1 %v9534_v18  ;;  %v9531_v59 = vsel %vm454_vm1, %v9507_v48, 0.0  ;;  %v11681_v47 = vld [vmem:[%s18712_s13 + $0x50] sm:$0xff]  ;;  %v13886_v48 = vpack.c.bf16 %v11680_v16, %v11679_v33  ;;  %v11682_v18 = vld [vmem:[%s18712_s13 + $0x58] sm:$0xff] }
 0xf4e   :  { %v9480_v57 = vmul.f32 0.03125, %v9452_v53  ;;  %9532 = vadd.xlane.f32.xlu0 %v9531_v59  ;;  %v9449_v55 = vpop.xlane.xlu0 %9448  ;;  %v9510_v42 = vmul.f32 %v18083_v23, %v18083_v23  ;;  %v13890_v53 = vpack.c.bf16 %v11682_v18, %v11681_v47  ;;  %v11683_v59 = vld [vmem:[%s18712_s13 + $0x60] sm:$0xff] }
 0xf4f   :  { %v9479_v2 = vmul.f32 0.03125, %v9449_v55  ;;  %v9509_v44 = vmul.f32 %v18087_v56, %v18087_v56  ;;  %13887 = vmatprep.subr.bf16.mxu0 %v13886_v48 }
 0xf50   :  { %v18095_v5 = vsub.f32 %v17994_v43, %v9480_v57  ;;  %v9540_v19 = vsel %vm454_vm1, %v9510_v42, 0.0  ;;  %v11684_v57 = vld [vmem:[%s18712_s13 + $0x68] sm:$0xff]  ;;  %13889 = vmatpush3.bf16.msra.mxu0 %v13886_v48 }
 0xf51   :  { %v18099_v45 = vsub.f32 %v17998_v25, %v9479_v2  ;;  %v9458_v26 = vpop.xlane.xlu1 %9457  ;;  %9541 = vadd.xlane.f32.xlu1 %v9540_v19  ;;  %v9537_v36 = vsel %vm454_vm1, %v9509_v44, 0.0  ;;  %13891 = vmatprep.subr.bf16.mxu0 %v13890_v53  ;;  %v13894_v55 = vpack.c.bf16 %v11684_v57, %v11683_v59 }
 0xf52   :  { %v9482_v15 = vmul.f32 0.03125, %v9458_v26  ;;  %9538 = vadd.xlane.f32.xlu0 %v9537_v36  ;;  %v9455_v54 = vpop.xlane.xlu0 %9454  ;;  %v9512_v12 = vmul.f32 %v18095_v5, %v18095_v5 }
 0xf53   :  { %v9481_v38 = vmul.f32 0.03125, %v9455_v54  ;;  %v9511_v43 = vmul.f32 %v18099_v45, %v18099_v45 }
 0xf54   :  { %v18107_v29 = vsub.f32 %v18010_v63, %v9482_v15  ;;  %v9546_v25 = vsel %vm454_vm1, %v9512_v12, 0.0  ;;  %13893 = vmatpush3.bf16.msra.mxu0 %v13890_v53 }
 0xf55   :  { %v18111_v17 = vsub.f32 %v18014_v7, %v9481_v38  ;;  %v9464_v49 = vpop.xlane.xlu1 %9463  ;;  %9547 = vadd.xlane.f32.xlu1 %v9546_v25  ;;  %v9543_v3 = vsel %vm454_vm1, %v9511_v43, 0.0  ;;  %13895 = vmatprep.subr.bf16.mxu0 %v13894_v55 }
 0xf56   :  { %v9484_v13 = vmul.f32 0.03125, %v9464_v49  ;;  %9544 = vadd.xlane.f32.xlu0 %v9543_v3  ;;  %v9461_v4 = vpop.xlane.xlu0 %9460  ;;  %v9514_v51 = vmul.f32 %v18107_v29, %v18107_v29 }
 0xf57   :  { %v9483_v58 = vmul.f32 0.03125, %v9461_v4  ;;  %v9513_v63 = vmul.f32 %v18111_v17, %v18111_v17 }
 0xf58   :  { %v18119_v52 = vsub.f32 %v18026_v32, %v9484_v13  ;;  %v9552_v7 = vsel %vm454_vm1, %v9514_v51, 0.0  ;;  %13897 = vmatpush3.bf16.msra.mxu0 %v13894_v55 }
 0xf59   :  { %v18123_v37 = vsub.f32 %v18030_v60, %v9483_v58  ;;  %9553 = vadd.xlane.f32.xlu1 %v9552_v7  ;;  %v9470_v14 = vpop.xlane.xlu1 %9469  ;;  %v9549_v27 = vsel %vm454_vm1, %v9513_v63, 0.0 }
 0xf5a   :  { %v9486_v22 = vmul.f32 0.03125, %v9470_v14  ;;  %9550 = vadd.xlane.f32.xlu0 %v9549_v27  ;;  %v9467_v34 = vpop.xlane.xlu0 %9466  ;;  %v9516_v35 = vmul.f32 %v18119_v52, %v18119_v52 }
 0xf5b   :  { %v9485_v40 = vmul.f32 0.03125, %v9467_v34  ;;  %v9515_v32 = vmul.f32 %v18123_v37, %v18123_v37  ;;  %v18177_v34 = vld [vmem:[%s18713_s9 + $0x1] ss:$0 sm:$0xff] }
 0xf5c   :  { %v18131_v39 = vsub.f32 %v18039_v41, %v9486_v22  ;;  %v9558_v60 = vsel %vm454_vm1, %v9516_v35, 0.0 }
 0xf5d   :  { %v18135_v21 = vsub.f32 %v18042_v31, %v9485_v40  ;;  %9559 = vadd.xlane.f32.xlu1 %v9558_v60  ;;  %v9555_v28 = vsel %vm454_vm1, %v9515_v32, 0.0  ;;  %v11657_v31 = vld [vmem:[%s18711_s11 + $0x20] sm:$0xff] }
 0xf5e   :  { %9556 = vadd.xlane.f32.xlu0 %v9555_v28  ;;  %v9518_v11 = vmul.f32 %v18131_v39, %v18131_v39  ;;  %v13878_v62 = vpack.c.bf16 %v11658_v10, %v11657_v31 }
 0xf5f   :  { %v9517_v30 = vmul.f32 %v18135_v21, %v18135_v21 }
 0xf60   :  { %v9564_v0 = vsel %vm454_vm1, %v9518_v11, 0.0  ;;  %13879 = vmatprep.subr.bf16.mxu1 %v13878_v62 }
 0xf61   :  { %9565 = vadd.xlane.f32.xlu1 %v9564_v0  ;;  %v9561_v41 = vsel %vm454_vm1, %v9517_v30, 0.0  ;;  %13881 = vmatpush3.bf16.msra.mxu1 %v13878_v62 }
 0xf62   :  { %9562 = vadd.xlane.f32.xlu0 %v9561_v41  ;;  %13883 = vmatprep.subr.bf16.mxu1 %v13882_v24  ;;  %v18184_v41 = vld [vmem:[%s18714_s10 + $0x1] ss:$0 sm:$0xff] }
 0xf65   :  { %13885 = vmatpush3.bf16.msra.mxu1 %v13882_v24 }
 0xfd2   :  { %v9524_v42 = vpop.xlane.xlu1 %9523 }
 0xfd3   :  { %v9568_v2 = vmul.f32 0.03125, %v9524_v42  ;;  %v9521_v44 = vpop.xlane.xlu0 %9520 }
 0xfd4   :  { %v9567_v19 = vmul.f32 0.03125, %v9521_v44 }
 0xfd5   :  { %v9584_v26 = vadd.f32 1e-05, %v9568_v2 }
 0xfd6   :  { %v9583_v36 = vadd.f32 1e-05, %v9567_v19  ;;  %v9530_v15 = vpop.xlane.xlu1 %9529 }
 0xfd7   :  { %14493 = vrsqrt.f32 %v9584_v26  ;;  %v9570_v54 = vmul.f32 0.03125, %v9530_v15  ;;  %v9527_v12 = vpop.xlane.xlu0 %9526 }
 0xfd8   :  { %14495 = vrsqrt.f32 %v9583_v36  ;;  %v9569_v38 = vmul.f32 0.03125, %v9527_v12 }
 0xfd9   :  { %v9586_v43 = vadd.f32 1e-05, %v9570_v54 }
 0xfda   :  { %v9585_v25 = vadd.f32 1e-05, %v9569_v38  ;;  %v9536_v49 = vpop.xlane.xlu1 %9535 }
 0xfdb   :  { %14497 = vrsqrt.f32 %v9586_v43  ;;  %v9572_v3 = vmul.f32 0.03125, %v9536_v49  ;;  %v9533_v13 = vpop.xlane.xlu0 %9532 }
 0xfdc   :  { %14499 = vrsqrt.f32 %v9585_v25  ;;  %v9571_v4 = vmul.f32 0.03125, %v9533_v13 }
 0xfdd   :  { %v9588_v51 = vadd.f32 1e-05, %v9572_v3 }
 0xfde   :  { %v9587_v58 = vadd.f32 1e-05, %v9571_v4  ;;  %v9542_v63 = vpop.xlane.xlu1 %9541 }
 0xfdf   :  { %14501 = vrsqrt.f32 %v9588_v51  ;;  %v9574_v7 = vmul.f32 0.03125, %v9542_v63  ;;  %v9539_v14 = vpop.xlane.xlu0 %9538 }
 0xfe0   :  { %14503 = vrsqrt.f32 %v9587_v58  ;;  %v9573_v27 = vmul.f32 0.03125, %v9539_v14 }
 0xfe1   :  { %v14494_v22 = vpop.eup %14493  ;;  %v9590_v35 = vadd.f32 1e-05, %v9574_v7 }
 0xfe2   :  { %v14496_v40 = vpop.eup %14495  ;;  %v9616_v32 = vmul.f32 %v14494_v22, %v18049_v6  ;;  %v9589_v60 = vadd.f32 1e-05, %v9573_v27  ;;  %v9548_v28 = vpop.xlane.xlu1 %9547 }
 0xfe3   :  { %14505 = vrsqrt.f32 %v9590_v35  ;;  %v9576_v11 = vmul.f32 0.03125, %v9548_v28  ;;  %v9545_v30 = vpop.xlane.xlu0 %9544  ;;  %v9615_v0 = vmul.f32 %v14496_v40, %v18052_v20 }
 0xfe4   :  { %v9638_v31 = vmul.f32 %v18177_v34, %v9616_v32  ;;  %14507 = vrsqrt.f32 %v9589_v60  ;;  %v9575_v10 = vmul.f32 0.03125, %v9545_v30 }
 0xfe5   :  { %v14498_v62 = vpop.eup %14497  ;;  %v9592_v46 = vadd.f32 1e-05, %v9576_v11  ;;  %v9637_v6 = vmul.f32 %v18177_v34, %v9615_v0 }
 0xfe6   :  { %v14500_v61 = vpop.eup %14499  ;;  %v9591_v24 = vadd.f32 1e-05, %v9575_v10  ;;  %v9554_v33 = vpop.xlane.xlu1 %9553  ;;  %v9618_v16 = vmul.f32 %v14498_v62, %v18059_v8  ;;  %v18194_v53 = vadd.f32 %v18184_v41, %v9638_v31 }
 0xfe7   :  { %14509 = vrsqrt.f32 %v9592_v46  ;;  %v9578_v20 = vmul.f32 0.03125, %v9554_v33  ;;  %v9551_v47 = vpop.xlane.xlu0 %9550  ;;  %v18190_v48 = vadd.f32 %v18184_v41, %v9637_v6  ;;  %v9617_v18 = vmul.f32 %v14500_v61, %v18063_v9 }
 0xfe8   :  { %14511 = vrsqrt.f32 %v9591_v24  ;;  %v9577_v59 = vmul.f32 0.03125, %v9551_v47  ;;  %v9640_v57 = vmul.f32 %v18177_v34, %v9618_v16 }
 0xfe9   :  { %v14502_v55 = vpop.eup %14501  ;;  %v9594_v42 = vadd.f32 1e-05, %v9578_v20  ;;  %13412 = vmatprep.mubr.msk.f32.mxu1 %vm454_vm1, %v18190_v48  ;;  %v9639_v8 = vmul.f32 %v18177_v34, %v9617_v18 }
 0xfea   :  { %v14504_v2 = vpop.eup %14503  ;;  %v9593_v44 = vadd.f32 1e-05, %v9577_v59  ;;  %v9560_v19 = vpop.xlane.xlu1 %9559  ;;  %13413 = vmatmul.mubr.msk.f32.vlgmr.msra.gmra.mrb[186].mxu1 %vm454_vm1, %v18194_v53  ;;  %v9620_v9 = vmul.f32 %v14502_v55, %v18071_v50  ;;  %v18208_v38 = vadd.f32 %v18184_v41, %v9640_v57 }
 0xfeb   :  { %14513 = vrsqrt.f32 %v9594_v42  ;;  %v9580_v26 = vmul.f32 0.03125, %v9560_v19  ;;  %v9557_v36 = vpop.xlane.xlu0 %9556  ;;  %v18204_v15 = vadd.f32 %v18184_v41, %v9639_v8  ;;  %v9619_v54 = vmul.f32 %v14504_v2, %v18075_v1 }
 0xfec   :  { %14515 = vrsqrt.f32 %v9593_v44  ;;  %v9579_v12 = vmul.f32 0.03125, %v9557_v36  ;;  %v9642_v43 = vmul.f32 %v18177_v34, %v9620_v9 }
 0xfed   :  { %v14506_v25 = vpop.eup %14505  ;;  %v9596_v49 = vadd.f32 1e-05, %v9580_v26  ;;  %13415 = vmatprep.mubr.msk.f32.mxu1 %vm454_vm1, %v18204_v15  ;;  %v9641_v50 = vmul.f32 %v18177_v34, %v9619_v54 }
 0xfee   :  { %v14508_v3 = vpop.eup %14507  ;;  %v9595_v13 = vadd.f32 1e-05, %v9579_v12  ;;  %v9566_v4 = vpop.xlane.xlu1 %9565  ;;  %13416 = vmatmul.mubr.msk.f32.gmra.mrb[188].mxu1 %vm454_vm1, %v18208_v38  ;;  %v9622_v1 = vmul.f32 %v14506_v25, %v18083_v23  ;;  %v18222_v27 = vadd.f32 %v18184_v41, %v9642_v43 }
 0xfef   :  { %14517 = vrsqrt.f32 %v9596_v49  ;;  %v9582_v51 = vmul.f32 0.03125, %v9566_v4  ;;  %v9563_v58 = vpop.xlane.xlu0 %9562  ;;  %v18218_v63 = vadd.f32 %v18184_v41, %v9641_v50  ;;  %v9621_v7 = vmul.f32 %v14508_v3, %v18087_v56 }
 0xff0   :  { %14519 = vrsqrt.f32 %v9595_v13  ;;  %v9581_v14 = vmul.f32 0.03125, %v9563_v58  ;;  %v9644_v22 = vmul.f32 %v18177_v34, %v9622_v1 }
 0xff1   :  { %v14510_v35 = vpop.eup %14509  ;;  %v9598_v40 = vadd.f32 1e-05, %v9582_v51  ;;  %13418 = vmatprep.mubr.msk.f32.mxu1 %vm454_vm1, %v18218_v63  ;;  %v9643_v23 = vmul.f32 %v18177_v34, %v9621_v7 }
 0xff2   :  { %v14512_v32 = vpop.eup %14511  ;;  %v9597_v60 = vadd.f32 1e-05, %v9581_v14  ;;  %13419 = vmatmul.mubr.msk.f32.gmra.mrb[190].mxu1 %vm454_vm1, %v18222_v27  ;;  %v9624_v56 = vmul.f32 %v14510_v35, %v18095_v5  ;;  %v18236_v30 = vadd.f32 %v18184_v41, %v9644_v22 }
 0xff3   :  { %14521 = vrsqrt.f32 %v9598_v40  ;;  %v18232_v28 = vadd.f32 %v18184_v41, %v9643_v23  ;;  %v9623_v11 = vmul.f32 %v14512_v32, %v18099_v45 }
 0xff4   :  { %14523 = vrsqrt.f32 %v9597_v60  ;;  %v9646_v0 = vmul.f32 %v18177_v34, %v9624_v56 }
 0xff5   :  { %v14514_v31 = vpop.eup %14513  ;;  %13421 = vmatprep.mubr.msk.f32.mxu1 %vm454_vm1, %v18232_v28  ;;  %v9645_v10 = vmul.f32 %v18177_v34, %v9623_v11 }
 0xff6   :  { %v14516_v62 = vpop.eup %14515  ;;  %13422 = vmatmul.mubr.msk.f32.gmra.mrb[192].mxu1 %vm454_vm1, %v18236_v30  ;;  %v9626_v5 = vmul.f32 %v14514_v31, %v18107_v29  ;;  %v18250_v6 = vadd.f32 %v18184_v41, %v9646_v0 }
 0xff7   :  { %v18246_v45 = vadd.f32 %v18184_v41, %v9645_v10  ;;  %v9625_v46 = vmul.f32 %v14516_v62, %v18111_v17 }
 0xff8   :  { %v9648_v61 = vmul.f32 %v18177_v34, %v9626_v5 }
 0xff9   :  { %v14518_v24 = vpop.eup %14517  ;;  %13424 = vmatprep.mubr.msk.f32.mxu1 %vm454_vm1, %v18246_v45  ;;  %v9647_v33 = vmul.f32 %v18177_v34, %v9625_v46 }
 0xffa   :  { %v14520_v16 = vpop.eup %14519  ;;  %13425 = vmatmul.mubr.msk.f32.gmra.mrb[194].mxu1 %vm454_vm1, %v18250_v6  ;;  %v9628_v29 = vmul.f32 %v14518_v24, %v18119_v52  ;;  %v18264_v47 = vadd.f32 %v18184_v41, %v9648_v61 }
 0xffb   :  { %v18260_v20 = vadd.f32 %v18184_v41, %v9647_v33  ;;  %v9627_v17 = vmul.f32 %v14520_v16, %v18123_v37 }
 0xffc   :  { %v9650_v18 = vmul.f32 %v18177_v34, %v9628_v29 }
 0xffd   :  { %v14522_v59 = vpop.eup %14521  ;;  %13427 = vmatprep.mubr.msk.f32.mxu1 %vm454_vm1, %v18260_v20  ;;  %v9649_v57 = vmul.f32 %v18177_v34, %v9627_v17 }
 0xffe   :  { %v14524_v55 = vpop.eup %14523  ;;  %13428 = vmatmul.mubr.msk.f32.gmra.mrb[196].mxu1 %vm454_vm1, %v18264_v47  ;;  %v9630_v52 = vmul.f32 %v14522_v59, %v18131_v39  ;;  %v18278_v8 = vadd.f32 %v18184_v41, %v9650_v18 }
 0xfff   :  { %v18274_v42 = vadd.f32 %v18184_v41, %v9649_v57  ;;  %v9629_v37 = vmul.f32 %v14524_v55, %v18135_v21  ;;  %v11685_v21 = vld [vmem:[%s18712_s13 + $0x70] sm:$0xff] }
0x1000   :  { %v9652_v2 = vmul.f32 %v18177_v34, %v9630_v52 }
0x1001   :  { %13430 = vmatprep.mubr.msk.f32.mxu1 %vm454_vm1, %v18274_v42  ;;  %v9651_v44 = vmul.f32 %v18177_v34, %v9629_v37  ;;  %v11686_v34 = vld [vmem:[%s18712_s13 + $0x78] sm:$0xff] }
0x1002   :  { %13431 = vmatmul.mubr.msk.f32.gmra.mrb[198].mxu1 %vm454_vm1, %v18278_v8  ;;  %v18290_v19 = vadd.f32 %v18184_v41, %v9652_v2  ;;  %v13898_v9 = vpack.c.bf16 %v11686_v34, %v11685_v21 }
0x1003   :  { %v18287_v39 = vadd.f32 %v18184_v41, %v9651_v44  ;;  %v11662_v41 = vld [vmem:[%s18715_s12 + $0x1] ss:$0 sm:$0xff] }
0x1004   :  { %13899 = vmatprep.subr.bf16.mxu0 %v13898_v9 }
0x1005   :  { %13433 = vmatprep.mubr.msk.f32.mxu1 %vm454_vm1, %v18287_v39  ;;  %13901 = vmatpush3.bf16.msra.mxu0 %v13898_v9 }
0x1006   :  { %13434 = vmatmul.mubr.msk.f32.gmra.mrb[200].mxu1 %vm454_vm1, %v18290_v19 }
0x10bd   :  { %v13414_v26 = vpop.f32.mrb[186].mxu1 }
0x10be   :  { %v9808_v36 = vadd.f32 %v13414_v26, %v11662_v41  ;;  %v9802_v54 = vpop.f32.mrb[187].mxu1 }
0x10bf   :  { %v9803_v12 = vadd.f32 %v11662_v41, %v9802_v54 }
0x10c0   :  { %v9882_v49 = vmax.f32 %v9808_v36, 0.0  ;;  %v18324_v36 = vld [vmem:[%s18716_s14 + $0x1] ss:$0 sm:$0xff] }
0x10c1   :  { %v9881_v43 = vmax.f32 %v9803_v12, 0.0  ;;  %v13417_v25 = vpop.f32.mrb[188].mxu1 }
0x10c2   :  { %v9818_v50 = vadd.f32 %v13417_v25, %v11662_v41  ;;  %v9812_v3 = vpop.f32.mrb[189].mxu1 }
0x10c3   :  { %v9813_v13 = vadd.f32 %v11662_v41, %v9812_v3  ;;  %13452 = vmatprep.mubr.msk.f32.mxu0 %vm4876_vm4, %v9881_v43 }
0x10c4   :  { %13453 = vmatmul.mubr.msk.f32.vlgmr.msra.gmra.mrb[14].mxu0 %vm4876_vm4, %v9882_v49  ;;  %v9884_v51 = vmax.f32 %v9818_v50, 0.0 }
0x10c5   :  { %v9883_v4 = vmax.f32 %v9813_v13, 0.0  ;;  %v13420_v1 = vpop.f32.mrb[190].mxu1 }
0x10c6   :  { %v9828_v58 = vadd.f32 %v13420_v1, %v11662_v41  ;;  %v9822_v7 = vpop.f32.mrb[191].mxu1 }
0x10c7   :  { %v9823_v14 = vadd.f32 %v11662_v41, %v9822_v7  ;;  %13455 = vmatprep.mubr.msk.f32.mxu0 %vm4876_vm4, %v9883_v4 }
0x10c8   :  { %13456 = vmatmul.mubr.msk.f32.gmra.mrb[16].mxu0 %vm4876_vm4, %v9884_v51  ;;  %v9886_v40 = vmax.f32 %v9828_v58, 0.0 }
0x10c9   :  { %v9885_v22 = vmax.f32 %v9823_v14, 0.0  ;;  %v13423_v35 = vpop.f32.mrb[192].mxu1 }
0x10ca   :  { %v9838_v23 = vadd.f32 %v13423_v35, %v11662_v41  ;;  %v9832_v32 = vpop.f32.mrb[193].mxu1 }
0x10cb   :  { %v9833_v60 = vadd.f32 %v11662_v41, %v9832_v32  ;;  %13458 = vmatprep.mubr.msk.f32.mxu0 %vm4876_vm4, %v9885_v22 }
0x10cc   :  { %13459 = vmatmul.mubr.msk.f32.gmra.mrb[18].mxu0 %vm4876_vm4, %v9886_v40  ;;  %v9888_v0 = vmax.f32 %v9838_v23, 0.0 }
0x10cd   :  { %v9887_v56 = vmax.f32 %v9833_v60, 0.0  ;;  %v13426_v11 = vpop.f32.mrb[194].mxu1 }
0x10ce   :  { %v9848_v31 = vadd.f32 %v13426_v11, %v11662_v41  ;;  %v9842_v10 = vpop.f32.mrb[195].mxu1 }
0x10cf   :  { %v9843_v62 = vadd.f32 %v11662_v41, %v9842_v10  ;;  %13461 = vmatprep.mubr.msk.f32.mxu0 %vm4876_vm4, %v9887_v56 }
0x10d0   :  { %13462 = vmatmul.mubr.msk.f32.gmra.mrb[20].mxu0 %vm4876_vm4, %v9888_v0  ;;  %v9890_v61 = vmax.f32 %v9848_v31, 0.0 }
0x10d1   :  { %v9889_v5 = vmax.f32 %v9843_v62, 0.0  ;;  %v13429_v46 = vpop.f32.mrb[196].mxu1 }
0x10d2   :  { %v9858_v24 = vadd.f32 %v13429_v46, %v11662_v41  ;;  %v9852_v33 = vpop.f32.mrb[197].mxu1 }
0x10d3   :  { %v9853_v16 = vadd.f32 %v11662_v41, %v9852_v33  ;;  %13464 = vmatprep.mubr.msk.f32.mxu0 %vm4876_vm4, %v9889_v5 }
0x10d4   :  { %13465 = vmatmul.mubr.msk.f32.gmra.mrb[22].mxu0 %vm4876_vm4, %v9890_v61  ;;  %v9892_v18 = vmax.f32 %v9858_v24, 0.0 }
0x10d5   :  { %v9891_v29 = vmax.f32 %v9853_v16, 0.0  ;;  %v13432_v17 = vpop.f32.mrb[198].mxu1 }
0x10d6   :  { %v9868_v59 = vadd.f32 %v13432_v17, %v11662_v41  ;;  %v9862_v57 = vpop.f32.mrb[199].mxu1 }
0x10d7   :  { %v9863_v55 = vadd.f32 %v11662_v41, %v9862_v57  ;;  %13467 = vmatprep.mubr.msk.f32.mxu0 %vm4876_vm4, %v9891_v29 }
0x10d8   :  { %13468 = vmatmul.mubr.msk.f32.gmra.mrb[24].mxu0 %vm4876_vm4, %v9892_v18  ;;  %v9894_v2 = vmax.f32 %v9868_v59, 0.0 }
0x10d9   :  { %v9893_v52 = vmax.f32 %v9863_v55, 0.0  ;;  %v13435_v37 = vpop.f32.mrb[200].mxu1 }
0x10da   :  { %v9878_v44 = vadd.f32 %v13435_v37, %v11662_v41  ;;  %v9872_v21 = vpop.f32.mrb[201].mxu1 }
0x10db   :  { %v9873_v34 = vadd.f32 %v11662_v41, %v9872_v21  ;;  %13470 = vmatprep.mubr.msk.f32.mxu0 %vm4876_vm4, %v9893_v52 }
0x10dc   :  { %13471 = vmatmul.mubr.msk.f32.gmra.mrb[26].mxu0 %vm4876_vm4, %v9894_v2  ;;  %v9896_v26 = vmax.f32 %v9878_v44, 0.0 }
0x10dd   :  { %v9895_v9 = vmax.f32 %v9873_v34, 0.0 }
0x10df   :  { %13473 = vmatprep.mubr.msk.f32.mxu0 %vm4876_vm4, %v9895_v9 }
0x10e0   :  { %13474 = vmatmul.mubr.msk.f32.gmra.mrb[28].mxu0 %vm4876_vm4, %v9896_v26 }
0x1197   :  { %v13454_v54 = vpop.f32.mrb[14].mxu0 }
0x1198   :  { %v10034_v12 = vadd.f32 %v13454_v54, %v18324_v36  ;;  %v10028_v43 = vpop.f32.mrb[15].mxu0 }
0x1199   :  { %v10029_v41 = vadd.f32 %v18324_v36, %v10028_v43 }
0x119a   :  { %v18329_v25 = vadd.f32 %v10034_v12, %v18194_v53 }
0x119b   :  { %v18332_v49 = vadd.f32 %v10029_v41, %v18190_v48  ;;  %v13457_v50 = vpop.f32.mrb[16].mxu0 }
0x119c   :  { %v10044_v3 = vadd.f32 %v13457_v50, %v18324_v36  ;;  %v10038_v13 = vpop.f32.mrb[17].mxu0  ;;  %v10130_v4 = vsel %vm454_vm1, %v18329_v25, 0.0 }
0x119d   :  { %v10039_v1 = vadd.f32 %v18324_v36, %v10038_v13  ;;  %10131 = vadd.xlane.f32.xlu1 %v10130_v4  ;;  %v10127_v51 = vsel %vm454_vm1, %v18332_v49, 0.0 }
0x119e   :  { %v18341_v58 = vadd.f32 %v10044_v3, %v18208_v38  ;;  %10128 = vadd.xlane.f32.xlu0 %v10127_v51 }
0x119f   :  { %v18344_v48 = vadd.f32 %v10039_v1, %v18204_v15  ;;  %v13460_v53 = vpop.f32.mrb[18].mxu0 }
0x11a0   :  { %v10054_v7 = vadd.f32 %v13460_v53, %v18324_v36  ;;  %v10048_v14 = vpop.f32.mrb[19].mxu0  ;;  %v10136_v22 = vsel %vm454_vm1, %v18341_v58, 0.0 }
0x11a1   :  { %v10049_v35 = vadd.f32 %v18324_v36, %v10048_v14  ;;  %10137 = vadd.xlane.f32.xlu1 %v10136_v22  ;;  %v10133_v40 = vsel %vm454_vm1, %v18344_v48, 0.0 }
0x11a2   :  { %v18353_v38 = vadd.f32 %v10054_v7, %v18222_v27  ;;  %10134 = vadd.xlane.f32.xlu0 %v10133_v40 }
0x11a3   :  { %v18356_v15 = vadd.f32 %v10049_v35, %v18218_v63  ;;  %v13463_v23 = vpop.f32.mrb[20].mxu0 }
0x11a4   :  { %v10064_v32 = vadd.f32 %v13463_v23, %v18324_v36  ;;  %v10058_v60 = vpop.f32.mrb[21].mxu0  ;;  %v10142_v56 = vsel %vm454_vm1, %v18353_v38, 0.0 }
0x11a5   :  { %v10059_v11 = vadd.f32 %v18324_v36, %v10058_v60  ;;  %10143 = vadd.xlane.f32.xlu1 %v10142_v56  ;;  %v10139_v0 = vsel %vm454_vm1, %v18356_v15, 0.0 }
0x11a6   :  { %v18365_v27 = vadd.f32 %v10064_v32, %v18236_v30  ;;  %10140 = vadd.xlane.f32.xlu0 %v10139_v0 }
0x11a7   :  { %v18368_v63 = vadd.f32 %v10059_v11, %v18232_v28  ;;  %v13466_v31 = vpop.f32.mrb[22].mxu0 }
0x11a8   :  { %v10074_v10 = vadd.f32 %v13466_v31, %v18324_v36  ;;  %v10068_v62 = vpop.f32.mrb[23].mxu0  ;;  %v10148_v5 = vsel %vm454_vm1, %v18365_v27, 0.0 }
0x11a9   :  { %v10069_v46 = vadd.f32 %v18324_v36, %v10068_v62  ;;  %10149 = vadd.xlane.f32.xlu1 %v10148_v5  ;;  %v10145_v61 = vsel %vm454_vm1, %v18368_v63, 0.0 }
0x11aa   :  { %v18377_v30 = vadd.f32 %v10074_v10, %v18250_v6  ;;  %10146 = vadd.xlane.f32.xlu0 %v10145_v61 }
0x11ab   :  { %v18380_v28 = vadd.f32 %v10069_v46, %v18246_v45  ;;  %v13469_v24 = vpop.f32.mrb[24].mxu0 }
0x11ac   :  { %v10084_v33 = vadd.f32 %v13469_v24, %v18324_v36  ;;  %v10078_v16 = vpop.f32.mrb[25].mxu0  ;;  %v10154_v29 = vsel %vm454_vm1, %v18377_v30, 0.0 }
0x11ad   :  { %v10079_v17 = vadd.f32 %v18324_v36, %v10078_v16  ;;  %10155 = vadd.xlane.f32.xlu1 %v10154_v29  ;;  %v10151_v18 = vsel %vm454_vm1, %v18380_v28, 0.0 }
0x11ae   :  { %v18389_v6 = vadd.f32 %v10084_v33, %v18264_v47  ;;  %10152 = vadd.xlane.f32.xlu0 %v10151_v18 }
0x11af   :  { %v18392_v45 = vadd.f32 %v10079_v17, %v18260_v20  ;;  %v13472_v59 = vpop.f32.mrb[26].mxu0 }
0x11b0   :  { %v10094_v57 = vadd.f32 %v13472_v59, %v18324_v36  ;;  %v10088_v55 = vpop.f32.mrb[27].mxu0  ;;  %v10160_v52 = vsel %vm454_vm1, %v18389_v6, 0.0 }
0x11b1   :  { %v10089_v37 = vadd.f32 %v18324_v36, %v10088_v55  ;;  %10161 = vadd.xlane.f32.xlu1 %v10160_v52  ;;  %v10157_v2 = vsel %vm454_vm1, %v18392_v45, 0.0 }
0x11b2   :  { %v18401_v47 = vadd.f32 %v10094_v57, %v18278_v8  ;;  %10158 = vadd.xlane.f32.xlu0 %v10157_v2 }
0x11b3   :  { %v18404_v20 = vadd.f32 %v10089_v37, %v18274_v42  ;;  %v13475_v44 = vpop.f32.mrb[28].mxu0 }
0x11b4   :  { %v10104_v21 = vadd.f32 %v13475_v44, %v18324_v36  ;;  %v10098_v34 = vpop.f32.mrb[29].mxu0  ;;  %v10166_v9 = vsel %vm454_vm1, %v18401_v47, 0.0 }
0x11b5   :  { %v10099_v26 = vadd.f32 %v18324_v36, %v10098_v34  ;;  %10167 = vadd.xlane.f32.xlu1 %v10166_v9  ;;  %v10163_v54 = vsel %vm454_vm1, %v18404_v20, 0.0 }
0x11b6   :  { %v18413_v8 = vadd.f32 %v10104_v21, %v18290_v19  ;;  %10164 = vadd.xlane.f32.xlu0 %v10163_v54 }
0x11b7   :  { %v18416_v42 = vadd.f32 %v10099_v26, %v18287_v39 }
0x11b8   :  { %v10172_v12 = vsel %vm454_vm1, %v18413_v8, 0.0 }
0x11b9   :  { %10173 = vadd.xlane.f32.xlu1 %v10172_v12  ;;  %v10169_v43 = vsel %vm454_vm1, %v18416_v42, 0.0 }
0x11ba   :  { %10170 = vadd.xlane.f32.xlu0 %v10169_v43 }
0x122a   :  { %v10132_v36 = vpop.xlane.xlu1 %10131 }
0x122b   :  { %v10176_v41 = vmul.f32 0.03125, %v10132_v36  ;;  %v10129_v50 = vpop.xlane.xlu0 %10128 }
0x122c   :  { %v10175_v3 = vmul.f32 0.03125, %v10129_v50 }
0x122d   :  { %v18423_v13 = vsub.f32 %v18329_v25, %v10176_v41 }
0x122e   :  { %v18426_v19 = vsub.f32 %v18332_v49, %v10175_v3  ;;  %v10138_v39 = vpop.xlane.xlu1 %10137 }
0x122f   :  { %v10178_v4 = vmul.f32 0.03125, %v10138_v39  ;;  %v10135_v1 = vpop.xlane.xlu0 %10134  ;;  %v10208_v51 = vmul.f32 %v18423_v13, %v18423_v13 }
0x1230   :  { %v10177_v53 = vmul.f32 0.03125, %v10135_v1  ;;  %v10207_v7 = vmul.f32 %v18426_v19, %v18426_v19 }
0x1231   :  { %v18433_v14 = vsub.f32 %v18341_v58, %v10178_v4  ;;  %v10226_v22 = vsel %vm454_vm1, %v10208_v51, 0.0 }
0x1232   :  { %v18437_v25 = vsub.f32 %v18344_v48, %v10177_v53  ;;  %v10144_v49 = vpop.xlane.xlu1 %10143  ;;  %10227 = vadd.xlane.f32.xlu1 %v10226_v22  ;;  %v10223_v35 = vsel %vm454_vm1, %v10207_v7, 0.0 }
0x1233   :  { %v10180_v40 = vmul.f32 0.03125, %v10144_v49  ;;  %10224 = vadd.xlane.f32.xlu0 %v10223_v35  ;;  %v10141_v23 = vpop.xlane.xlu0 %10140  ;;  %v10210_v32 = vmul.f32 %v18433_v14, %v18433_v14 }
0x1234   :  { %v10179_v60 = vmul.f32 0.03125, %v10141_v23  ;;  %v10209_v58 = vmul.f32 %v18437_v25, %v18437_v25 }
0x1235   :  { %v18445_v56 = vsub.f32 %v18353_v38, %v10180_v40  ;;  %v10232_v48 = vsel %vm454_vm1, %v10210_v32, 0.0 }
0x1236   :  { %v18449_v11 = vsub.f32 %v18356_v15, %v10179_v60  ;;  %v10150_v0 = vpop.xlane.xlu1 %10149  ;;  %10233 = vadd.xlane.f32.xlu1 %v10232_v48  ;;  %v10229_v31 = vsel %vm454_vm1, %v10209_v58, 0.0  ;;  %v10380_v58 = vld [vmem:[%s18719_s17 + $0x8] sm:$0xff] }
0x1237   :  { %v10182_v10 = vmul.f32 0.03125, %v10150_v0  ;;  %10230 = vadd.xlane.f32.xlu0 %v10229_v31  ;;  %v10147_v62 = vpop.xlane.xlu0 %10146  ;;  %v10212_v5 = vmul.f32 %v18445_v56, %v18445_v56  ;;  %v10381_v0 = vld [vmem:[%s18719_s17 + $0x10] sm:$0xff]  ;;  %v10382_v31 = vld [vmem:[%s18719_s17 + $0x18] sm:$0xff] }
0x1238   :  { %v10181_v46 = vmul.f32 0.03125, %v10147_v62  ;;  %v10211_v38 = vmul.f32 %v18449_v11, %v18449_v11 }
0x1239   :  { %v18457_v61 = vsub.f32 %v18365_v27, %v10182_v10  ;;  %v10238_v15 = vsel %vm454_vm1, %v10212_v5, 0.0  ;;  %v13906_v10 = vpack.c.bf16 %v10382_v31, %v10381_v0 }
0x123a   :  { %v18461_v24 = vsub.f32 %v18368_v63, %v10181_v46  ;;  %v10156_v33 = vpop.xlane.xlu1 %10155  ;;  %10239 = vadd.xlane.f32.xlu1 %v10238_v15  ;;  %v10235_v16 = vsel %vm454_vm1, %v10211_v38, 0.0 }
0x123b   :  { %v10184_v29 = vmul.f32 0.03125, %v10156_v33  ;;  %10236 = vadd.xlane.f32.xlu0 %v10235_v16  ;;  %v10153_v17 = vpop.xlane.xlu0 %10152  ;;  %v10214_v18 = vmul.f32 %v18457_v61, %v18457_v61 }
0x123c   :  { %v10183_v59 = vmul.f32 0.03125, %v10153_v17  ;;  %v10213_v27 = vmul.f32 %v18461_v24, %v18461_v24 }
0x123d   :  { %v18469_v57 = vsub.f32 %v18377_v30, %v10184_v29  ;;  %v10244_v63 = vsel %vm454_vm1, %v10214_v18, 0.0 }
0x123e   :  { %v18473_v55 = vsub.f32 %v18380_v28, %v10183_v59  ;;  %v10162_v52 = vpop.xlane.xlu1 %10161  ;;  %10245 = vadd.xlane.f32.xlu1 %v10244_v63  ;;  %v10241_v37 = vsel %vm454_vm1, %v10213_v27, 0.0 }
0x123f   :  { %v10186_v2 = vmul.f32 0.03125, %v10162_v52  ;;  %10242 = vadd.xlane.f32.xlu0 %v10241_v37  ;;  %v10159_v44 = vpop.xlane.xlu0 %10158  ;;  %v10216_v21 = vmul.f32 %v18469_v57, %v18469_v57 }
0x1240   :  { %v10185_v34 = vmul.f32 0.03125, %v10159_v44  ;;  %v10215_v30 = vmul.f32 %v18473_v55, %v18473_v55 }
0x1241   :  { %v18481_v9 = vsub.f32 %v18389_v6, %v10186_v2  ;;  %v10250_v28 = vsel %vm454_vm1, %v10216_v21, 0.0 }
0x1242   :  { %v18485_v26 = vsub.f32 %v18392_v45, %v10185_v34  ;;  %v10168_v54 = vpop.xlane.xlu1 %10167  ;;  %10251 = vadd.xlane.f32.xlu1 %v10250_v28  ;;  %v10247_v12 = vsel %vm454_vm1, %v10215_v30, 0.0 }
0x1243   :  { %v10188_v43 = vmul.f32 0.03125, %v10168_v54  ;;  %10248 = vadd.xlane.f32.xlu0 %v10247_v12  ;;  %v10165_v36 = vpop.xlane.xlu0 %10164  ;;  %v10218_v41 = vmul.f32 %v18481_v9, %v18481_v9 }
0x1244   :  { %v10187_v50 = vmul.f32 0.03125, %v10165_v36  ;;  %v10217_v6 = vmul.f32 %v18485_v26, %v18485_v26 }
0x1245   :  { %v18493_v3 = vsub.f32 %v18401_v47, %v10188_v43  ;;  %v10256_v45 = vsel %vm454_vm1, %v10218_v41, 0.0  ;;  %v18533_v43 = vld [vmem:[%s18717_s15 + $0x1] ss:$0 sm:$0xff] }
0x1246   :  { %v18497_v39 = vsub.f32 %v18404_v20, %v10187_v50  ;;  %10257 = vadd.xlane.f32.xlu1 %v10256_v45  ;;  %v10174_v4 = vpop.xlane.xlu1 %10173  ;;  %v10253_v1 = vsel %vm454_vm1, %v10217_v6, 0.0 }
0x1247   :  { %v10190_v51 = vmul.f32 0.03125, %v10174_v4  ;;  %10254 = vadd.xlane.f32.xlu0 %v10253_v1  ;;  %v10171_v53 = vpop.xlane.xlu0 %10170  ;;  %v10220_v7 = vmul.f32 %v18493_v3, %v18493_v3 }
0x1248   :  { %v10189_v22 = vmul.f32 0.03125, %v10171_v53  ;;  %v10219_v47 = vmul.f32 %v18497_v39, %v18497_v39  ;;  %v18540_v53 = vld [vmem:[%s18718_s16 + $0x1] ss:$0 sm:$0xff] }
0x1249   :  { %v18505_v49 = vsub.f32 %v18413_v8, %v10190_v51  ;;  %v10262_v20 = vsel %vm454_vm1, %v10220_v7, 0.0 }
0x124a   :  { %v18509_v35 = vsub.f32 %v18416_v42, %v10189_v22  ;;  %10263 = vadd.xlane.f32.xlu1 %v10262_v20  ;;  %v10259_v40 = vsel %vm454_vm1, %v10219_v47, 0.0  ;;  %v10379_v42 = vld [vmem:[%s18719_s17] sm:$0xff] }
0x124b   :  { %10260 = vadd.xlane.f32.xlu0 %v10259_v40  ;;  %v10222_v23 = vmul.f32 %v18505_v49, %v18505_v49  ;;  %v13902_v48 = vpack.c.bf16 %v10380_v58, %v10379_v42 }
0x124c   :  { %v10221_v32 = vmul.f32 %v18509_v35, %v18509_v35 }
0x124d   :  { %v10268_v60 = vsel %vm454_vm1, %v10222_v23, 0.0  ;;  %13903 = vmatprep.subr.bf16.mxu1 %v13902_v48 }
0x124e   :  { %10269 = vadd.xlane.f32.xlu1 %v10268_v60  ;;  %v10265_v8 = vsel %vm454_vm1, %v10221_v32, 0.0  ;;  %13905 = vmatpush3.bf16.msra.mxu1 %v13902_v48 }
0x124f   :  { %10266 = vadd.xlane.f32.xlu0 %v10265_v8  ;;  %13907 = vmatprep.subr.bf16.mxu1 %v13906_v10 }
0x1252   :  { %13909 = vmatpush3.bf16.msra.mxu1 %v13906_v10 }
0x12bf   :  { %v10228_v62 = vpop.xlane.xlu1 %10227 }
0x12c0   :  { %v10272_v5 = vmul.f32 0.03125, %v10228_v62  ;;  %v10225_v46 = vpop.xlane.xlu0 %10224 }
0x12c1   :  { %v10271_v38 = vmul.f32 0.03125, %v10225_v46 }
0x12c2   :  { %v10288_v15 = vadd.f32 1e-05, %v10272_v5 }
0x12c3   :  { %v10287_v33 = vadd.f32 1e-05, %v10271_v38  ;;  %v10234_v16 = vpop.xlane.xlu1 %10233 }
0x12c4   :  { %14525 = vrsqrt.f32 %v10288_v15  ;;  %v10274_v29 = vmul.f32 0.03125, %v10234_v16  ;;  %v10231_v17 = vpop.xlane.xlu0 %10230 }
0x12c5   :  { %14527 = vrsqrt.f32 %v10287_v33  ;;  %v10273_v18 = vmul.f32 0.03125, %v10231_v17 }
0x12c6   :  { %v10290_v59 = vadd.f32 1e-05, %v10274_v29 }
0x12c7   :  { %v10289_v27 = vadd.f32 1e-05, %v10273_v18  ;;  %v10240_v63 = vpop.xlane.xlu1 %10239 }
0x12c8   :  { %14529 = vrsqrt.f32 %v10290_v59  ;;  %v10276_v52 = vmul.f32 0.03125, %v10240_v63  ;;  %v10237_v37 = vpop.xlane.xlu0 %10236 }
0x12c9   :  { %14531 = vrsqrt.f32 %v10289_v27  ;;  %v10275_v2 = vmul.f32 0.03125, %v10237_v37 }
0x12ca   :  { %v10292_v44 = vadd.f32 1e-05, %v10276_v52 }
0x12cb   :  { %v10291_v21 = vadd.f32 1e-05, %v10275_v2  ;;  %v10246_v34 = vpop.xlane.xlu1 %10245 }
0x12cc   :  { %14533 = vrsqrt.f32 %v10292_v44  ;;  %v10278_v30 = vmul.f32 0.03125, %v10246_v34  ;;  %v10243_v28 = vpop.xlane.xlu0 %10242 }
0x12cd   :  { %14535 = vrsqrt.f32 %v10291_v21  ;;  %v10277_v54 = vmul.f32 0.03125, %v10243_v28 }
0x12ce   :  { %v14526_v12 = vpop.eup %14525  ;;  %v10294_v36 = vadd.f32 1e-05, %v10278_v30 }
0x12cf   :  { %v14528_v41 = vpop.eup %14527  ;;  %v10320_v50 = vmul.f32 %v14526_v12, %v18423_v13  ;;  %v10293_v6 = vadd.f32 1e-05, %v10277_v54  ;;  %v10252_v45 = vpop.xlane.xlu1 %10251 }
0x12d0   :  { %14537 = vrsqrt.f32 %v10294_v36  ;;  %v10280_v4 = vmul.f32 0.03125, %v10252_v45  ;;  %v10249_v1 = vpop.xlane.xlu0 %10248  ;;  %v10319_v51 = vmul.f32 %v14528_v41, %v18426_v19 }
0x12d1   :  { %v10342_v7 = vmul.f32 %v18533_v43, %v10320_v50  ;;  %14539 = vrsqrt.f32 %v10293_v6  ;;  %v10279_v22 = vmul.f32 0.03125, %v10249_v1 }
0x12d2   :  { %v14530_v47 = vpop.eup %14529  ;;  %v10296_v20 = vadd.f32 1e-05, %v10280_v4  ;;  %v10341_v13 = vmul.f32 %v18533_v43, %v10319_v51 }
0x12d3   :  { %v14532_v40 = vpop.eup %14531  ;;  %v10295_v23 = vadd.f32 1e-05, %v10279_v22  ;;  %v10258_v32 = vpop.xlane.xlu1 %10257  ;;  %v10322_v60 = vmul.f32 %v14530_v47, %v18433_v14  ;;  %v10364_v48 = vadd.f32 %v18540_v53, %v10342_v7 }
0x12d4   :  { %14541 = vrsqrt.f32 %v10296_v20  ;;  %v10282_v19 = vmul.f32 0.03125, %v10258_v32  ;;  %v10255_v8 = vpop.xlane.xlu0 %10254  ;;  %v10363_v42 = vadd.f32 %v18540_v53, %v10341_v13  ;;  %v10321_v58 = vmul.f32 %v14532_v40, %v18437_v25 }
0x12d5   :  { %14543 = vrsqrt.f32 %v10295_v23  ;;  %v10281_v0 = vmul.f32 0.03125, %v10255_v8  ;;  %v10344_v31 = vmul.f32 %v18533_v43, %v10322_v60 }
0x12d6   :  { %v14534_v10 = vpop.eup %14533  ;;  %v10298_v62 = vadd.f32 1e-05, %v10282_v19  ;;  %13484 = vmatprep.mubr.msk.f32.mxu1 %vm454_vm1, %v10363_v42  ;;  %v10343_v5 = vmul.f32 %v18533_v43, %v10321_v58 }
0x12d7   :  { %v14536_v14 = vpop.eup %14535  ;;  %v10297_v46 = vadd.f32 1e-05, %v10281_v0  ;;  %v10264_v38 = vpop.xlane.xlu1 %10263  ;;  %13485 = vmatmul.mubr.msk.f32.vlgmr.msra.gmra.mrb[202].mxu1 %vm454_vm1, %v10364_v48  ;;  %v10324_v15 = vmul.f32 %v14534_v10, %v18445_v56  ;;  %v10366_v18 = vadd.f32 %v18540_v53, %v10344_v31 }
0x12d8   :  { %14545 = vrsqrt.f32 %v10298_v62  ;;  %v10284_v25 = vmul.f32 0.03125, %v10264_v38  ;;  %v10261_v33 = vpop.xlane.xlu0 %10260  ;;  %v10365_v16 = vadd.f32 %v18540_v53, %v10343_v5  ;;  %v10323_v29 = vmul.f32 %v14536_v14, %v18449_v11 }
0x12d9   :  { %14547 = vrsqrt.f32 %v10297_v46  ;;  %v10283_v17 = vmul.f32 0.03125, %v10261_v33  ;;  %v10346_v59 = vmul.f32 %v18533_v43, %v10324_v15 }
0x12da   :  { %v14538_v27 = vpop.eup %14537  ;;  %v10300_v63 = vadd.f32 1e-05, %v10284_v25  ;;  %13487 = vmatprep.mubr.msk.f32.mxu1 %vm454_vm1, %v10365_v16  ;;  %v10345_v52 = vmul.f32 %v18533_v43, %v10323_v29 }
0x12db   :  { %v14540_v56 = vpop.eup %14539  ;;  %v10299_v37 = vadd.f32 1e-05, %v10283_v17  ;;  %v10270_v2 = vpop.xlane.xlu1 %10269  ;;  %13488 = vmatmul.mubr.msk.f32.gmra.mrb[204].mxu1 %vm454_vm1, %v10366_v18  ;;  %v10326_v44 = vmul.f32 %v14538_v27, %v18457_v61  ;;  %v10368_v54 = vadd.f32 %v18540_v53, %v10346_v59 }
0x12dc   :  { %14549 = vrsqrt.f32 %v10300_v63  ;;  %v10286_v11 = vmul.f32 0.03125, %v10270_v2  ;;  %v10267_v21 = vpop.xlane.xlu0 %10266  ;;  %v10367_v34 = vadd.f32 %v18540_v53, %v10345_v52  ;;  %v10325_v30 = vmul.f32 %v14540_v56, %v18461_v24 }
0x12dd   :  { %14551 = vrsqrt.f32 %v10299_v37  ;;  %v10285_v28 = vmul.f32 0.03125, %v10267_v21  ;;  %v10348_v12 = vmul.f32 %v18533_v43, %v10326_v44 }
0x12de   :  { %v14542_v36 = vpop.eup %14541  ;;  %v10302_v41 = vadd.f32 1e-05, %v10286_v11  ;;  %13490 = vmatprep.mubr.msk.f32.mxu1 %vm454_vm1, %v10367_v34  ;;  %v10347_v50 = vmul.f32 %v18533_v43, %v10325_v30 }
0x12df   :  { %v14544_v61 = vpop.eup %14543  ;;  %v10301_v6 = vadd.f32 1e-05, %v10285_v28  ;;  %13491 = vmatmul.mubr.msk.f32.gmra.mrb[206].mxu1 %vm454_vm1, %v10368_v54  ;;  %v10328_v45 = vmul.f32 %v14542_v36, %v18469_v57  ;;  %v10370_v1 = vadd.f32 %v18540_v53, %v10348_v12 }
0x12e0   :  { %14553 = vrsqrt.f32 %v10302_v41  ;;  %v10369_v24 = vadd.f32 %v18540_v53, %v10347_v50  ;;  %v10327_v4 = vmul.f32 %v14544_v61, %v18473_v55 }
0x12e1   :  { %14555 = vrsqrt.f32 %v10301_v6  ;;  %v10350_v51 = vmul.f32 %v18533_v43, %v10328_v45 }
0x12e2   :  { %v14546_v7 = vpop.eup %14545  ;;  %13493 = vmatprep.mubr.msk.f32.mxu1 %vm454_vm1, %v10369_v24  ;;  %v10349_v22 = vmul.f32 %v18533_v43, %v10327_v4 }
0x12e3   :  { %v14548_v47 = vpop.eup %14547  ;;  %13494 = vmatmul.mubr.msk.f32.gmra.mrb[208].mxu1 %vm454_vm1, %v10370_v1  ;;  %v10330_v57 = vmul.f32 %v14546_v7, %v18481_v9  ;;  %v10372_v55 = vadd.f32 %v18540_v53, %v10350_v51 }
0x12e4   :  { %v10371_v20 = vadd.f32 %v18540_v53, %v10349_v22  ;;  %v10329_v13 = vmul.f32 %v14548_v47, %v18485_v26 }
0x12e5   :  { %v10352_v40 = vmul.f32 %v18533_v43, %v10330_v57 }
0x12e6   :  { %v14550_v23 = vpop.eup %14549  ;;  %13496 = vmatprep.mubr.msk.f32.mxu1 %vm454_vm1, %v10371_v20  ;;  %v10351_v32 = vmul.f32 %v18533_v43, %v10329_v13 }
0x12e7   :  { %v14552_v60 = vpop.eup %14551  ;;  %13497 = vmatmul.mubr.msk.f32.gmra.mrb[210].mxu1 %vm454_vm1, %v10372_v55  ;;  %v10332_v19 = vmul.f32 %v14550_v23, %v18493_v3  ;;  %v10374_v26 = vadd.f32 %v18540_v53, %v10352_v40 }
0x12e8   :  { %v10373_v9 = vadd.f32 %v18540_v53, %v10351_v32  ;;  %v10331_v8 = vmul.f32 %v14552_v60, %v18497_v39 }
0x12e9   :  { %v10354_v42 = vmul.f32 %v18533_v43, %v10332_v19 }
0x12ea   :  { %v14554_v58 = vpop.eup %14553  ;;  %13499 = vmatprep.mubr.msk.f32.mxu1 %vm454_vm1, %v10373_v9  ;;  %v10353_v48 = vmul.f32 %v18533_v43, %v10331_v8 }
0x12eb   :  { %v14556_v0 = vpop.eup %14555  ;;  %13500 = vmatmul.mubr.msk.f32.gmra.mrb[212].mxu1 %vm454_vm1, %v10374_v26  ;;  %v10334_v31 = vmul.f32 %v14554_v58, %v18505_v49  ;;  %v10376_v39 = vadd.f32 %v18540_v53, %v10354_v42  ;;  %v10599_v49 = vld [vmem:[%s18720_s19] sm:$0xff] }
0x12ec   :  { %v10375_v3 = vadd.f32 %v18540_v53, %v10353_v48  ;;  %v10333_v10 = vmul.f32 %v14556_v0, %v18509_v35  ;;  %v10600_v35 = vld [vmem:[%s18720_s19 + $0x8] sm:$0xff]  ;;  %v10818_v42 = vld [vmem:[%s18722_s21] sm:$0xff] }
0x12ed   :  { %v10356_v62 = vmul.f32 %v18533_v43, %v10334_v31  ;;  %v13910_v38 = vpack.c.bf16 %v10600_v35, %v10599_v49  ;;  %13536 = vmatprep.subr.mxu1 %v10818_v42  ;;  %v11726_v58 = vld [vmem:[%s18723_s20] ss:$0 sm:$0xff] }
0x12ee   :  { %13502 = vmatprep.mubr.msk.f32.mxu1 %vm454_vm1, %v10375_v3  ;;  %v10355_v5 = vmul.f32 %v18533_v43, %v10333_v10  ;;  %v11709_v43 = vld [vmem:[%s18721_s18] ss:$0 sm:$0xff]  ;;  %13537 = vmatpush3.msra.mxu1 %v10818_v42 }
0x12ef   :  { %13503 = vmatmul.mubr.msk.f32.gmra.mrb[214].mxu1 %vm454_vm1, %v10376_v39  ;;  %v10378_v46 = vadd.f32 %v18540_v53, %v10356_v62  ;;  %13911 = vmatprep.subr.bf16.mxu0 %v13910_v38 }
0x12f0   :  { %v10377_v14 = vadd.f32 %v18540_v53, %v10355_v5  ;;  %13913 = vmatpush3.bf16.msra.mxu0 %v13910_v38 }
0x12f2   :  { %13505 = vmatprep.mubr.msk.f32.mxu1 %vm454_vm1, %v10377_v14 }
0x12f3   :  { %13506 = vmatmul.mubr.msk.f32.gmra.mrb[216].mxu1 %vm454_vm1, %v10378_v46 }
0x13aa   :  { %v13486_v53 = vpop.f32.mrb[202].mxu1 }
0x13ab   :  { %v10510_v15 = vadd.f32 %v13486_v53, %v11709_v43  ;;  %v10504_v25 = vpop.f32.mrb[203].mxu1 }
0x13ac   :  { %v10505_v33 = vadd.f32 %v11709_v43, %v10504_v25 }
0x13ad   :  { %v10584_v17 = vmax.f32 %v10510_v15, 0.0 }
0x13ae   :  { %v10583_v16 = vmax.f32 %v10505_v33, 0.0  ;;  %v13489_v29 = vpop.f32.mrb[204].mxu1 }
0x13af   :  { %v10520_v18 = vadd.f32 %v13489_v29, %v11709_v43  ;;  %v10514_v59 = vpop.f32.mrb[205].mxu1 }
0x13b0   :  { %v10515_v27 = vadd.f32 %v11709_v43, %v10514_v59  ;;  %13512 = vmatprep.mubr.msk.f32.mxu0 %vm10608_vm5, %v10583_v16 }
0x13b1   :  { %13513 = vmatmul.mubr.msk.f32.vlgmr.msra.gmra.mrb[30].mxu0 %vm10608_vm5, %v10584_v17  ;;  %v10586_v56 = vmax.f32 %v10520_v18, 0.0 }
0x13b2   :  { %v10585_v63 = vmax.f32 %v10515_v27, 0.0  ;;  %v13492_v52 = vpop.f32.mrb[206].mxu1 }
0x13b3   :  { %v10530_v37 = vadd.f32 %v13492_v52, %v11709_v43  ;;  %v10524_v2 = vpop.f32.mrb[207].mxu1 }
0x13b4   :  { %v10525_v44 = vadd.f32 %v11709_v43, %v10524_v2  ;;  %13515 = vmatprep.mubr.msk.f32.mxu0 %vm10608_vm5, %v10585_v63 }
0x13b5   :  { %13516 = vmatmul.mubr.msk.f32.gmra.mrb[32].mxu0 %vm10608_vm5, %v10586_v56  ;;  %v10588_v34 = vmax.f32 %v10530_v37, 0.0 }
0x13b6   :  { %v10587_v11 = vmax.f32 %v10525_v44, 0.0  ;;  %v13495_v21 = vpop.f32.mrb[208].mxu1 }
0x13b7   :  { %v10540_v30 = vadd.f32 %v13495_v21, %v11709_v43  ;;  %v10534_v28 = vpop.f32.mrb[209].mxu1 }
0x13b8   :  { %v10535_v54 = vadd.f32 %v11709_v43, %v10534_v28  ;;  %13518 = vmatprep.mubr.msk.f32.mxu0 %vm10608_vm5, %v10587_v11 }
0x13b9   :  { %13519 = vmatmul.mubr.msk.f32.gmra.mrb[34].mxu0 %vm10608_vm5, %v10588_v34  ;;  %v10590_v41 = vmax.f32 %v10540_v30, 0.0 }
0x13ba   :  { %v10589_v12 = vmax.f32 %v10535_v54, 0.0  ;;  %v13498_v36 = vpop.f32.mrb[210].mxu1 }
0x13bb   :  { %v10550_v50 = vadd.f32 %v13498_v36, %v11709_v43  ;;  %v10544_v61 = vpop.f32.mrb[211].mxu1 }
0x13bc   :  { %v10545_v6 = vadd.f32 %v11709_v43, %v10544_v61  ;;  %13521 = vmatprep.mubr.msk.f32.mxu0 %vm10608_vm5, %v10589_v12 }
0x13bd   :  { %13522 = vmatmul.mubr.msk.f32.gmra.mrb[36].mxu0 %vm10608_vm5, %v10590_v41  ;;  %v10592_v4 = vmax.f32 %v10550_v50, 0.0 }
0x13be   :  { %v10591_v45 = vmax.f32 %v10545_v6, 0.0  ;;  %v13501_v24 = vpop.f32.mrb[212].mxu1 }
0x13bf   :  { %v10560_v1 = vadd.f32 %v13501_v24, %v11709_v43  ;;  %v10554_v51 = vpop.f32.mrb[213].mxu1 }
0x13c0   :  { %v10555_v7 = vadd.f32 %v11709_v43, %v10554_v51  ;;  %13524 = vmatprep.mubr.msk.f32.mxu0 %vm10608_vm5, %v10591_v45 }
0x13c1   :  { %13525 = vmatmul.mubr.msk.f32.gmra.mrb[38].mxu0 %vm10608_vm5, %v10592_v4  ;;  %v10594_v57 = vmax.f32 %v10560_v1, 0.0 }
0x13c2   :  { %v10593_v22 = vmax.f32 %v10555_v7, 0.0  ;;  %v13504_v47 = vpop.f32.mrb[214].mxu1 }
0x13c3   :  { %v10570_v20 = vadd.f32 %v13504_v47, %v11709_v43  ;;  %v10564_v13 = vpop.f32.mrb[215].mxu1 }
0x13c4   :  { %v10565_v55 = vadd.f32 %v11709_v43, %v10564_v13  ;;  %13527 = vmatprep.mubr.msk.f32.mxu0 %vm10608_vm5, %v10593_v22  ;;  %v11743_v22 = vld [vmem:[%s18724_s22] ss:$0 sm:$0xff] }
0x13c5   :  { %13528 = vmatmul.mubr.msk.f32.gmra.mrb[40].mxu0 %vm10608_vm5, %v10594_v57  ;;  %v10596_v32 = vmax.f32 %v10570_v20, 0.0 }
0x13c6   :  { %v10595_v40 = vmax.f32 %v10565_v55, 0.0  ;;  %v13507_v23 = vpop.f32.mrb[216].mxu1 }
0x13c7   :  { %v10580_v60 = vadd.f32 %v13507_v23, %v11709_v43  ;;  %v10574_v19 = vpop.f32.mrb[217].mxu1 }
0x13c8   :  { %v10575_v9 = vadd.f32 %v11709_v43, %v10574_v19  ;;  %13530 = vmatprep.mubr.msk.f32.mxu0 %vm10608_vm5, %v10595_v40 }
0x13c9   :  { %13531 = vmatmul.mubr.msk.f32.gmra.mrb[42].mxu0 %vm10608_vm5, %v10596_v32  ;;  %v10598_v26 = vmax.f32 %v10580_v60, 0.0 }
0x13ca   :  { %v10597_v8 = vmax.f32 %v10575_v9, 0.0 }
0x13cc   :  { %13533 = vmatprep.mubr.msk.f32.mxu0 %vm10608_vm5, %v10597_v8 }
0x13cd   :  { %13534 = vmatmul.mubr.msk.f32.gmra.mrb[44].mxu0 %vm10608_vm5, %v10598_v26 }
0x1484   :  { %v13514_v48 = vpop.f32.mrb[30].mxu0 }
0x1485   :  { %v10729_v0 = vadd.f32 %v13514_v48, %v11726_v58  ;;  %v10723_v31 = vpop.f32.mrb[31].mxu0 }
0x1486   :  { %v10724_v3 = vadd.f32 %v11726_v58, %v10723_v31 }
0x1487   :  { %v10803_v62 = vmax.f32 %v10729_v0, 0.0 }
0x1488   :  { %v10802_v10 = vmax.f32 %v10724_v3, 0.0  ;;  %v13517_v39 = vpop.f32.mrb[32].mxu0 }
0x1489   :  { %v10739_v5 = vadd.f32 %v13517_v39, %v11726_v58  ;;  %v10733_v14 = vpop.f32.mrb[33].mxu0 }
0x148a   :  { %v10734_v46 = vadd.f32 %v11726_v58, %v10733_v14  ;;  %13538 = vmatprep.mubr.msk.f32.mxu1 %vm1114_vm3, %v10802_v10 }
0x148b   :  { %13539 = vmatmul.mubr.msk.f32.vlgmr.msra.gmra.mrb[218].mxu1 %vm1114_vm3, %v10803_v62  ;;  %v10805_v38 = vmax.f32 %v10739_v5, 0.0 }
0x148c   :  { %v10804_v49 = vmax.f32 %v10734_v46, 0.0  ;;  %v13520_v35 = vpop.f32.mrb[34].mxu0 }
0x148d   :  { %v10749_v43 = vadd.f32 %v13520_v35, %v11726_v58  ;;  %v10743_v53 = vpop.f32.mrb[35].mxu0 }
0x148e   :  { %v10744_v15 = vadd.f32 %v11726_v58, %v10743_v53  ;;  %13541 = vmatprep.mubr.msk.f32.mxu1 %vm1114_vm3, %v10804_v49 }
0x148f   :  { %13542 = vmatmul.mubr.msk.f32.gmra.mrb[220].mxu1 %vm1114_vm3, %v10805_v38  ;;  %v10807_v16 = vmax.f32 %v10749_v43, 0.0 }
0x1490   :  { %v10806_v25 = vmax.f32 %v10744_v15, 0.0  ;;  %v13523_v33 = vpop.f32.mrb[36].mxu0 }
0x1491   :  { %v10759_v29 = vadd.f32 %v13523_v33, %v11726_v58  ;;  %v10753_v17 = vpop.f32.mrb[37].mxu0 }
0x1492   :  { %v10754_v18 = vadd.f32 %v11726_v58, %v10753_v17  ;;  %13544 = vmatprep.mubr.msk.f32.mxu1 %vm1114_vm3, %v10806_v25 }
0x1493   :  { %13545 = vmatmul.mubr.msk.f32.gmra.mrb[222].mxu1 %vm1114_vm3, %v10807_v16  ;;  %v10809_v63 = vmax.f32 %v10759_v29, 0.0 }
0x1494   :  { %v10808_v59 = vmax.f32 %v10754_v18, 0.0  ;;  %v13526_v27 = vpop.f32.mrb[38].mxu0 }
0x1495   :  { %v10769_v52 = vadd.f32 %v13526_v27, %v11726_v58  ;;  %v10763_v56 = vpop.f32.mrb[39].mxu0 }
0x1496   :  { %v10764_v37 = vadd.f32 %v11726_v58, %v10763_v56  ;;  %13547 = vmatprep.mubr.msk.f32.mxu1 %vm1114_vm3, %v10808_v59 }
0x1497   :  { %13548 = vmatmul.mubr.msk.f32.gmra.mrb[224].mxu1 %vm1114_vm3, %v10809_v63  ;;  %v10811_v11 = vmax.f32 %v10769_v52, 0.0 }
0x1498   :  { %v10810_v2 = vmax.f32 %v10764_v37, 0.0  ;;  %v13529_v44 = vpop.f32.mrb[40].mxu0 }
0x1499   :  { %v10779_v21 = vadd.f32 %v13529_v44, %v11726_v58  ;;  %v10773_v34 = vpop.f32.mrb[41].mxu0 }
0x149a   :  { %v10774_v30 = vadd.f32 %v11726_v58, %v10773_v34  ;;  %13550 = vmatprep.mubr.msk.f32.mxu1 %vm1114_vm3, %v10810_v2 }
0x149b   :  { %13551 = vmatmul.mubr.msk.f32.gmra.mrb[226].mxu1 %vm1114_vm3, %v10811_v11  ;;  %v10813_v12 = vmax.f32 %v10779_v21, 0.0 }
0x149c   :  { %v10812_v28 = vmax.f32 %v10774_v30, 0.0  ;;  %v13532_v54 = vpop.f32.mrb[42].mxu0 }
0x149d   :  { %v10789_v36 = vadd.f32 %v13532_v54, %v11726_v58  ;;  %v10783_v41 = vpop.f32.mrb[43].mxu0 }
0x149e   :  { %v10784_v50 = vadd.f32 %v11726_v58, %v10783_v41  ;;  %13553 = vmatprep.mubr.msk.f32.mxu1 %vm1114_vm3, %v10812_v28 }
0x149f   :  { %13554 = vmatmul.mubr.msk.f32.gmra.mrb[228].mxu1 %vm1114_vm3, %v10813_v12  ;;  %v10815_v45 = vmax.f32 %v10789_v36, 0.0 }
0x14a0   :  { %v10814_v61 = vmax.f32 %v10784_v50, 0.0  ;;  %v13535_v6 = vpop.f32.mrb[44].mxu0 }
0x14a1   :  { %v10799_v24 = vadd.f32 %v13535_v6, %v11726_v58  ;;  %v10793_v4 = vpop.f32.mrb[45].mxu0 }
0x14a2   :  { %v10794_v1 = vadd.f32 %v11726_v58, %v10793_v4  ;;  %13556 = vmatprep.mubr.msk.f32.mxu1 %vm1114_vm3, %v10814_v61 }
0x14a3   :  { %13557 = vmatmul.mubr.msk.f32.gmra.mrb[230].mxu1 %vm1114_vm3, %v10815_v45  ;;  %v10817_v7 = vmax.f32 %v10799_v24, 0.0 }
0x14a4   :  { %v10816_v51 = vmax.f32 %v10794_v1, 0.0 }
0x14a6   :  { %13559 = vmatprep.mubr.msk.f32.mxu1 %vm1114_vm3, %v10816_v51 }
0x14a7   :  { %13560 = vmatmul.mubr.msk.f32.gmra.mrb[232].mxu1 %vm1114_vm3, %v10817_v7 }
0x155e   :  { %v13540_v47 = vpop.f32.mrb[218].mxu1 }
0x155f   :  { %v10946_v57 = vadd.f32 %v13540_v47, %v11743_v22  ;;  %v10940_v20 = vpop.f32.mrb[219].mxu1 }
0x1560   :  { %v10941_v13 = vadd.f32 %v11743_v22, %v10940_v20 }
0x1561   :  { %11020 = vst [vmem:[%s18725_s23 + $0x8] sm:$0xff] %v10946_v57 }
0x1562   :  { %11019 = vst [vmem:[%s18725_s23] sm:$0xff] %v10941_v13  ;;  %v13543_v55 = vpop.f32.mrb[220].mxu1 }
0x1563   :  { %v10956_v40 = vadd.f32 %v13543_v55, %v11743_v22  ;;  %v10950_v23 = vpop.f32.mrb[221].mxu1 }
0x1564   :  { %v10951_v32 = vadd.f32 %v11743_v22, %v10950_v23 }
0x1565   :  { %11022 = vst [vmem:[%s18725_s23 + $0x18] sm:$0xff] %v10956_v40 }
0x1566   :  { %11021 = vst [vmem:[%s18725_s23 + $0x10] sm:$0xff] %v10951_v32  ;;  %v13546_v60 = vpop.f32.mrb[222].mxu1 }
0x1567   :  { %v10966_v19 = vadd.f32 %v13546_v60, %v11743_v22  ;;  %v10960_v9 = vpop.f32.mrb[223].mxu1 }
0x1568   :  { %v10961_v8 = vadd.f32 %v11743_v22, %v10960_v9 }
0x1569   :  { %11024 = vst [vmem:[%s18725_s23 + $0x28] sm:$0xff] %v10966_v19 }
0x156a   :  { %11023 = vst [vmem:[%s18725_s23 + $0x20] sm:$0xff] %v10961_v8  ;;  %v13549_v26 = vpop.f32.mrb[224].mxu1 }
0x156b   :  { %v10976_v42 = vadd.f32 %v13549_v26, %v11743_v22  ;;  %v10970_v58 = vpop.f32.mrb[225].mxu1 }
0x156c   :  { %v10971_v48 = vadd.f32 %v11743_v22, %v10970_v58 }
0x156d   :  { %11026 = vst [vmem:[%s18725_s23 + $0x38] sm:$0xff] %v10976_v42 }
0x156e   :  { %11025 = vst [vmem:[%s18725_s23 + $0x30] sm:$0xff] %v10971_v48  ;;  %v13552_v0 = vpop.f32.mrb[226].mxu1 }
0x156f   :  { %v10986_v31 = vadd.f32 %v13552_v0, %v11743_v22  ;;  %v10980_v3 = vpop.f32.mrb[227].mxu1 }
0x1570   :  { %v10981_v10 = vadd.f32 %v11743_v22, %v10980_v3 }
0x1571   :  { %11028 = vst [vmem:[%s18725_s23 + $0x48] sm:$0xff] %v10986_v31 }
0x1572   :  { %11027 = vst [vmem:[%s18725_s23 + $0x40] sm:$0xff] %v10981_v10  ;;  %v13555_v39 = vpop.f32.mrb[228].mxu1 }
0x1573   :  { %v10996_v62 = vadd.f32 %v13555_v39, %v11743_v22  ;;  %v10990_v5 = vpop.f32.mrb[229].mxu1 }
0x1574   :  { %v10991_v14 = vadd.f32 %v11743_v22, %v10990_v5 }
0x1575   :  { %11030 = vst [vmem:[%s18725_s23 + $0x58] sm:$0xff] %v10996_v62 }
0x1576   :  { %11029 = vst [vmem:[%s18725_s23 + $0x50] sm:$0xff] %v10991_v14  ;;  %v13558_v46 = vpop.f32.mrb[230].mxu1 }
0x1577   :  { %v11006_v49 = vadd.f32 %v13558_v46, %v11743_v22  ;;  %v11000_v35 = vpop.f32.mrb[231].mxu1 }
0x1578   :  { %v11001_v38 = vadd.f32 %v11743_v22, %v11000_v35 }
0x1579   :  { %11032 = vst [vmem:[%s18725_s23 + $0x68] sm:$0xff] %v11006_v49 }
0x157a   :  { %11031 = vst [vmem:[%s18725_s23 + $0x60] sm:$0xff] %v11001_v38  ;;  %v13561_v43 = vpop.f32.mrb[232].mxu1 }
0x157b   :  { %v11016_v53 = vadd.f32 %v13561_v43, %v11743_v22  ;;  %v11010_v15 = vpop.f32.mrb[233].mxu1 }
0x157c   :  { %v11011_v25 = vadd.f32 %v11743_v22, %v11010_v15 }
0x157d   :  { %11034 = vst [vmem:[%s18725_s23 + $0x78] sm:$0xff] %v11016_v53 }
0x157e   :  { %11033 = vst [vmem:[%s18725_s23 + $0x70] sm:$0xff] %v11011_v25 }

</bundles_post_ra>
